<compile_context>
chip_gen: v6e
topology: v6e:2x2x1
jax: 0.10.0
libtpu: 0.0.40
codegen_flags: <defaults>
</compile_context>

<pallas_src>
import functools

import jax
import jax.numpy as jnp
from jax.experimental import pallas as pl
from jax.experimental.pallas import tpu as pltpu

NEG_SLOPE = 0.01          # F.leaky_relu default negative_slope
BN_EPS = 1e-5             # nn.BatchNorm1d default eps
HIDDEN_SIZES = [1500, 1250, 1000, 750]
WEIGHT_DTYPE = jnp.bfloat16   # set to jnp.float32 for bit-faithful numerics


def _round_up(n, m):
    return (n + m - 1) // m * m


# --------------------------- fused Pallas kernel ----------------------------

def _make_kernel(np_list):
    """Build the fused 5-layer kernel for the given padded output widths."""
    n_layers = len(np_list)
    offs = [0]
    for n in np_list:
        offs.append(offs[-1] + n)

    def kernel(x_ref, bias_ref,               # VMEM inputs
               w1_hbm, w2_hbm, w3_hbm, w4_hbm, w5_hbm,   # HBM (pl.ANY) inputs
               o_ref,                          # VMEM output
               w1_buf, w2_buf, w3_buf, w4_buf, w5_buf,    # VMEM scratch
               sems):                          # DMA semaphores
        w_hbm = (w1_hbm, w2_hbm, w3_hbm, w4_hbm, w5_hbm)
        w_buf = (w1_buf, w2_buf, w3_buf, w4_buf, w5_buf)

        # Kick off ALL weight DMAs immediately so HBM streaming of later layers
        # overlaps with the matmuls of earlier layers.
        copies = []
        for i in range(n_layers):
            cp = pltpu.make_async_copy(w_hbm[i], w_buf[i], sems.at[i])
            cp.start()
            copies.append(cp)

        h = x_ref[...]                                    # f32 activation
        for i in range(n_layers):
            copies[i].wait()                              # weight i resident
            w = w_buf[i][...]                             # bf16 (or f32) tile
            h_in = h.astype(w.dtype)                      # native MXU dtype
            b = bias_ref[:, pl.ds(offs[i], np_list[i])]   # (1, Np_i) f32
            h = jnp.dot(h_in, w, preferred_element_type=jnp.float32) + b
            if i < n_layers - 1:
                h = jnp.maximum(h, NEG_SLOPE * h)         # leaky_relu
        o_ref[...] = h

    return kernel


@functools.partial(jax.jit, static_argnums=(2, 3))
def _forward_padded(prepared, x, num_features, num_targets):
    ws = prepared["ws"]
    bias_cat = prepared["bias_cat"]
    B = x.shape[0]
    Bp = _round_up(max(B, 8), 8)
    Kp0 = ws[0].shape[0]
    np_list = tuple(int(w.shape[1]) for w in ws)
    Np_last = np_list[-1]

    # Only the (tiny) activation is padded per call; weights are pre-padded.
    xp = jnp.zeros((Bp, Kp0), jnp.float32).at[:B, :num_features].set(x)

    kernel = _make_kernel(np_list)
    vmem = pl.BlockSpec(memory_space=pltpu.MemorySpace.VMEM)
    hbm = pl.BlockSpec(memory_space=pl.ANY)

    out = pl.pallas_call(
        kernel,
        out_shape=jax.ShapeDtypeStruct((Bp, Np_last), jnp.float32),
        in_specs=[vmem, vmem] + [hbm] * len(ws),
        out_specs=vmem,
        scratch_shapes=[pltpu.VMEM(w.shape, w.dtype) for w in ws]
                       + [pltpu.SemaphoreType.DMA((len(ws),))],
        compiler_params=pltpu.CompilerParams(
            # ~8 MiB of bf16 weights + small activations; stays well under
            # v7x's 64 MiB physical VMEM while leaving room for XLA fusions.
            vmem_limit_bytes=28 << 20,
        ),
    )(xp, bias_cat, *ws)
    return out[:B, :num_targets]


def model_forward(prepared_params, x, num_features, num_targets):
    """Pallas forward pass (eval mode; dropout = identity)."""
    return _forward_padded(prepared_params, x, num_features, num_targets)


# ------------------------- parameter construction ---------------------------

def init_raw_params(key, num_features, num_targets):
    """Torch-like raw parameters (BN stats + linear weights + weight_norm)."""
    dims = [num_features] + HIDDEN_SIZES
    params = {}
    keys = iter(jax.random.split(key, 40))

    # BatchNorm layers (5), sized [num_features, 1500, 1250, 1000, 750]
    for li, d in enumerate([num_features] + HIDDEN_SIZES, start=1):
        gamma = 1.0 + 0.1 * jax.random.normal(next(keys), (d,), jnp.float32)
        beta = 0.1 * jax.random.normal(next(keys), (d,), jnp.float32)
        rmean = 0.1 * jax.random.normal(next(keys), (d,), jnp.float32)
        rvar = 1.0 + 0.1 * jax.random.uniform(next(keys), (d,), jnp.float32)
        params[f"bn{li}"] = (gamma, beta, rmean, rvar)

    # Dense 1..4, torch layout (out, in)
    for li in range(4):
        fan_in, fan_out = dims[li], dims[li + 1]
        w = jax.random.normal(next(keys), (fan_out, fan_in), jnp.float32) / jnp.sqrt(fan_in)
        b = 0.01 * jax.random.normal(next(keys), (fan_out,), jnp.float32)
        params[f"dense{li + 1}"] = (w, b)

    # Dense 5 with weight_norm (dim=0): weight = g * v / ||v||_row
    fan_in, fan_out = HIDDEN_SIZES[-1], num_targets
    v = jax.random.normal(next(keys), (fan_out, fan_in), jnp.float32) / jnp.sqrt(fan_in)
    g = 0.5 + jax.random.uniform(next(keys), (fan_out, 1), jnp.float32)
    w5 = g * v / jnp.sqrt(jnp.sum(v * v, axis=1, keepdims=True))
    b5 = 0.01 * jax.random.normal(next(keys), (fan_out,), jnp.float32)
    params["dense5"] = (w5, b5)
    return params


def prepare_params(raw, num_features, num_targets, weight_dtype=WEIGHT_DTYPE):
    """Fold eval-mode BatchNorm into the linears, transpose to (in, out),
    zero-pad (K to 16 for layer 1, N to 128), cast weights to `weight_dtype`
    and concatenate biases — all ONCE, not per forward call."""
    in_dims = [num_features] + HIDDEN_SIZES
    out_dims = HIDDEN_SIZES + [num_targets]
    np_pad = [_round_up(d, 128) for d in out_dims]
    # Layer-1 K only needs the bf16 sublane tile (16); later K's must equal the
    # previous layer's 128-padded N.
    kp_pad = [_round_up(max(num_features, 16), 16)] + np_pad[:-1]

    ws, bias_parts = [], []
    for i in range(5):
        gamma, beta, rmean, rvar = raw[f"bn{i + 1}"]
        scale = gamma / jnp.sqrt(rvar + BN_EPS)
        shift = beta - rmean * scale
        w, b = raw[f"dense{i + 1}"]           # torch layout (out, in)
        wt = w.T                               # (in, out)
        w_fold = scale[:, None] * wt           # absorb BN scale into rows of W
        b_fold = shift @ wt + b                # absorb BN shift into bias

        Kp, Np = kp_pad[i], np_pad[i]
        wp = (jnp.zeros((Kp, Np), jnp.float32)
              .at[:in_dims[i], :out_dims[i]].set(w_fold)
              .astype(weight_dtype))
        bp = jnp.zeros((Np,), jnp.float32).at[:out_dims[i]].set(b_fold)
        ws.append(wp)
        bias_parts.append(bp)

    bias_cat = jnp.concatenate(bias_parts)[None, :]   # (1, sum(Np)) f32
    return {"ws": tuple(ws), "bias_cat": bias_cat}


# ------------------------------ pure-JAX refs --------------------------------

def model_forward_ref(raw, x):
    """Literal f32 translation of the PyTorch module (eval mode)."""
    h = x
    for i in range(1, 6):
        gamma, beta, rmean, rvar = raw[f"bn{i}"]
        h = (h - rmean) / jnp.sqrt(rvar + BN_EPS) * gamma + beta   # BatchNorm1d (eval)
        # dropout_i: identity in eval mode
        w, b = raw[f"dense{i}"]
        h = jnp.dot(h, w.T, precision=jax.lax.Precision.HIGHEST) + b
        if i < 5:
            h = jnp.where(h >= 0.0, h, NEG_SLOPE * h)              # leaky_relu
    return h


def model_forward_prepared_ref(prepared, x, num_features, num_targets):
    """Same quantization/padding semantics as the kernel, in pure JAX."""
    ws = prepared["ws"]
    bias = prepared["bias_cat"][0]
    B = x.shape[0]
    h = jnp.zeros((B, ws[0].shape[0]), jnp.float32).at[:, :num_features].set(x)
    off = 0
    for i, w in enumerate(ws):
        Np = w.shape[1]
        h = jnp.dot(h.astype(w.dtype), w,
                    preferred_element_type=jnp.float32) + bias[off:off + Np]
        if i < len(ws) - 1:
            h = jnp.maximum(h, NEG_SLOPE * h)
        off += Np
    return h[:, :num_targets]


if __name__ == "__main__":
    num_features, num_targets, batch = 32, 16, 8

    key = jax.random.PRNGKey(0)
    kp, kx = jax.random.split(key)
    raw = init_raw_params(kp, num_features, num_targets)
    prepared = prepare_params(raw, num_features, num_targets)
    x = jax.random.normal(kx, (batch, num_features), jnp.float32)

    out = model_forward(prepared, x, num_features, num_targets)
    out = jax.block_until_ready(out)
    assert out.shape == (batch, num_targets), out.shape

    # Tight check: kernel vs. a pure-JAX reference with identical bf16-weight
    # semantics (validates the Pallas mechanics).
    ref_q = model_forward_prepared_ref(prepared, x, num_features, num_targets)
    err_q = float(jnp.max(jnp.abs(out - ref_q)))
    assert jnp.allclose(out, ref_q, rtol=5e-3, atol=5e-3), err_q

    # Loose check: kernel vs. the literal f32 PyTorch translation (quantization
    # of the weights to bf16 is the only source of difference).
    ref_f32 = model_forward_ref(raw, x)
    err_f32 = float(jnp.max(jnp.abs(out - ref_f32)))
    assert jnp.allclose(out, ref_f32, rtol=5e-2, atol=5e-2), err_f32

    print("KERNEL_OK")
</pallas_src>

<mosaic_0001>
module attributes {stable_mosaic.version = 11 : i64} {
  func.func @kernel(%arg0: memref<8x32xf32, #tpu.memory_space<vmem>>, %arg1: memref<1x4736xf32, #tpu.memory_space<vmem>>, %arg2: memref<32x1536xbf16, #tpu.memory_space<any>>, %arg3: memref<1536x1280xbf16, #tpu.memory_space<any>>, %arg4: memref<1280x1024xbf16, #tpu.memory_space<any>>, %arg5: memref<1024x768xbf16, #tpu.memory_space<any>>, %arg6: memref<768x128xbf16, #tpu.memory_space<any>>, %arg7: memref<8x128xf32, #tpu.memory_space<vmem>>, %arg8: memref<32x1536xbf16, #tpu.memory_space<vmem>>, %arg9: memref<1536x1280xbf16, #tpu.memory_space<vmem>>, %arg10: memref<1280x1024xbf16, #tpu.memory_space<vmem>>, %arg11: memref<1024x768xbf16, #tpu.memory_space<vmem>>, %arg12: memref<768x128xbf16, #tpu.memory_space<vmem>>, %arg13: memref<5x!tpu.dma_semaphore, #tpu.memory_space<semaphore_mem>>) attributes {dimension_semantics = [], scalar_prefetch = 0 : i64, scratch_operands = 6 : i64, tpu.core_type = #tpu.core_type<tc>} {
    %c0_i32 = arith.constant 0 : i32
    %0 = tpu.memref_slice %arg13[%c0_i32] : memref<5x!tpu.dma_semaphore, #tpu.memory_space<semaphore_mem>> -> memref<1x!tpu.dma_semaphore, #tpu.memory_space<semaphore_mem>>
    %1 = tpu.memref_squeeze %0 : memref<1x!tpu.dma_semaphore, #tpu.memory_space<semaphore_mem>> -> memref<!tpu.dma_semaphore, #tpu.memory_space<semaphore_mem>>
    tpu.enqueue_dma source(%arg2 : memref<32x1536xbf16, #tpu.memory_space<any>>) target(%arg8 : memref<32x1536xbf16, #tpu.memory_space<vmem>>) target_semaphore(%1 : memref<!tpu.dma_semaphore, #tpu.memory_space<semaphore_mem>>)
    %c1_i32 = arith.constant 1 : i32
    %2 = tpu.memref_slice %arg13[%c1_i32] : memref<5x!tpu.dma_semaphore, #tpu.memory_space<semaphore_mem>> -> memref<1x!tpu.dma_semaphore, #tpu.memory_space<semaphore_mem>>
    %3 = tpu.memref_squeeze %2 : memref<1x!tpu.dma_semaphore, #tpu.memory_space<semaphore_mem>> -> memref<!tpu.dma_semaphore, #tpu.memory_space<semaphore_mem>>
    tpu.enqueue_dma source(%arg3 : memref<1536x1280xbf16, #tpu.memory_space<any>>) target(%arg9 : memref<1536x1280xbf16, #tpu.memory_space<vmem>>) target_semaphore(%3 : memref<!tpu.dma_semaphore, #tpu.memory_space<semaphore_mem>>)
    %c2_i32 = arith.constant 2 : i32
    %4 = tpu.memref_slice %arg13[%c2_i32] : memref<5x!tpu.dma_semaphore, #tpu.memory_space<semaphore_mem>> -> memref<1x!tpu.dma_semaphore, #tpu.memory_space<semaphore_mem>>
    %5 = tpu.memref_squeeze %4 : memref<1x!tpu.dma_semaphore, #tpu.memory_space<semaphore_mem>> -> memref<!tpu.dma_semaphore, #tpu.memory_space<semaphore_mem>>
    tpu.enqueue_dma source(%arg4 : memref<1280x1024xbf16, #tpu.memory_space<any>>) target(%arg10 : memref<1280x1024xbf16, #tpu.memory_space<vmem>>) target_semaphore(%5 : memref<!tpu.dma_semaphore, #tpu.memory_space<semaphore_mem>>)
    %c3_i32 = arith.constant 3 : i32
    %6 = tpu.memref_slice %arg13[%c3_i32] : memref<5x!tpu.dma_semaphore, #tpu.memory_space<semaphore_mem>> -> memref<1x!tpu.dma_semaphore, #tpu.memory_space<semaphore_mem>>
    %7 = tpu.memref_squeeze %6 : memref<1x!tpu.dma_semaphore, #tpu.memory_space<semaphore_mem>> -> memref<!tpu.dma_semaphore, #tpu.memory_space<semaphore_mem>>
    tpu.enqueue_dma source(%arg5 : memref<1024x768xbf16, #tpu.memory_space<any>>) target(%arg11 : memref<1024x768xbf16, #tpu.memory_space<vmem>>) target_semaphore(%7 : memref<!tpu.dma_semaphore, #tpu.memory_space<semaphore_mem>>)
    %c4_i32 = arith.constant 4 : i32
    %8 = tpu.memref_slice %arg13[%c4_i32] : memref<5x!tpu.dma_semaphore, #tpu.memory_space<semaphore_mem>> -> memref<1x!tpu.dma_semaphore, #tpu.memory_space<semaphore_mem>>
    %9 = tpu.memref_squeeze %8 : memref<1x!tpu.dma_semaphore, #tpu.memory_space<semaphore_mem>> -> memref<!tpu.dma_semaphore, #tpu.memory_space<semaphore_mem>>
    tpu.enqueue_dma source(%arg6 : memref<768x128xbf16, #tpu.memory_space<any>>) target(%arg12 : memref<768x128xbf16, #tpu.memory_space<vmem>>) target_semaphore(%9 : memref<!tpu.dma_semaphore, #tpu.memory_space<semaphore_mem>>)
    %c0 = arith.constant 0 : index
    %c0_0 = arith.constant 0 : index
    %10 = vector.load %arg0[%c0, %c0_0] : memref<8x32xf32, #tpu.memory_space<vmem>>, vector<8x32xf32>
    %c0_i32_1 = arith.constant 0 : i32
    %11 = tpu.memref_slice %arg13[%c0_i32_1] : memref<5x!tpu.dma_semaphore, #tpu.memory_space<semaphore_mem>> -> memref<1x!tpu.dma_semaphore, #tpu.memory_space<semaphore_mem>>
    %12 = tpu.memref_squeeze %11 : memref<1x!tpu.dma_semaphore, #tpu.memory_space<semaphore_mem>> -> memref<!tpu.dma_semaphore, #tpu.memory_space<semaphore_mem>>
    tpu.wait_dma2 semaphore(%12 : memref<!tpu.dma_semaphore, #tpu.memory_space<semaphore_mem>>) src(%arg2 : memref<32x1536xbf16, #tpu.memory_space<any>>) dst(%arg8 : memref<32x1536xbf16, #tpu.memory_space<vmem>>)
    %c0_2 = arith.constant 0 : index
    %c0_3 = arith.constant 0 : index
    %13 = vector.load %arg8[%c0_2, %c0_3] : memref<32x1536xbf16, #tpu.memory_space<vmem>>, vector<32x1536xbf16>
    %14 = arith.truncf %10 : vector<8x32xf32> to vector<8x32xbf16>
    %c0_4 = arith.constant 0 : index
    %c0_5 = arith.constant 0 : index
    %15 = vector.load %arg1[%c0_4, %c0_5] : memref<1x4736xf32, #tpu.memory_space<vmem>>, vector<1x1536xf32>
    %cst = arith.constant dense<0.000000e+00> : vector<8x1536xf32>
    %16 = tpu.matmul %14, %13, %cst {dimension_numbers = #tpu.dot_dimension_numbers<[1], [0], [0], [1], [0, 0, 1, 1], [], []>} : vector<8x32xbf16>, vector<32x1536xbf16>, vector<8x1536xf32> -> vector<8x1536xf32>
    %17 = vector.broadcast %15 : vector<1x1536xf32> to vector<8x1536xf32>
    %18 = arith.addf %16, %17 : vector<8x1536xf32>
    %cst_6 = arith.constant 0.00999999977 : f32
    %19 = vector.broadcast %cst_6 : f32 to vector<8x1536xf32>
    %20 = arith.mulf %19, %18 : vector<8x1536xf32>
    %21 = arith.maximumf %18, %20 : vector<8x1536xf32>
    %c1_i32_7 = arith.constant 1 : i32
    %22 = tpu.memref_slice %arg13[%c1_i32_7] : memref<5x!tpu.dma_semaphore, #tpu.memory_space<semaphore_mem>> -> memref<1x!tpu.dma_semaphore, #tpu.memory_space<semaphore_mem>>
    %23 = tpu.memref_squeeze %22 : memref<1x!tpu.dma_semaphore, #tpu.memory_space<semaphore_mem>> -> memref<!tpu.dma_semaphore, #tpu.memory_space<semaphore_mem>>
    tpu.wait_dma2 semaphore(%23 : memref<!tpu.dma_semaphore, #tpu.memory_space<semaphore_mem>>) src(%arg3 : memref<1536x1280xbf16, #tpu.memory_space<any>>) dst(%arg9 : memref<1536x1280xbf16, #tpu.memory_space<vmem>>)
    %c0_8 = arith.constant 0 : index
    %c0_9 = arith.constant 0 : index
    %24 = vector.load %arg9[%c0_8, %c0_9] : memref<1536x1280xbf16, #tpu.memory_space<vmem>>, vector<1536x1280xbf16>
    %25 = arith.truncf %21 : vector<8x1536xf32> to vector<8x1536xbf16>
    %c0_10 = arith.constant 0 : index
    %c1536 = arith.constant 1536 : index
    %26 = vector.load %arg1[%c0_10, %c1536] : memref<1x4736xf32, #tpu.memory_space<vmem>>, vector<1x1280xf32>
    %cst_11 = arith.constant dense<0.000000e+00> : vector<8x1280xf32>
    %27 = tpu.matmul %25, %24, %cst_11 {dimension_numbers = #tpu.dot_dimension_numbers<[1], [0], [0], [1], [0, 0, 1, 1], [], []>} : vector<8x1536xbf16>, vector<1536x1280xbf16>, vector<8x1280xf32> -> vector<8x1280xf32>
    %28 = vector.broadcast %26 : vector<1x1280xf32> to vector<8x1280xf32>
    %29 = arith.addf %27, %28 : vector<8x1280xf32>
    %cst_12 = arith.constant 0.00999999977 : f32
    %30 = vector.broadcast %cst_12 : f32 to vector<8x1280xf32>
    %31 = arith.mulf %30, %29 : vector<8x1280xf32>
    %32 = arith.maximumf %29, %31 : vector<8x1280xf32>
    %c2_i32_13 = arith.constant 2 : i32
    %33 = tpu.memref_slice %arg13[%c2_i32_13] : memref<5x!tpu.dma_semaphore, #tpu.memory_space<semaphore_mem>> -> memref<1x!tpu.dma_semaphore, #tpu.memory_space<semaphore_mem>>
    %34 = tpu.memref_squeeze %33 : memref<1x!tpu.dma_semaphore, #tpu.memory_space<semaphore_mem>> -> memref<!tpu.dma_semaphore, #tpu.memory_space<semaphore_mem>>
    tpu.wait_dma2 semaphore(%34 : memref<!tpu.dma_semaphore, #tpu.memory_space<semaphore_mem>>) src(%arg4 : memref<1280x1024xbf16, #tpu.memory_space<any>>) dst(%arg10 : memref<1280x1024xbf16, #tpu.memory_space<vmem>>)
    %c0_14 = arith.constant 0 : index
    %c0_15 = arith.constant 0 : index
    %35 = vector.load %arg10[%c0_14, %c0_15] : memref<1280x1024xbf16, #tpu.memory_space<vmem>>, vector<1280x1024xbf16>
    %36 = arith.truncf %32 : vector<8x1280xf32> to vector<8x1280xbf16>
    %c0_16 = arith.constant 0 : index
    %c2816 = arith.constant 2816 : index
    %37 = vector.load %arg1[%c0_16, %c2816] : memref<1x4736xf32, #tpu.memory_space<vmem>>, vector<1x1024xf32>
    %cst_17 = arith.constant dense<0.000000e+00> : vector<8x1024xf32>
    %38 = tpu.matmul %36, %35, %cst_17 {dimension_numbers = #tpu.dot_dimension_numbers<[1], [0], [0], [1], [0, 0, 1, 1], [], []>} : vector<8x1280xbf16>, vector<1280x1024xbf16>, vector<8x1024xf32> -> vector<8x1024xf32>
    %39 = vector.broadcast %37 : vector<1x1024xf32> to vector<8x1024xf32>
    %40 = arith.addf %38, %39 : vector<8x1024xf32>
    %cst_18 = arith.constant 0.00999999977 : f32
    %41 = vector.broadcast %cst_18 : f32 to vector<8x1024xf32>
    %42 = arith.mulf %41, %40 : vector<8x1024xf32>
    %43 = arith.maximumf %40, %42 : vector<8x1024xf32>
    %c3_i32_19 = arith.constant 3 : i32
    %44 = tpu.memref_slice %arg13[%c3_i32_19] : memref<5x!tpu.dma_semaphore, #tpu.memory_space<semaphore_mem>> -> memref<1x!tpu.dma_semaphore, #tpu.memory_space<semaphore_mem>>
    %45 = tpu.memref_squeeze %44 : memref<1x!tpu.dma_semaphore, #tpu.memory_space<semaphore_mem>> -> memref<!tpu.dma_semaphore, #tpu.memory_space<semaphore_mem>>
    tpu.wait_dma2 semaphore(%45 : memref<!tpu.dma_semaphore, #tpu.memory_space<semaphore_mem>>) src(%arg5 : memref<1024x768xbf16, #tpu.memory_space<any>>) dst(%arg11 : memref<1024x768xbf16, #tpu.memory_space<vmem>>)
    %c0_20 = arith.constant 0 : index
    %c0_21 = arith.constant 0 : index
    %46 = vector.load %arg11[%c0_20, %c0_21] : memref<1024x768xbf16, #tpu.memory_space<vmem>>, vector<1024x768xbf16>
    %47 = arith.truncf %43 : vector<8x1024xf32> to vector<8x1024xbf16>
    %c0_22 = arith.constant 0 : index
    %c3840 = arith.constant 3840 : index
    %48 = vector.load %arg1[%c0_22, %c3840] : memref<1x4736xf32, #tpu.memory_space<vmem>>, vector<1x768xf32>
    %cst_23 = arith.constant dense<0.000000e+00> : vector<8x768xf32>
    %49 = tpu.matmul %47, %46, %cst_23 {dimension_numbers = #tpu.dot_dimension_numbers<[1], [0], [0], [1], [0, 0, 1, 1], [], []>} : vector<8x1024xbf16>, vector<1024x768xbf16>, vector<8x768xf32> -> vector<8x768xf32>
    %50 = vector.broadcast %48 : vector<1x768xf32> to vector<8x768xf32>
    %51 = arith.addf %49, %50 : vector<8x768xf32>
    %cst_24 = arith.constant 0.00999999977 : f32
    %52 = vector.broadcast %cst_24 : f32 to vector<8x768xf32>
    %53 = arith.mulf %52, %51 : vector<8x768xf32>
    %54 = arith.maximumf %51, %53 : vector<8x768xf32>
    %c4_i32_25 = arith.constant 4 : i32
    %55 = tpu.memref_slice %arg13[%c4_i32_25] : memref<5x!tpu.dma_semaphore, #tpu.memory_space<semaphore_mem>> -> memref<1x!tpu.dma_semaphore, #tpu.memory_space<semaphore_mem>>
    %56 = tpu.memref_squeeze %55 : memref<1x!tpu.dma_semaphore, #tpu.memory_space<semaphore_mem>> -> memref<!tpu.dma_semaphore, #tpu.memory_space<semaphore_mem>>
    tpu.wait_dma2 semaphore(%56 : memref<!tpu.dma_semaphore, #tpu.memory_space<semaphore_mem>>) src(%arg6 : memref<768x128xbf16, #tpu.memory_space<any>>) dst(%arg12 : memref<768x128xbf16, #tpu.memory_space<vmem>>)
    %c0_26 = arith.constant 0 : index
    %c0_27 = arith.constant 0 : index
    %57 = vector.load %arg12[%c0_26, %c0_27] : memref<768x128xbf16, #tpu.memory_space<vmem>>, vector<768x128xbf16>
    %58 = arith.truncf %54 : vector<8x768xf32> to vector<8x768xbf16>
    %c0_28 = arith.constant 0 : index
    %c4608 = arith.constant 4608 : index
    %59 = vector.load %arg1[%c0_28, %c4608] : memref<1x4736xf32, #tpu.memory_space<vmem>>, vector<1x128xf32>
    %cst_29 = arith.constant dense<0.000000e+00> : vector<8x128xf32>
    %60 = tpu.matmul %58, %57, %cst_29 {dimension_numbers = #tpu.dot_dimension_numbers<[1], [0], [0], [1], [0, 0, 1, 1], [], []>} : vector<8x768xbf16>, vector<768x128xbf16>, vector<8x128xf32> -> vector<8x128xf32>
    %61 = vector.broadcast %59 : vector<1x128xf32> to vector<8x128xf32>
    %62 = arith.addf %60, %61 : vector<8x128xf32>
    %c0_30 = arith.constant 0 : index
    %c0_31 = arith.constant 0 : index
    %63 = vector.load %arg7[%c0_30, %c0_31] : memref<8x128xf32, #tpu.memory_space<vmem>>, vector<8x128xf32>
    tpu.vector_store %arg7[%c0_30, %c0_31], %62 {strides = array<i32>} : memref<8x128xf32, #tpu.memory_space<vmem>>, vector<8x128xf32>,
    return
  }
}

</mosaic_0001>

<bundles_post_ra>
// kernel: _forward_padded.1
= control target key start
LH: loop header
LB: loop body
LE: loop exit
PB: predicated region body
PF: predicated region fallthrough
CT: control target
= control target key end

     0   :  { %12 = vsyncpa [#allocation9], 0  ;;  %s20819_s0 = inlined_call_operand.hbm [shape: f32[8,32], index: 0, kind: input, shape index: {}]   ;;  %s20820_s1 = inlined_call_operand.hbm [shape: f32[1,4736], index: 1, kind: input, shape index: {}]   ;;  %s20821_s2 = inlined_call_operand.hbm [shape: bf16[32,1536], index: 2, kind: input, shape index: {}]   ;;  %s20822_s3 = inlined_call_operand.hbm [shape: bf16[1536,1280], index: 3, kind: input, shape index: {}]   ;;  %s20823_s4 = inlined_call_operand.hbm [shape: bf16[1280,1024], index: 4, kind: input, shape index: {}]   ;;  %s20824_s5 = inlined_call_operand.hbm [shape: bf16[1024,768], index: 5, kind: input, shape index: {}]   ;;  %s20825_s6 = inlined_call_operand.hbm [shape: bf16[768,128], index: 6, kind: input, shape index: {}]   ;;  %s20826_s7 = inlined_call_operand.hbm [shape: f32[8,128], index: 7, kind: output, shape index: {}]  }
   0x1   :  { %13 = vsyncpa [#allocation12], 0 }
   0x2   :  { %14 = vsyncpa [#allocation10], 0  ;;  %s20248_s24 = smov [#allocation8]   ;;  %s20249_s26 = smov [#allocation11]  }
   0x3   :  { %s21_s25 = sshll.u32 %s20248_s24, 4  ;;  %s31_s27 = sshll.u32 %s20249_s26, 4  ;;  %s22_s25 = int_to_ptr.vmem [resolvable:$true] %s21_s25  ;;  %s32_s27 = int_to_ptr.vmem [resolvable:$true] %s31_s27 }
   0x4   :  { %s20080_s28 = scalar_lea.vmem %s22_s25, 128  ;;  %p20085_p1 = scmp.lt.s32.totalorder %s22_s25, %s22_s25 }
   0x5   :  { %p20081_p0 = scmp.ne.s32.totalorder %s22_s25, %s20080_s28  ;;  %p20086_p2 = scmp.lt.s32.totalorder %s20080_s28, %s20080_s28 }
   0x7   :  { %p20087_p3 = por %p20086_p2, %p20085_p1 }
   0x9   :  { %p20088_p4 = pnand %p20087_p3, %p20081_p0 }
   0xb   :  { %20091 = shalt.err (!%p20088_p4)
}
   0xc   :  { %24 = dma.hbm_to_vmem [thread:$0]  %s20819_s0, 128, %s22_s25, [#allocation9]  }
   0xd   :  { %s20100_s8 = scalar_lea.vmem %s32_s27, 592  ;;  %s20104_s9 = scalar_lea.vmem %s32_s27, 608 }
   0xe   :  { %p20101_p5 = scmp.ne.s32.totalorder %s32_s27, %s20100_s8  ;;  %p20105_p6 = scmp.lt.s32.totalorder %s32_s27, %s32_s27 }
   0xf   :  { %p20106_p7 = scmp.lt.s32.totalorder %s20104_s9, %s20100_s8 }
  0x11   :  { %p20107_p8 = por %p20106_p7, %p20105_p6 }
  0x13   :  { %p20108_p9 = pnand %p20107_p8, %p20101_p5 }
  0x15   :  { %20111 = shalt.err (!%p20108_p9)
}
  0x16   :  { %34 = dma.hbm_to_vmem [thread:$0]  %s20820_s1, 592, %s32_s27, [#allocation12]  }
  0x17   :  { %20232 = dma.done.wait [#allocation9], 128  }
  0x18   :  { %20233 = vsyncadd [#allocation9], 4294967168 }
  0x19   :  { %20234 = dma.done.wait [#allocation12], 592  }
  0x1a   :  { %20235 = vsyncadd [#allocation12], 4294966704  ;;  %s20250_s12 = smov [#allocation2]   ;;  %s20251_s14 = smov [#allocation3]  }
  0x1b   :  { %s49_s13 = sshll.u32 %s20250_s12, 4  ;;  %s61_s0 = sshll.u32 %s20251_s14, 4  ;;  %s50_s13 = int_to_ptr.vmem [resolvable:$true] %s49_s13  ;;  %s62_s0 = int_to_ptr.vmem [resolvable:$true] %s61_s0 }
  0x1c   :  { %s20120_s15 = scalar_lea.vmem %s50_s13, 3072  ;;  %p20125_p11 = scmp.lt.s32.totalorder %s50_s13, %s50_s13 }
  0x1d   :  { %p20121_p10 = scmp.ne.s32.totalorder %s50_s13, %s20120_s15  ;;  %p20126_p12 = scmp.lt.s32.totalorder %s20120_s15, %s20120_s15 }
  0x1f   :  { %p20127_p13 = por %p20126_p12, %p20125_p11 }
  0x21   :  { %p20128_p0 = pnand %p20127_p13, %p20121_p10 }
  0x23   :  { %20131 = shalt.err (!%p20128_p0)  }
  0x24   :  { %52 = dma.hbm_to_vmem [thread:$0]  %s20821_s2, 3072, %s50_s13, [#allocation7] }
  0x25   :  { %s20140_s1 = scalar_lea.vmem %s62_s0, 122880  ;;  %p20145_p2 = scmp.lt.s32.totalorder %s62_s0, %s62_s0 }
  0x26   :  { %p20141_p1 = scmp.ne.s32.totalorder %s62_s0, %s20140_s1  ;;  %p20146_p3 = scmp.lt.s32.totalorder %s20140_s1, %s20140_s1 }
  0x28   :  { %p20147_p4 = por %p20146_p3, %p20145_p2 }
  0x2a   :  { %p20148_p5 = pnand %p20147_p4, %p20141_p1 }
  0x2c   :  { %20151 = shalt.err (!%p20148_p5)  }
  0x2d   :  { %64 = dma.hbm_to_vmem [thread:$0]  %s20822_s3, 122880, %s62_s0, [#allocation7 + $0x1]  ;;  %v101_v0 = vld [vmem:[#allocation8] sm:$0xff] }
  0x2e   :  { %s20252_s20 = smov [#allocation4]   ;;  %s20253_s22 = smov [#allocation5]  }
  0x2f   :  { %s73_s21 = sshll.u32 %s20252_s20, 4  ;;  %s85_s23 = sshll.u32 %s20253_s22, 4  ;;  %s74_s21 = int_to_ptr.vmem [resolvable:$true] %s73_s21  ;;  %s86_s23 = int_to_ptr.vmem [resolvable:$true] %s85_s23 }
  0x30   :  { %s20160_s24 = scalar_lea.vmem %s74_s21, 81920  ;;  %p20165_p7 = scmp.lt.s32.totalorder %s74_s21, %s74_s21 }
  0x31   :  { %p20161_p6 = scmp.ne.s32.totalorder %s74_s21, %s20160_s24  ;;  %p20166_p8 = scmp.lt.s32.totalorder %s20160_s24, %s20160_s24 }
  0x33   :  { %p20167_p9 = por %p20166_p8, %p20165_p7 }
  0x35   :  { %p20168_p10 = pnand %p20167_p9, %p20161_p6 }
  0x37   :  { %20171 = shalt.err (!%p20168_p10)  }
  0x38   :  { %76 = dma.hbm_to_vmem [thread:$0]  %s20823_s4, 81920, %s74_s21, [#allocation7 + $0x2] }
  0x39   :  { %s20180_s26 = scalar_lea.vmem %s86_s23, 49152  ;;  %p20185_p12 = scmp.lt.s32.totalorder %s86_s23, %s86_s23 }
  0x3a   :  { %p20181_p11 = scmp.ne.s32.totalorder %s86_s23, %s20180_s26  ;;  %p20186_p13 = scmp.lt.s32.totalorder %s20180_s26, %s20180_s26 }
  0x3c   :  { %p20187_p0 = por %p20186_p13, %p20185_p12 }
  0x3e   :  { %p20188_p1 = pnand %p20187_p0, %p20181_p11 }
  0x40   :  { %20191 = shalt.err (!%p20188_p1)  }
  0x41   :  { %88 = dma.hbm_to_vmem [thread:$0]  %s20824_s5, 49152, %s86_s23, [#allocation7 + $0x3] }
  0x42   :  { %s20254_s28 = smov [#allocation6]  }
  0x43   :  { %s97_s29 = sshll.u32 %s20254_s28, 4  ;;  %s98_s29 = int_to_ptr.vmem [resolvable:$true] %s97_s29 }
  0x44   :  { %s20200_s30 = scalar_lea.vmem %s98_s29, 6144  ;;  %p20205_p3 = scmp.lt.s32.totalorder %s98_s29, %s98_s29 }
  0x45   :  { %p20201_p2 = scmp.ne.s32.totalorder %s98_s29, %s20200_s30  ;;  %p20206_p4 = scmp.lt.s32.totalorder %s20200_s30, %s20200_s30 }
  0x47   :  { %p20207_p5 = por %p20206_p4, %p20205_p3 }
  0x49   :  { %p20208_p6 = pnand %p20207_p5, %p20201_p2 }
  0x4b   :  { %20211 = shalt.err (!%p20208_p6)  }
  0x4c   :  { %100 = dma.hbm_to_vmem [thread:$0]  %s20825_s6, 6144, %s98_s29, [#allocation7 + $0x4] }
  0x4d   :  { %20236 = dma.done.wait [#allocation7], 3072 }
  0x4e   :  { %20237 = vsyncadd [#allocation7], 4294964224  ;;  %v20255_v1 = vmov 0   ;;  %v17968_v2 = vld [vmem:[#allocation2 + $0x64] ss:$48 sps:$4 sm:$0xff]   ;;  %v130_v7 = vpack.c.bf16 %v101_v0, %v101_v0  ;;  %vm315_vm0 = vcmask 261120   ;;  %v135_v27 = vlaneseq }
  0x4f   :  { %351 = vmatprep.mubr.bf16.mxu1 %v20255_v1  ;;  %515 = vmatprep.mubr.bf16.mxu0 %v20255_v1  ;;  %v17970_v3 = vld [vmem:[#allocation2 + $0x60] ss:$48 sps:$4 sm:$0xff]   ;;  %v17971_v4 = vld [vmem:[#allocation2 + $0x4] ss:$48 sps:$4 sm:$0xff]   ;;  %v17976_v6 = vld [vmem:[#allocation2 + $0x6c] ss:$48 sps:$4 sm:$0xff]  }
  0x50   :  { %331 = vmatprep.subr.bf16.mxu1 %v17968_v2  ;;  %v17973_v5 = vld [vmem:[#allocation2] ss:$48 sps:$4 sm:$0xff]   ;;  %v17974_v8 = vld [vmem:[#allocation2 + $0x68] ss:$48 sps:$4 sm:$0xff]   ;;  %v17979_v9 = vld [vmem:[#allocation2 + $0xc] ss:$48 sps:$4 sm:$0xff]  }
  0x51   :  { %332 = vmatpush1.bf16.msra.mxu1 %v17970_v3  ;;  %v17989_v10 = vld [vmem:[#allocation2 + $0x84] ss:$48 sps:$4 sm:$0xff]   ;;  %v17977_v11 = vld [vmem:[#allocation2 + $0x8] ss:$48 sps:$4 sm:$0xff]   ;;  %v17994_v13 = vld [vmem:[#allocation2 + $0x80] ss:$48 sps:$4 sm:$0xff]  }
  0x52   :  { %333 = vmatprep.subr.bf16.mxu1 %v17971_v4  ;;  %v17982_v12 = vld [vmem:[#allocation2 + $0x74] ss:$48 sps:$4 sm:$0xff]   ;;  %495 = vmatprep.subr.bf16.mxu0 %v17989_v10  ;;  %v17997_v15 = vld [vmem:[#allocation2 + $0x20] ss:$48 sps:$4 sm:$0xff]   ;;  %v17988_v19 = vld [vmem:[#allocation2 + $0x7c] ss:$48 sps:$4 sm:$0xff]  }
  0x53   :  { %v17995_v14 = vld [vmem:[#allocation2 + $0x24] ss:$48 sps:$4 sm:$0xff]   ;;  %496 = vmatpush1.bf16.msra.mxu0 %v17994_v13  ;;  %v17980_v16 = vld [vmem:[#allocation2 + $0x70] ss:$48 sps:$4 sm:$0xff]   ;;  %v17986_v20 = vld [vmem:[#allocation2 + $0x78] ss:$48 sps:$4 sm:$0xff]  }
  0x54   :  { %497 = vmatprep.subr.bf16.mxu0 %v17995_v14  ;;  %v17985_v17 = vld [vmem:[#allocation2 + $0x14] ss:$48 sps:$4 sm:$0xff]   ;;  %v17983_v18 = vld [vmem:[#allocation2 + $0x10] ss:$48 sps:$4 sm:$0xff]   ;;  %v17993_v21 = vld [vmem:[#allocation2 + $0x1c] ss:$48 sps:$4 sm:$0xff]  }
  0x55   :  { %334 = vmatpush1.bf16.msra.mxu1 %v17973_v5  ;;  %v17991_v22 = vld [vmem:[#allocation2 + $0x18] ss:$48 sps:$4 sm:$0xff]   ;;  %v18000_v23 = vld [vmem:[#allocation2 + $0x8c] ss:$48 sps:$4 sm:$0xff]   ;;  %v136_v28 = vshrl.u32 %v135_v27, 7 }
  0x56   :  { %372 = vmatprep.subr.bf16.mxu1 %v17976_v6  ;;  %v17998_v24 = vld [vmem:[#allocation2 + $0x88] ss:$48 sps:$4 sm:$0xff]   ;;  %v18003_v25 = vld [vmem:[#allocation2 + $0x2c] ss:$48 sps:$4 sm:$0xff]   ;;  %v20338_v42 = vld [vmem:[#allocation11 + $0x8] sm:$0xf] }
  0x57   :  { %498 = vmatpush1.bf16.msra.mxu0 %v17997_v15  ;;  %v18001_v26 = vld [vmem:[#allocation2 + $0x28] ss:$48 sps:$4 sm:$0xff]   ;;  %v20324_v29 = vsub.s32 0, %v136_v28  ;;  %v20328_v31 = vsub.s32 1, %v136_v28  ;;  %v20334_v36 = vsub.s32 2, %v136_v28  ;;  %v20336_v40 = vsub.s32 3, %v136_v28 }
  0x58   :  { %15849 = vmatmul.mubr.msk.bf16.vlgmr.msra.gmra.mxu1 %vm315_vm0, %v130_v7  ;;  %v20326_v30 = vld [vmem:[#allocation11] sm:$0xff]  ;;  %v20350_v51 = vsub.s32 4, %v136_v28  ;;  %v20354_v58 = vsub.s32 5, %v136_v28 }
  0x59   :  { %373 = vmatpush1.bf16.msra.mxu1 %v17974_v8  ;;  %392 = vmatprep.mubr.bf16.mxu1 %v20255_v1  ;;  %v138_v32 = vrot.slane %v20326_v30, %v20324_v29  ;;  %v142_v33 = vrot.slane %v20326_v30, %v20328_v31  ;;  %v146_v45 = vrot.slane %v20326_v30, %v20334_v36 }
  0x5a   :  { %374 = vmatprep.subr.bf16.mxu1 %v17979_v9  ;;  %15853 = vmatmul.mubr.msk.bf16.vlgmr.msra.gmra.mxu0 %vm315_vm0, %v130_v7  ;;  %v150_v48 = vrot.slane %v20326_v30, %v20336_v40  ;;  %v170_v49 = vrot.slane %v20338_v42, %v20324_v29  ;;  %v174_v53 = vrot.slane %v20338_v42, %v20328_v31 }
  0x5b   :  { %v154_v61 = vrot.slane %v20326_v30, %v20350_v51  ;;  %v158_v6 = vrot.slane %v20326_v30, %v20354_v58 }
  0x5d   :  { %375 = vmatpush1.bf16.msra.mxu1 %v17977_v11 }
  0x5e   :  { %413 = vmatprep.subr.bf16.mxu1 %v17982_v12  ;;  %v20364_v12 = vsub.s32 6, %v136_v28 }
  0x60   :  { %15850 = vmatmul.mubr.msk.bf16.vlgmr.msra.gmra.mxu1 %vm315_vm0, %v130_v7 }
  0x61   :  { %414 = vmatpush1.bf16.msra.mxu1 %v17980_v16  ;;  %433 = vmatprep.mubr.bf16.mxu1 %v20255_v1 }
  0x62   :  { %415 = vmatprep.subr.bf16.mxu1 %v17985_v17  ;;  %v20368_v17 = vsub.s32 7, %v136_v28 }
  0x65   :  { %416 = vmatpush1.bf16.msra.mxu1 %v17983_v18 }
  0x66   :  { %454 = vmatprep.subr.bf16.mxu1 %v17988_v19 }
  0x68   :  { %15851 = vmatmul.mubr.msk.bf16.vlgmr.msra.gmra.mxu1 %vm315_vm0, %v130_v7 }
  0x69   :  { %455 = vmatpush1.bf16.msra.mxu1 %v17986_v20  ;;  %474 = vmatprep.mubr.bf16.mxu1 %v20255_v1 }
  0x6a   :  { %456 = vmatprep.subr.bf16.mxu1 %v17993_v21  ;;  %v162_v21 = vrot.slane %v20326_v30, %v20364_v12 }
  0x6d   :  { %457 = vmatpush1.bf16.msra.mxu1 %v17991_v22 }
  0x6e   :  { %536 = vmatprep.subr.bf16.mxu1 %v18000_v23 }
  0x70   :  { %15852 = vmatmul.mubr.msk.bf16.vlgmr.msra.gmra.mxu1 %vm315_vm0, %v130_v7 }
  0x71   :  { %537 = vmatpush1.bf16.msra.mxu1 %v17998_v24  ;;  %556 = vmatprep.mubr.bf16.mxu1 %v20255_v1  ;;  %v166_v24 = vrot.slane %v20326_v30, %v20368_v17 }
  0x72   :  { %538 = vmatprep.subr.bf16.mxu1 %v18003_v25 }
  0x75   :  { %539 = vmatpush1.bf16.msra.mxu1 %v18001_v26 }
  0x78   :  { %15854 = vmatmul.mubr.msk.bf16.vlgmr.msra.gmra.mxu1 %vm315_vm0, %v130_v7 }
 0x118   :  { %v353_v34 = vpop.f32.mrf.mxu1 }
 0x119   :  { %v354_v35 = vadd.f32 %v353_v34, %v138_v32 }
 0x11a   :  { %v355_v37 = vpop.f32.mrf.mxu1  ;;  %v517_v55 = vpop.f32.mrf.mxu0 }
 0x11b   :  { %v565_v38 = vmul.f32 0.01, %v354_v35  ;;  %v356_v39 = vadd.f32 %v355_v37, %v142_v33  ;;  %v518_v59 = vadd.f32 %v517_v55, %v170_v49  ;;  %v178_v37 = vrot.slane %v20338_v42, %v20334_v36 }
 0x11c   :  { %v357_v41 = vpop.f32.mrf.mxu1  ;;  %v519_v62 = vpop.f32.mrf.mxu0 }
 0x11d   :  { %v20340_v43 = vmax.f32 %v354_v35, %v565_v38  ;;  %v566_v44 = vmul.f32 0.01, %v356_v39  ;;  %v573_v1 = vmul.f32 0.01, %v518_v59  ;;  %v520_v2 = vadd.f32 %v519_v62, %v174_v53 }
 0x11e   :  { %v358_v46 = vpop.f32.mrf.mxu1  ;;  %v521_v4 = vpop.f32.mrf.mxu0  ;;  %v182_v41 = vrot.slane %v20338_v42, %v20336_v40 }
 0x11f   :  { %v20344_v47 = vmax.f32 %v356_v39, %v566_v44  ;;  %v20362_v7 = vmax.f32 %v518_v59, %v573_v1  ;;  %v574_v8 = vmul.f32 0.01, %v520_v2 }
 0x120   :  { %v394_v50 = vpop.f32.mrf.mxu1  ;;  %v522_v10 = vpop.f32.mrf.mxu0 }
 0x121   :  { %v395_v52 = vadd.f32 %v394_v50, %v146_v45  ;;  %v20366_v13 = vmax.f32 %v520_v2, %v574_v8 }
 0x122   :  { %v396_v54 = vpop.f32.mrf.mxu1 }
 0x123   :  { %v567_v56 = vmul.f32 0.01, %v395_v52  ;;  %v397_v57 = vadd.f32 %v396_v54, %v150_v48 }
 0x124   :  { %v398_v60 = vpop.f32.mrf.mxu1 }
 0x125   :  { %v20358_v63 = vmax.f32 %v395_v52, %v567_v56  ;;  %v568_v0 = vmul.f32 0.01, %v397_v57 }
 0x126   :  { %v399_v3 = vpop.f32.mrf.mxu1 }
 0x127   :  { %v580_v5 = vmax.f32 %v397_v57, %v568_v0 }
 0x128   :  { %v435_v9 = vpop.f32.mrf.mxu1 }
 0x129   :  { %v436_v11 = vadd.f32 %v435_v9, %v154_v61 }
 0x12a   :  { %v437_v14 = vpop.f32.mrf.mxu1 }
 0x12b   :  { %v569_v15 = vmul.f32 0.01, %v436_v11  ;;  %v438_v16 = vadd.f32 %v437_v14, %v158_v6 }
 0x12c   :  { %v439_v18 = vpop.f32.mrf.mxu1 }
 0x12d   :  { %v20370_v19 = vmax.f32 %v436_v11, %v569_v15  ;;  %v570_v20 = vmul.f32 0.01, %v438_v16 }
 0x12e   :  { %v440_v22 = vpop.f32.mrf.mxu1 }
 0x12f   :  { %v20374_v23 = vmax.f32 %v438_v16, %v570_v20 }
 0x130   :  { %v476_v25 = vpop.f32.mrf.mxu1 }
 0x131   :  { %v477_v26 = vadd.f32 %v476_v25, %v162_v21 }
 0x132   :  { %v478_v27 = vpop.f32.mrf.mxu1 }
 0x133   :  { %v571_v32 = vmul.f32 0.01, %v477_v26  ;;  %v479_v33 = vadd.f32 %v478_v27, %v166_v24 }
 0x134   :  { %v480_v28 = vpop.f32.mrf.mxu1 }
 0x135   :  { %v20378_v34 = vmax.f32 %v477_v26, %v571_v32  ;;  %v572_v35 = vmul.f32 0.01, %v479_v33 }
 0x136   :  { %v481_v38 = vpop.f32.mrf.mxu1 }
 0x137   :  { %v20382_v39 = vmax.f32 %v479_v33, %v572_v35 }
 0x138   :  { %v558_v44 = vpop.f32.mrf.mxu1 }
 0x139   :  { %v559_v30 = vadd.f32 %v558_v44, %v178_v37 }
 0x13a   :  { %v560_v45 = vpop.f32.mrf.mxu1 }
 0x13b   :  { %v575_v46 = vmul.f32 0.01, %v559_v30  ;;  %v561_v48 = vadd.f32 %v560_v45, %v182_v41 }
 0x13c   :  { %v562_v49 = vpop.f32.mrf.mxu1 }
 0x13d   :  { %v20386_v50 = vmax.f32 %v559_v30, %v575_v46  ;;  %v576_v52 = vmul.f32 0.01, %v561_v48 }
 0x13e   :  { %v563_v53 = vpop.f32.mrf.mxu1 }
 0x13f   :  { %v20388_v54 = vmax.f32 %v561_v48, %v576_v52 }
 0x140   :  { %20238 = dma.done.wait [#allocation7 + $0x1], 122880 }
 0x141   :  { %20239 = vsyncadd [#allocation7 + $0x1], 4294844416  ;;  %v20392_v55 = vpack.c.bf16 %v20344_v47, %v20344_v47  ;;  %v20394_v56 = vpack.c.bf16 %v580_v5, %v580_v5  ;;  %v18004_v42 = vld [vmem:[#allocation3 + $0x234] ss:$40 sps:$4 sm:$0xff]   ;;  %v18008_v59 = vld [vmem:[#allocation3 + $0x230] ss:$40 sps:$4 sm:$0xff]  }
 0x142   :  { %v18006_v57 = vld [vmem:[#allocation3 + $0x734] ss:$40 sps:$4 sm:$0xff]   ;;  %6419 = vmatprep.subr.bf16.mxu0 %v18004_v42  ;;  %v18009_v60 = vld [vmem:[#allocation3 + $0x730] ss:$40 sps:$4 sm:$0xff]   ;;  %v18010_v61 = vld [vmem:[#allocation3 + $0x1e4] ss:$40 sps:$4 sm:$0xff]  }
 0x143   :  { %6451 = vmatprep.mubr.bf16.mxu0 %v20392_v55  ;;  %6492 = vmatprep.mubr.bf16.mxu1 %v20394_v56  ;;  %v18012_v62 = vld [vmem:[#allocation3 + $0x6e4] ss:$40 sps:$4 sm:$0xff]   ;;  %v18014_v0 = vld [vmem:[#allocation3 + $0x1e0] ss:$40 sps:$4 sm:$0xff]   ;;  %v18016_v1 = vld [vmem:[#allocation3 + $0x194] ss:$40 sps:$4 sm:$0xff]  }
 0x144   :  { %6460 = vmatprep.subr.bf16.mxu1 %v18006_v57  ;;  %6420 = vmatpush1.bf16.msra.mxu0 %v18008_v59  ;;  %v18015_v47 = vld [vmem:[#allocation3 + $0x6e0] ss:$40 sps:$4 sm:$0xff]   ;;  %v18018_v2 = vld [vmem:[#allocation3 + $0x694] ss:$40 sps:$4 sm:$0xff]   ;;  %v18020_v3 = vld [vmem:[#allocation3 + $0x190] ss:$40 sps:$4 sm:$0xff]  }
 0x145   :  { %6461 = vmatpush1.bf16.msra.mxu1 %v18009_v60  ;;  %6421 = vmatprep.subr.bf16.mxu0 %v18010_v61  ;;  %v18021_v4 = vld [vmem:[#allocation3 + $0x690] ss:$40 sps:$4 sm:$0xff]   ;;  %v18022_v5 = vld [vmem:[#allocation3 + $0x144] ss:$40 sps:$4 sm:$0xff]   ;;  %v18026_v8 = vld [vmem:[#allocation3 + $0x140] ss:$40 sps:$4 sm:$0xff]  }
 0x146   :  { %6462 = vmatprep.subr.bf16.mxu1 %v18012_v62  ;;  %v18024_v6 = vld [vmem:[#allocation3 + $0x644] ss:$40 sps:$4 sm:$0xff]   ;;  %v18027_v9 = vld [vmem:[#allocation3 + $0x640] ss:$40 sps:$4 sm:$0xff]   ;;  %v18028_v10 = vld [vmem:[#allocation3 + $0xf4] ss:$40 sps:$4 sm:$0xff]  }
 0x147   :  { %v18030_v11 = vld [vmem:[#allocation3 + $0x5f4] ss:$40 sps:$4 sm:$0xff]   ;;  %v18032_v14 = vld [vmem:[#allocation3 + $0xf0] ss:$40 sps:$4 sm:$0xff]   ;;  %v18034_v16 = vld [vmem:[#allocation3 + $0xa4] ss:$40 sps:$4 sm:$0xff]  }
 0x148   :  { %6422 = vmatpush1.bf16.msra.mxu0 %v18014_v0  ;;  %v18033_v15 = vld [vmem:[#allocation3 + $0x5f0] ss:$40 sps:$4 sm:$0xff]   ;;  %v18036_v18 = vld [vmem:[#allocation3 + $0x5a4] ss:$40 sps:$4 sm:$0xff]   ;;  %v18038_v20 = vld [vmem:[#allocation3 + $0xa0] ss:$40 sps:$4 sm:$0xff]  }
 0x149   :  { %6463 = vmatpush1.bf16.msra.mxu1 %v18015_v47  ;;  %6423 = vmatprep.subr.bf16.mxu0 %v18016_v1  ;;  %v18039_v21 = vld [vmem:[#allocation3 + $0x5a0] ss:$40 sps:$4 sm:$0xff]   ;;  %v18040_v22 = vld [vmem:[#allocation3 + $0x54] ss:$40 sps:$4 sm:$0xff]   ;;  %v18044_v25 = vld [vmem:[#allocation3 + $0x50] ss:$40 sps:$4 sm:$0xff]  }
 0x14a   :  { %6464 = vmatprep.subr.bf16.mxu1 %v18018_v2  ;;  %v18042_v24 = vld [vmem:[#allocation3 + $0x554] ss:$40 sps:$4 sm:$0xff]   ;;  %v18045_v26 = vld [vmem:[#allocation3 + $0x550] ss:$40 sps:$4 sm:$0xff]   ;;  %v18046_v27 = vld [vmem:[#allocation3 + $0x4] ss:$40 sps:$4 sm:$0xff]  }
 0x14b   :  { %v18048_v32 = vld [vmem:[#allocation3 + $0x504] ss:$40 sps:$4 sm:$0xff]   ;;  %v18050_v33 = vld [vmem:[#allocation3] ss:$40 sps:$4 sm:$0xff]   ;;  %v18052_v35 = vld [vmem:[#allocation3 + $0x4b4] ss:$40 sps:$4 sm:$0xff]  }
 0x14c   :  { %6424 = vmatpush1.bf16.msra.mxu0 %v18020_v3  ;;  %v18051_v28 = vld [vmem:[#allocation3 + $0x500] ss:$40 sps:$4 sm:$0xff]   ;;  %v18054_v37 = vld [vmem:[#allocation3 + $0x9b4] ss:$40 sps:$4 sm:$0xff]   ;;  %v18056_v38 = vld [vmem:[#allocation3 + $0x4b0] ss:$40 sps:$4 sm:$0xff]  }
 0x14d   :  { %6465 = vmatpush1.bf16.msra.mxu1 %v18021_v4  ;;  %6425 = vmatprep.subr.bf16.mxu0 %v18022_v5  ;;  %v18057_v41 = vld [vmem:[#allocation3 + $0x9b0] ss:$40 sps:$4 sm:$0xff]   ;;  %v18058_v44 = vld [vmem:[#allocation3 + $0x464] ss:$40 sps:$4 sm:$0xff]   ;;  %v18062_v45 = vld [vmem:[#allocation3 + $0x460] ss:$40 sps:$4 sm:$0xff]  }
 0x14e   :  { %6466 = vmatprep.subr.bf16.mxu1 %v18024_v6  ;;  %v18060_v30 = vld [vmem:[#allocation3 + $0x964] ss:$40 sps:$4 sm:$0xff]   ;;  %v18063_v46 = vld [vmem:[#allocation3 + $0x960] ss:$40 sps:$4 sm:$0xff]   ;;  %v18064_v48 = vld [vmem:[#allocation3 + $0x414] ss:$40 sps:$4 sm:$0xff]  }
 0x14f   :  { %v18066_v49 = vld [vmem:[#allocation3 + $0x914] ss:$40 sps:$4 sm:$0xff]   ;;  %v18068_v52 = vld [vmem:[#allocation3 + $0x410] ss:$40 sps:$4 sm:$0xff]   ;;  %v18070_v42 = vld [vmem:[#allocation3 + $0x3c4] ss:$40 sps:$4 sm:$0xff]  }
 0x150   :  { %6426 = vmatpush1.bf16.msra.mxu0 %v18026_v8  ;;  %v18069_v53 = vld [vmem:[#allocation3 + $0x910] ss:$40 sps:$4 sm:$0xff]   ;;  %v18072_v57 = vld [vmem:[#allocation3 + $0x8c4] ss:$40 sps:$4 sm:$0xff]   ;;  %v18074_v59 = vld [vmem:[#allocation3 + $0x3c0] ss:$40 sps:$4 sm:$0xff]  }
 0x151   :  { %6467 = vmatpush1.bf16.msra.mxu1 %v18027_v9  ;;  %6427 = vmatprep.subr.bf16.mxu0 %v18028_v10  ;;  %v18075_v60 = vld [vmem:[#allocation3 + $0x8c0] ss:$40 sps:$4 sm:$0xff]   ;;  %v18076_v61 = vld [vmem:[#allocation3 + $0x374] ss:$40 sps:$4 sm:$0xff]   ;;  %v18080_v0 = vld [vmem:[#allocation3 + $0x370] ss:$40 sps:$4 sm:$0xff]  }
 0x152   :  { %6468 = vmatprep.subr.bf16.mxu1 %v18030_v11  ;;  %v18078_v62 = vld [vmem:[#allocation3 + $0x874] ss:$40 sps:$4 sm:$0xff]   ;;  %v18081_v47 = vld [vmem:[#allocation3 + $0x870] ss:$40 sps:$4 sm:$0xff]   ;;  %v18082_v1 = vld [vmem:[#allocation3 + $0x324] ss:$40 sps:$4 sm:$0xff]  }
 0x153   :  { %v18084_v2 = vld [vmem:[#allocation3 + $0x824] ss:$40 sps:$4 sm:$0xff]   ;;  %v18086_v3 = vld [vmem:[#allocation3 + $0x320] ss:$40 sps:$4 sm:$0xff]   ;;  %v18088_v5 = vld [vmem:[#allocation3 + $0x2d4] ss:$40 sps:$4 sm:$0xff]  }
 0x154   :  { %6428 = vmatpush1.bf16.msra.mxu0 %v18032_v14  ;;  %v18087_v4 = vld [vmem:[#allocation3 + $0x820] ss:$40 sps:$4 sm:$0xff]   ;;  %v18090_v6 = vld [vmem:[#allocation3 + $0x7d4] ss:$40 sps:$4 sm:$0xff]   ;;  %v18092_v8 = vld [vmem:[#allocation3 + $0x2d0] ss:$40 sps:$4 sm:$0xff]  }
 0x155   :  { %6469 = vmatpush1.bf16.msra.mxu1 %v18033_v15  ;;  %6429 = vmatprep.subr.bf16.mxu0 %v18034_v16  ;;  %v18093_v9 = vld [vmem:[#allocation3 + $0x7d0] ss:$40 sps:$4 sm:$0xff]   ;;  %v18094_v10 = vld [vmem:[#allocation3 + $0x284] ss:$40 sps:$4 sm:$0xff]   ;;  %v18098_v14 = vld [vmem:[#allocation3 + $0x280] ss:$40 sps:$4 sm:$0xff]  }
 0x156   :  { %6470 = vmatprep.subr.bf16.mxu1 %v18036_v18  ;;  %v18096_v11 = vld [vmem:[#allocation3 + $0x784] ss:$40 sps:$4 sm:$0xff]   ;;  %v18099_v15 = vld [vmem:[#allocation3 + $0x780] ss:$40 sps:$4 sm:$0xff]   ;;  %v18102_v16 = vld [vmem:[#allocation3 + $0xc34] ss:$40 sps:$4 sm:$0xff]  }
 0x157   :  { %v18105_v18 = vld [vmem:[#allocation3 + $0x1134] ss:$40 sps:$4 sm:$0xff]  }
 0x158   :  { %6430 = vmatpush1.bf16.msra.mxu0 %v18038_v20  ;;  %v20400_v20 = vpack.c.bf16 %v20340_v43, %v20340_v43  ;;  %v20412_v43 = vpack.c.bf16 %v20382_v39, %v20382_v39  ;;  %v18120_v39 = vld [vmem:[#allocation3 + $0xb44] ss:$40 sps:$4 sm:$0xff]  }
 0x159   :  { %6471 = vmatpush1.bf16.msra.mxu1 %v18039_v21  ;;  %6431 = vmatprep.subr.bf16.mxu0 %v18040_v22  ;;  %v20404_v21 = vpack.c.bf16 %v20358_v63, %v20358_v63  ;;  %v18100_v22 = vld [vmem:[#allocation3 + $0xc30] ss:$40 sps:$4 sm:$0xff]   ;;  %v18106_v63 = vld [vmem:[#allocation3 + $0xbe0] ss:$40 sps:$4 sm:$0xff]  }
 0x15a   :  { %6472 = vmatprep.subr.bf16.mxu1 %v18042_v24  ;;  %v18103_v24 = vld [vmem:[#allocation3 + $0x1130] ss:$40 sps:$4 sm:$0xff]  }
 0x15c   :  { %6432 = vmatpush1.bf16.msra.mxu0 %v18044_v25  ;;  %v18108_v25 = vld [vmem:[#allocation3 + $0xbe4] ss:$40 sps:$4 sm:$0xff]  }
 0x15d   :  { %6473 = vmatpush1.bf16.msra.mxu1 %v18045_v26  ;;  %6433 = vmatprep.subr.bf16.mxu0 %v18046_v27  ;;  %v18111_v26 = vld [vmem:[#allocation3 + $0x10e4] ss:$40 sps:$4 sm:$0xff]   ;;  %v20408_v27 = vpack.c.bf16 %v20374_v23, %v20374_v23  ;;  %v18112_v23 = vld [vmem:[#allocation3 + $0xb90] ss:$40 sps:$4 sm:$0xff]  }
 0x15e   :  { %6474 = vmatprep.subr.bf16.mxu1 %v18048_v32  ;;  %v18109_v32 = vld [vmem:[#allocation3 + $0x10e0] ss:$40 sps:$4 sm:$0xff]  }
 0x160   :  { %6434 = vmatpush1.bf16.msra.mxu0 %v18050_v33  ;;  %v18114_v33 = vld [vmem:[#allocation3 + $0xb94] ss:$40 sps:$4 sm:$0xff]  }
 0x161   :  { %6475 = vmatpush1.bf16.msra.mxu1 %v18051_v28  ;;  %6435 = vmatprep.subr.bf16.mxu0 %v18052_v35  ;;  %v18117_v28 = vld [vmem:[#allocation3 + $0x1094] ss:$40 sps:$4 sm:$0xff]   ;;  %v18115_v35 = vld [vmem:[#allocation3 + $0x1090] ss:$40 sps:$4 sm:$0xff]  }
 0x162   :  { %6476 = vmatprep.subr.bf16.mxu1 %v18054_v37  ;;  %v18123_v37 = vld [vmem:[#allocation3 + $0x1044] ss:$40 sps:$4 sm:$0xff]  }
 0x164   :  { %6436 = vmatpush2.bf16.msra.mxu0 %v18056_v38  ;;  %v18118_v38 = vld [vmem:[#allocation3 + $0xb40] ss:$40 sps:$4 sm:$0xff]  }
 0x165   :  { %6477 = vmatpush2.bf16.msra.mxu1 %v18057_v41  ;;  %6437 = vmatprep.subr.bf16.mxu0 %v18058_v44  ;;  %v18121_v41 = vld [vmem:[#allocation3 + $0x1040] ss:$40 sps:$4 sm:$0xff]   ;;  %v18126_v44 = vld [vmem:[#allocation3 + $0xaf4] ss:$40 sps:$4 sm:$0xff]  }
 0x166   :  { %6478 = vmatprep.subr.bf16.mxu1 %v18060_v30  ;;  %v18129_v30 = vld [vmem:[#allocation3 + $0xff4] ss:$40 sps:$4 sm:$0xff]  }
 0x168   :  { %6438 = vmatpush2.bf16.msra.mxu0 %v18062_v45  ;;  %v18124_v45 = vld [vmem:[#allocation3 + $0xaf0] ss:$40 sps:$4 sm:$0xff]  }
 0x169   :  { %6479 = vmatpush2.bf16.msra.mxu1 %v18063_v46  ;;  %6439 = vmatprep.subr.bf16.mxu0 %v18064_v48  ;;  %v18127_v46 = vld [vmem:[#allocation3 + $0xff0] ss:$40 sps:$4 sm:$0xff]   ;;  %v18132_v48 = vld [vmem:[#allocation3 + $0xaa4] ss:$40 sps:$4 sm:$0xff]  }
 0x16a   :  { %6480 = vmatprep.subr.bf16.mxu1 %v18066_v49  ;;  %v18135_v49 = vld [vmem:[#allocation3 + $0xfa4] ss:$40 sps:$4 sm:$0xff]  }
 0x16c   :  { %6440 = vmatpush2.bf16.msra.mxu0 %v18068_v52  ;;  %v18130_v52 = vld [vmem:[#allocation3 + $0xaa0] ss:$40 sps:$4 sm:$0xff]  }
 0x16d   :  { %6481 = vmatpush2.bf16.msra.mxu1 %v18069_v53  ;;  %6441 = vmatprep.subr.bf16.mxu0 %v18070_v42  ;;  %v18133_v53 = vld [vmem:[#allocation3 + $0xfa0] ss:$40 sps:$4 sm:$0xff]   ;;  %v18138_v42 = vld [vmem:[#allocation3 + $0xa54] ss:$40 sps:$4 sm:$0xff]  }
 0x16e   :  { %6482 = vmatprep.subr.bf16.mxu1 %v18072_v57  ;;  %v18141_v57 = vld [vmem:[#allocation3 + $0xf54] ss:$40 sps:$4 sm:$0xff]  }
 0x170   :  { %6442 = vmatpush2.bf16.msra.mxu0 %v18074_v59  ;;  %v18136_v59 = vld [vmem:[#allocation3 + $0xa50] ss:$40 sps:$4 sm:$0xff]  }
 0x171   :  { %6483 = vmatpush2.bf16.msra.mxu1 %v18075_v60  ;;  %6443 = vmatprep.subr.bf16.mxu0 %v18076_v61  ;;  %v18139_v60 = vld [vmem:[#allocation3 + $0xf50] ss:$40 sps:$4 sm:$0xff]   ;;  %v18144_v61 = vld [vmem:[#allocation3 + $0xa04] ss:$40 sps:$4 sm:$0xff]  }
 0x172   :  { %6484 = vmatprep.subr.bf16.mxu1 %v18078_v62  ;;  %v18147_v62 = vld [vmem:[#allocation3 + $0xf04] ss:$40 sps:$4 sm:$0xff]  }
 0x174   :  { %6444 = vmatpush2.bf16.msra.mxu0 %v18080_v0  ;;  %v18142_v0 = vld [vmem:[#allocation3 + $0xa00] ss:$40 sps:$4 sm:$0xff]  }
 0x175   :  { %6485 = vmatpush2.bf16.msra.mxu1 %v18081_v47  ;;  %6445 = vmatprep.subr.bf16.mxu0 %v18082_v1  ;;  %v18145_v47 = vld [vmem:[#allocation3 + $0xf00] ss:$40 sps:$4 sm:$0xff]   ;;  %v18150_v1 = vld [vmem:[#allocation3 + $0xeb4] ss:$40 sps:$4 sm:$0xff]  }
 0x176   :  { %6486 = vmatprep.subr.bf16.mxu1 %v18084_v2  ;;  %v18153_v2 = vld [vmem:[#allocation3 + $0x13b4] ss:$40 sps:$4 sm:$0xff]  }
 0x178   :  { %6446 = vmatpush2.bf16.msra.mxu0 %v18086_v3  ;;  %v18148_v3 = vld [vmem:[#allocation3 + $0xeb0] ss:$40 sps:$4 sm:$0xff]  }
 0x179   :  { %6487 = vmatpush2.bf16.msra.mxu1 %v18087_v4  ;;  %6447 = vmatprep.subr.bf16.mxu0 %v18088_v5  ;;  %v18151_v4 = vld [vmem:[#allocation3 + $0x13b0] ss:$40 sps:$4 sm:$0xff]   ;;  %v18156_v5 = vld [vmem:[#allocation3 + $0xe64] ss:$40 sps:$4 sm:$0xff]  }
 0x17a   :  { %6488 = vmatprep.subr.bf16.mxu1 %v18090_v6  ;;  %v18159_v6 = vld [vmem:[#allocation3 + $0x1364] ss:$40 sps:$4 sm:$0xff]  }
 0x17c   :  { %6448 = vmatpush2.bf16.msra.mxu0 %v18092_v8  ;;  %v18154_v8 = vld [vmem:[#allocation3 + $0xe60] ss:$40 sps:$4 sm:$0xff]  }
 0x17d   :  { %6489 = vmatpush2.bf16.msra.mxu1 %v18093_v9  ;;  %6449 = vmatprep.subr.bf16.mxu0 %v18094_v10  ;;  %v18157_v9 = vld [vmem:[#allocation3 + $0x1360] ss:$40 sps:$4 sm:$0xff]   ;;  %v18162_v10 = vld [vmem:[#allocation3 + $0xe14] ss:$40 sps:$4 sm:$0xff]  }
 0x17e   :  { %6490 = vmatprep.subr.bf16.mxu1 %v18096_v11  ;;  %v18165_v11 = vld [vmem:[#allocation3 + $0x1314] ss:$40 sps:$4 sm:$0xff]  }
 0x180   :  { %6450 = vmatpush2.bf16.msra.mxu0 %v18098_v14  ;;  %v18160_v14 = vld [vmem:[#allocation3 + $0xe10] ss:$40 sps:$4 sm:$0xff]  }
 0x181   :  { %6491 = vmatpush2.bf16.msra.mxu1 %v18099_v15  ;;  %6501 = vmatprep.subr.bf16.mxu0 %v18102_v16  ;;  %v18163_v15 = vld [vmem:[#allocation3 + $0x1310] ss:$40 sps:$4 sm:$0xff]   ;;  %v18168_v16 = vld [vmem:[#allocation3 + $0xdc4] ss:$40 sps:$4 sm:$0xff]  }
 0x182   :  { %6542 = vmatprep.subr.bf16.mxu1 %v18105_v18  ;;  %v18171_v18 = vld [vmem:[#allocation3 + $0x12c4] ss:$40 sps:$4 sm:$0xff]  }
 0x183   :  { %6452 = vmatmul.mubr.bf16.vlgmr.msra.gmra.mxu0 %v20400_v20 }
 0x184   :  { %6493 = vmatmul.mubr.bf16.vlgmr.msra.gmra.mxu1 %v20404_v21  ;;  %6502 = vmatpush1.bf16.msra.mxu0 %v18100_v22  ;;  %v18166_v22 = vld [vmem:[#allocation3 + $0xdc0] ss:$40 sps:$4 sm:$0xff]  }
 0x185   :  { %6543 = vmatpush1.bf16.msra.mxu1 %v18103_v24  ;;  %6503 = vmatprep.subr.bf16.mxu0 %v18108_v25  ;;  %v18169_v24 = vld [vmem:[#allocation3 + $0x12c0] ss:$40 sps:$4 sm:$0xff]   ;;  %v18174_v25 = vld [vmem:[#allocation3 + $0xd74] ss:$40 sps:$4 sm:$0xff]  }
 0x186   :  { %6544 = vmatprep.subr.bf16.mxu1 %v18111_v26  ;;  %6533 = vmatprep.mubr.bf16.mxu0 %v20408_v27  ;;  %v18177_v26 = vld [vmem:[#allocation3 + $0x1274] ss:$40 sps:$4 sm:$0xff]  }
 0x187   :  { %6574 = vmatprep.mubr.bf16.mxu1 %v20412_v43 }
 0x188   :  { %6504 = vmatpush1.bf16.msra.mxu0 %v18106_v63  ;;  %v18172_v63 = vld [vmem:[#allocation3 + $0xd70] ss:$40 sps:$4 sm:$0xff]  }
 0x189   :  { %6545 = vmatpush1.bf16.msra.mxu1 %v18109_v32  ;;  %6505 = vmatprep.subr.bf16.mxu0 %v18114_v33  ;;  %v18175_v32 = vld [vmem:[#allocation3 + $0x1270] ss:$40 sps:$4 sm:$0xff]   ;;  %v18180_v33 = vld [vmem:[#allocation3 + $0xd24] ss:$40 sps:$4 sm:$0xff]  }
 0x18a   :  { %6546 = vmatprep.subr.bf16.mxu1 %v18117_v28  ;;  %v18183_v28 = vld [vmem:[#allocation3 + $0x1224] ss:$40 sps:$4 sm:$0xff]  }
 0x18c   :  { %6506 = vmatpush1.bf16.msra.mxu0 %v18112_v23  ;;  %v18178_v23 = vld [vmem:[#allocation3 + $0xd20] ss:$40 sps:$4 sm:$0xff]  }
 0x18d   :  { %6547 = vmatpush1.bf16.msra.mxu1 %v18115_v35  ;;  %6507 = vmatprep.subr.bf16.mxu0 %v18120_v39  ;;  %v18181_v35 = vld [vmem:[#allocation3 + $0x1220] ss:$40 sps:$4 sm:$0xff]   ;;  %v18186_v39 = vld [vmem:[#allocation3 + $0xcd4] ss:$40 sps:$4 sm:$0xff]  }
 0x18e   :  { %6548 = vmatprep.subr.bf16.mxu1 %v18123_v37  ;;  %v18189_v37 = vld [vmem:[#allocation3 + $0x11d4] ss:$40 sps:$4 sm:$0xff]  }
 0x190   :  { %6508 = vmatpush1.bf16.msra.mxu0 %v18118_v38  ;;  %v18184_v38 = vld [vmem:[#allocation3 + $0xcd0] ss:$40 sps:$4 sm:$0xff]  }
 0x191   :  { %6549 = vmatpush1.bf16.msra.mxu1 %v18121_v41  ;;  %6509 = vmatprep.subr.bf16.mxu0 %v18126_v44  ;;  %v18187_v41 = vld [vmem:[#allocation3 + $0x11d0] ss:$40 sps:$4 sm:$0xff]   ;;  %v18192_v44 = vld [vmem:[#allocation3 + $0xc84] ss:$40 sps:$4 sm:$0xff]  }
 0x192   :  { %6550 = vmatprep.subr.bf16.mxu1 %v18129_v30  ;;  %v18195_v30 = vld [vmem:[#allocation3 + $0x1184] ss:$40 sps:$4 sm:$0xff]  }
 0x194   :  { %6510 = vmatpush1.bf16.msra.mxu0 %v18124_v45  ;;  %v18190_v45 = vld [vmem:[#allocation3 + $0xc80] ss:$40 sps:$4 sm:$0xff]  }
 0x195   :  { %6551 = vmatpush1.bf16.msra.mxu1 %v18127_v46  ;;  %6511 = vmatprep.subr.bf16.mxu0 %v18132_v48  ;;  %v18193_v46 = vld [vmem:[#allocation3 + $0x1180] ss:$40 sps:$4 sm:$0xff]   ;;  %v18198_v48 = vld [vmem:[#allocation3 + $0x1634] ss:$40 sps:$4 sm:$0xff]  }
 0x196   :  { %6552 = vmatprep.subr.bf16.mxu1 %v18135_v49  ;;  %v18201_v49 = vld [vmem:[#allocation3 + $0x1b34] ss:$40 sps:$4 sm:$0xff]  }
 0x198   :  { %6512 = vmatpush1.bf16.msra.mxu0 %v18130_v52  ;;  %v20420_v52 = vpack.c.bf16 %v20370_v19, %v20370_v19  ;;  %v20432_v19 = vpack.c.bf16 %v20388_v54, %v20388_v54  ;;  %v18216_v54 = vld [vmem:[#allocation3 + $0x1544] ss:$40 sps:$4 sm:$0xff]  }
 0x199   :  { %6553 = vmatpush1.bf16.msra.mxu1 %v18133_v53  ;;  %6513 = vmatprep.subr.bf16.mxu0 %v18138_v42  ;;  %v20424_v53 = vpack.c.bf16 %v20378_v34, %v20378_v34  ;;  %v18196_v42 = vld [vmem:[#allocation3 + $0x1630] ss:$40 sps:$4 sm:$0xff]   ;;  %v18202_v34 = vld [vmem:[#allocation3 + $0x15e0] ss:$40 sps:$4 sm:$0xff]  }
 0x19a   :  { %6554 = vmatprep.subr.bf16.mxu1 %v18141_v57  ;;  %v18199_v57 = vld [vmem:[#allocation3 + $0x1b30] ss:$40 sps:$4 sm:$0xff]  }
 0x19c   :  { %6514 = vmatpush1.bf16.msra.mxu0 %v18136_v59  ;;  %v18204_v59 = vld [vmem:[#allocation3 + $0x15e4] ss:$40 sps:$4 sm:$0xff]  }
 0x19d   :  { %6555 = vmatpush1.bf16.msra.mxu1 %v18139_v60  ;;  %6515 = vmatprep.subr.bf16.mxu0 %v18144_v61  ;;  %v18207_v60 = vld [vmem:[#allocation3 + $0x1ae4] ss:$40 sps:$4 sm:$0xff]   ;;  %v20428_v61 = vpack.c.bf16 %v20366_v13, %v20366_v13  ;;  %v18208_v13 = vld [vmem:[#allocation3 + $0x1590] ss:$40 sps:$4 sm:$0xff]  }
 0x19e   :  { %6556 = vmatprep.subr.bf16.mxu1 %v18147_v62  ;;  %v18205_v62 = vld [vmem:[#allocation3 + $0x1ae0] ss:$40 sps:$4 sm:$0xff]  }
 0x1a0   :  { %6516 = vmatpush1.bf16.msra.mxu0 %v18142_v0  ;;  %v18210_v0 = vld [vmem:[#allocation3 + $0x1594] ss:$40 sps:$4 sm:$0xff]  }
 0x1a1   :  { %6557 = vmatpush1.bf16.msra.mxu1 %v18145_v47  ;;  %6517 = vmatprep.subr.bf16.mxu0 %v18150_v1  ;;  %v18213_v47 = vld [vmem:[#allocation3 + $0x1a94] ss:$40 sps:$4 sm:$0xff]   ;;  %v18211_v1 = vld [vmem:[#allocation3 + $0x1a90] ss:$40 sps:$4 sm:$0xff]  }
 0x1a2   :  { %6558 = vmatprep.subr.bf16.mxu1 %v18153_v2  ;;  %v18219_v2 = vld [vmem:[#allocation3 + $0x1a44] ss:$40 sps:$4 sm:$0xff]  }
 0x1a4   :  { %6518 = vmatpush2.bf16.msra.mxu0 %v18148_v3  ;;  %v18214_v3 = vld [vmem:[#allocation3 + $0x1540] ss:$40 sps:$4 sm:$0xff]  }
 0x1a5   :  { %6559 = vmatpush2.bf16.msra.mxu1 %v18151_v4  ;;  %6519 = vmatprep.subr.bf16.mxu0 %v18156_v5  ;;  %v18217_v4 = vld [vmem:[#allocation3 + $0x1a40] ss:$40 sps:$4 sm:$0xff]   ;;  %v18222_v5 = vld [vmem:[#allocation3 + $0x14f4] ss:$40 sps:$4 sm:$0xff]  }
 0x1a6   :  { %6560 = vmatprep.subr.bf16.mxu1 %v18159_v6  ;;  %v18225_v6 = vld [vmem:[#allocation3 + $0x19f4] ss:$40 sps:$4 sm:$0xff]  }
 0x1a8   :  { %6520 = vmatpush2.bf16.msra.mxu0 %v18154_v8  ;;  %v18220_v8 = vld [vmem:[#allocation3 + $0x14f0] ss:$40 sps:$4 sm:$0xff]  }
 0x1a9   :  { %6561 = vmatpush2.bf16.msra.mxu1 %v18157_v9  ;;  %6521 = vmatprep.subr.bf16.mxu0 %v18162_v10  ;;  %v18223_v9 = vld [vmem:[#allocation3 + $0x19f0] ss:$40 sps:$4 sm:$0xff]   ;;  %v18228_v10 = vld [vmem:[#allocation3 + $0x14a4] ss:$40 sps:$4 sm:$0xff]  }
 0x1aa   :  { %6562 = vmatprep.subr.bf16.mxu1 %v18165_v11  ;;  %v18231_v11 = vld [vmem:[#allocation3 + $0x19a4] ss:$40 sps:$4 sm:$0xff]  }
 0x1ac   :  { %6522 = vmatpush2.bf16.msra.mxu0 %v18160_v14  ;;  %v18226_v14 = vld [vmem:[#allocation3 + $0x14a0] ss:$40 sps:$4 sm:$0xff]  }
 0x1ad   :  { %6563 = vmatpush2.bf16.msra.mxu1 %v18163_v15  ;;  %6523 = vmatprep.subr.bf16.mxu0 %v18168_v16  ;;  %v18229_v15 = vld [vmem:[#allocation3 + $0x19a0] ss:$40 sps:$4 sm:$0xff]   ;;  %v18234_v16 = vld [vmem:[#allocation3 + $0x1454] ss:$40 sps:$4 sm:$0xff]  }
 0x1ae   :  { %6564 = vmatprep.subr.bf16.mxu1 %v18171_v18  ;;  %v18237_v18 = vld [vmem:[#allocation3 + $0x1954] ss:$40 sps:$4 sm:$0xff]  }
 0x1b0   :  { %6524 = vmatpush2.bf16.msra.mxu0 %v18166_v22  ;;  %v18232_v22 = vld [vmem:[#allocation3 + $0x1450] ss:$40 sps:$4 sm:$0xff]  }
 0x1b1   :  { %6565 = vmatpush2.bf16.msra.mxu1 %v18169_v24  ;;  %6525 = vmatprep.subr.bf16.mxu0 %v18174_v25  ;;  %v18235_v24 = vld [vmem:[#allocation3 + $0x1950] ss:$40 sps:$4 sm:$0xff]   ;;  %v18240_v25 = vld [vmem:[#allocation3 + $0x1404] ss:$40 sps:$4 sm:$0xff]  }
 0x1b2   :  { %6566 = vmatprep.subr.bf16.mxu1 %v18177_v26  ;;  %v18243_v26 = vld [vmem:[#allocation3 + $0x1904] ss:$40 sps:$4 sm:$0xff]  }
 0x1b4   :  { %6526 = vmatpush2.bf16.msra.mxu0 %v18172_v63  ;;  %v18238_v63 = vld [vmem:[#allocation3 + $0x1400] ss:$40 sps:$4 sm:$0xff]  }
 0x1b5   :  { %6567 = vmatpush2.bf16.msra.mxu1 %v18175_v32  ;;  %6527 = vmatprep.subr.bf16.mxu0 %v18180_v33  ;;  %v18241_v32 = vld [vmem:[#allocation3 + $0x1900] ss:$40 sps:$4 sm:$0xff]   ;;  %v18246_v33 = vld [vmem:[#allocation3 + $0x18b4] ss:$40 sps:$4 sm:$0xff]  }
 0x1b6   :  { %6568 = vmatprep.subr.bf16.mxu1 %v18183_v28  ;;  %v18249_v28 = vld [vmem:[#allocation3 + $0x1db4] ss:$40 sps:$4 sm:$0xff]  }
 0x1b8   :  { %6528 = vmatpush2.bf16.msra.mxu0 %v18178_v23  ;;  %v18244_v23 = vld [vmem:[#allocation3 + $0x18b0] ss:$40 sps:$4 sm:$0xff]  }
 0x1b9   :  { %6569 = vmatpush2.bf16.msra.mxu1 %v18181_v35  ;;  %6529 = vmatprep.subr.bf16.mxu0 %v18186_v39  ;;  %v18247_v35 = vld [vmem:[#allocation3 + $0x1db0] ss:$40 sps:$4 sm:$0xff]   ;;  %v18252_v39 = vld [vmem:[#allocation3 + $0x1864] ss:$40 sps:$4 sm:$0xff]  }
 0x1ba   :  { %6570 = vmatprep.subr.bf16.mxu1 %v18189_v37  ;;  %v18255_v37 = vld [vmem:[#allocation3 + $0x1d64] ss:$40 sps:$4 sm:$0xff]  }
 0x1bc   :  { %6530 = vmatpush2.bf16.msra.mxu0 %v18184_v38  ;;  %v18250_v38 = vld [vmem:[#allocation3 + $0x1860] ss:$40 sps:$4 sm:$0xff]  }
 0x1bd   :  { %6571 = vmatpush2.bf16.msra.mxu1 %v18187_v41  ;;  %6531 = vmatprep.subr.bf16.mxu0 %v18192_v44  ;;  %v18253_v41 = vld [vmem:[#allocation3 + $0x1d60] ss:$40 sps:$4 sm:$0xff]   ;;  %v18258_v44 = vld [vmem:[#allocation3 + $0x1814] ss:$40 sps:$4 sm:$0xff]  }
 0x1be   :  { %6572 = vmatprep.subr.bf16.mxu1 %v18195_v30  ;;  %v18261_v30 = vld [vmem:[#allocation3 + $0x1d14] ss:$40 sps:$4 sm:$0xff]  }
 0x1c0   :  { %6532 = vmatpush2.bf16.msra.mxu0 %v18190_v45  ;;  %v18256_v45 = vld [vmem:[#allocation3 + $0x1810] ss:$40 sps:$4 sm:$0xff]  }
 0x1c1   :  { %6573 = vmatpush2.bf16.msra.mxu1 %v18193_v46  ;;  %6583 = vmatprep.subr.bf16.mxu0 %v18198_v48  ;;  %v18259_v46 = vld [vmem:[#allocation3 + $0x1d10] ss:$40 sps:$4 sm:$0xff]   ;;  %v18264_v48 = vld [vmem:[#allocation3 + $0x17c4] ss:$40 sps:$4 sm:$0xff]  }
 0x1c2   :  { %6624 = vmatprep.subr.bf16.mxu1 %v18201_v49  ;;  %v18267_v49 = vld [vmem:[#allocation3 + $0x1cc4] ss:$40 sps:$4 sm:$0xff]  }
 0x1c3   :  { %6534 = vmatmul.mubr.bf16.vlgmr.msra.gmra.mxu0 %v20420_v52 }
 0x1c4   :  { %6575 = vmatmul.mubr.bf16.vlgmr.msra.gmra.mxu1 %v20424_v53  ;;  %6584 = vmatpush1.bf16.msra.mxu0 %v18196_v42  ;;  %v18262_v42 = vld [vmem:[#allocation3 + $0x17c0] ss:$40 sps:$4 sm:$0xff]  }
 0x1c5   :  { %6625 = vmatpush1.bf16.msra.mxu1 %v18199_v57  ;;  %6585 = vmatprep.subr.bf16.mxu0 %v18204_v59  ;;  %v18265_v57 = vld [vmem:[#allocation3 + $0x1cc0] ss:$40 sps:$4 sm:$0xff]   ;;  %v18270_v59 = vld [vmem:[#allocation3 + $0x1774] ss:$40 sps:$4 sm:$0xff]  }
 0x1c6   :  { %6626 = vmatprep.subr.bf16.mxu1 %v18207_v60  ;;  %6615 = vmatprep.mubr.bf16.mxu0 %v20428_v61  ;;  %v18273_v60 = vld [vmem:[#allocation3 + $0x1c74] ss:$40 sps:$4 sm:$0xff]  }
 0x1c7   :  { %6656 = vmatprep.mubr.bf16.mxu1 %v20432_v19 }
 0x1c8   :  { %6586 = vmatpush1.bf16.msra.mxu0 %v18202_v34  ;;  %v18268_v34 = vld [vmem:[#allocation3 + $0x1770] ss:$40 sps:$4 sm:$0xff]  }
 0x1c9   :  { %6627 = vmatpush1.bf16.msra.mxu1 %v18205_v62  ;;  %6587 = vmatprep.subr.bf16.mxu0 %v18210_v0  ;;  %v18271_v62 = vld [vmem:[#allocation3 + $0x1c70] ss:$40 sps:$4 sm:$0xff]   ;;  %v18276_v0 = vld [vmem:[#allocation3 + $0x1724] ss:$40 sps:$4 sm:$0xff]  }
 0x1ca   :  { %6628 = vmatprep.subr.bf16.mxu1 %v18213_v47  ;;  %v18279_v47 = vld [vmem:[#allocation3 + $0x1c24] ss:$40 sps:$4 sm:$0xff]  }
 0x1cc   :  { %6588 = vmatpush1.bf16.msra.mxu0 %v18208_v13  ;;  %v18274_v13 = vld [vmem:[#allocation3 + $0x1720] ss:$40 sps:$4 sm:$0xff]  }
 0x1cd   :  { %6629 = vmatpush1.bf16.msra.mxu1 %v18211_v1  ;;  %6589 = vmatprep.subr.bf16.mxu0 %v18216_v54  ;;  %v18277_v1 = vld [vmem:[#allocation3 + $0x1c20] ss:$40 sps:$4 sm:$0xff]   ;;  %v18282_v54 = vld [vmem:[#allocation3 + $0x16d4] ss:$40 sps:$4 sm:$0xff]  }
 0x1ce   :  { %6630 = vmatprep.subr.bf16.mxu1 %v18219_v2  ;;  %v18285_v2 = vld [vmem:[#allocation3 + $0x1bd4] ss:$40 sps:$4 sm:$0xff]  }
 0x1d0   :  { %6590 = vmatpush1.bf16.msra.mxu0 %v18214_v3  ;;  %v18280_v3 = vld [vmem:[#allocation3 + $0x16d0] ss:$40 sps:$4 sm:$0xff]  }
 0x1d1   :  { %6631 = vmatpush1.bf16.msra.mxu1 %v18217_v4  ;;  %6591 = vmatprep.subr.bf16.mxu0 %v18222_v5  ;;  %v18283_v4 = vld [vmem:[#allocation3 + $0x1bd0] ss:$40 sps:$4 sm:$0xff]   ;;  %v18288_v5 = vld [vmem:[#allocation3 + $0x1684] ss:$40 sps:$4 sm:$0xff]  }
 0x1d2   :  { %6632 = vmatprep.subr.bf16.mxu1 %v18225_v6  ;;  %v18291_v6 = vld [vmem:[#allocation3 + $0x1b84] ss:$40 sps:$4 sm:$0xff]  }
 0x1d4   :  { %6592 = vmatpush1.bf16.msra.mxu0 %v18220_v8  ;;  %v18286_v8 = vld [vmem:[#allocation3 + $0x1680] ss:$40 sps:$4 sm:$0xff]  }
 0x1d5   :  { %6633 = vmatpush1.bf16.msra.mxu1 %v18223_v9  ;;  %6593 = vmatprep.subr.bf16.mxu0 %v18228_v10  ;;  %v18289_v9 = vld [vmem:[#allocation3 + $0x1b80] ss:$40 sps:$4 sm:$0xff]   ;;  %v18294_v10 = vld [vmem:[#allocation3 + $0x23c] ss:$40 sps:$4 sm:$0xff]  }
 0x1d6   :  { %6634 = vmatprep.subr.bf16.mxu1 %v18231_v11  ;;  %v18297_v11 = vld [vmem:[#allocation3 + $0x73c] ss:$40 sps:$4 sm:$0xff]  }
 0x1d8   :  { %6594 = vmatpush1.bf16.msra.mxu0 %v18226_v14  ;;  %v20440_v14 = vpack.c.bf16 %v20362_v7, %v20362_v7  ;;  %v18301_v7 = vld [vmem:[#allocation3 + $0x6e8] ss:$40 sps:$4 sm:$0xff]  }
 0x1d9   :  { %6635 = vmatpush1.bf16.msra.mxu1 %v18229_v15  ;;  %6595 = vmatprep.subr.bf16.mxu0 %v18234_v16  ;;  %v20444_v15 = vpack.c.bf16 %v20386_v50, %v20386_v50  ;;  %v18292_v16 = vld [vmem:[#allocation3 + $0x238] ss:$40 sps:$4 sm:$0xff]   ;;  %v18306_v50 = vld [vmem:[#allocation3 + $0x19c] ss:$40 sps:$4 sm:$0xff]  }
 0x1da   :  { %6636 = vmatprep.subr.bf16.mxu1 %v18237_v18  ;;  %v18295_v18 = vld [vmem:[#allocation3 + $0x738] ss:$40 sps:$4 sm:$0xff]  }
 0x1dc   :  { %6596 = vmatpush1.bf16.msra.mxu0 %v18232_v22  ;;  %v18300_v22 = vld [vmem:[#allocation3 + $0x1ec] ss:$40 sps:$4 sm:$0xff]  }
 0x1dd   :  { %6637 = vmatpush1.bf16.msra.mxu1 %v18235_v24  ;;  %6597 = vmatprep.subr.bf16.mxu0 %v18240_v25  ;;  %v18303_v24 = vld [vmem:[#allocation3 + $0x6ec] ss:$40 sps:$4 sm:$0xff]   ;;  %v18298_v25 = vld [vmem:[#allocation3 + $0x1e8] ss:$40 sps:$4 sm:$0xff]  }
 0x1de   :  { %6638 = vmatprep.subr.bf16.mxu1 %v18243_v26  ;;  %v18309_v26 = vld [vmem:[#allocation3 + $0x69c] ss:$40 sps:$4 sm:$0xff]  }
 0x1e0   :  { %6598 = vmatpush1.bf16.msra.mxu0 %v18238_v63  ;;  %v18304_v63 = vld [vmem:[#allocation3 + $0x198] ss:$40 sps:$4 sm:$0xff]  }
 0x1e1   :  { %6639 = vmatpush1.bf16.msra.mxu1 %v18241_v32  ;;  %6599 = vmatprep.subr.bf16.mxu0 %v18246_v33  ;;  %v18307_v32 = vld [vmem:[#allocation3 + $0x698] ss:$40 sps:$4 sm:$0xff]   ;;  %v18312_v33 = vld [vmem:[#allocation3 + $0x14c] ss:$40 sps:$4 sm:$0xff]  }
 0x1e2   :  { %6640 = vmatprep.subr.bf16.mxu1 %v18249_v28  ;;  %v18315_v28 = vld [vmem:[#allocation3 + $0x64c] ss:$40 sps:$4 sm:$0xff]  }
 0x1e4   :  { %6600 = vmatpush2.bf16.msra.mxu0 %v18244_v23  ;;  %v18310_v23 = vld [vmem:[#allocation3 + $0x148] ss:$40 sps:$4 sm:$0xff]  }
 0x1e5   :  { %6641 = vmatpush2.bf16.msra.mxu1 %v18247_v35  ;;  %6601 = vmatprep.subr.bf16.mxu0 %v18252_v39  ;;  %v18313_v35 = vld [vmem:[#allocation3 + $0x648] ss:$40 sps:$4 sm:$0xff]   ;;  %v18318_v39 = vld [vmem:[#allocation3 + $0xfc] ss:$40 sps:$4 sm:$0xff]  }
 0x1e6   :  { %6642 = vmatprep.subr.bf16.mxu1 %v18255_v37  ;;  %v18321_v37 = vld [vmem:[#allocation3 + $0x5fc] ss:$40 sps:$4 sm:$0xff]  }
 0x1e8   :  { %6602 = vmatpush2.bf16.msra.mxu0 %v18250_v38  ;;  %v18316_v38 = vld [vmem:[#allocation3 + $0xf8] ss:$40 sps:$4 sm:$0xff]  }
 0x1e9   :  { %6643 = vmatpush2.bf16.msra.mxu1 %v18253_v41  ;;  %6603 = vmatprep.subr.bf16.mxu0 %v18258_v44  ;;  %v18319_v41 = vld [vmem:[#allocation3 + $0x5f8] ss:$40 sps:$4 sm:$0xff]   ;;  %v18324_v44 = vld [vmem:[#allocation3 + $0xac] ss:$40 sps:$4 sm:$0xff]  }
 0x1ea   :  { %6644 = vmatprep.subr.bf16.mxu1 %v18261_v30  ;;  %v18327_v30 = vld [vmem:[#allocation3 + $0x5ac] ss:$40 sps:$4 sm:$0xff]  }
 0x1ec   :  { %6604 = vmatpush2.bf16.msra.mxu0 %v18256_v45  ;;  %v18322_v45 = vld [vmem:[#allocation3 + $0xa8] ss:$40 sps:$4 sm:$0xff]  }
 0x1ed   :  { %6645 = vmatpush2.bf16.msra.mxu1 %v18259_v46  ;;  %6605 = vmatprep.subr.bf16.mxu0 %v18264_v48  ;;  %v18325_v46 = vld [vmem:[#allocation3 + $0x5a8] ss:$40 sps:$4 sm:$0xff]   ;;  %v18330_v48 = vld [vmem:[#allocation3 + $0x5c] ss:$40 sps:$4 sm:$0xff]  }
 0x1ee   :  { %6646 = vmatprep.subr.bf16.mxu1 %v18267_v49  ;;  %v18333_v49 = vld [vmem:[#allocation3 + $0x55c] ss:$40 sps:$4 sm:$0xff]  }
 0x1f0   :  { %6606 = vmatpush2.bf16.msra.mxu0 %v18262_v42  ;;  %v18328_v42 = vld [vmem:[#allocation3 + $0x58] ss:$40 sps:$4 sm:$0xff]  }
 0x1f1   :  { %6647 = vmatpush2.bf16.msra.mxu1 %v18265_v57  ;;  %6607 = vmatprep.subr.bf16.mxu0 %v18270_v59  ;;  %v18331_v57 = vld [vmem:[#allocation3 + $0x558] ss:$40 sps:$4 sm:$0xff]   ;;  %v18336_v59 = vld [vmem:[#allocation3 + $0xc] ss:$40 sps:$4 sm:$0xff]  }
 0x1f2   :  { %6648 = vmatprep.subr.bf16.mxu1 %v18273_v60  ;;  %v18339_v60 = vld [vmem:[#allocation3 + $0x50c] ss:$40 sps:$4 sm:$0xff]  }
 0x1f4   :  { %6608 = vmatpush2.bf16.msra.mxu0 %v18268_v34  ;;  %v18334_v34 = vld [vmem:[#allocation3 + $0x8] ss:$40 sps:$4 sm:$0xff]  }
 0x1f5   :  { %6649 = vmatpush2.bf16.msra.mxu1 %v18271_v62  ;;  %6609 = vmatprep.subr.bf16.mxu0 %v18276_v0  ;;  %v18337_v62 = vld [vmem:[#allocation3 + $0x508] ss:$40 sps:$4 sm:$0xff]   ;;  %v18342_v0 = vld [vmem:[#allocation3 + $0x4bc] ss:$40 sps:$4 sm:$0xff]  }
 0x1f6   :  { %6650 = vmatprep.subr.bf16.mxu1 %v18279_v47  ;;  %v18345_v47 = vld [vmem:[#allocation3 + $0x9bc] ss:$40 sps:$4 sm:$0xff]  }
 0x1f8   :  { %6610 = vmatpush2.bf16.msra.mxu0 %v18274_v13  ;;  %v18340_v13 = vld [vmem:[#allocation3 + $0x4b8] ss:$40 sps:$4 sm:$0xff]  }
 0x1f9   :  { %6651 = vmatpush2.bf16.msra.mxu1 %v18277_v1  ;;  %6611 = vmatprep.subr.bf16.mxu0 %v18282_v54  ;;  %v18343_v1 = vld [vmem:[#allocation3 + $0x9b8] ss:$40 sps:$4 sm:$0xff]   ;;  %v18348_v54 = vld [vmem:[#allocation3 + $0x46c] ss:$40 sps:$4 sm:$0xff]  }
 0x1fa   :  { %6652 = vmatprep.subr.bf16.mxu1 %v18285_v2  ;;  %v18351_v2 = vld [vmem:[#allocation3 + $0x96c] ss:$40 sps:$4 sm:$0xff]  }
 0x1fc   :  { %6612 = vmatpush2.bf16.msra.mxu0 %v18280_v3  ;;  %v18346_v3 = vld [vmem:[#allocation3 + $0x468] ss:$40 sps:$4 sm:$0xff]  }
 0x1fd   :  { %6653 = vmatpush2.bf16.msra.mxu1 %v18283_v4  ;;  %6613 = vmatprep.subr.bf16.mxu0 %v18288_v5  ;;  %v18349_v4 = vld [vmem:[#allocation3 + $0x968] ss:$40 sps:$4 sm:$0xff]   ;;  %v18354_v5 = vld [vmem:[#allocation3 + $0x41c] ss:$40 sps:$4 sm:$0xff]  }
 0x1fe   :  { %6654 = vmatprep.subr.bf16.mxu1 %v18291_v6  ;;  %v18357_v6 = vld [vmem:[#allocation3 + $0x91c] ss:$40 sps:$4 sm:$0xff]  }
 0x200   :  { %6614 = vmatpush2.bf16.msra.mxu0 %v18286_v8  ;;  %v18352_v8 = vld [vmem:[#allocation3 + $0x418] ss:$40 sps:$4 sm:$0xff]  }
 0x201   :  { %6655 = vmatpush2.bf16.msra.mxu1 %v18289_v9  ;;  %6665 = vmatprep.subr.bf16.mxu0 %v18294_v10  ;;  %v18355_v9 = vld [vmem:[#allocation3 + $0x918] ss:$40 sps:$4 sm:$0xff]   ;;  %v18360_v10 = vld [vmem:[#allocation3 + $0x3cc] ss:$40 sps:$4 sm:$0xff]  }
 0x202   :  { %6706 = vmatprep.subr.bf16.mxu1 %v18297_v11  ;;  %v18363_v11 = vld [vmem:[#allocation3 + $0x8cc] ss:$40 sps:$4 sm:$0xff]  }
 0x203   :  { %6616 = vmatmul.mubr.bf16.vlgmr.msra.gmra.mxu0 %v20440_v14 }
 0x204   :  { %6657 = vmatmul.mubr.bf16.vlgmr.msra.gmra.mxu1 %v20444_v15  ;;  %6666 = vmatpush1.bf16.msra.mxu0 %v18292_v16  ;;  %v18358_v16 = vld [vmem:[#allocation3 + $0x3c8] ss:$40 sps:$4 sm:$0xff]  }
 0x205   :  { %6707 = vmatpush1.bf16.msra.mxu1 %v18295_v18  ;;  %6667 = vmatprep.subr.bf16.mxu0 %v18300_v22  ;;  %v18361_v18 = vld [vmem:[#allocation3 + $0x8c8] ss:$40 sps:$4 sm:$0xff]   ;;  %v18366_v22 = vld [vmem:[#allocation3 + $0x37c] ss:$40 sps:$4 sm:$0xff]  }
 0x206   :  { %6708 = vmatprep.subr.bf16.mxu1 %v18303_v24  ;;  %6697 = vmatprep.mubr.bf16.mxu0 %v20392_v55  ;;  %v18369_v24 = vld [vmem:[#allocation3 + $0x87c] ss:$40 sps:$4 sm:$0xff]  }
 0x207   :  { %6738 = vmatprep.mubr.bf16.mxu1 %v20394_v56 }
 0x208   :  { %6668 = vmatpush1.bf16.msra.mxu0 %v18298_v25  ;;  %v18364_v25 = vld [vmem:[#allocation3 + $0x378] ss:$40 sps:$4 sm:$0xff]  }
 0x209   :  { %6709 = vmatpush1.bf16.msra.mxu1 %v18301_v7  ;;  %6669 = vmatprep.subr.bf16.mxu0 %v18306_v50  ;;  %v18367_v7 = vld [vmem:[#allocation3 + $0x878] ss:$40 sps:$4 sm:$0xff]   ;;  %v18372_v50 = vld [vmem:[#allocation3 + $0x32c] ss:$40 sps:$4 sm:$0xff]  }
 0x20a   :  { %6710 = vmatprep.subr.bf16.mxu1 %v18309_v26  ;;  %v18375_v26 = vld [vmem:[#allocation3 + $0x82c] ss:$40 sps:$4 sm:$0xff]  }
 0x20c   :  { %6670 = vmatpush1.bf16.msra.mxu0 %v18304_v63  ;;  %v18370_v63 = vld [vmem:[#allocation3 + $0x328] ss:$40 sps:$4 sm:$0xff]  }
 0x20d   :  { %6711 = vmatpush1.bf16.msra.mxu1 %v18307_v32  ;;  %6671 = vmatprep.subr.bf16.mxu0 %v18312_v33  ;;  %v18373_v32 = vld [vmem:[#allocation3 + $0x828] ss:$40 sps:$4 sm:$0xff]   ;;  %v18378_v33 = vld [vmem:[#allocation3 + $0x2dc] ss:$40 sps:$4 sm:$0xff]  }
 0x20e   :  { %6712 = vmatprep.subr.bf16.mxu1 %v18315_v28  ;;  %v18381_v28 = vld [vmem:[#allocation3 + $0x7dc] ss:$40 sps:$4 sm:$0xff]  }
 0x210   :  { %6672 = vmatpush1.bf16.msra.mxu0 %v18310_v23  ;;  %v18376_v23 = vld [vmem:[#allocation3 + $0x2d8] ss:$40 sps:$4 sm:$0xff]  }
 0x211   :  { %6713 = vmatpush1.bf16.msra.mxu1 %v18313_v35  ;;  %6673 = vmatprep.subr.bf16.mxu0 %v18318_v39  ;;  %v18379_v35 = vld [vmem:[#allocation3 + $0x7d8] ss:$40 sps:$4 sm:$0xff]   ;;  %v18384_v39 = vld [vmem:[#allocation3 + $0x28c] ss:$40 sps:$4 sm:$0xff]  }
 0x212   :  { %6714 = vmatprep.subr.bf16.mxu1 %v18321_v37  ;;  %v18387_v37 = vld [vmem:[#allocation3 + $0x78c] ss:$40 sps:$4 sm:$0xff]  }
 0x214   :  { %6674 = vmatpush1.bf16.msra.mxu0 %v18316_v38  ;;  %v18382_v38 = vld [vmem:[#allocation3 + $0x288] ss:$40 sps:$4 sm:$0xff]  }
 0x215   :  { %6715 = vmatpush1.bf16.msra.mxu1 %v18319_v41  ;;  %6675 = vmatprep.subr.bf16.mxu0 %v18324_v44  ;;  %v18385_v41 = vld [vmem:[#allocation3 + $0x788] ss:$40 sps:$4 sm:$0xff]   ;;  %v1565_v44 = vld [vmem:[#allocation11 + $0xc] sm:$0xff] }
 0x216   :  { %6716 = vmatprep.subr.bf16.mxu1 %v18327_v30  ;;  %v18390_v30 = vld [vmem:[#allocation3 + $0xc3c] ss:$40 sps:$4 sm:$0xff]  }
 0x218   :  { %6676 = vmatpush1.bf16.msra.mxu0 %v18322_v45  ;;  %v18393_v45 = vld [vmem:[#allocation3 + $0x113c] ss:$40 sps:$4 sm:$0xff]  }
 0x219   :  { %6717 = vmatpush1.bf16.msra.mxu1 %v18325_v46  ;;  %6677 = vmatprep.subr.bf16.mxu0 %v18330_v48  ;;  %v18388_v46 = vld [vmem:[#allocation3 + $0xc38] ss:$40 sps:$4 sm:$0xff]  }
 0x21a   :  { %6718 = vmatprep.subr.bf16.mxu1 %v18333_v49  ;;  %v18391_v48 = vld [vmem:[#allocation3 + $0x1138] ss:$40 sps:$4 sm:$0xff]   ;;  %v1572_v49 = vrot.slane %v1565_v44, %v20324_v29 }
 0x21c   :  { %6678 = vmatpush1.bf16.msra.mxu0 %v18328_v42  ;;  %v18396_v42 = vld [vmem:[#allocation3 + $0xbec] ss:$40 sps:$4 sm:$0xff]  }
 0x21d   :  { %6719 = vmatpush1.bf16.msra.mxu1 %v18331_v57  ;;  %6679 = vmatprep.subr.bf16.mxu0 %v18336_v59  ;;  %v18399_v57 = vld [vmem:[#allocation3 + $0x10ec] ss:$40 sps:$4 sm:$0xff]   ;;  %v1576_v59 = vrot.slane %v1565_v44, %v20328_v31 }
 0x21e   :  { %6720 = vmatprep.subr.bf16.mxu1 %v18339_v60  ;;  %v18394_v60 = vld [vmem:[#allocation3 + $0xbe8] ss:$40 sps:$4 sm:$0xff]   ;;  %v18435_v44 = vld [vmem:[#allocation3 + $0xf0c] ss:$40 sps:$4 sm:$0xff]  }
 0x220   :  { %6680 = vmatpush1.bf16.msra.mxu0 %v18334_v34  ;;  %v18397_v34 = vld [vmem:[#allocation3 + $0x10e8] ss:$40 sps:$4 sm:$0xff]  }
 0x221   :  { %6721 = vmatpush1.bf16.msra.mxu1 %v18337_v62  ;;  %6681 = vmatprep.subr.bf16.mxu0 %v18342_v0 }
 0x222   :  { %6722 = vmatprep.subr.bf16.mxu1 %v18345_v47 }
 0x224   :  { %6682 = vmatpush2.bf16.msra.mxu0 %v18340_v13 }
 0x225   :  { %6723 = vmatpush2.bf16.msra.mxu1 %v18343_v1  ;;  %6683 = vmatprep.subr.bf16.mxu0 %v18348_v54  ;;  %v18402_v54 = vld [vmem:[#allocation3 + $0xb9c] ss:$40 sps:$4 sm:$0xff]  }
 0x226   :  { %6724 = vmatprep.subr.bf16.mxu1 %v18351_v2  ;;  %v18405_v2 = vld [vmem:[#allocation3 + $0x109c] ss:$40 sps:$4 sm:$0xff]  }
 0x228   :  { %6684 = vmatpush2.bf16.msra.mxu0 %v18346_v3 }
 0x229   :  { %6725 = vmatpush2.bf16.msra.mxu1 %v18349_v4  ;;  %6685 = vmatprep.subr.bf16.mxu0 %v18354_v5  ;;  %v18400_v5 = vld [vmem:[#allocation3 + $0xb98] ss:$40 sps:$4 sm:$0xff]  }
 0x22a   :  { %6726 = vmatprep.subr.bf16.mxu1 %v18357_v6  ;;  %v18403_v6 = vld [vmem:[#allocation3 + $0x1098] ss:$40 sps:$4 sm:$0xff]  }
 0x22c   :  { %6686 = vmatpush2.bf16.msra.mxu0 %v18352_v8 }
 0x22d   :  { %6727 = vmatpush2.bf16.msra.mxu1 %v18355_v9  ;;  %6687 = vmatprep.subr.bf16.mxu0 %v18360_v10 }
 0x22e   :  { %6728 = vmatprep.subr.bf16.mxu1 %v18363_v11 }
 0x230   :  { %6688 = vmatpush2.bf16.msra.mxu0 %v18358_v16 }
 0x231   :  { %6729 = vmatpush2.bf16.msra.mxu1 %v18361_v18  ;;  %6689 = vmatprep.subr.bf16.mxu0 %v18366_v22  ;;  %v18408_v18 = vld [vmem:[#allocation3 + $0xb4c] ss:$40 sps:$4 sm:$0xff]  }
 0x232   :  { %6730 = vmatprep.subr.bf16.mxu1 %v18369_v24  ;;  %v18411_v22 = vld [vmem:[#allocation3 + $0x104c] ss:$40 sps:$4 sm:$0xff]   ;;  %v18406_v24 = vld [vmem:[#allocation3 + $0xb48] ss:$40 sps:$4 sm:$0xff]  }
 0x234   :  { %6690 = vmatpush2.bf16.msra.mxu0 %v18364_v25  ;;  %v18409_v25 = vld [vmem:[#allocation3 + $0x1048] ss:$40 sps:$4 sm:$0xff]  }
 0x235   :  { %6731 = vmatpush2.bf16.msra.mxu1 %v18367_v7  ;;  %6691 = vmatprep.subr.bf16.mxu0 %v18372_v50  ;;  %v18414_v7 = vld [vmem:[#allocation3 + $0xafc] ss:$40 sps:$4 sm:$0xff]  }
 0x236   :  { %6732 = vmatprep.subr.bf16.mxu1 %v18375_v26  ;;  %v18417_v50 = vld [vmem:[#allocation3 + $0xffc] ss:$40 sps:$4 sm:$0xff]   ;;  %v18412_v26 = vld [vmem:[#allocation3 + $0xaf8] ss:$40 sps:$4 sm:$0xff]  }
 0x238   :  { %6692 = vmatpush2.bf16.msra.mxu0 %v18370_v63  ;;  %v18415_v63 = vld [vmem:[#allocation3 + $0xff8] ss:$40 sps:$4 sm:$0xff]  }
 0x239   :  { %6733 = vmatpush2.bf16.msra.mxu1 %v18373_v32  ;;  %6693 = vmatprep.subr.bf16.mxu0 %v18378_v33  ;;  %v18420_v32 = vld [vmem:[#allocation3 + $0xaac] ss:$40 sps:$4 sm:$0xff]  }
 0x23a   :  { %6734 = vmatprep.subr.bf16.mxu1 %v18381_v28  ;;  %v18423_v33 = vld [vmem:[#allocation3 + $0xfac] ss:$40 sps:$4 sm:$0xff]   ;;  %v18418_v28 = vld [vmem:[#allocation3 + $0xaa8] ss:$40 sps:$4 sm:$0xff]  }
 0x23c   :  { %6694 = vmatpush2.bf16.msra.mxu0 %v18376_v23  ;;  %v18421_v23 = vld [vmem:[#allocation3 + $0xfa8] ss:$40 sps:$4 sm:$0xff]  }
 0x23d   :  { %6735 = vmatpush2.bf16.msra.mxu1 %v18379_v35  ;;  %6695 = vmatprep.subr.bf16.mxu0 %v18384_v39  ;;  %v18426_v35 = vld [vmem:[#allocation3 + $0xa5c] ss:$40 sps:$4 sm:$0xff]  }
 0x23e   :  { %6736 = vmatprep.subr.bf16.mxu1 %v18387_v37  ;;  %v18429_v39 = vld [vmem:[#allocation3 + $0xf5c] ss:$40 sps:$4 sm:$0xff]   ;;  %v18424_v37 = vld [vmem:[#allocation3 + $0xa58] ss:$40 sps:$4 sm:$0xff]  }
 0x240   :  { %6696 = vmatpush2.bf16.msra.mxu0 %v18382_v38  ;;  %v18427_v38 = vld [vmem:[#allocation3 + $0xf58] ss:$40 sps:$4 sm:$0xff]  }
 0x241   :  { %6737 = vmatpush2.bf16.msra.mxu1 %v18385_v41  ;;  %6747 = vmatprep.subr.bf16.mxu0 %v18390_v30  ;;  %v18432_v41 = vld [vmem:[#allocation3 + $0xa0c] ss:$40 sps:$4 sm:$0xff]   ;;  %v18430_v30 = vld [vmem:[#allocation3 + $0xa08] ss:$40 sps:$4 sm:$0xff]  }
 0x242   :  { %6788 = vmatprep.subr.bf16.mxu1 %v18393_v45  ;;  %v18433_v45 = vld [vmem:[#allocation3 + $0xf08] ss:$40 sps:$4 sm:$0xff]  }
 0x243   :  { %v6453_v62 = vpop.f32.mrf.mxu0  ;;  %6698 = vmatmul.mubr.bf16.vlgmr.msra.gmra.mxu0 %v20400_v20 }
 0x244   :  { %v6494_v0 = vpop.f32.mrf.mxu1  ;;  %6739 = vmatmul.mubr.bf16.vlgmr.msra.gmra.mxu1 %v20404_v21  ;;  %v6454_v47 = vadd.f32 %v6453_v62, %v1572_v49  ;;  %6748 = vmatpush1.bf16.msra.mxu0 %v18388_v46  ;;  %v18438_v46 = vld [vmem:[#allocation3 + $0xebc] ss:$40 sps:$4 sm:$0xff]   ;;  %v18436_v49 = vld [vmem:[#allocation3 + $0xeb8] ss:$40 sps:$4 sm:$0xff]  }
 0x245   :  { %6789 = vmatpush1.bf16.msra.mxu1 %v18391_v48  ;;  %v6455_v13 = vpop.f32.mrf.mxu0  ;;  %6749 = vmatprep.subr.bf16.mxu0 %v18396_v42  ;;  %v18441_v48 = vld [vmem:[#allocation3 + $0x13bc] ss:$40 sps:$4 sm:$0xff]   ;;  %v18439_v42 = vld [vmem:[#allocation3 + $0x13b8] ss:$40 sps:$4 sm:$0xff]  }
 0x246   :  { %v6496_v1 = vpop.f32.mrf.mxu1  ;;  %6790 = vmatprep.subr.bf16.mxu1 %v18399_v57  ;;  %v20454_v3 = vadd.f32 %v6494_v0, %v6454_v47  ;;  %v6456_v4 = vadd.f32 %v6455_v13, %v1576_v59  ;;  %6779 = vmatprep.mubr.bf16.mxu0 %v20408_v27  ;;  %v18444_v57 = vld [vmem:[#allocation3 + $0xe6c] ss:$40 sps:$4 sm:$0xff]   ;;  %v18450_v62 = vld [vmem:[#allocation3 + $0xe1c] ss:$40 sps:$4 sm:$0xff]   ;;  %v18448_v47 = vld [vmem:[#allocation3 + $0xe18] ss:$40 sps:$4 sm:$0xff]  }
 0x247   :  { %6820 = vmatprep.mubr.bf16.mxu1 %v20412_v43  ;;  %v6457_v8 = vpop.f32.mrf.mxu0  ;;  %v18447_v59 = vld [vmem:[#allocation3 + $0x136c] ss:$40 sps:$4 sm:$0xff]   ;;  %v18453_v0 = vld [vmem:[#allocation3 + $0x131c] ss:$40 sps:$4 sm:$0xff]   ;;  %v18451_v13 = vld [vmem:[#allocation3 + $0x1318] ss:$40 sps:$4 sm:$0xff]  }
 0x248   :  { %v6498_v9 = vpop.f32.mrf.mxu1  ;;  %v20458_v10 = vadd.f32 %v6496_v1, %v6456_v4  ;;  %6750 = vmatpush1.bf16.msra.mxu0 %v18394_v60  ;;  %v18442_v60 = vld [vmem:[#allocation3 + $0xe68] ss:$40 sps:$4 sm:$0xff]   ;;  %v18456_v1 = vld [vmem:[#allocation3 + $0xdcc] ss:$40 sps:$4 sm:$0xff]   ;;  %v18460_v8 = vld [vmem:[#allocation3 + $0xd78] ss:$40 sps:$4 sm:$0xff]  }
 0x249   :  { %6791 = vmatpush1.bf16.msra.mxu1 %v18397_v34  ;;  %v6458_v11 = vpop.f32.mrf.mxu0  ;;  %6751 = vmatprep.subr.bf16.mxu0 %v18402_v54  ;;  %v18445_v34 = vld [vmem:[#allocation3 + $0x1368] ss:$40 sps:$4 sm:$0xff]   ;;  %v18459_v54 = vld [vmem:[#allocation3 + $0x12cc] ss:$40 sps:$4 sm:$0xff]   ;;  %v18463_v9 = vld [vmem:[#allocation3 + $0x1278] ss:$40 sps:$4 sm:$0xff]  }
 0x24a   :  { %v6499_v16 = vpop.f32.mrf.mxu1  ;;  %6792 = vmatprep.subr.bf16.mxu1 %v18405_v2  ;;  %v18454_v2 = vld [vmem:[#allocation3 + $0xdc8] ss:$40 sps:$4 sm:$0xff]   ;;  %v18468_v11 = vld [vmem:[#allocation3 + $0xd2c] ss:$40 sps:$4 sm:$0xff]  }
 0x24b   :  { %v18457_v4 = vld [vmem:[#allocation3 + $0x12c8] ss:$40 sps:$4 sm:$0xff]   ;;  %v18471_v16 = vld [vmem:[#allocation3 + $0x122c] ss:$40 sps:$4 sm:$0xff]  }
 0x24c   :  { %6752 = vmatpush1.bf16.msra.mxu0 %v18400_v5  ;;  %v18462_v5 = vld [vmem:[#allocation3 + $0xd7c] ss:$40 sps:$4 sm:$0xff]  }
 0x24d   :  { %6793 = vmatpush1.bf16.msra.mxu1 %v18403_v6  ;;  %6753 = vmatprep.subr.bf16.mxu0 %v18408_v18  ;;  %v18465_v6 = vld [vmem:[#allocation3 + $0x127c] ss:$40 sps:$4 sm:$0xff]   ;;  %v18466_v18 = vld [vmem:[#allocation3 + $0xd28] ss:$40 sps:$4 sm:$0xff]  }
 0x24e   :  { %6794 = vmatprep.subr.bf16.mxu1 %v18411_v22  ;;  %v18469_v22 = vld [vmem:[#allocation3 + $0x1228] ss:$40 sps:$4 sm:$0xff]  }
 0x250   :  { %6754 = vmatpush1.bf16.msra.mxu0 %v18406_v24  ;;  %v18474_v24 = vld [vmem:[#allocation3 + $0xcdc] ss:$40 sps:$4 sm:$0xff]  }
 0x251   :  { %6795 = vmatpush1.bf16.msra.mxu1 %v18409_v25  ;;  %6755 = vmatprep.subr.bf16.mxu0 %v18414_v7  ;;  %v18477_v25 = vld [vmem:[#allocation3 + $0x11dc] ss:$40 sps:$4 sm:$0xff]   ;;  %v18472_v7 = vld [vmem:[#allocation3 + $0xcd8] ss:$40 sps:$4 sm:$0xff]  }
 0x252   :  { %6796 = vmatprep.subr.bf16.mxu1 %v18417_v50  ;;  %v18475_v50 = vld [vmem:[#allocation3 + $0x11d8] ss:$40 sps:$4 sm:$0xff]  }
 0x254   :  { %6756 = vmatpush1.bf16.msra.mxu0 %v18412_v26  ;;  %v18480_v26 = vld [vmem:[#allocation3 + $0xc8c] ss:$40 sps:$4 sm:$0xff]  }
 0x255   :  { %6797 = vmatpush1.bf16.msra.mxu1 %v18415_v63  ;;  %6757 = vmatprep.subr.bf16.mxu0 %v18420_v32  ;;  %v18483_v63 = vld [vmem:[#allocation3 + $0x118c] ss:$40 sps:$4 sm:$0xff]   ;;  %v18478_v32 = vld [vmem:[#allocation3 + $0xc88] ss:$40 sps:$4 sm:$0xff]  }
 0x256   :  { %6798 = vmatprep.subr.bf16.mxu1 %v18423_v33  ;;  %v18481_v33 = vld [vmem:[#allocation3 + $0x1188] ss:$40 sps:$4 sm:$0xff]  }
 0x258   :  { %6758 = vmatpush1.bf16.msra.mxu0 %v18418_v28  ;;  %v18486_v28 = vld [vmem:[#allocation3 + $0x163c] ss:$40 sps:$4 sm:$0xff]  }
 0x259   :  { %6799 = vmatpush1.bf16.msra.mxu1 %v18421_v23  ;;  %6759 = vmatprep.subr.bf16.mxu0 %v18426_v35  ;;  %v18489_v23 = vld [vmem:[#allocation3 + $0x1b3c] ss:$40 sps:$4 sm:$0xff]   ;;  %v18484_v35 = vld [vmem:[#allocation3 + $0x1638] ss:$40 sps:$4 sm:$0xff]  }
 0x25a   :  { %6800 = vmatprep.subr.bf16.mxu1 %v18429_v39  ;;  %v18487_v39 = vld [vmem:[#allocation3 + $0x1b38] ss:$40 sps:$4 sm:$0xff]  }
 0x25c   :  { %6760 = vmatpush1.bf16.msra.mxu0 %v18424_v37  ;;  %v18492_v37 = vld [vmem:[#allocation3 + $0x15ec] ss:$40 sps:$4 sm:$0xff]  }
 0x25d   :  { %6801 = vmatpush1.bf16.msra.mxu1 %v18427_v38  ;;  %6761 = vmatprep.subr.bf16.mxu0 %v18432_v41  ;;  %v18495_v38 = vld [vmem:[#allocation3 + $0x1aec] ss:$40 sps:$4 sm:$0xff]   ;;  %v18490_v41 = vld [vmem:[#allocation3 + $0x15e8] ss:$40 sps:$4 sm:$0xff]  }
 0x25e   :  { %6802 = vmatprep.subr.bf16.mxu1 %v18435_v44  ;;  %v18493_v44 = vld [vmem:[#allocation3 + $0x1ae8] ss:$40 sps:$4 sm:$0xff]  }
 0x260   :  { %6762 = vmatpush1.bf16.msra.mxu0 %v18430_v30 }
 0x261   :  { %6803 = vmatpush1.bf16.msra.mxu1 %v18433_v45  ;;  %6763 = vmatprep.subr.bf16.mxu0 %v18438_v46 }
 0x262   :  { %6804 = vmatprep.subr.bf16.mxu1 %v18441_v48 }
 0x264   :  { %6764 = vmatpush2.bf16.msra.mxu0 %v18436_v49 }
 0x265   :  { %6805 = vmatpush2.bf16.msra.mxu1 %v18439_v42  ;;  %6765 = vmatprep.subr.bf16.mxu0 %v18444_v57  ;;  %v18498_v42 = vld [vmem:[#allocation3 + $0x159c] ss:$40 sps:$4 sm:$0xff]  }
 0x266   :  { %6806 = vmatprep.subr.bf16.mxu1 %v18447_v59  ;;  %v18501_v57 = vld [vmem:[#allocation3 + $0x1a9c] ss:$40 sps:$4 sm:$0xff]  }
 0x268   :  { %6766 = vmatpush2.bf16.msra.mxu0 %v18442_v60 }
 0x269   :  { %6807 = vmatpush2.bf16.msra.mxu1 %v18445_v34  ;;  %6767 = vmatprep.subr.bf16.mxu0 %v18450_v62  ;;  %v18496_v34 = vld [vmem:[#allocation3 + $0x1598] ss:$40 sps:$4 sm:$0xff]  }
 0x26a   :  { %6808 = vmatprep.subr.bf16.mxu1 %v18453_v0  ;;  %v18499_v62 = vld [vmem:[#allocation3 + $0x1a98] ss:$40 sps:$4 sm:$0xff]  }
 0x26c   :  { %6768 = vmatpush2.bf16.msra.mxu0 %v18448_v47 }
 0x26d   :  { %6809 = vmatpush2.bf16.msra.mxu1 %v18451_v13  ;;  %6769 = vmatprep.subr.bf16.mxu0 %v18456_v1 }
 0x26e   :  { %6810 = vmatprep.subr.bf16.mxu1 %v18459_v54  ;;  %v18504_v54 = vld [vmem:[#allocation3 + $0x154c] ss:$40 sps:$4 sm:$0xff]  }
 0x270   :  { %6770 = vmatpush2.bf16.msra.mxu0 %v18454_v2  ;;  %v18507_v2 = vld [vmem:[#allocation3 + $0x1a4c] ss:$40 sps:$4 sm:$0xff]  }
 0x271   :  { %6811 = vmatpush2.bf16.msra.mxu1 %v18457_v4  ;;  %6771 = vmatprep.subr.bf16.mxu0 %v18462_v5  ;;  %v18505_v4 = vld [vmem:[#allocation3 + $0x1a48] ss:$40 sps:$4 sm:$0xff]   ;;  %v18510_v5 = vld [vmem:[#allocation3 + $0x14fc] ss:$40 sps:$4 sm:$0xff]  }
 0x272   :  { %6812 = vmatprep.subr.bf16.mxu1 %v18465_v6  ;;  %v18513_v6 = vld [vmem:[#allocation3 + $0x19fc] ss:$40 sps:$4 sm:$0xff]  }
 0x274   :  { %6772 = vmatpush2.bf16.msra.mxu0 %v18460_v8  ;;  %v18508_v8 = vld [vmem:[#allocation3 + $0x14f8] ss:$40 sps:$4 sm:$0xff]  }
 0x275   :  { %6813 = vmatpush2.bf16.msra.mxu1 %v18463_v9  ;;  %6773 = vmatprep.subr.bf16.mxu0 %v18468_v11  ;;  %v18511_v9 = vld [vmem:[#allocation3 + $0x19f8] ss:$40 sps:$4 sm:$0xff]   ;;  %v18516_v11 = vld [vmem:[#allocation3 + $0x14ac] ss:$40 sps:$4 sm:$0xff]  }
 0x276   :  { %6814 = vmatprep.subr.bf16.mxu1 %v18471_v16  ;;  %v18519_v16 = vld [vmem:[#allocation3 + $0x19ac] ss:$40 sps:$4 sm:$0xff]  }
 0x278   :  { %6774 = vmatpush2.bf16.msra.mxu0 %v18466_v18  ;;  %v18514_v18 = vld [vmem:[#allocation3 + $0x14a8] ss:$40 sps:$4 sm:$0xff]  }
 0x279   :  { %6815 = vmatpush2.bf16.msra.mxu1 %v18469_v22  ;;  %6775 = vmatprep.subr.bf16.mxu0 %v18474_v24  ;;  %v18517_v22 = vld [vmem:[#allocation3 + $0x19a8] ss:$40 sps:$4 sm:$0xff]   ;;  %v18522_v24 = vld [vmem:[#allocation3 + $0x145c] ss:$40 sps:$4 sm:$0xff]  }
 0x27a   :  { %6816 = vmatprep.subr.bf16.mxu1 %v18477_v25  ;;  %v18525_v25 = vld [vmem:[#allocation3 + $0x195c] ss:$40 sps:$4 sm:$0xff]  }
 0x27c   :  { %6776 = vmatpush2.bf16.msra.mxu0 %v18472_v7  ;;  %v18520_v7 = vld [vmem:[#allocation3 + $0x1458] ss:$40 sps:$4 sm:$0xff]  }
 0x27d   :  { %6817 = vmatpush2.bf16.msra.mxu1 %v18475_v50  ;;  %6777 = vmatprep.subr.bf16.mxu0 %v18480_v26  ;;  %v18523_v50 = vld [vmem:[#allocation3 + $0x1958] ss:$40 sps:$4 sm:$0xff]   ;;  %v18528_v26 = vld [vmem:[#allocation3 + $0x140c] ss:$40 sps:$4 sm:$0xff]  }
 0x27e   :  { %6818 = vmatprep.subr.bf16.mxu1 %v18483_v63  ;;  %v18531_v63 = vld [vmem:[#allocation3 + $0x190c] ss:$40 sps:$4 sm:$0xff]  }
 0x280   :  { %6778 = vmatpush2.bf16.msra.mxu0 %v18478_v32  ;;  %v18526_v32 = vld [vmem:[#allocation3 + $0x1408] ss:$40 sps:$4 sm:$0xff]  }
 0x281   :  { %6819 = vmatpush2.bf16.msra.mxu1 %v18481_v33  ;;  %6829 = vmatprep.subr.bf16.mxu0 %v18486_v28  ;;  %v18529_v33 = vld [vmem:[#allocation3 + $0x1908] ss:$40 sps:$4 sm:$0xff]   ;;  %v18534_v28 = vld [vmem:[#allocation3 + $0x18bc] ss:$40 sps:$4 sm:$0xff]  }
 0x282   :  { %6870 = vmatprep.subr.bf16.mxu1 %v18489_v23  ;;  %v18537_v23 = vld [vmem:[#allocation3 + $0x1dbc] ss:$40 sps:$4 sm:$0xff]  }
 0x283   :  { %v6535_v30 = vpop.f32.mrf.mxu0  ;;  %6780 = vmatmul.mubr.bf16.vlgmr.msra.gmra.mxu0 %v20420_v52 }
 0x284   :  { %v6576_v45 = vpop.f32.mrf.mxu1  ;;  %6821 = vmatmul.mubr.bf16.vlgmr.msra.gmra.mxu1 %v20424_v53  ;;  %v6536_v46 = vadd.f32 %v6535_v30, %v20454_v3  ;;  %6830 = vmatpush1.bf16.msra.mxu0 %v18484_v35  ;;  %v18532_v35 = vld [vmem:[#allocation3 + $0x18b8] ss:$40 sps:$4 sm:$0xff]   ;;  %v18546_v30 = vld [vmem:[#allocation3 + $0x181c] ss:$40 sps:$4 sm:$0xff]  }
 0x285   :  { %6871 = vmatpush1.bf16.msra.mxu1 %v18487_v39  ;;  %v6537_v48 = vpop.f32.mrf.mxu0  ;;  %6831 = vmatprep.subr.bf16.mxu0 %v18492_v37  ;;  %v18535_v39 = vld [vmem:[#allocation3 + $0x1db8] ss:$40 sps:$4 sm:$0xff]   ;;  %v18540_v37 = vld [vmem:[#allocation3 + $0x186c] ss:$40 sps:$4 sm:$0xff]  }
 0x286   :  { %v6578_v49 = vpop.f32.mrf.mxu1  ;;  %6872 = vmatprep.subr.bf16.mxu1 %v18495_v38  ;;  %v20463_v59 = vadd.f32 %v6576_v45, %v6536_v46  ;;  %v6538_v60 = vadd.f32 %v6537_v48, %v20458_v10  ;;  %6861 = vmatprep.mubr.bf16.mxu0 %v20428_v61  ;;  %v18502_v10 = vld [vmem:[#allocation3 + $0x1548] ss:$40 sps:$4 sm:$0xff]   ;;  %v18543_v38 = vld [vmem:[#allocation3 + $0x1d6c] ss:$40 sps:$4 sm:$0xff]   ;;  %v18549_v45 = vld [vmem:[#allocation3 + $0x1d1c] ss:$40 sps:$4 sm:$0xff]  }
 0x287   :  { %6902 = vmatprep.mubr.bf16.mxu1 %v20432_v19  ;;  %v6539_v0 = vpop.f32.mrf.mxu0  ;;  %v18544_v46 = vld [vmem:[#allocation3 + $0x1818] ss:$40 sps:$4 sm:$0xff]  }
 0x288   :  { %v6580_v3 = vpop.f32.mrf.mxu1  ;;  %v20468_v47 = vadd.f32 %v6578_v49, %v6538_v60  ;;  %6832 = vmatpush1.bf16.msra.mxu0 %v18490_v41  ;;  %v18538_v41 = vld [vmem:[#allocation3 + $0x1868] ss:$40 sps:$4 sm:$0xff]   ;;  %v18547_v48 = vld [vmem:[#allocation3 + $0x1d18] ss:$40 sps:$4 sm:$0xff]   ;;  %v18552_v49 = vld [vmem:[#allocation3 + $0x17cc] ss:$40 sps:$4 sm:$0xff]  }
 0x289   :  { %6873 = vmatpush1.bf16.msra.mxu1 %v18493_v44  ;;  %v6540_v13 = vpop.f32.mrf.mxu0  ;;  %6833 = vmatprep.subr.bf16.mxu0 %v18498_v42  ;;  %v18541_v44 = vld [vmem:[#allocation3 + $0x1d68] ss:$40 sps:$4 sm:$0xff]   ;;  %v18555_v42 = vld [vmem:[#allocation3 + $0x1ccc] ss:$40 sps:$4 sm:$0xff]   ;;  %v18556_v0 = vld [vmem:[#allocation3 + $0x1778] ss:$40 sps:$4 sm:$0xff]  }
 0x28a   :  { %v6581_v1 = vpop.f32.mrf.mxu1  ;;  %6874 = vmatprep.subr.bf16.mxu1 %v18501_v57  ;;  %v18550_v57 = vld [vmem:[#allocation3 + $0x17c8] ss:$40 sps:$4 sm:$0xff]   ;;  %v18559_v3 = vld [vmem:[#allocation3 + $0x1c78] ss:$40 sps:$4 sm:$0xff]   ;;  %v18564_v13 = vld [vmem:[#allocation3 + $0x172c] ss:$40 sps:$4 sm:$0xff]  }
 0x28b   :  { %v18553_v60 = vld [vmem:[#allocation3 + $0x1cc8] ss:$40 sps:$4 sm:$0xff]   ;;  %v18567_v1 = vld [vmem:[#allocation3 + $0x1c2c] ss:$40 sps:$4 sm:$0xff]  }
 0x28c   :  { %6834 = vmatpush1.bf16.msra.mxu0 %v18496_v34  ;;  %v18558_v34 = vld [vmem:[#allocation3 + $0x177c] ss:$40 sps:$4 sm:$0xff]  }
 0x28d   :  { %6875 = vmatpush1.bf16.msra.mxu1 %v18499_v62  ;;  %6835 = vmatprep.subr.bf16.mxu0 %v18504_v54  ;;  %v18561_v62 = vld [vmem:[#allocation3 + $0x1c7c] ss:$40 sps:$4 sm:$0xff]   ;;  %v18562_v54 = vld [vmem:[#allocation3 + $0x1728] ss:$40 sps:$4 sm:$0xff]  }
 0x28e   :  { %6876 = vmatprep.subr.bf16.mxu1 %v18507_v2  ;;  %v18565_v2 = vld [vmem:[#allocation3 + $0x1c28] ss:$40 sps:$4 sm:$0xff]  }
 0x290   :  { %6836 = vmatpush1.bf16.msra.mxu0 %v18502_v10  ;;  %v18570_v10 = vld [vmem:[#allocation3 + $0x16dc] ss:$40 sps:$4 sm:$0xff]  }
 0x291   :  { %6877 = vmatpush1.bf16.msra.mxu1 %v18505_v4  ;;  %6837 = vmatprep.subr.bf16.mxu0 %v18510_v5  ;;  %v18573_v4 = vld [vmem:[#allocation3 + $0x1bdc] ss:$40 sps:$4 sm:$0xff]   ;;  %v18568_v5 = vld [vmem:[#allocation3 + $0x16d8] ss:$40 sps:$4 sm:$0xff]  }
 0x292   :  { %6878 = vmatprep.subr.bf16.mxu1 %v18513_v6  ;;  %v18571_v6 = vld [vmem:[#allocation3 + $0x1bd8] ss:$40 sps:$4 sm:$0xff]  }
 0x294   :  { %6838 = vmatpush1.bf16.msra.mxu0 %v18508_v8  ;;  %v18576_v8 = vld [vmem:[#allocation3 + $0x168c] ss:$40 sps:$4 sm:$0xff]  }
 0x295   :  { %6879 = vmatpush1.bf16.msra.mxu1 %v18511_v9  ;;  %6839 = vmatprep.subr.bf16.mxu0 %v18516_v11  ;;  %v18579_v9 = vld [vmem:[#allocation3 + $0x1b8c] ss:$40 sps:$4 sm:$0xff]   ;;  %v18574_v11 = vld [vmem:[#allocation3 + $0x1688] ss:$40 sps:$4 sm:$0xff]  }
 0x296   :  { %6880 = vmatprep.subr.bf16.mxu1 %v18519_v16  ;;  %v18577_v16 = vld [vmem:[#allocation3 + $0x1b88] ss:$40 sps:$4 sm:$0xff]  }
 0x298   :  { %6840 = vmatpush1.bf16.msra.mxu0 %v18514_v18  ;;  %v18582_v18 = vld [vmem:[#allocation3 + $0x244] ss:$40 sps:$4 sm:$0xff]  }
 0x299   :  { %6881 = vmatpush1.bf16.msra.mxu1 %v18517_v22  ;;  %6841 = vmatprep.subr.bf16.mxu0 %v18522_v24  ;;  %v18585_v22 = vld [vmem:[#allocation3 + $0x744] ss:$40 sps:$4 sm:$0xff]   ;;  %v18580_v24 = vld [vmem:[#allocation3 + $0x240] ss:$40 sps:$4 sm:$0xff]  }
 0x29a   :  { %6882 = vmatprep.subr.bf16.mxu1 %v18525_v25  ;;  %v18583_v25 = vld [vmem:[#allocation3 + $0x740] ss:$40 sps:$4 sm:$0xff]  }
 0x29c   :  { %6842 = vmatpush1.bf16.msra.mxu0 %v18520_v7  ;;  %v18588_v7 = vld [vmem:[#allocation3 + $0x1f4] ss:$40 sps:$4 sm:$0xff]  }
 0x29d   :  { %6883 = vmatpush1.bf16.msra.mxu1 %v18523_v50  ;;  %6843 = vmatprep.subr.bf16.mxu0 %v18528_v26  ;;  %v18591_v50 = vld [vmem:[#allocation3 + $0x6f4] ss:$40 sps:$4 sm:$0xff]   ;;  %v18586_v26 = vld [vmem:[#allocation3 + $0x1f0] ss:$40 sps:$4 sm:$0xff]  }
 0x29e   :  { %6884 = vmatprep.subr.bf16.mxu1 %v18531_v63  ;;  %v18589_v63 = vld [vmem:[#allocation3 + $0x6f0] ss:$40 sps:$4 sm:$0xff]  }
 0x2a0   :  { %6844 = vmatpush1.bf16.msra.mxu0 %v18526_v32 }
 0x2a1   :  { %6885 = vmatpush1.bf16.msra.mxu1 %v18529_v33  ;;  %6845 = vmatprep.subr.bf16.mxu0 %v18534_v28 }
 0x2a2   :  { %6886 = vmatprep.subr.bf16.mxu1 %v18537_v23 }
 0x2a4   :  { %6846 = vmatpush2.bf16.msra.mxu0 %v18532_v35 }
 0x2a5   :  { %6887 = vmatpush2.bf16.msra.mxu1 %v18535_v39  ;;  %6847 = vmatprep.subr.bf16.mxu0 %v18540_v37  ;;  %v18594_v39 = vld [vmem:[#allocation3 + $0x1a4] ss:$40 sps:$4 sm:$0xff]  }
 0x2a6   :  { %6888 = vmatprep.subr.bf16.mxu1 %v18543_v38  ;;  %v18597_v37 = vld [vmem:[#allocation3 + $0x6a4] ss:$40 sps:$4 sm:$0xff]  }
 0x2a8   :  { %6848 = vmatpush2.bf16.msra.mxu0 %v18538_v41 }
 0x2a9   :  { %6889 = vmatpush2.bf16.msra.mxu1 %v18541_v44  ;;  %6849 = vmatprep.subr.bf16.mxu0 %v18546_v30  ;;  %v18592_v44 = vld [vmem:[#allocation3 + $0x1a0] ss:$40 sps:$4 sm:$0xff]  }
 0x2aa   :  { %6890 = vmatprep.subr.bf16.mxu1 %v18549_v45  ;;  %v18595_v30 = vld [vmem:[#allocation3 + $0x6a0] ss:$40 sps:$4 sm:$0xff]  }
 0x2ac   :  { %6850 = vmatpush2.bf16.msra.mxu0 %v18544_v46 }
 0x2ad   :  { %6891 = vmatpush2.bf16.msra.mxu1 %v18547_v48  ;;  %6851 = vmatprep.subr.bf16.mxu0 %v18552_v49 }
 0x2ae   :  { %6892 = vmatprep.subr.bf16.mxu1 %v18555_v42 }
 0x2b0   :  { %6852 = vmatpush2.bf16.msra.mxu0 %v18550_v57  ;;  %v18600_v57 = vld [vmem:[#allocation3 + $0x154] ss:$40 sps:$4 sm:$0xff]  }
 0x2b1   :  { %6893 = vmatpush2.bf16.msra.mxu1 %v18553_v60  ;;  %6853 = vmatprep.subr.bf16.mxu0 %v18558_v34  ;;  %v18603_v60 = vld [vmem:[#allocation3 + $0x654] ss:$40 sps:$4 sm:$0xff]  }
 0x2b2   :  { %6894 = vmatprep.subr.bf16.mxu1 %v18561_v62 }
 0x2b4   :  { %6854 = vmatpush2.bf16.msra.mxu0 %v18556_v0  ;;  %v18598_v0 = vld [vmem:[#allocation3 + $0x150] ss:$40 sps:$4 sm:$0xff]  }
 0x2b5   :  { %6895 = vmatpush2.bf16.msra.mxu1 %v18559_v3  ;;  %6855 = vmatprep.subr.bf16.mxu0 %v18564_v13  ;;  %v18601_v3 = vld [vmem:[#allocation3 + $0x650] ss:$40 sps:$4 sm:$0xff]   ;;  %v18606_v13 = vld [vmem:[#allocation3 + $0x104] ss:$40 sps:$4 sm:$0xff]  }
 0x2b6   :  { %6896 = vmatprep.subr.bf16.mxu1 %v18567_v1  ;;  %v18609_v1 = vld [vmem:[#allocation3 + $0x604] ss:$40 sps:$4 sm:$0xff]  }
 0x2b8   :  { %6856 = vmatpush2.bf16.msra.mxu0 %v18562_v54  ;;  %v18604_v54 = vld [vmem:[#allocation3 + $0x100] ss:$40 sps:$4 sm:$0xff]  }
 0x2b9   :  { %6897 = vmatpush2.bf16.msra.mxu1 %v18565_v2  ;;  %6857 = vmatprep.subr.bf16.mxu0 %v18570_v10  ;;  %v18607_v2 = vld [vmem:[#allocation3 + $0x600] ss:$40 sps:$4 sm:$0xff]   ;;  %v18612_v10 = vld [vmem:[#allocation3 + $0xb4] ss:$40 sps:$4 sm:$0xff]  }
 0x2ba   :  { %6898 = vmatprep.subr.bf16.mxu1 %v18573_v4  ;;  %v18615_v4 = vld [vmem:[#allocation3 + $0x5b4] ss:$40 sps:$4 sm:$0xff]  }
 0x2bc   :  { %6858 = vmatpush2.bf16.msra.mxu0 %v18568_v5  ;;  %v18610_v5 = vld [vmem:[#allocation3 + $0xb0] ss:$40 sps:$4 sm:$0xff]  }
 0x2bd   :  { %6899 = vmatpush2.bf16.msra.mxu1 %v18571_v6  ;;  %6859 = vmatprep.subr.bf16.mxu0 %v18576_v8  ;;  %v18613_v6 = vld [vmem:[#allocation3 + $0x5b0] ss:$40 sps:$4 sm:$0xff]   ;;  %v18618_v8 = vld [vmem:[#allocation3 + $0x64] ss:$40 sps:$4 sm:$0xff]  }
 0x2be   :  { %6900 = vmatprep.subr.bf16.mxu1 %v18579_v9  ;;  %v18621_v9 = vld [vmem:[#allocation3 + $0x564] ss:$40 sps:$4 sm:$0xff]  }
 0x2c0   :  { %6860 = vmatpush2.bf16.msra.mxu0 %v18574_v11  ;;  %v18616_v11 = vld [vmem:[#allocation3 + $0x60] ss:$40 sps:$4 sm:$0xff]  }
 0x2c1   :  { %6901 = vmatpush2.bf16.msra.mxu1 %v18577_v16  ;;  %6911 = vmatprep.subr.bf16.mxu0 %v18582_v18  ;;  %v18619_v16 = vld [vmem:[#allocation3 + $0x560] ss:$40 sps:$4 sm:$0xff]   ;;  %v18624_v18 = vld [vmem:[#allocation3 + $0x14] ss:$40 sps:$4 sm:$0xff]  }
 0x2c2   :  { %6952 = vmatprep.subr.bf16.mxu1 %v18585_v22  ;;  %v18627_v22 = vld [vmem:[#allocation3 + $0x514] ss:$40 sps:$4 sm:$0xff]  }
 0x2c3   :  { %v6617_v32 = vpop.f32.mrf.mxu0  ;;  %6862 = vmatmul.mubr.bf16.vlgmr.msra.gmra.mxu0 %v20440_v14 }
 0x2c4   :  { %v6658_v33 = vpop.f32.mrf.mxu1  ;;  %6903 = vmatmul.mubr.bf16.vlgmr.msra.gmra.mxu1 %v20444_v15  ;;  %v6618_v28 = vadd.f32 %v6617_v32, %v20463_v59  ;;  %6912 = vmatpush1.bf16.msra.mxu0 %v18580_v24  ;;  %v18622_v24 = vld [vmem:[#allocation3 + $0x10] ss:$40 sps:$4 sm:$0xff]   ;;  %v18636_v32 = vld [vmem:[#allocation3 + $0x474] ss:$40 sps:$4 sm:$0xff]  }
 0x2c5   :  { %6953 = vmatpush1.bf16.msra.mxu1 %v18583_v25  ;;  %v6619_v23 = vpop.f32.mrf.mxu0  ;;  %6913 = vmatprep.subr.bf16.mxu0 %v18588_v7  ;;  %v18625_v25 = vld [vmem:[#allocation3 + $0x510] ss:$40 sps:$4 sm:$0xff]   ;;  %v18630_v7 = vld [vmem:[#allocation3 + $0x4c4] ss:$40 sps:$4 sm:$0xff]  }
 0x2c6   :  { %v6660_v35 = vpop.f32.mrf.mxu1  ;;  %6954 = vmatprep.subr.bf16.mxu1 %v18591_v50  ;;  %v6659_v38 = vadd.f32 %v6658_v33, %v6618_v28  ;;  %v6620_v41 = vadd.f32 %v6619_v23, %v20468_v47  ;;  %6943 = vmatprep.mubr.bf16.mxu0 %v20392_v55  ;;  %v18633_v50 = vld [vmem:[#allocation3 + $0x9c4] ss:$40 sps:$4 sm:$0xff]   ;;  %v18639_v33 = vld [vmem:[#allocation3 + $0x974] ss:$40 sps:$4 sm:$0xff]   ;;  %v18634_v28 = vld [vmem:[#allocation3 + $0x470] ss:$40 sps:$4 sm:$0xff]  }
 0x2c7   :  { %6984 = vmatprep.mubr.bf16.mxu1 %v20394_v56  ;;  %v6621_v45 = vpop.f32.mrf.mxu0  ;;  %v18637_v23 = vld [vmem:[#allocation3 + $0x970] ss:$40 sps:$4 sm:$0xff]  }
 0x2c8   :  { %v6662_v46 = vpop.f32.mrf.mxu1  ;;  %v7649_v59 = vmul.f32 0.01, %v6659_v38  ;;  %v6661_v48 = vadd.f32 %v6660_v35, %v6620_v41  ;;  %6914 = vmatpush1.bf16.msra.mxu0 %v18586_v26  ;;  %v18628_v26 = vld [vmem:[#allocation3 + $0x4c0] ss:$40 sps:$4 sm:$0xff]   ;;  %v18642_v35 = vld [vmem:[#allocation3 + $0x424] ss:$40 sps:$4 sm:$0xff]  }
 0x2c9   :  { %6955 = vmatpush1.bf16.msra.mxu1 %v18589_v63  ;;  %v6622_v49 = vpop.f32.mrf.mxu0  ;;  %6915 = vmatprep.subr.bf16.mxu0 %v18594_v39  ;;  %v18631_v63 = vld [vmem:[#allocation3 + $0x9c0] ss:$40 sps:$4 sm:$0xff]   ;;  %v18645_v39 = vld [vmem:[#allocation3 + $0x924] ss:$40 sps:$4 sm:$0xff]   ;;  %v18648_v41 = vld [vmem:[#allocation3 + $0x3d4] ss:$40 sps:$4 sm:$0xff]  }
 0x2ca   :  { %v6663_v42 = vpop.f32.mrf.mxu1  ;;  %6956 = vmatprep.subr.bf16.mxu1 %v18597_v37  ;;  %v20476_v34 = vmax.f32 %v6659_v38, %v7649_v59  ;;  %v7650_v47 = vmul.f32 0.01, %v6661_v48  ;;  %v18640_v37 = vld [vmem:[#allocation3 + $0x420] ss:$40 sps:$4 sm:$0xff]   ;;  %v18649_v45 = vld [vmem:[#allocation3 + $0x8d0] ss:$40 sps:$4 sm:$0xff]  }
 0x2cb   :  { %v18643_v38 = vld [vmem:[#allocation3 + $0x920] ss:$40 sps:$4 sm:$0xff]   ;;  %v18654_v46 = vld [vmem:[#allocation3 + $0x384] ss:$40 sps:$4 sm:$0xff]   ;;  %v18660_v42 = vld [vmem:[#allocation3 + $0x334] ss:$40 sps:$4 sm:$0xff]  }
 0x2cc   :  { %v20478_v62 = vmax.f32 %v6661_v48, %v7650_v47  ;;  %6916 = vmatpush1.bf16.msra.mxu0 %v18592_v44  ;;  %v18651_v44 = vld [vmem:[#allocation3 + $0x8d4] ss:$40 sps:$4 sm:$0xff]   ;;  %v18657_v59 = vld [vmem:[#allocation3 + $0x884] ss:$40 sps:$4 sm:$0xff]   ;;  %v18652_v48 = vld [vmem:[#allocation3 + $0x380] ss:$40 sps:$4 sm:$0xff]  }
 0x2cd   :  { %6957 = vmatpush1.bf16.msra.mxu1 %v18595_v30  ;;  %6917 = vmatprep.subr.bf16.mxu0 %v18600_v57  ;;  %v18646_v30 = vld [vmem:[#allocation3 + $0x3d0] ss:$40 sps:$4 sm:$0xff]   ;;  %v18655_v49 = vld [vmem:[#allocation3 + $0x880] ss:$40 sps:$4 sm:$0xff]   ;;  %v18663_v57 = vld [vmem:[#allocation3 + $0x834] ss:$40 sps:$4 sm:$0xff]  }
 0x2ce   :  { %6958 = vmatprep.subr.bf16.mxu1 %v18603_v60  ;;  %v18658_v60 = vld [vmem:[#allocation3 + $0x330] ss:$40 sps:$4 sm:$0xff]  }
 0x2cf   :  { %v18661_v47 = vld [vmem:[#allocation3 + $0x830] ss:$40 sps:$4 sm:$0xff]  }
 0x2d0   :  { %6918 = vmatpush1.bf16.msra.mxu0 %v18598_v0  ;;  %v18666_v0 = vld [vmem:[#allocation3 + $0x2e4] ss:$40 sps:$4 sm:$0xff]  }
 0x2d1   :  { %6959 = vmatpush1.bf16.msra.mxu1 %v18601_v3  ;;  %6919 = vmatprep.subr.bf16.mxu0 %v18606_v13  ;;  %v18669_v3 = vld [vmem:[#allocation3 + $0x7e4] ss:$40 sps:$4 sm:$0xff]   ;;  %v18664_v13 = vld [vmem:[#allocation3 + $0x2e0] ss:$40 sps:$4 sm:$0xff]  }
 0x2d2   :  { %6960 = vmatprep.subr.bf16.mxu1 %v18609_v1  ;;  %v18667_v1 = vld [vmem:[#allocation3 + $0x7e0] ss:$40 sps:$4 sm:$0xff]  }
 0x2d4   :  { %6920 = vmatpush1.bf16.msra.mxu0 %v18604_v54  ;;  %v18672_v54 = vld [vmem:[#allocation3 + $0x294] ss:$40 sps:$4 sm:$0xff]  }
 0x2d5   :  { %6961 = vmatpush1.bf16.msra.mxu1 %v18607_v2  ;;  %6921 = vmatprep.subr.bf16.mxu0 %v18612_v10  ;;  %v18675_v2 = vld [vmem:[#allocation3 + $0x794] ss:$40 sps:$4 sm:$0xff]   ;;  %v18670_v10 = vld [vmem:[#allocation3 + $0x290] ss:$40 sps:$4 sm:$0xff]  }
 0x2d6   :  { %6962 = vmatprep.subr.bf16.mxu1 %v18615_v4  ;;  %v18673_v4 = vld [vmem:[#allocation3 + $0x790] ss:$40 sps:$4 sm:$0xff]  }
 0x2d8   :  { %6922 = vmatpush1.bf16.msra.mxu0 %v18610_v5  ;;  %v18678_v5 = vld [vmem:[#allocation3 + $0xc44] ss:$40 sps:$4 sm:$0xff]  }
 0x2d9   :  { %6963 = vmatpush1.bf16.msra.mxu1 %v18613_v6  ;;  %6923 = vmatprep.subr.bf16.mxu0 %v18618_v8  ;;  %v18681_v6 = vld [vmem:[#allocation3 + $0x1144] ss:$40 sps:$4 sm:$0xff]   ;;  %v18676_v8 = vld [vmem:[#allocation3 + $0xc40] ss:$40 sps:$4 sm:$0xff]  }
 0x2da   :  { %6964 = vmatprep.subr.bf16.mxu1 %v18621_v9  ;;  %v18679_v9 = vld [vmem:[#allocation3 + $0x1140] ss:$40 sps:$4 sm:$0xff]  }
 0x2dc   :  { %6924 = vmatpush1.bf16.msra.mxu0 %v18616_v11  ;;  %v19444_v11 = vld [vmem:[#allocation11 + $0xc] sm:$0xff] }
 0x2dd   :  { %6965 = vmatpush1.bf16.msra.mxu1 %v18619_v16  ;;  %6925 = vmatprep.subr.bf16.mxu0 %v18624_v18  ;;  %v1580_v16 = vrot.slane %v19444_v11, %v20334_v36  ;;  %v18684_v18 = vld [vmem:[#allocation3 + $0xbf4] ss:$40 sps:$4 sm:$0xff]  }
 0x2de   :  { %6966 = vmatprep.subr.bf16.mxu1 %v18627_v22  ;;  %v18687_v22 = vld [vmem:[#allocation3 + $0x10f4] ss:$40 sps:$4 sm:$0xff]  }
 0x2e0   :  { %6926 = vmatpush1.bf16.msra.mxu0 %v18622_v24  ;;  %v1584_v24 = vrot.slane %v19444_v11, %v20336_v40  ;;  %v18721_v11 = vld [vmem:[#allocation3 + $0xf10] ss:$40 sps:$4 sm:$0xff]  }
 0x2e1   :  { %6967 = vmatpush1.bf16.msra.mxu1 %v18625_v25  ;;  %6927 = vmatprep.subr.bf16.mxu0 %v18630_v7  ;;  %v18682_v25 = vld [vmem:[#allocation3 + $0xbf0] ss:$40 sps:$4 sm:$0xff]  }
 0x2e2   :  { %6968 = vmatprep.subr.bf16.mxu1 %v18633_v50  ;;  %v18685_v7 = vld [vmem:[#allocation3 + $0x10f0] ss:$40 sps:$4 sm:$0xff]  }
 0x2e4   :  { %6928 = vmatpush2.bf16.msra.mxu0 %v18628_v26 }
 0x2e5   :  { %6969 = vmatpush2.bf16.msra.mxu1 %v18631_v63  ;;  %6929 = vmatprep.subr.bf16.mxu0 %v18636_v32 }
 0x2e6   :  { %6970 = vmatprep.subr.bf16.mxu1 %v18639_v33 }
 0x2e8   :  { %6930 = vmatpush2.bf16.msra.mxu0 %v18634_v28  ;;  %v18690_v28 = vld [vmem:[#allocation3 + $0xba4] ss:$40 sps:$4 sm:$0xff]  }
 0x2e9   :  { %6971 = vmatpush2.bf16.msra.mxu1 %v18637_v23  ;;  %6931 = vmatprep.subr.bf16.mxu0 %v18642_v35  ;;  %v18693_v23 = vld [vmem:[#allocation3 + $0x10a4] ss:$40 sps:$4 sm:$0xff]  }
 0x2ea   :  { %6972 = vmatprep.subr.bf16.mxu1 %v18645_v39 }
 0x2ec   :  { %6932 = vmatpush2.bf16.msra.mxu0 %v18640_v37  ;;  %v18688_v37 = vld [vmem:[#allocation3 + $0xba0] ss:$40 sps:$4 sm:$0xff]  }
 0x2ed   :  { %6973 = vmatpush2.bf16.msra.mxu1 %v18643_v38  ;;  %6933 = vmatprep.subr.bf16.mxu0 %v18648_v41  ;;  %v18691_v38 = vld [vmem:[#allocation3 + $0x10a0] ss:$40 sps:$4 sm:$0xff]  }
 0x2ee   :  { %6974 = vmatprep.subr.bf16.mxu1 %v18651_v44 }
 0x2f0   :  { %6934 = vmatpush2.bf16.msra.mxu0 %v18646_v30 }
 0x2f1   :  { %6975 = vmatpush2.bf16.msra.mxu1 %v18649_v45  ;;  %6935 = vmatprep.subr.bf16.mxu0 %v18654_v46 }
 0x2f2   :  { %6976 = vmatprep.subr.bf16.mxu1 %v18657_v59  ;;  %v18696_v59 = vld [vmem:[#allocation3 + $0xb54] ss:$40 sps:$4 sm:$0xff]  }
 0x2f4   :  { %6936 = vmatpush2.bf16.msra.mxu0 %v18652_v48  ;;  %v18699_v48 = vld [vmem:[#allocation3 + $0x1054] ss:$40 sps:$4 sm:$0xff]  }
 0x2f5   :  { %6977 = vmatpush2.bf16.msra.mxu1 %v18655_v49  ;;  %6937 = vmatprep.subr.bf16.mxu0 %v18660_v42  ;;  %v18694_v49 = vld [vmem:[#allocation3 + $0xb50] ss:$40 sps:$4 sm:$0xff]  }
 0x2f6   :  { %6978 = vmatprep.subr.bf16.mxu1 %v18663_v57  ;;  %v18697_v42 = vld [vmem:[#allocation3 + $0x1050] ss:$40 sps:$4 sm:$0xff]   ;;  %v18702_v57 = vld [vmem:[#allocation3 + $0xb04] ss:$40 sps:$4 sm:$0xff]  }
 0x2f8   :  { %6938 = vmatpush2.bf16.msra.mxu0 %v18658_v60  ;;  %v18705_v60 = vld [vmem:[#allocation3 + $0x1004] ss:$40 sps:$4 sm:$0xff]  }
 0x2f9   :  { %6979 = vmatpush2.bf16.msra.mxu1 %v18661_v47  ;;  %6939 = vmatprep.subr.bf16.mxu0 %v18666_v0  ;;  %v18700_v47 = vld [vmem:[#allocation3 + $0xb00] ss:$40 sps:$4 sm:$0xff]  }
 0x2fa   :  { %6980 = vmatprep.subr.bf16.mxu1 %v18669_v3  ;;  %v18703_v0 = vld [vmem:[#allocation3 + $0x1000] ss:$40 sps:$4 sm:$0xff]   ;;  %v18708_v3 = vld [vmem:[#allocation3 + $0xab4] ss:$40 sps:$4 sm:$0xff]  }
 0x2fc   :  { %6940 = vmatpush2.bf16.msra.mxu0 %v18664_v13  ;;  %v18711_v13 = vld [vmem:[#allocation3 + $0xfb4] ss:$40 sps:$4 sm:$0xff]  }
 0x2fd   :  { %6981 = vmatpush2.bf16.msra.mxu1 %v18667_v1  ;;  %6941 = vmatprep.subr.bf16.mxu0 %v18672_v54  ;;  %v18706_v1 = vld [vmem:[#allocation3 + $0xab0] ss:$40 sps:$4 sm:$0xff]  }
 0x2fe   :  { %6982 = vmatprep.subr.bf16.mxu1 %v18675_v2  ;;  %v18709_v54 = vld [vmem:[#allocation3 + $0xfb0] ss:$40 sps:$4 sm:$0xff]   ;;  %v18714_v2 = vld [vmem:[#allocation3 + $0xa64] ss:$40 sps:$4 sm:$0xff]  }
 0x300   :  { %6942 = vmatpush2.bf16.msra.mxu0 %v18670_v10  ;;  %v18717_v10 = vld [vmem:[#allocation3 + $0xf64] ss:$40 sps:$4 sm:$0xff]  }
 0x301   :  { %6983 = vmatpush2.bf16.msra.mxu1 %v18673_v4  ;;  %6993 = vmatprep.subr.bf16.mxu0 %v18678_v5  ;;  %v18712_v4 = vld [vmem:[#allocation3 + $0xa60] ss:$40 sps:$4 sm:$0xff]  }
 0x302   :  { %7034 = vmatprep.subr.bf16.mxu1 %v18681_v6  ;;  %v18715_v5 = vld [vmem:[#allocation3 + $0xf60] ss:$40 sps:$4 sm:$0xff]   ;;  %v18720_v6 = vld [vmem:[#allocation3 + $0xa14] ss:$40 sps:$4 sm:$0xff]  }
 0x303   :  { %v6699_v50 = vpop.f32.mrf.mxu0  ;;  %6944 = vmatmul.mubr.bf16.vlgmr.msra.gmra.mxu0 %v20400_v20 }
 0x304   :  { %v6740_v26 = vpop.f32.mrf.mxu1  ;;  %6985 = vmatmul.mubr.bf16.vlgmr.msra.gmra.mxu1 %v20404_v21  ;;  %v6700_v63 = vadd.f32 %v6699_v50, %v1580_v16  ;;  %6994 = vmatpush1.bf16.msra.mxu0 %v18676_v8  ;;  %v18723_v8 = vld [vmem:[#allocation3 + $0xf14] ss:$40 sps:$4 sm:$0xff]   ;;  %v18726_v16 = vld [vmem:[#allocation3 + $0xec4] ss:$40 sps:$4 sm:$0xff]   ;;  %v18730_v50 = vld [vmem:[#allocation3 + $0xe70] ss:$40 sps:$4 sm:$0xff]  }
 0x305   :  { %7035 = vmatpush1.bf16.msra.mxu1 %v18679_v9  ;;  %v6701_v32 = vpop.f32.mrf.mxu0  ;;  %6995 = vmatprep.subr.bf16.mxu0 %v18684_v18  ;;  %v18718_v9 = vld [vmem:[#allocation3 + $0xa10] ss:$40 sps:$4 sm:$0xff]   ;;  %v18729_v18 = vld [vmem:[#allocation3 + $0x13c4] ss:$40 sps:$4 sm:$0xff]  }
 0x306   :  { %v6742_v33 = vpop.f32.mrf.mxu1  ;;  %7036 = vmatprep.subr.bf16.mxu1 %v18687_v22  ;;  %v20484_v35 = vadd.f32 %v6740_v26, %v6700_v63  ;;  %v6702_v39 = vadd.f32 %v6701_v32, %v1584_v24  ;;  %7025 = vmatprep.mubr.bf16.mxu0 %v20408_v27  ;;  %v18724_v22 = vld [vmem:[#allocation3 + $0xec0] ss:$40 sps:$4 sm:$0xff]   ;;  %v18733_v26 = vld [vmem:[#allocation3 + $0x1370] ss:$40 sps:$4 sm:$0xff]   ;;  %v18738_v63 = vld [vmem:[#allocation3 + $0xe24] ss:$40 sps:$4 sm:$0xff]  }
 0x307   :  { %7066 = vmatprep.mubr.bf16.mxu1 %v20412_v43  ;;  %v6703_v41 = vpop.f32.mrf.mxu0  ;;  %v18727_v24 = vld [vmem:[#allocation3 + $0x13c0] ss:$40 sps:$4 sm:$0xff]   ;;  %v18741_v32 = vld [vmem:[#allocation3 + $0x1324] ss:$40 sps:$4 sm:$0xff]  }
 0x308   :  { %v6744_v44 = vpop.f32.mrf.mxu1  ;;  %v20488_v30 = vadd.f32 %v6742_v33, %v6702_v39  ;;  %6996 = vmatpush1.bf16.msra.mxu0 %v18682_v25  ;;  %v18732_v25 = vld [vmem:[#allocation3 + $0xe74] ss:$40 sps:$4 sm:$0xff]   ;;  %v18736_v33 = vld [vmem:[#allocation3 + $0xe20] ss:$40 sps:$4 sm:$0xff]   ;;  %v18750_v41 = vld [vmem:[#allocation3 + $0xd84] ss:$40 sps:$4 sm:$0xff]  }
 0x309   :  { %7037 = vmatpush1.bf16.msra.mxu1 %v18685_v7  ;;  %v6704_v45 = vpop.f32.mrf.mxu0  ;;  %6997 = vmatprep.subr.bf16.mxu0 %v18690_v28  ;;  %v18735_v7 = vld [vmem:[#allocation3 + $0x1374] ss:$40 sps:$4 sm:$0xff]   ;;  %v18739_v28 = vld [vmem:[#allocation3 + $0x1320] ss:$40 sps:$4 sm:$0xff]   ;;  %v18753_v44 = vld [vmem:[#allocation3 + $0x1284] ss:$40 sps:$4 sm:$0xff]  }
 0x30a   :  { %v6745_v46 = vpop.f32.mrf.mxu1  ;;  %7038 = vmatprep.subr.bf16.mxu1 %v18693_v23  ;;  %v18744_v23 = vld [vmem:[#allocation3 + $0xdd4] ss:$40 sps:$4 sm:$0xff]   ;;  %v18748_v45 = vld [vmem:[#allocation3 + $0xd80] ss:$40 sps:$4 sm:$0xff]  }
 0x30b   :  { %v18747_v39 = vld [vmem:[#allocation3 + $0x12d4] ss:$40 sps:$4 sm:$0xff]   ;;  %v18751_v46 = vld [vmem:[#allocation3 + $0x1280] ss:$40 sps:$4 sm:$0xff]  }
 0x30c   :  { %6998 = vmatpush1.bf16.msra.mxu0 %v18688_v37  ;;  %v18742_v37 = vld [vmem:[#allocation3 + $0xdd0] ss:$40 sps:$4 sm:$0xff]  }
 0x30d   :  { %7039 = vmatpush1.bf16.msra.mxu1 %v18691_v38  ;;  %6999 = vmatprep.subr.bf16.mxu0 %v18696_v59  ;;  %v18745_v38 = vld [vmem:[#allocation3 + $0x12d0] ss:$40 sps:$4 sm:$0xff]   ;;  %v18756_v59 = vld [vmem:[#allocation3 + $0xd34] ss:$40 sps:$4 sm:$0xff]  }
 0x30e   :  { %7040 = vmatprep.subr.bf16.mxu1 %v18699_v48  ;;  %v18759_v48 = vld [vmem:[#allocation3 + $0x1234] ss:$40 sps:$4 sm:$0xff]  }
 0x310   :  { %7000 = vmatpush1.bf16.msra.mxu0 %v18694_v49  ;;  %v18754_v49 = vld [vmem:[#allocation3 + $0xd30] ss:$40 sps:$4 sm:$0xff]  }
 0x311   :  { %7041 = vmatpush1.bf16.msra.mxu1 %v18697_v42  ;;  %7001 = vmatprep.subr.bf16.mxu0 %v18702_v57  ;;  %v18757_v42 = vld [vmem:[#allocation3 + $0x1230] ss:$40 sps:$4 sm:$0xff]   ;;  %v18762_v57 = vld [vmem:[#allocation3 + $0xce4] ss:$40 sps:$4 sm:$0xff]  }
 0x312   :  { %7042 = vmatprep.subr.bf16.mxu1 %v18705_v60  ;;  %v18765_v60 = vld [vmem:[#allocation3 + $0x11e4] ss:$40 sps:$4 sm:$0xff]  }
 0x314   :  { %7002 = vmatpush1.bf16.msra.mxu0 %v18700_v47  ;;  %v18760_v47 = vld [vmem:[#allocation3 + $0xce0] ss:$40 sps:$4 sm:$0xff]  }
 0x315   :  { %7043 = vmatpush1.bf16.msra.mxu1 %v18703_v0  ;;  %7003 = vmatprep.subr.bf16.mxu0 %v18708_v3  ;;  %v18763_v0 = vld [vmem:[#allocation3 + $0x11e0] ss:$40 sps:$4 sm:$0xff]   ;;  %v18768_v3 = vld [vmem:[#allocation3 + $0xc94] ss:$40 sps:$4 sm:$0xff]  }
 0x316   :  { %7044 = vmatprep.subr.bf16.mxu1 %v18711_v13  ;;  %v18771_v13 = vld [vmem:[#allocation3 + $0x1194] ss:$40 sps:$4 sm:$0xff]  }
 0x318   :  { %7004 = vmatpush1.bf16.msra.mxu0 %v18706_v1  ;;  %v18766_v1 = vld [vmem:[#allocation3 + $0xc90] ss:$40 sps:$4 sm:$0xff]  }
 0x319   :  { %7045 = vmatpush1.bf16.msra.mxu1 %v18709_v54  ;;  %7005 = vmatprep.subr.bf16.mxu0 %v18714_v2  ;;  %v18769_v54 = vld [vmem:[#allocation3 + $0x1190] ss:$40 sps:$4 sm:$0xff]   ;;  %v18774_v2 = vld [vmem:[#allocation3 + $0x1644] ss:$40 sps:$4 sm:$0xff]  }
 0x31a   :  { %7046 = vmatprep.subr.bf16.mxu1 %v18717_v10  ;;  %v18777_v10 = vld [vmem:[#allocation3 + $0x1b44] ss:$40 sps:$4 sm:$0xff]  }
 0x31c   :  { %7006 = vmatpush1.bf16.msra.mxu0 %v18712_v4  ;;  %v18772_v4 = vld [vmem:[#allocation3 + $0x1640] ss:$40 sps:$4 sm:$0xff]  }
 0x31d   :  { %7047 = vmatpush1.bf16.msra.mxu1 %v18715_v5  ;;  %7007 = vmatprep.subr.bf16.mxu0 %v18720_v6  ;;  %v18775_v5 = vld [vmem:[#allocation3 + $0x1b40] ss:$40 sps:$4 sm:$0xff]   ;;  %v18780_v6 = vld [vmem:[#allocation3 + $0x15f4] ss:$40 sps:$4 sm:$0xff]  }
 0x31e   :  { %7048 = vmatprep.subr.bf16.mxu1 %v18723_v8  ;;  %v18783_v8 = vld [vmem:[#allocation3 + $0x1af4] ss:$40 sps:$4 sm:$0xff]  }
 0x320   :  { %7008 = vmatpush1.bf16.msra.mxu0 %v18718_v9  ;;  %v18778_v9 = vld [vmem:[#allocation3 + $0x15f0] ss:$40 sps:$4 sm:$0xff]  }
 0x321   :  { %7049 = vmatpush1.bf16.msra.mxu1 %v18721_v11  ;;  %7009 = vmatprep.subr.bf16.mxu0 %v18726_v16  ;;  %v18781_v11 = vld [vmem:[#allocation3 + $0x1af0] ss:$40 sps:$4 sm:$0xff]  }
 0x322   :  { %7050 = vmatprep.subr.bf16.mxu1 %v18729_v18 }
 0x324   :  { %7010 = vmatpush2.bf16.msra.mxu0 %v18724_v22 }
 0x325   :  { %7051 = vmatpush2.bf16.msra.mxu1 %v18727_v24  ;;  %7011 = vmatprep.subr.bf16.mxu0 %v18732_v25 }
 0x326   :  { %7052 = vmatprep.subr.bf16.mxu1 %v18735_v7  ;;  %v18786_v7 = vld [vmem:[#allocation3 + $0x15a4] ss:$40 sps:$4 sm:$0xff]  }
 0x328   :  { %7012 = vmatpush2.bf16.msra.mxu0 %v18730_v50  ;;  %v18789_v50 = vld [vmem:[#allocation3 + $0x1aa4] ss:$40 sps:$4 sm:$0xff]  }
 0x329   :  { %7053 = vmatpush2.bf16.msra.mxu1 %v18733_v26  ;;  %7013 = vmatprep.subr.bf16.mxu0 %v18738_v63 }
 0x32a   :  { %7054 = vmatprep.subr.bf16.mxu1 %v18741_v32  ;;  %v18784_v32 = vld [vmem:[#allocation3 + $0x15a0] ss:$40 sps:$4 sm:$0xff]  }
 0x32c   :  { %7014 = vmatpush2.bf16.msra.mxu0 %v18736_v33  ;;  %v18787_v33 = vld [vmem:[#allocation3 + $0x1aa0] ss:$40 sps:$4 sm:$0xff]  }
 0x32d   :  { %7055 = vmatpush2.bf16.msra.mxu1 %v18739_v28  ;;  %7015 = vmatprep.subr.bf16.mxu0 %v18744_v23 }
 0x32e   :  { %7056 = vmatprep.subr.bf16.mxu1 %v18747_v39 }
 0x330   :  { %7016 = vmatpush2.bf16.msra.mxu0 %v18742_v37 }
 0x331   :  { %7057 = vmatpush2.bf16.msra.mxu1 %v18745_v38  ;;  %7017 = vmatprep.subr.bf16.mxu0 %v18750_v41  ;;  %v18792_v38 = vld [vmem:[#allocation3 + $0x1554] ss:$40 sps:$4 sm:$0xff]  }
 0x332   :  { %7058 = vmatprep.subr.bf16.mxu1 %v18753_v44  ;;  %v18795_v41 = vld [vmem:[#allocation3 + $0x1a54] ss:$40 sps:$4 sm:$0xff]   ;;  %v18793_v44 = vld [vmem:[#allocation3 + $0x1a50] ss:$40 sps:$4 sm:$0xff]  }
 0x334   :  { %7018 = vmatpush2.bf16.msra.mxu0 %v18748_v45  ;;  %v18798_v45 = vld [vmem:[#allocation3 + $0x1504] ss:$40 sps:$4 sm:$0xff]  }
 0x335   :  { %7059 = vmatpush2.bf16.msra.mxu1 %v18751_v46  ;;  %7019 = vmatprep.subr.bf16.mxu0 %v18756_v59  ;;  %v18801_v46 = vld [vmem:[#allocation3 + $0x1a04] ss:$40 sps:$4 sm:$0xff]   ;;  %v18796_v59 = vld [vmem:[#allocation3 + $0x1500] ss:$40 sps:$4 sm:$0xff]  }
 0x336   :  { %7060 = vmatprep.subr.bf16.mxu1 %v18759_v48  ;;  %v18799_v48 = vld [vmem:[#allocation3 + $0x1a00] ss:$40 sps:$4 sm:$0xff]  }
 0x338   :  { %7020 = vmatpush2.bf16.msra.mxu0 %v18754_v49  ;;  %v18804_v49 = vld [vmem:[#allocation3 + $0x14b4] ss:$40 sps:$4 sm:$0xff]  }
 0x339   :  { %7061 = vmatpush2.bf16.msra.mxu1 %v18757_v42  ;;  %7021 = vmatprep.subr.bf16.mxu0 %v18762_v57  ;;  %v18807_v42 = vld [vmem:[#allocation3 + $0x19b4] ss:$40 sps:$4 sm:$0xff]   ;;  %v18802_v57 = vld [vmem:[#allocation3 + $0x14b0] ss:$40 sps:$4 sm:$0xff]  }
 0x33a   :  { %7062 = vmatprep.subr.bf16.mxu1 %v18765_v60  ;;  %v18805_v60 = vld [vmem:[#allocation3 + $0x19b0] ss:$40 sps:$4 sm:$0xff]  }
 0x33c   :  { %7022 = vmatpush2.bf16.msra.mxu0 %v18760_v47  ;;  %v18810_v47 = vld [vmem:[#allocation3 + $0x1464] ss:$40 sps:$4 sm:$0xff]  }
 0x33d   :  { %7063 = vmatpush2.bf16.msra.mxu1 %v18763_v0  ;;  %7023 = vmatprep.subr.bf16.mxu0 %v18768_v3  ;;  %v18813_v0 = vld [vmem:[#allocation3 + $0x1964] ss:$40 sps:$4 sm:$0xff]   ;;  %v18808_v3 = vld [vmem:[#allocation3 + $0x1460] ss:$40 sps:$4 sm:$0xff]  }
 0x33e   :  { %7064 = vmatprep.subr.bf16.mxu1 %v18771_v13  ;;  %v18811_v13 = vld [vmem:[#allocation3 + $0x1960] ss:$40 sps:$4 sm:$0xff]  }
 0x340   :  { %7024 = vmatpush2.bf16.msra.mxu0 %v18766_v1  ;;  %v18816_v1 = vld [vmem:[#allocation3 + $0x1414] ss:$40 sps:$4 sm:$0xff]  }
 0x341   :  { %7065 = vmatpush2.bf16.msra.mxu1 %v18769_v54  ;;  %7075 = vmatprep.subr.bf16.mxu0 %v18774_v2  ;;  %v18819_v54 = vld [vmem:[#allocation3 + $0x1914] ss:$40 sps:$4 sm:$0xff]   ;;  %v18814_v2 = vld [vmem:[#allocation3 + $0x1410] ss:$40 sps:$4 sm:$0xff]  }
 0x342   :  { %7116 = vmatprep.subr.bf16.mxu1 %v18777_v10  ;;  %v18817_v10 = vld [vmem:[#allocation3 + $0x1910] ss:$40 sps:$4 sm:$0xff]  }
 0x343   :  { %v6781_v16 = vpop.f32.mrf.mxu0  ;;  %7026 = vmatmul.mubr.bf16.vlgmr.msra.gmra.mxu0 %v20420_v52 }
 0x344   :  { %v6822_v18 = vpop.f32.mrf.mxu1  ;;  %7067 = vmatmul.mubr.bf16.vlgmr.msra.gmra.mxu1 %v20424_v53  ;;  %v6782_v22 = vadd.f32 %v6781_v16, %v20484_v35  ;;  %7076 = vmatpush1.bf16.msra.mxu0 %v18772_v4  ;;  %v18822_v4 = vld [vmem:[#allocation3 + $0x18c4] ss:$40 sps:$4 sm:$0xff]   ;;  %v18826_v16 = vld [vmem:[#allocation3 + $0x1870] ss:$40 sps:$4 sm:$0xff]  }
 0x345   :  { %7117 = vmatpush1.bf16.msra.mxu1 %v18775_v5  ;;  %v6783_v24 = vpop.f32.mrf.mxu0  ;;  %7077 = vmatprep.subr.bf16.mxu0 %v18780_v6  ;;  %v18825_v5 = vld [vmem:[#allocation3 + $0x1dc4] ss:$40 sps:$4 sm:$0xff]   ;;  %v18820_v6 = vld [vmem:[#allocation3 + $0x18c0] ss:$40 sps:$4 sm:$0xff]  }
 0x346   :  { %v6824_v25 = vpop.f32.mrf.mxu1  ;;  %7118 = vmatprep.subr.bf16.mxu1 %v18783_v8  ;;  %v20493_v26 = vadd.f32 %v6822_v18, %v6782_v22  ;;  %v6784_v63 = vadd.f32 %v6783_v24, %v20488_v30  ;;  %7107 = vmatprep.mubr.bf16.mxu0 %v20428_v61  ;;  %v18790_v30 = vld [vmem:[#allocation3 + $0x1550] ss:$40 sps:$4 sm:$0xff]   ;;  %v18823_v8 = vld [vmem:[#allocation3 + $0x1dc0] ss:$40 sps:$4 sm:$0xff]   ;;  %v18834_v22 = vld [vmem:[#allocation3 + $0x1824] ss:$40 sps:$4 sm:$0xff]  }
 0x347   :  { %7148 = vmatprep.mubr.bf16.mxu1 %v20432_v19  ;;  %v6785_v28 = vpop.f32.mrf.mxu0  ;;  %v18829_v18 = vld [vmem:[#allocation3 + $0x1d70] ss:$40 sps:$4 sm:$0xff]   ;;  %v18837_v24 = vld [vmem:[#allocation3 + $0x1d24] ss:$40 sps:$4 sm:$0xff]  }
 0x348   :  { %v6826_v35 = vpop.f32.mrf.mxu1  ;;  %v20498_v23 = vadd.f32 %v6824_v25, %v6784_v63  ;;  %7078 = vmatpush1.bf16.msra.mxu0 %v18778_v9  ;;  %v18828_v9 = vld [vmem:[#allocation3 + $0x1874] ss:$40 sps:$4 sm:$0xff]   ;;  %v18832_v25 = vld [vmem:[#allocation3 + $0x1820] ss:$40 sps:$4 sm:$0xff]   ;;  %v18846_v28 = vld [vmem:[#allocation3 + $0x1784] ss:$40 sps:$4 sm:$0xff]  }
 0x349   :  { %7119 = vmatpush1.bf16.msra.mxu1 %v18781_v11  ;;  %v6786_v39 = vpop.f32.mrf.mxu0  ;;  %7079 = vmatprep.subr.bf16.mxu0 %v18786_v7  ;;  %v18831_v11 = vld [vmem:[#allocation3 + $0x1d74] ss:$40 sps:$4 sm:$0xff]   ;;  %v18835_v7 = vld [vmem:[#allocation3 + $0x1d20] ss:$40 sps:$4 sm:$0xff]   ;;  %v18849_v35 = vld [vmem:[#allocation3 + $0x1c84] ss:$40 sps:$4 sm:$0xff]  }
 0x34a   :  { %v6827_v37 = vpop.f32.mrf.mxu1  ;;  %7120 = vmatprep.subr.bf16.mxu1 %v18789_v50  ;;  %v18840_v50 = vld [vmem:[#allocation3 + $0x17d4] ss:$40 sps:$4 sm:$0xff]   ;;  %v18844_v39 = vld [vmem:[#allocation3 + $0x1780] ss:$40 sps:$4 sm:$0xff]  }
 0x34b   :  { %v18843_v63 = vld [vmem:[#allocation3 + $0x1cd4] ss:$40 sps:$4 sm:$0xff]   ;;  %v18847_v37 = vld [vmem:[#allocation3 + $0x1c80] ss:$40 sps:$4 sm:$0xff]  }
 0x34c   :  { %7080 = vmatpush1.bf16.msra.mxu0 %v18784_v32  ;;  %v18838_v32 = vld [vmem:[#allocation3 + $0x17d0] ss:$40 sps:$4 sm:$0xff]  }
 0x34d   :  { %7121 = vmatpush1.bf16.msra.mxu1 %v18787_v33  ;;  %7081 = vmatprep.subr.bf16.mxu0 %v18792_v38  ;;  %v18841_v33 = vld [vmem:[#allocation3 + $0x1cd0] ss:$40 sps:$4 sm:$0xff]   ;;  %v18852_v38 = vld [vmem:[#allocation3 + $0x1734] ss:$40 sps:$4 sm:$0xff]  }
 0x34e   :  { %7122 = vmatprep.subr.bf16.mxu1 %v18795_v41  ;;  %v18855_v41 = vld [vmem:[#allocation3 + $0x1c34] ss:$40 sps:$4 sm:$0xff]  }
 0x350   :  { %7082 = vmatpush1.bf16.msra.mxu0 %v18790_v30  ;;  %v18850_v30 = vld [vmem:[#allocation3 + $0x1730] ss:$40 sps:$4 sm:$0xff]  }
 0x351   :  { %7123 = vmatpush1.bf16.msra.mxu1 %v18793_v44  ;;  %7083 = vmatprep.subr.bf16.mxu0 %v18798_v45  ;;  %v18853_v44 = vld [vmem:[#allocation3 + $0x1c30] ss:$40 sps:$4 sm:$0xff]   ;;  %v18858_v45 = vld [vmem:[#allocation3 + $0x16e4] ss:$40 sps:$4 sm:$0xff]  }
 0x352   :  { %7124 = vmatprep.subr.bf16.mxu1 %v18801_v46  ;;  %v18861_v46 = vld [vmem:[#allocation3 + $0x1be4] ss:$40 sps:$4 sm:$0xff]  }
 0x354   :  { %7084 = vmatpush1.bf16.msra.mxu0 %v18796_v59  ;;  %v18856_v59 = vld [vmem:[#allocation3 + $0x16e0] ss:$40 sps:$4 sm:$0xff]  }
 0x355   :  { %7125 = vmatpush1.bf16.msra.mxu1 %v18799_v48  ;;  %7085 = vmatprep.subr.bf16.mxu0 %v18804_v49  ;;  %v18859_v48 = vld [vmem:[#allocation3 + $0x1be0] ss:$40 sps:$4 sm:$0xff]   ;;  %v18864_v49 = vld [vmem:[#allocation3 + $0x1694] ss:$40 sps:$4 sm:$0xff]  }
 0x356   :  { %7126 = vmatprep.subr.bf16.mxu1 %v18807_v42  ;;  %v18867_v42 = vld [vmem:[#allocation3 + $0x1b94] ss:$40 sps:$4 sm:$0xff]  }
 0x358   :  { %7086 = vmatpush1.bf16.msra.mxu0 %v18802_v57  ;;  %v18862_v57 = vld [vmem:[#allocation3 + $0x1690] ss:$40 sps:$4 sm:$0xff]  }
 0x359   :  { %7127 = vmatpush1.bf16.msra.mxu1 %v18805_v60  ;;  %7087 = vmatprep.subr.bf16.mxu0 %v18810_v47  ;;  %v18865_v60 = vld [vmem:[#allocation3 + $0x1b90] ss:$40 sps:$4 sm:$0xff]   ;;  %v18870_v47 = vld [vmem:[#allocation3 + $0x24c] ss:$40 sps:$4 sm:$0xff]  }
 0x35a   :  { %7128 = vmatprep.subr.bf16.mxu1 %v18813_v0  ;;  %v18873_v0 = vld [vmem:[#allocation3 + $0x74c] ss:$40 sps:$4 sm:$0xff]  }
 0x35c   :  { %7088 = vmatpush1.bf16.msra.mxu0 %v18808_v3  ;;  %v18868_v3 = vld [vmem:[#allocation3 + $0x248] ss:$40 sps:$4 sm:$0xff]  }
 0x35d   :  { %7129 = vmatpush1.bf16.msra.mxu1 %v18811_v13  ;;  %7089 = vmatprep.subr.bf16.mxu0 %v18816_v1  ;;  %v18871_v13 = vld [vmem:[#allocation3 + $0x748] ss:$40 sps:$4 sm:$0xff]   ;;  %v18876_v1 = vld [vmem:[#allocation3 + $0x1fc] ss:$40 sps:$4 sm:$0xff]  }
 0x35e   :  { %7130 = vmatprep.subr.bf16.mxu1 %v18819_v54  ;;  %v18879_v54 = vld [vmem:[#allocation3 + $0x6fc] ss:$40 sps:$4 sm:$0xff]  }
 0x360   :  { %7090 = vmatpush1.bf16.msra.mxu0 %v18814_v2 }
 0x361   :  { %7131 = vmatpush1.bf16.msra.mxu1 %v18817_v10  ;;  %7091 = vmatprep.subr.bf16.mxu0 %v18822_v4 }
 0x362   :  { %7132 = vmatprep.subr.bf16.mxu1 %v18825_v5  ;;  %v18874_v5 = vld [vmem:[#allocation3 + $0x1f8] ss:$40 sps:$4 sm:$0xff]  }
 0x364   :  { %7092 = vmatpush2.bf16.msra.mxu0 %v18820_v6  ;;  %v18877_v6 = vld [vmem:[#allocation3 + $0x6f8] ss:$40 sps:$4 sm:$0xff]  }
 0x365   :  { %7133 = vmatpush2.bf16.msra.mxu1 %v18823_v8  ;;  %7093 = vmatprep.subr.bf16.mxu0 %v18828_v9 }
 0x366   :  { %7134 = vmatprep.subr.bf16.mxu1 %v18831_v11  ;;  %v18882_v11 = vld [vmem:[#allocation3 + $0x1ac] ss:$40 sps:$4 sm:$0xff]  }
 0x368   :  { %7094 = vmatpush2.bf16.msra.mxu0 %v18826_v16  ;;  %v18885_v16 = vld [vmem:[#allocation3 + $0x6ac] ss:$40 sps:$4 sm:$0xff]  }
 0x369   :  { %7135 = vmatpush2.bf16.msra.mxu1 %v18829_v18  ;;  %7095 = vmatprep.subr.bf16.mxu0 %v18834_v22 }
 0x36a   :  { %7136 = vmatprep.subr.bf16.mxu1 %v18837_v24 }
 0x36c   :  { %7096 = vmatpush2.bf16.msra.mxu0 %v18832_v25 }
 0x36d   :  { %7137 = vmatpush2.bf16.msra.mxu1 %v18835_v7  ;;  %7097 = vmatprep.subr.bf16.mxu0 %v18840_v50  ;;  %v18880_v50 = vld [vmem:[#allocation3 + $0x1a8] ss:$40 sps:$4 sm:$0xff]  }
 0x36e   :  { %7138 = vmatprep.subr.bf16.mxu1 %v18843_v63  ;;  %v18883_v63 = vld [vmem:[#allocation3 + $0x6a8] ss:$40 sps:$4 sm:$0xff]  }
 0x370   :  { %7098 = vmatpush2.bf16.msra.mxu0 %v18838_v32 }
 0x371   :  { %7139 = vmatpush2.bf16.msra.mxu1 %v18841_v33  ;;  %7099 = vmatprep.subr.bf16.mxu0 %v18846_v28  ;;  %v18888_v28 = vld [vmem:[#allocation3 + $0x15c] ss:$40 sps:$4 sm:$0xff]  }
 0x372   :  { %7140 = vmatprep.subr.bf16.mxu1 %v18849_v35  ;;  %v18891_v35 = vld [vmem:[#allocation3 + $0x65c] ss:$40 sps:$4 sm:$0xff]  }
 0x374   :  { %7100 = vmatpush2.bf16.msra.mxu0 %v18844_v39 }
 0x375   :  { %7141 = vmatpush2.bf16.msra.mxu1 %v18847_v37  ;;  %7101 = vmatprep.subr.bf16.mxu0 %v18852_v38  ;;  %v18886_v38 = vld [vmem:[#allocation3 + $0x158] ss:$40 sps:$4 sm:$0xff]  }
 0x376   :  { %7142 = vmatprep.subr.bf16.mxu1 %v18855_v41  ;;  %v18889_v41 = vld [vmem:[#allocation3 + $0x658] ss:$40 sps:$4 sm:$0xff]  }
 0x378   :  { %7102 = vmatpush2.bf16.msra.mxu0 %v18850_v30  ;;  %v18894_v30 = vld [vmem:[#allocation3 + $0x10c] ss:$40 sps:$4 sm:$0xff]  }
 0x379   :  { %7143 = vmatpush2.bf16.msra.mxu1 %v18853_v44  ;;  %7103 = vmatprep.subr.bf16.mxu0 %v18858_v45  ;;  %v18897_v44 = vld [vmem:[#allocation3 + $0x60c] ss:$40 sps:$4 sm:$0xff]   ;;  %v18892_v45 = vld [vmem:[#allocation3 + $0x108] ss:$40 sps:$4 sm:$0xff]  }
 0x37a   :  { %7144 = vmatprep.subr.bf16.mxu1 %v18861_v46  ;;  %v18895_v46 = vld [vmem:[#allocation3 + $0x608] ss:$40 sps:$4 sm:$0xff]  }
 0x37c   :  { %7104 = vmatpush2.bf16.msra.mxu0 %v18856_v59  ;;  %v18900_v59 = vld [vmem:[#allocation3 + $0xbc] ss:$40 sps:$4 sm:$0xff]  }
 0x37d   :  { %7145 = vmatpush2.bf16.msra.mxu1 %v18859_v48  ;;  %7105 = vmatprep.subr.bf16.mxu0 %v18864_v49  ;;  %v18903_v48 = vld [vmem:[#allocation3 + $0x5bc] ss:$40 sps:$4 sm:$0xff]   ;;  %v18898_v49 = vld [vmem:[#allocation3 + $0xb8] ss:$40 sps:$4 sm:$0xff]  }
 0x37e   :  { %7146 = vmatprep.subr.bf16.mxu1 %v18867_v42  ;;  %v18901_v42 = vld [vmem:[#allocation3 + $0x5b8] ss:$40 sps:$4 sm:$0xff]  }
 0x380   :  { %7106 = vmatpush2.bf16.msra.mxu0 %v18862_v57  ;;  %v18906_v57 = vld [vmem:[#allocation3 + $0x6c] ss:$40 sps:$4 sm:$0xff]  }
 0x381   :  { %7147 = vmatpush2.bf16.msra.mxu1 %v18865_v60  ;;  %7157 = vmatprep.subr.bf16.mxu0 %v18870_v47  ;;  %v18909_v60 = vld [vmem:[#allocation3 + $0x56c] ss:$40 sps:$4 sm:$0xff]   ;;  %v18904_v47 = vld [vmem:[#allocation3 + $0x68] ss:$40 sps:$4 sm:$0xff]  }
 0x382   :  { %7198 = vmatprep.subr.bf16.mxu1 %v18873_v0  ;;  %v18907_v0 = vld [vmem:[#allocation3 + $0x568] ss:$40 sps:$4 sm:$0xff]  }
 0x383   :  { %v6863_v2 = vpop.f32.mrf.mxu0  ;;  %7108 = vmatmul.mubr.bf16.vlgmr.msra.gmra.mxu0 %v20440_v14 }
 0x384   :  { %v6904_v10 = vpop.f32.mrf.mxu1  ;;  %7149 = vmatmul.mubr.bf16.vlgmr.msra.gmra.mxu1 %v20444_v15  ;;  %v6864_v4 = vadd.f32 %v6863_v2, %v20493_v26  ;;  %7158 = vmatpush1.bf16.msra.mxu0 %v18868_v3  ;;  %v18912_v3 = vld [vmem:[#allocation3 + $0x1c] ss:$40 sps:$4 sm:$0xff]   ;;  %v18918_v2 = vld [vmem:[#allocation3 + $0x4cc] ss:$40 sps:$4 sm:$0xff]  }
 0x385   :  { %7199 = vmatpush1.bf16.msra.mxu1 %v18871_v13  ;;  %v6865_v8 = vpop.f32.mrf.mxu0  ;;  %7159 = vmatprep.subr.bf16.mxu0 %v18876_v1  ;;  %v18915_v13 = vld [vmem:[#allocation3 + $0x51c] ss:$40 sps:$4 sm:$0xff]   ;;  %v18910_v1 = vld [vmem:[#allocation3 + $0x18] ss:$40 sps:$4 sm:$0xff]  }
 0x386   :  { %v6906_v9 = vpop.f32.mrf.mxu1  ;;  %7200 = vmatprep.subr.bf16.mxu1 %v18879_v54  ;;  %v6905_v18 = vadd.f32 %v6904_v10, %v6864_v4  ;;  %v6866_v22 = vadd.f32 %v6865_v8, %v20498_v23  ;;  %7189 = vmatprep.mubr.bf16.mxu0 %v20392_v55  ;;  %v18913_v54 = vld [vmem:[#allocation3 + $0x518] ss:$40 sps:$4 sm:$0xff]   ;;  %v18921_v10 = vld [vmem:[#allocation3 + $0x9cc] ss:$40 sps:$4 sm:$0xff]   ;;  %v18916_v4 = vld [vmem:[#allocation3 + $0x4c8] ss:$40 sps:$4 sm:$0xff]  }
 0x387   :  { %7230 = vmatprep.mubr.bf16.mxu1 %v20394_v56  ;;  %v6867_v24 = vpop.f32.mrf.mxu0  ;;  %v18927_v8 = vld [vmem:[#allocation3 + $0x97c] ss:$40 sps:$4 sm:$0xff]  }
 0x388   :  { %v6908_v25 = vpop.f32.mrf.mxu1  ;;  %v7651_v26 = vmul.f32 0.01, %v6905_v18  ;;  %v6907_v7 = vadd.f32 %v6906_v9, %v6866_v22  ;;  %7160 = vmatpush1.bf16.msra.mxu0 %v18874_v5  ;;  %v18919_v5 = vld [vmem:[#allocation3 + $0x9c8] ss:$40 sps:$4 sm:$0xff]   ;;  %v18922_v9 = vld [vmem:[#allocation3 + $0x478] ss:$40 sps:$4 sm:$0xff]  }
 0x389   :  { %7201 = vmatpush1.bf16.msra.mxu1 %v18877_v6  ;;  %v6868_v32 = vpop.f32.mrf.mxu0  ;;  %7161 = vmatprep.subr.bf16.mxu0 %v18882_v11  ;;  %v18924_v6 = vld [vmem:[#allocation3 + $0x47c] ss:$40 sps:$4 sm:$0xff]   ;;  %v18925_v11 = vld [vmem:[#allocation3 + $0x978] ss:$40 sps:$4 sm:$0xff]   ;;  %v18928_v22 = vld [vmem:[#allocation3 + $0x428] ss:$40 sps:$4 sm:$0xff]  }
 0x38a   :  { %v6909_v33 = vpop.f32.mrf.mxu1  ;;  %7202 = vmatprep.subr.bf16.mxu1 %v18885_v16  ;;  %v20506_v39 = vmax.f32 %v6905_v18, %v7651_v26  ;;  %v7652_v23 = vmul.f32 0.01, %v6907_v7  ;;  %v18930_v16 = vld [vmem:[#allocation3 + $0x42c] ss:$40 sps:$4 sm:$0xff]   ;;  %v18931_v24 = vld [vmem:[#allocation3 + $0x928] ss:$40 sps:$4 sm:$0xff]  }
 0x38b   :  { %v18933_v18 = vld [vmem:[#allocation3 + $0x92c] ss:$40 sps:$4 sm:$0xff]   ;;  %v18936_v25 = vld [vmem:[#allocation3 + $0x3dc] ss:$40 sps:$4 sm:$0xff]   ;;  %v18940_v33 = vld [vmem:[#allocation3 + $0x388] ss:$40 sps:$4 sm:$0xff]  }
 0x38c   :  { %v20508_v37 = vmax.f32 %v6907_v7, %v7652_v23  ;;  %7162 = vmatpush1.bf16.msra.mxu0 %v18880_v50  ;;  %v18939_v26 = vld [vmem:[#allocation3 + $0x8dc] ss:$40 sps:$4 sm:$0xff]   ;;  %v18934_v7 = vld [vmem:[#allocation3 + $0x3d8] ss:$40 sps:$4 sm:$0xff]   ;;  %v18945_v32 = vld [vmem:[#allocation3 + $0x88c] ss:$40 sps:$4 sm:$0xff]  }
 0x38d   :  { %7203 = vmatpush1.bf16.msra.mxu1 %v18883_v63  ;;  %7163 = vmatprep.subr.bf16.mxu0 %v18888_v28  ;;  %v18937_v50 = vld [vmem:[#allocation3 + $0x8d8] ss:$40 sps:$4 sm:$0xff]   ;;  %v18942_v63 = vld [vmem:[#allocation3 + $0x38c] ss:$40 sps:$4 sm:$0xff]   ;;  %v18943_v28 = vld [vmem:[#allocation3 + $0x888] ss:$40 sps:$4 sm:$0xff]  }
 0x38e   :  { %7204 = vmatprep.subr.bf16.mxu1 %v18891_v35  ;;  %v18948_v35 = vld [vmem:[#allocation3 + $0x33c] ss:$40 sps:$4 sm:$0xff]  }
 0x38f   :  { %v18951_v23 = vld [vmem:[#allocation3 + $0x83c] ss:$40 sps:$4 sm:$0xff]  }
 0x390   :  { %7164 = vmatpush1.bf16.msra.mxu0 %v18886_v38  ;;  %v18946_v38 = vld [vmem:[#allocation3 + $0x338] ss:$40 sps:$4 sm:$0xff]  }
 0x391   :  { %7205 = vmatpush1.bf16.msra.mxu1 %v18889_v41  ;;  %7165 = vmatprep.subr.bf16.mxu0 %v18894_v30  ;;  %v18949_v41 = vld [vmem:[#allocation3 + $0x838] ss:$40 sps:$4 sm:$0xff]   ;;  %v18954_v30 = vld [vmem:[#allocation3 + $0x2ec] ss:$40 sps:$4 sm:$0xff]  }
 0x392   :  { %7206 = vmatprep.subr.bf16.mxu1 %v18897_v44  ;;  %v18957_v44 = vld [vmem:[#allocation3 + $0x7ec] ss:$40 sps:$4 sm:$0xff]  }
 0x394   :  { %7166 = vmatpush1.bf16.msra.mxu0 %v18892_v45  ;;  %v18952_v45 = vld [vmem:[#allocation3 + $0x2e8] ss:$40 sps:$4 sm:$0xff]  }
 0x395   :  { %7207 = vmatpush1.bf16.msra.mxu1 %v18895_v46  ;;  %7167 = vmatprep.subr.bf16.mxu0 %v18900_v59  ;;  %v18955_v46 = vld [vmem:[#allocation3 + $0x7e8] ss:$40 sps:$4 sm:$0xff]   ;;  %v18960_v59 = vld [vmem:[#allocation3 + $0x29c] ss:$40 sps:$4 sm:$0xff]  }
 0x396   :  { %7208 = vmatprep.subr.bf16.mxu1 %v18903_v48  ;;  %v18963_v48 = vld [vmem:[#allocation3 + $0x79c] ss:$40 sps:$4 sm:$0xff]  }
 0x398   :  { %7168 = vmatpush1.bf16.msra.mxu0 %v18898_v49  ;;  %v18958_v49 = vld [vmem:[#allocation3 + $0x298] ss:$40 sps:$4 sm:$0xff]  }
 0x399   :  { %7209 = vmatpush1.bf16.msra.mxu1 %v18901_v42  ;;  %7169 = vmatprep.subr.bf16.mxu0 %v18906_v57  ;;  %v18961_v42 = vld [vmem:[#allocation3 + $0x798] ss:$40 sps:$4 sm:$0xff]   ;;  %v18966_v57 = vld [vmem:[#allocation3 + $0xc4c] ss:$40 sps:$4 sm:$0xff]  }
 0x39a   :  { %7210 = vmatprep.subr.bf16.mxu1 %v18909_v60  ;;  %v18969_v60 = vld [vmem:[#allocation3 + $0x114c] ss:$40 sps:$4 sm:$0xff]  }
 0x39c   :  { %7170 = vmatpush1.bf16.msra.mxu0 %v18904_v47  ;;  %v20510_v47 = vld [vmem:[#allocation11 + $0xc] sm:$0xff] }
 0x39d   :  { %7211 = vmatpush1.bf16.msra.mxu1 %v18907_v0  ;;  %7171 = vmatprep.subr.bf16.mxu0 %v18912_v3  ;;  %v1588_v0 = vrot.slane %v20510_v47, %v20350_v51  ;;  %v18964_v3 = vld [vmem:[#allocation3 + $0xc48] ss:$40 sps:$4 sm:$0xff]  }
 0x39e   :  { %7212 = vmatprep.subr.bf16.mxu1 %v18915_v13  ;;  %v18967_v13 = vld [vmem:[#allocation3 + $0x1148] ss:$40 sps:$4 sm:$0xff]  }
 0x3a0   :  { %7172 = vmatpush1.bf16.msra.mxu0 %v18910_v1  ;;  %v18972_v1 = vld [vmem:[#allocation3 + $0xbfc] ss:$40 sps:$4 sm:$0xff]  }
 0x3a1   :  { %7213 = vmatpush1.bf16.msra.mxu1 %v18913_v54  ;;  %7173 = vmatprep.subr.bf16.mxu0 %v18918_v2  ;;  %v18975_v54 = vld [vmem:[#allocation3 + $0x10fc] ss:$40 sps:$4 sm:$0xff]   ;;  %v1592_v2 = vrot.slane %v20510_v47, %v20354_v58 }
 0x3a2   :  { %7214 = vmatprep.subr.bf16.mxu1 %v18921_v10 }
 0x3a4   :  { %7174 = vmatpush2.bf16.msra.mxu0 %v18916_v4 }
 0x3a5   :  { %7215 = vmatpush2.bf16.msra.mxu1 %v18919_v5  ;;  %7175 = vmatprep.subr.bf16.mxu0 %v18924_v6  ;;  %v18970_v6 = vld [vmem:[#allocation3 + $0xbf8] ss:$40 sps:$4 sm:$0xff]  }
 0x3a6   :  { %7216 = vmatprep.subr.bf16.mxu1 %v18927_v8  ;;  %v18973_v8 = vld [vmem:[#allocation3 + $0x10f8] ss:$40 sps:$4 sm:$0xff]  }
 0x3a8   :  { %7176 = vmatpush2.bf16.msra.mxu0 %v18922_v9 }
 0x3a9   :  { %7217 = vmatpush2.bf16.msra.mxu1 %v18925_v11  ;;  %7177 = vmatprep.subr.bf16.mxu0 %v18930_v16  ;;  %v18978_v16 = vld [vmem:[#allocation3 + $0xbac] ss:$40 sps:$4 sm:$0xff]  }
 0x3aa   :  { %7218 = vmatprep.subr.bf16.mxu1 %v18933_v18  ;;  %v18981_v18 = vld [vmem:[#allocation3 + $0x10ac] ss:$40 sps:$4 sm:$0xff]  }
 0x3ac   :  { %7178 = vmatpush2.bf16.msra.mxu0 %v18928_v22 }
 0x3ad   :  { %7219 = vmatpush2.bf16.msra.mxu1 %v18931_v24  ;;  %7179 = vmatprep.subr.bf16.mxu0 %v18936_v25 }
 0x3ae   :  { %7220 = vmatprep.subr.bf16.mxu1 %v18939_v26 }
 0x3b0   :  { %7180 = vmatpush2.bf16.msra.mxu0 %v18934_v7 }
 0x3b1   :  { %7221 = vmatpush2.bf16.msra.mxu1 %v18937_v50  ;;  %7181 = vmatprep.subr.bf16.mxu0 %v18942_v63  ;;  %v18976_v50 = vld [vmem:[#allocation3 + $0xba8] ss:$40 sps:$4 sm:$0xff]  }
 0x3b2   :  { %7222 = vmatprep.subr.bf16.mxu1 %v18945_v32  ;;  %v18979_v63 = vld [vmem:[#allocation3 + $0x10a8] ss:$40 sps:$4 sm:$0xff]  }
 0x3b4   :  { %7182 = vmatpush2.bf16.msra.mxu0 %v18940_v33 }
 0x3b5   :  { %7223 = vmatpush2.bf16.msra.mxu1 %v18943_v28  ;;  %7183 = vmatprep.subr.bf16.mxu0 %v18948_v35  ;;  %v18984_v28 = vld [vmem:[#allocation3 + $0xb5c] ss:$40 sps:$4 sm:$0xff]  }
 0x3b6   :  { %7224 = vmatprep.subr.bf16.mxu1 %v18951_v23  ;;  %v18987_v35 = vld [vmem:[#allocation3 + $0x105c] ss:$40 sps:$4 sm:$0xff]   ;;  %v18982_v23 = vld [vmem:[#allocation3 + $0xb58] ss:$40 sps:$4 sm:$0xff]  }
 0x3b8   :  { %7184 = vmatpush2.bf16.msra.mxu0 %v18946_v38  ;;  %v18985_v38 = vld [vmem:[#allocation3 + $0x1058] ss:$40 sps:$4 sm:$0xff]  }
 0x3b9   :  { %7225 = vmatpush2.bf16.msra.mxu1 %v18949_v41  ;;  %7185 = vmatprep.subr.bf16.mxu0 %v18954_v30  ;;  %v18990_v41 = vld [vmem:[#allocation3 + $0xb0c] ss:$40 sps:$4 sm:$0xff]  }
 0x3ba   :  { %7226 = vmatprep.subr.bf16.mxu1 %v18957_v44  ;;  %v18993_v30 = vld [vmem:[#allocation3 + $0x100c] ss:$40 sps:$4 sm:$0xff]   ;;  %v18988_v44 = vld [vmem:[#allocation3 + $0xb08] ss:$40 sps:$4 sm:$0xff]  }
 0x3bc   :  { %7186 = vmatpush2.bf16.msra.mxu0 %v18952_v45  ;;  %v18991_v45 = vld [vmem:[#allocation3 + $0x1008] ss:$40 sps:$4 sm:$0xff]  }
 0x3bd   :  { %7227 = vmatpush2.bf16.msra.mxu1 %v18955_v46  ;;  %7187 = vmatprep.subr.bf16.mxu0 %v18960_v59  ;;  %v18996_v46 = vld [vmem:[#allocation3 + $0xabc] ss:$40 sps:$4 sm:$0xff]  }
 0x3be   :  { %7228 = vmatprep.subr.bf16.mxu1 %v18963_v48  ;;  %v18999_v59 = vld [vmem:[#allocation3 + $0xfbc] ss:$40 sps:$4 sm:$0xff]   ;;  %v18994_v48 = vld [vmem:[#allocation3 + $0xab8] ss:$40 sps:$4 sm:$0xff]  }
 0x3c0   :  { %7188 = vmatpush2.bf16.msra.mxu0 %v18958_v49  ;;  %v18997_v49 = vld [vmem:[#allocation3 + $0xfb8] ss:$40 sps:$4 sm:$0xff]  }
 0x3c1   :  { %7229 = vmatpush2.bf16.msra.mxu1 %v18961_v42  ;;  %7239 = vmatprep.subr.bf16.mxu0 %v18966_v57  ;;  %v19002_v42 = vld [vmem:[#allocation3 + $0xa6c] ss:$40 sps:$4 sm:$0xff]  }
 0x3c2   :  { %7280 = vmatprep.subr.bf16.mxu1 %v18969_v60  ;;  %v19005_v57 = vld [vmem:[#allocation3 + $0xf6c] ss:$40 sps:$4 sm:$0xff]   ;;  %v19000_v60 = vld [vmem:[#allocation3 + $0xa68] ss:$40 sps:$4 sm:$0xff]  }
 0x3c3   :  { %v6945_v10 = vpop.f32.mrf.mxu0  ;;  %7190 = vmatmul.mubr.bf16.vlgmr.msra.gmra.mxu0 %v20400_v20 }
 0x3c4   :  { %v6986_v4 = vpop.f32.mrf.mxu1  ;;  %7231 = vmatmul.mubr.bf16.vlgmr.msra.gmra.mxu1 %v20404_v21  ;;  %v6946_v5 = vadd.f32 %v6945_v10, %v1588_v0  ;;  %7240 = vmatpush1.bf16.msra.mxu0 %v18964_v3  ;;  %v19003_v0 = vld [vmem:[#allocation3 + $0xf68] ss:$40 sps:$4 sm:$0xff]   ;;  %v19008_v3 = vld [vmem:[#allocation3 + $0xa1c] ss:$40 sps:$4 sm:$0xff]   ;;  %v19017_v10 = vld [vmem:[#allocation3 + $0x13cc] ss:$40 sps:$4 sm:$0xff]  }
 0x3c5   :  { %7281 = vmatpush1.bf16.msra.mxu1 %v18967_v13  ;;  %v6947_v9 = vpop.f32.mrf.mxu0  ;;  %7241 = vmatprep.subr.bf16.mxu0 %v18972_v1  ;;  %v19011_v13 = vld [vmem:[#allocation3 + $0xf1c] ss:$40 sps:$4 sm:$0xff]   ;;  %v19006_v1 = vld [vmem:[#allocation3 + $0xa18] ss:$40 sps:$4 sm:$0xff]  }
 0x3c6   :  { %v6988_v11 = vpop.f32.mrf.mxu1  ;;  %7282 = vmatprep.subr.bf16.mxu1 %v18975_v54  ;;  %v20518_v22 = vadd.f32 %v6986_v4, %v6946_v5  ;;  %v6948_v24 = vadd.f32 %v6947_v9, %v1592_v2  ;;  %7271 = vmatprep.mubr.bf16.mxu0 %v20408_v27  ;;  %v19009_v54 = vld [vmem:[#allocation3 + $0xf18] ss:$40 sps:$4 sm:$0xff]   ;;  %v19014_v2 = vld [vmem:[#allocation3 + $0xecc] ss:$40 sps:$4 sm:$0xff]   ;;  %v19012_v4 = vld [vmem:[#allocation3 + $0xec8] ss:$40 sps:$4 sm:$0xff]  }
 0x3c7   :  { %7312 = vmatprep.mubr.bf16.mxu1 %v20412_v43  ;;  %v6949_v25 = vpop.f32.mrf.mxu0  ;;  %v19015_v5 = vld [vmem:[#allocation3 + $0x13c8] ss:$40 sps:$4 sm:$0xff]   ;;  %v19018_v9 = vld [vmem:[#allocation3 + $0xe78] ss:$40 sps:$4 sm:$0xff]  }
 0x3c8   :  { %v6990_v26 = vpop.f32.mrf.mxu1  ;;  %v20522_v7 = vadd.f32 %v6988_v11, %v6948_v24  ;;  %7242 = vmatpush1.bf16.msra.mxu0 %v18970_v6  ;;  %v19020_v6 = vld [vmem:[#allocation3 + $0xe7c] ss:$40 sps:$4 sm:$0xff]   ;;  %v19021_v11 = vld [vmem:[#allocation3 + $0x1378] ss:$40 sps:$4 sm:$0xff]   ;;  %v19024_v24 = vld [vmem:[#allocation3 + $0xe28] ss:$40 sps:$4 sm:$0xff]  }
 0x3c9   :  { %7283 = vmatpush1.bf16.msra.mxu1 %v18973_v8  ;;  %v6950_v32 = vpop.f32.mrf.mxu0  ;;  %7243 = vmatprep.subr.bf16.mxu0 %v18978_v16  ;;  %v19023_v8 = vld [vmem:[#allocation3 + $0x137c] ss:$40 sps:$4 sm:$0xff]   ;;  %v19026_v16 = vld [vmem:[#allocation3 + $0xe2c] ss:$40 sps:$4 sm:$0xff]   ;;  %v19027_v25 = vld [vmem:[#allocation3 + $0x1328] ss:$40 sps:$4 sm:$0xff]  }
 0x3ca   :  { %v6991_v33 = vpop.f32.mrf.mxu1  ;;  %7284 = vmatprep.subr.bf16.mxu1 %v18981_v18  ;;  %v19029_v18 = vld [vmem:[#allocation3 + $0x132c] ss:$40 sps:$4 sm:$0xff]   ;;  %v19032_v26 = vld [vmem:[#allocation3 + $0xddc] ss:$40 sps:$4 sm:$0xff]   ;;  %v19033_v32 = vld [vmem:[#allocation3 + $0x12d8] ss:$40 sps:$4 sm:$0xff]  }
 0x3cb   :  { %v19038_v33 = vld [vmem:[#allocation3 + $0xd8c] ss:$40 sps:$4 sm:$0xff]  }
 0x3cc   :  { %7244 = vmatpush1.bf16.msra.mxu0 %v18976_v50  ;;  %v19035_v50 = vld [vmem:[#allocation3 + $0x12dc] ss:$40 sps:$4 sm:$0xff]  }
 0x3cd   :  { %7285 = vmatpush1.bf16.msra.mxu1 %v18979_v63  ;;  %7245 = vmatprep.subr.bf16.mxu0 %v18984_v28  ;;  %v19030_v63 = vld [vmem:[#allocation3 + $0xdd8] ss:$40 sps:$4 sm:$0xff]   ;;  %v19041_v28 = vld [vmem:[#allocation3 + $0x128c] ss:$40 sps:$4 sm:$0xff]  }
 0x3ce   :  { %7286 = vmatprep.subr.bf16.mxu1 %v18987_v35  ;;  %v19036_v35 = vld [vmem:[#allocation3 + $0xd88] ss:$40 sps:$4 sm:$0xff]  }
 0x3d0   :  { %7246 = vmatpush1.bf16.msra.mxu0 %v18982_v23  ;;  %v19039_v23 = vld [vmem:[#allocation3 + $0x1288] ss:$40 sps:$4 sm:$0xff]  }
 0x3d1   :  { %7287 = vmatpush1.bf16.msra.mxu1 %v18985_v38  ;;  %7247 = vmatprep.subr.bf16.mxu0 %v18990_v41  ;;  %v19044_v38 = vld [vmem:[#allocation3 + $0xd3c] ss:$40 sps:$4 sm:$0xff]  }
 0x3d2   :  { %7288 = vmatprep.subr.bf16.mxu1 %v18993_v30  ;;  %v19047_v41 = vld [vmem:[#allocation3 + $0x123c] ss:$40 sps:$4 sm:$0xff]   ;;  %v19042_v30 = vld [vmem:[#allocation3 + $0xd38] ss:$40 sps:$4 sm:$0xff]  }
 0x3d4   :  { %7248 = vmatpush1.bf16.msra.mxu0 %v18988_v44  ;;  %v19045_v44 = vld [vmem:[#allocation3 + $0x1238] ss:$40 sps:$4 sm:$0xff]  }
 0x3d5   :  { %7289 = vmatpush1.bf16.msra.mxu1 %v18991_v45  ;;  %7249 = vmatprep.subr.bf16.mxu0 %v18996_v46  ;;  %v19050_v45 = vld [vmem:[#allocation3 + $0xcec] ss:$40 sps:$4 sm:$0xff]  }
 0x3d6   :  { %7290 = vmatprep.subr.bf16.mxu1 %v18999_v59  ;;  %v19053_v46 = vld [vmem:[#allocation3 + $0x11ec] ss:$40 sps:$4 sm:$0xff]   ;;  %v19048_v59 = vld [vmem:[#allocation3 + $0xce8] ss:$40 sps:$4 sm:$0xff]  }
 0x3d8   :  { %7250 = vmatpush1.bf16.msra.mxu0 %v18994_v48  ;;  %v19051_v48 = vld [vmem:[#allocation3 + $0x11e8] ss:$40 sps:$4 sm:$0xff]  }
 0x3d9   :  { %7291 = vmatpush1.bf16.msra.mxu1 %v18997_v49  ;;  %7251 = vmatprep.subr.bf16.mxu0 %v19002_v42  ;;  %v19056_v49 = vld [vmem:[#allocation3 + $0xc9c] ss:$40 sps:$4 sm:$0xff]  }
 0x3da   :  { %7292 = vmatprep.subr.bf16.mxu1 %v19005_v57  ;;  %v19059_v42 = vld [vmem:[#allocation3 + $0x119c] ss:$40 sps:$4 sm:$0xff]   ;;  %v19054_v57 = vld [vmem:[#allocation3 + $0xc98] ss:$40 sps:$4 sm:$0xff]  }
 0x3dc   :  { %7252 = vmatpush1.bf16.msra.mxu0 %v19000_v60  ;;  %v19057_v60 = vld [vmem:[#allocation3 + $0x1198] ss:$40 sps:$4 sm:$0xff]  }
 0x3dd   :  { %7293 = vmatpush1.bf16.msra.mxu1 %v19003_v0  ;;  %7253 = vmatprep.subr.bf16.mxu0 %v19008_v3  ;;  %v19062_v0 = vld [vmem:[#allocation3 + $0x164c] ss:$40 sps:$4 sm:$0xff]  }
 0x3de   :  { %7294 = vmatprep.subr.bf16.mxu1 %v19011_v13  ;;  %v19065_v3 = vld [vmem:[#allocation3 + $0x1b4c] ss:$40 sps:$4 sm:$0xff]   ;;  %v19060_v13 = vld [vmem:[#allocation3 + $0x1648] ss:$40 sps:$4 sm:$0xff]  }
 0x3e0   :  { %7254 = vmatpush1.bf16.msra.mxu0 %v19006_v1  ;;  %v19063_v1 = vld [vmem:[#allocation3 + $0x1b48] ss:$40 sps:$4 sm:$0xff]  }
 0x3e1   :  { %7295 = vmatpush1.bf16.msra.mxu1 %v19009_v54  ;;  %7255 = vmatprep.subr.bf16.mxu0 %v19014_v2  ;;  %v19068_v54 = vld [vmem:[#allocation3 + $0x15fc] ss:$40 sps:$4 sm:$0xff]  }
 0x3e2   :  { %7296 = vmatprep.subr.bf16.mxu1 %v19017_v10  ;;  %v19071_v2 = vld [vmem:[#allocation3 + $0x1afc] ss:$40 sps:$4 sm:$0xff]  }
 0x3e4   :  { %7256 = vmatpush2.bf16.msra.mxu0 %v19012_v4 }
 0x3e5   :  { %7297 = vmatpush2.bf16.msra.mxu1 %v19015_v5  ;;  %7257 = vmatprep.subr.bf16.mxu0 %v19020_v6  ;;  %v19066_v6 = vld [vmem:[#allocation3 + $0x15f8] ss:$40 sps:$4 sm:$0xff]  }
 0x3e6   :  { %7298 = vmatprep.subr.bf16.mxu1 %v19023_v8  ;;  %v19069_v8 = vld [vmem:[#allocation3 + $0x1af8] ss:$40 sps:$4 sm:$0xff]  }
 0x3e8   :  { %7258 = vmatpush2.bf16.msra.mxu0 %v19018_v9 }
 0x3e9   :  { %7299 = vmatpush2.bf16.msra.mxu1 %v19021_v11  ;;  %7259 = vmatprep.subr.bf16.mxu0 %v19026_v16  ;;  %v19074_v16 = vld [vmem:[#allocation3 + $0x15ac] ss:$40 sps:$4 sm:$0xff]  }
 0x3ea   :  { %7300 = vmatprep.subr.bf16.mxu1 %v19029_v18  ;;  %v19077_v18 = vld [vmem:[#allocation3 + $0x1aac] ss:$40 sps:$4 sm:$0xff]  }
 0x3ec   :  { %7260 = vmatpush2.bf16.msra.mxu0 %v19024_v24 }
 0x3ed   :  { %7301 = vmatpush2.bf16.msra.mxu1 %v19027_v25  ;;  %7261 = vmatprep.subr.bf16.mxu0 %v19032_v26 }
 0x3ee   :  { %7302 = vmatprep.subr.bf16.mxu1 %v19035_v50 }
 0x3f0   :  { %7262 = vmatpush2.bf16.msra.mxu0 %v19030_v63  ;;  %v19072_v63 = vld [vmem:[#allocation3 + $0x15a8] ss:$40 sps:$4 sm:$0xff]  }
 0x3f1   :  { %7303 = vmatpush2.bf16.msra.mxu1 %v19033_v32  ;;  %7263 = vmatprep.subr.bf16.mxu0 %v19038_v33  ;;  %v19075_v32 = vld [vmem:[#allocation3 + $0x1aa8] ss:$40 sps:$4 sm:$0xff]  }
 0x3f2   :  { %7304 = vmatprep.subr.bf16.mxu1 %v19041_v28 }
 0x3f4   :  { %7264 = vmatpush2.bf16.msra.mxu0 %v19036_v35  ;;  %v19080_v35 = vld [vmem:[#allocation3 + $0x155c] ss:$40 sps:$4 sm:$0xff]  }
 0x3f5   :  { %7305 = vmatpush2.bf16.msra.mxu1 %v19039_v23  ;;  %7265 = vmatprep.subr.bf16.mxu0 %v19044_v38  ;;  %v19083_v23 = vld [vmem:[#allocation3 + $0x1a5c] ss:$40 sps:$4 sm:$0xff]   ;;  %v19081_v38 = vld [vmem:[#allocation3 + $0x1a58] ss:$40 sps:$4 sm:$0xff]  }
 0x3f6   :  { %7306 = vmatprep.subr.bf16.mxu1 %v19047_v41  ;;  %v19086_v41 = vld [vmem:[#allocation3 + $0x150c] ss:$40 sps:$4 sm:$0xff]  }
 0x3f8   :  { %7266 = vmatpush2.bf16.msra.mxu0 %v19042_v30  ;;  %v19089_v30 = vld [vmem:[#allocation3 + $0x1a0c] ss:$40 sps:$4 sm:$0xff]  }
 0x3f9   :  { %7307 = vmatpush2.bf16.msra.mxu1 %v19045_v44  ;;  %7267 = vmatprep.subr.bf16.mxu0 %v19050_v45  ;;  %v19084_v44 = vld [vmem:[#allocation3 + $0x1508] ss:$40 sps:$4 sm:$0xff]  }
 0x3fa   :  { %7308 = vmatprep.subr.bf16.mxu1 %v19053_v46  ;;  %v19087_v45 = vld [vmem:[#allocation3 + $0x1a08] ss:$40 sps:$4 sm:$0xff]   ;;  %v19092_v46 = vld [vmem:[#allocation3 + $0x14bc] ss:$40 sps:$4 sm:$0xff]  }
 0x3fc   :  { %7268 = vmatpush2.bf16.msra.mxu0 %v19048_v59  ;;  %v19095_v59 = vld [vmem:[#allocation3 + $0x19bc] ss:$40 sps:$4 sm:$0xff]  }
 0x3fd   :  { %7309 = vmatpush2.bf16.msra.mxu1 %v19051_v48  ;;  %7269 = vmatprep.subr.bf16.mxu0 %v19056_v49  ;;  %v19090_v48 = vld [vmem:[#allocation3 + $0x14b8] ss:$40 sps:$4 sm:$0xff]  }
 0x3fe   :  { %7310 = vmatprep.subr.bf16.mxu1 %v19059_v42  ;;  %v19093_v49 = vld [vmem:[#allocation3 + $0x19b8] ss:$40 sps:$4 sm:$0xff]   ;;  %v19098_v42 = vld [vmem:[#allocation3 + $0x146c] ss:$40 sps:$4 sm:$0xff]  }
 0x400   :  { %7270 = vmatpush2.bf16.msra.mxu0 %v19054_v57  ;;  %v19101_v57 = vld [vmem:[#allocation3 + $0x196c] ss:$40 sps:$4 sm:$0xff]  }
 0x401   :  { %7311 = vmatpush2.bf16.msra.mxu1 %v19057_v60  ;;  %7321 = vmatprep.subr.bf16.mxu0 %v19062_v0  ;;  %v19096_v60 = vld [vmem:[#allocation3 + $0x1468] ss:$40 sps:$4 sm:$0xff]  }
 0x402   :  { %7362 = vmatprep.subr.bf16.mxu1 %v19065_v3  ;;  %v19099_v0 = vld [vmem:[#allocation3 + $0x1968] ss:$40 sps:$4 sm:$0xff]   ;;  %v19104_v3 = vld [vmem:[#allocation3 + $0x141c] ss:$40 sps:$4 sm:$0xff]  }
 0x403   :  { %v7027_v10 = vpop.f32.mrf.mxu0  ;;  %7272 = vmatmul.mubr.bf16.vlgmr.msra.gmra.mxu0 %v20420_v52 }
 0x404   :  { %v7068_v4 = vpop.f32.mrf.mxu1  ;;  %7313 = vmatmul.mubr.bf16.vlgmr.msra.gmra.mxu1 %v20424_v53  ;;  %v7028_v5 = vadd.f32 %v7027_v10, %v20518_v22  ;;  %7322 = vmatpush1.bf16.msra.mxu0 %v19060_v13  ;;  %v19107_v13 = vld [vmem:[#allocation3 + $0x191c] ss:$40 sps:$4 sm:$0xff]   ;;  %v19113_v10 = vld [vmem:[#allocation3 + $0x1dcc] ss:$40 sps:$4 sm:$0xff]  }
 0x405   :  { %7363 = vmatpush1.bf16.msra.mxu1 %v19063_v1  ;;  %v7029_v9 = vpop.f32.mrf.mxu0  ;;  %7323 = vmatprep.subr.bf16.mxu0 %v19068_v54  ;;  %v19102_v1 = vld [vmem:[#allocation3 + $0x1418] ss:$40 sps:$4 sm:$0xff]  }
 0x406   :  { %v7070_v11 = vpop.f32.mrf.mxu1  ;;  %7364 = vmatprep.subr.bf16.mxu1 %v19071_v2  ;;  %v20527_v24 = vadd.f32 %v7068_v4, %v7028_v5  ;;  %v7030_v25 = vadd.f32 %v7029_v9, %v20522_v7  ;;  %7353 = vmatprep.mubr.bf16.mxu0 %v20428_v61  ;;  %v19078_v7 = vld [vmem:[#allocation3 + $0x1558] ss:$40 sps:$4 sm:$0xff]   ;;  %v19110_v2 = vld [vmem:[#allocation3 + $0x18cc] ss:$40 sps:$4 sm:$0xff]   ;;  %v19108_v4 = vld [vmem:[#allocation3 + $0x18c8] ss:$40 sps:$4 sm:$0xff]  }
 0x407   :  { %7394 = vmatprep.mubr.bf16.mxu1 %v20432_v19  ;;  %v7031_v26 = vpop.f32.mrf.mxu0  ;;  %v19105_v54 = vld [vmem:[#allocation3 + $0x1918] ss:$40 sps:$4 sm:$0xff]   ;;  %v19111_v5 = vld [vmem:[#allocation3 + $0x1dc8] ss:$40 sps:$4 sm:$0xff]  }
 0x408   :  { %v7072_v22 = vpop.f32.mrf.mxu1  ;;  %v20532_v50 = vadd.f32 %v7070_v11, %v7030_v25  ;;  %7324 = vmatpush1.bf16.msra.mxu0 %v19066_v6  ;;  %v19116_v6 = vld [vmem:[#allocation3 + $0x187c] ss:$40 sps:$4 sm:$0xff]   ;;  %v19114_v9 = vld [vmem:[#allocation3 + $0x1878] ss:$40 sps:$4 sm:$0xff]   ;;  %v19120_v25 = vld [vmem:[#allocation3 + $0x1828] ss:$40 sps:$4 sm:$0xff]  }
 0x409   :  { %7365 = vmatpush1.bf16.msra.mxu1 %v19069_v8  ;;  %v7032_v33 = vpop.f32.mrf.mxu0  ;;  %7325 = vmatprep.subr.bf16.mxu0 %v19074_v16  ;;  %v19119_v8 = vld [vmem:[#allocation3 + $0x1d7c] ss:$40 sps:$4 sm:$0xff]   ;;  %v19117_v11 = vld [vmem:[#allocation3 + $0x1d78] ss:$40 sps:$4 sm:$0xff]   ;;  %v19122_v16 = vld [vmem:[#allocation3 + $0x182c] ss:$40 sps:$4 sm:$0xff]  }
 0x40a   :  { %v7073_v28 = vpop.f32.mrf.mxu1  ;;  %7366 = vmatprep.subr.bf16.mxu1 %v19077_v18  ;;  %v19125_v18 = vld [vmem:[#allocation3 + $0x1d2c] ss:$40 sps:$4 sm:$0xff]   ;;  %v19123_v26 = vld [vmem:[#allocation3 + $0x1d28] ss:$40 sps:$4 sm:$0xff]   ;;  %v19128_v22 = vld [vmem:[#allocation3 + $0x17dc] ss:$40 sps:$4 sm:$0xff]  }
 0x40b   :  { %v19129_v33 = vld [vmem:[#allocation3 + $0x1cd8] ss:$40 sps:$4 sm:$0xff]   ;;  %v19134_v28 = vld [vmem:[#allocation3 + $0x178c] ss:$40 sps:$4 sm:$0xff]  }
 0x40c   :  { %7326 = vmatpush1.bf16.msra.mxu0 %v19072_v63  ;;  %v19131_v63 = vld [vmem:[#allocation3 + $0x1cdc] ss:$40 sps:$4 sm:$0xff]  }
 0x40d   :  { %7367 = vmatpush1.bf16.msra.mxu1 %v19075_v32  ;;  %7327 = vmatprep.subr.bf16.mxu0 %v19080_v35  ;;  %v19126_v32 = vld [vmem:[#allocation3 + $0x17d8] ss:$40 sps:$4 sm:$0xff]   ;;  %v19137_v35 = vld [vmem:[#allocation3 + $0x1c8c] ss:$40 sps:$4 sm:$0xff]  }
 0x40e   :  { %7368 = vmatprep.subr.bf16.mxu1 %v19083_v23  ;;  %v19132_v23 = vld [vmem:[#allocation3 + $0x1788] ss:$40 sps:$4 sm:$0xff]  }
 0x410   :  { %7328 = vmatpush1.bf16.msra.mxu0 %v19078_v7  ;;  %v19135_v7 = vld [vmem:[#allocation3 + $0x1c88] ss:$40 sps:$4 sm:$0xff]  }
 0x411   :  { %7369 = vmatpush1.bf16.msra.mxu1 %v19081_v38  ;;  %7329 = vmatprep.subr.bf16.mxu0 %v19086_v41  ;;  %v19140_v38 = vld [vmem:[#allocation3 + $0x173c] ss:$40 sps:$4 sm:$0xff]  }
 0x412   :  { %7370 = vmatprep.subr.bf16.mxu1 %v19089_v30  ;;  %v19143_v41 = vld [vmem:[#allocation3 + $0x1c3c] ss:$40 sps:$4 sm:$0xff]   ;;  %v19138_v30 = vld [vmem:[#allocation3 + $0x1738] ss:$40 sps:$4 sm:$0xff]  }
 0x414   :  { %7330 = vmatpush1.bf16.msra.mxu0 %v19084_v44  ;;  %v19141_v44 = vld [vmem:[#allocation3 + $0x1c38] ss:$40 sps:$4 sm:$0xff]  }
 0x415   :  { %7371 = vmatpush1.bf16.msra.mxu1 %v19087_v45  ;;  %7331 = vmatprep.subr.bf16.mxu0 %v19092_v46  ;;  %v19146_v45 = vld [vmem:[#allocation3 + $0x16ec] ss:$40 sps:$4 sm:$0xff]  }
 0x416   :  { %7372 = vmatprep.subr.bf16.mxu1 %v19095_v59  ;;  %v19149_v46 = vld [vmem:[#allocation3 + $0x1bec] ss:$40 sps:$4 sm:$0xff]   ;;  %v19144_v59 = vld [vmem:[#allocation3 + $0x16e8] ss:$40 sps:$4 sm:$0xff]  }
 0x418   :  { %7332 = vmatpush1.bf16.msra.mxu0 %v19090_v48  ;;  %v19147_v48 = vld [vmem:[#allocation3 + $0x1be8] ss:$40 sps:$4 sm:$0xff]  }
 0x419   :  { %7373 = vmatpush1.bf16.msra.mxu1 %v19093_v49  ;;  %7333 = vmatprep.subr.bf16.mxu0 %v19098_v42  ;;  %v19152_v49 = vld [vmem:[#allocation3 + $0x169c] ss:$40 sps:$4 sm:$0xff]  }
 0x41a   :  { %7374 = vmatprep.subr.bf16.mxu1 %v19101_v57  ;;  %v19155_v42 = vld [vmem:[#allocation3 + $0x1b9c] ss:$40 sps:$4 sm:$0xff]   ;;  %v19150_v57 = vld [vmem:[#allocation3 + $0x1698] ss:$40 sps:$4 sm:$0xff]  }
 0x41c   :  { %7334 = vmatpush1.bf16.msra.mxu0 %v19096_v60  ;;  %v19153_v60 = vld [vmem:[#allocation3 + $0x1b98] ss:$40 sps:$4 sm:$0xff]  }
 0x41d   :  { %7375 = vmatpush1.bf16.msra.mxu1 %v19099_v0  ;;  %7335 = vmatprep.subr.bf16.mxu0 %v19104_v3  ;;  %v19158_v0 = vld [vmem:[#allocation3 + $0x254] ss:$40 sps:$4 sm:$0xff]  }
 0x41e   :  { %7376 = vmatprep.subr.bf16.mxu1 %v19107_v13  ;;  %v19161_v3 = vld [vmem:[#allocation3 + $0x754] ss:$40 sps:$4 sm:$0xff]   ;;  %v19156_v13 = vld [vmem:[#allocation3 + $0x250] ss:$40 sps:$4 sm:$0xff]  }
 0x420   :  { %7336 = vmatpush1.bf16.msra.mxu0 %v19102_v1  ;;  %v19159_v1 = vld [vmem:[#allocation3 + $0x750] ss:$40 sps:$4 sm:$0xff]  }
 0x421   :  { %7377 = vmatpush1.bf16.msra.mxu1 %v19105_v54  ;;  %7337 = vmatprep.subr.bf16.mxu0 %v19110_v2  ;;  %v19164_v54 = vld [vmem:[#allocation3 + $0x204] ss:$40 sps:$4 sm:$0xff]  }
 0x422   :  { %7378 = vmatprep.subr.bf16.mxu1 %v19113_v10  ;;  %v19167_v2 = vld [vmem:[#allocation3 + $0x704] ss:$40 sps:$4 sm:$0xff]  }
 0x424   :  { %7338 = vmatpush2.bf16.msra.mxu0 %v19108_v4 }
 0x425   :  { %7379 = vmatpush2.bf16.msra.mxu1 %v19111_v5  ;;  %7339 = vmatprep.subr.bf16.mxu0 %v19116_v6  ;;  %v19162_v6 = vld [vmem:[#allocation3 + $0x200] ss:$40 sps:$4 sm:$0xff]  }
 0x426   :  { %7380 = vmatprep.subr.bf16.mxu1 %v19119_v8  ;;  %v19165_v8 = vld [vmem:[#allocation3 + $0x700] ss:$40 sps:$4 sm:$0xff]  }
 0x428   :  { %7340 = vmatpush2.bf16.msra.mxu0 %v19114_v9 }
 0x429   :  { %7381 = vmatpush2.bf16.msra.mxu1 %v19117_v11  ;;  %7341 = vmatprep.subr.bf16.mxu0 %v19122_v16  ;;  %v19170_v16 = vld [vmem:[#allocation3 + $0x1b4] ss:$40 sps:$4 sm:$0xff]  }
 0x42a   :  { %7382 = vmatprep.subr.bf16.mxu1 %v19125_v18  ;;  %v19173_v18 = vld [vmem:[#allocation3 + $0x6b4] ss:$40 sps:$4 sm:$0xff]  }
 0x42c   :  { %7342 = vmatpush2.bf16.msra.mxu0 %v19120_v25 }
 0x42d   :  { %7383 = vmatpush2.bf16.msra.mxu1 %v19123_v26  ;;  %7343 = vmatprep.subr.bf16.mxu0 %v19128_v22 }
 0x42e   :  { %7384 = vmatprep.subr.bf16.mxu1 %v19131_v63 }
 0x430   :  { %7344 = vmatpush2.bf16.msra.mxu0 %v19126_v32 }
 0x431   :  { %7385 = vmatpush2.bf16.msra.mxu1 %v19129_v33  ;;  %7345 = vmatprep.subr.bf16.mxu0 %v19134_v28  ;;  %v19168_v33 = vld [vmem:[#allocation3 + $0x1b0] ss:$40 sps:$4 sm:$0xff]  }
 0x432   :  { %7386 = vmatprep.subr.bf16.mxu1 %v19137_v35  ;;  %v19171_v28 = vld [vmem:[#allocation3 + $0x6b0] ss:$40 sps:$4 sm:$0xff]  }
 0x434   :  { %7346 = vmatpush2.bf16.msra.mxu0 %v19132_v23 }
 0x435   :  { %7387 = vmatpush2.bf16.msra.mxu1 %v19135_v7  ;;  %7347 = vmatprep.subr.bf16.mxu0 %v19140_v38  ;;  %v19176_v7 = vld [vmem:[#allocation3 + $0x164] ss:$40 sps:$4 sm:$0xff]  }
 0x436   :  { %7388 = vmatprep.subr.bf16.mxu1 %v19143_v41  ;;  %v19179_v38 = vld [vmem:[#allocation3 + $0x664] ss:$40 sps:$4 sm:$0xff]  }
 0x438   :  { %7348 = vmatpush2.bf16.msra.mxu0 %v19138_v30  ;;  %v19177_v30 = vld [vmem:[#allocation3 + $0x660] ss:$40 sps:$4 sm:$0xff]  }
 0x439   :  { %7389 = vmatpush2.bf16.msra.mxu1 %v19141_v44  ;;  %7349 = vmatprep.subr.bf16.mxu0 %v19146_v45  ;;  %v19182_v44 = vld [vmem:[#allocation3 + $0x114] ss:$40 sps:$4 sm:$0xff]  }
 0x43a   :  { %7390 = vmatprep.subr.bf16.mxu1 %v19149_v46  ;;  %v19185_v45 = vld [vmem:[#allocation3 + $0x614] ss:$40 sps:$4 sm:$0xff]   ;;  %v19180_v46 = vld [vmem:[#allocation3 + $0x110] ss:$40 sps:$4 sm:$0xff]  }
 0x43c   :  { %7350 = vmatpush2.bf16.msra.mxu0 %v19144_v59  ;;  %v19183_v59 = vld [vmem:[#allocation3 + $0x610] ss:$40 sps:$4 sm:$0xff]  }
 0x43d   :  { %7391 = vmatpush2.bf16.msra.mxu1 %v19147_v48  ;;  %7351 = vmatprep.subr.bf16.mxu0 %v19152_v49  ;;  %v19188_v48 = vld [vmem:[#allocation3 + $0xc4] ss:$40 sps:$4 sm:$0xff]  }
 0x43e   :  { %7392 = vmatprep.subr.bf16.mxu1 %v19155_v42  ;;  %v19191_v49 = vld [vmem:[#allocation3 + $0x5c4] ss:$40 sps:$4 sm:$0xff]   ;;  %v19186_v42 = vld [vmem:[#allocation3 + $0xc0] ss:$40 sps:$4 sm:$0xff]  }
 0x440   :  { %7352 = vmatpush2.bf16.msra.mxu0 %v19150_v57  ;;  %v19189_v57 = vld [vmem:[#allocation3 + $0x5c0] ss:$40 sps:$4 sm:$0xff]  }
 0x441   :  { %7393 = vmatpush2.bf16.msra.mxu1 %v19153_v60  ;;  %7403 = vmatprep.subr.bf16.mxu0 %v19158_v0  ;;  %v19194_v60 = vld [vmem:[#allocation3 + $0x74] ss:$40 sps:$4 sm:$0xff]  }
 0x442   :  { %7444 = vmatprep.subr.bf16.mxu1 %v19161_v3  ;;  %v19197_v0 = vld [vmem:[#allocation3 + $0x574] ss:$40 sps:$4 sm:$0xff]   ;;  %v19192_v3 = vld [vmem:[#allocation3 + $0x70] ss:$40 sps:$4 sm:$0xff]  }
 0x443   :  { %v7109_v10 = vpop.f32.mrf.mxu0  ;;  %7354 = vmatmul.mubr.bf16.vlgmr.msra.gmra.mxu0 %v20440_v14 }
 0x444   :  { %v7150_v4 = vpop.f32.mrf.mxu1  ;;  %7395 = vmatmul.mubr.bf16.vlgmr.msra.gmra.mxu1 %v20444_v15  ;;  %v7110_v5 = vadd.f32 %v7109_v10, %v20527_v24  ;;  %7404 = vmatpush1.bf16.msra.mxu0 %v19156_v13  ;;  %v19195_v13 = vld [vmem:[#allocation3 + $0x570] ss:$40 sps:$4 sm:$0xff]   ;;  %v19201_v10 = vld [vmem:[#allocation3 + $0x520] ss:$40 sps:$4 sm:$0xff]  }
 0x445   :  { %7445 = vmatpush1.bf16.msra.mxu1 %v19159_v1  ;;  %v7111_v9 = vpop.f32.mrf.mxu0  ;;  %7405 = vmatprep.subr.bf16.mxu0 %v19164_v54  ;;  %v19200_v1 = vld [vmem:[#allocation3 + $0x24] ss:$40 sps:$4 sm:$0xff]  }
 0x446   :  { %v7152_v11 = vpop.f32.mrf.mxu1  ;;  %7446 = vmatprep.subr.bf16.mxu1 %v19167_v2  ;;  %v7151_v25 = vadd.f32 %v7150_v4, %v7110_v5  ;;  %v7112_v26 = vadd.f32 %v7111_v9, %v20532_v50  ;;  %7435 = vmatprep.mubr.bf16.mxu0 %v20392_v55  ;;  %v19203_v54 = vld [vmem:[#allocation3 + $0x524] ss:$40 sps:$4 sm:$0xff]   ;;  %v19198_v2 = vld [vmem:[#allocation3 + $0x20] ss:$40 sps:$4 sm:$0xff]   ;;  %v19206_v4 = vld [vmem:[#allocation3 + $0x4d4] ss:$40 sps:$4 sm:$0xff]  }
 0x447   :  { %7476 = vmatprep.mubr.bf16.mxu1 %v20394_v56  ;;  %v7113_v22 = vpop.f32.mrf.mxu0  ;;  %v19174_v56 = vld [vmem:[#allocation3 + $0x160] ss:$40 sps:$4 sm:$0xff]   ;;  %v19209_v5 = vld [vmem:[#allocation3 + $0x9d4] ss:$40 sps:$4 sm:$0xff]   ;;  %v19212_v9 = vld [vmem:[#allocation3 + $0x484] ss:$40 sps:$4 sm:$0xff]  }
 0x448   :  { %v7154_v63 = vpop.f32.mrf.mxu1  ;;  %v7653_v24 = vmul.f32 0.01, %v7151_v25  ;;  %v7153_v32 = vadd.f32 %v7152_v11, %v7112_v26  ;;  %7406 = vmatpush1.bf16.msra.mxu0 %v19162_v6  ;;  %v19204_v6 = vld [vmem:[#allocation3 + $0x4d0] ss:$40 sps:$4 sm:$0xff]   ;;  %v19215_v11 = vld [vmem:[#allocation3 + $0x984] ss:$40 sps:$4 sm:$0xff]  }
 0x449   :  { %7447 = vmatpush1.bf16.msra.mxu1 %v19165_v8  ;;  %v7114_v35 = vpop.f32.mrf.mxu0  ;;  %7407 = vmatprep.subr.bf16.mxu0 %v19170_v16  ;;  %v19207_v8 = vld [vmem:[#allocation3 + $0x9d0] ss:$40 sps:$4 sm:$0xff]   ;;  %v19210_v16 = vld [vmem:[#allocation3 + $0x480] ss:$40 sps:$4 sm:$0xff]   ;;  %v19221_v26 = vld [vmem:[#allocation3 + $0x934] ss:$40 sps:$4 sm:$0xff]  }
 0x44a   :  { %v7155_v23 = vpop.f32.mrf.mxu1  ;;  %7448 = vmatprep.subr.bf16.mxu1 %v19173_v18  ;;  %v20540_v41 = vmax.f32 %v7151_v25, %v7653_v24  ;;  %v7654_v50 = vmul.f32 0.01, %v7153_v32  ;;  %v19213_v18 = vld [vmem:[#allocation3 + $0x980] ss:$40 sps:$4 sm:$0xff]   ;;  %v19218_v25 = vld [vmem:[#allocation3 + $0x434] ss:$40 sps:$4 sm:$0xff]  }
 0x44b   :  { %v19216_v22 = vld [vmem:[#allocation3 + $0x430] ss:$40 sps:$4 sm:$0xff]   ;;  %v19224_v24 = vld [vmem:[#allocation3 + $0x3e4] ss:$40 sps:$4 sm:$0xff]   ;;  %v19230_v35 = vld [vmem:[#allocation3 + $0x394] ss:$40 sps:$4 sm:$0xff]  }
 0x44c   :  { %v20542_v55 = vmax.f32 %v7153_v32, %v7654_v50  ;;  %7408 = vmatpush1.bf16.msra.mxu0 %v19168_v33  ;;  %v19219_v63 = vld [vmem:[#allocation3 + $0x930] ss:$40 sps:$4 sm:$0xff]   ;;  %v19227_v32 = vld [vmem:[#allocation3 + $0x8e4] ss:$40 sps:$4 sm:$0xff]   ;;  %v19222_v33 = vld [vmem:[#allocation3 + $0x3e0] ss:$40 sps:$4 sm:$0xff]  }
 0x44d   :  { %7449 = vmatpush1.bf16.msra.mxu1 %v19171_v28  ;;  %7409 = vmatprep.subr.bf16.mxu0 %v19176_v7  ;;  %v19225_v28 = vld [vmem:[#allocation3 + $0x8e0] ss:$40 sps:$4 sm:$0xff]   ;;  %v19233_v23 = vld [vmem:[#allocation3 + $0x894] ss:$40 sps:$4 sm:$0xff]   ;;  %v19228_v7 = vld [vmem:[#allocation3 + $0x390] ss:$40 sps:$4 sm:$0xff]  }
 0x44e   :  { %7450 = vmatprep.subr.bf16.mxu1 %v19179_v38  ;;  %v19231_v38 = vld [vmem:[#allocation3 + $0x890] ss:$40 sps:$4 sm:$0xff]   ;;  %v19236_v50 = vld [vmem:[#allocation3 + $0x344] ss:$40 sps:$4 sm:$0xff]  }
 0x450   :  { %7410 = vmatpush1.bf16.msra.mxu0 %v19174_v56  ;;  %v19239_v56 = vld [vmem:[#allocation3 + $0x844] ss:$40 sps:$4 sm:$0xff]  }
 0x451   :  { %7451 = vmatpush1.bf16.msra.mxu1 %v19177_v30  ;;  %7411 = vmatprep.subr.bf16.mxu0 %v19182_v44  ;;  %v19234_v30 = vld [vmem:[#allocation3 + $0x340] ss:$40 sps:$4 sm:$0xff]  }
 0x452   :  { %7452 = vmatprep.subr.bf16.mxu1 %v19185_v45  ;;  %v19237_v44 = vld [vmem:[#allocation3 + $0x840] ss:$40 sps:$4 sm:$0xff]   ;;  %v19242_v45 = vld [vmem:[#allocation3 + $0x2f4] ss:$40 sps:$4 sm:$0xff]  }
 0x454   :  { %7412 = vmatpush1.bf16.msra.mxu0 %v19180_v46  ;;  %v19245_v46 = vld [vmem:[#allocation3 + $0x7f4] ss:$40 sps:$4 sm:$0xff]  }
 0x455   :  { %7453 = vmatpush1.bf16.msra.mxu1 %v19183_v59  ;;  %7413 = vmatprep.subr.bf16.mxu0 %v19188_v48  ;;  %v19240_v59 = vld [vmem:[#allocation3 + $0x2f0] ss:$40 sps:$4 sm:$0xff]  }
 0x456   :  { %7454 = vmatprep.subr.bf16.mxu1 %v19191_v49  ;;  %v19243_v48 = vld [vmem:[#allocation3 + $0x7f0] ss:$40 sps:$4 sm:$0xff]   ;;  %v19248_v49 = vld [vmem:[#allocation3 + $0x2a4] ss:$40 sps:$4 sm:$0xff]  }
 0x458   :  { %7414 = vmatpush1.bf16.msra.mxu0 %v19186_v42  ;;  %v19251_v42 = vld [vmem:[#allocation3 + $0x7a4] ss:$40 sps:$4 sm:$0xff]  }
 0x459   :  { %7455 = vmatpush1.bf16.msra.mxu1 %v19189_v57  ;;  %7415 = vmatprep.subr.bf16.mxu0 %v19194_v60  ;;  %v19246_v57 = vld [vmem:[#allocation3 + $0x2a0] ss:$40 sps:$4 sm:$0xff]  }
 0x45a   :  { %7456 = vmatprep.subr.bf16.mxu1 %v19197_v0  ;;  %v19249_v60 = vld [vmem:[#allocation3 + $0x7a0] ss:$40 sps:$4 sm:$0xff]   ;;  %v19254_v0 = vld [vmem:[#allocation3 + $0xc54] ss:$40 sps:$4 sm:$0xff]  }
 0x45c   :  { %7416 = vmatpush1.bf16.msra.mxu0 %v19192_v3  ;;  %v19257_v3 = vld [vmem:[#allocation3 + $0x1154] ss:$40 sps:$4 sm:$0xff]  }
 0x45d   :  { %7457 = vmatpush1.bf16.msra.mxu1 %v19195_v13  ;;  %7417 = vmatprep.subr.bf16.mxu0 %v19200_v1  ;;  %v1596_v13 = vrot.slane %v20510_v47, %v20364_v12  ;;  %v19252_v1 = vld [vmem:[#allocation3 + $0xc50] ss:$40 sps:$4 sm:$0xff]  }
 0x45e   :  { %7458 = vmatprep.subr.bf16.mxu1 %v19203_v54  ;;  %v19255_v54 = vld [vmem:[#allocation3 + $0x1150] ss:$40 sps:$4 sm:$0xff]  }
 0x460   :  { %7418 = vmatpush1.bf16.msra.mxu0 %v19198_v2  ;;  %v19260_v2 = vld [vmem:[#allocation3 + $0xc04] ss:$40 sps:$4 sm:$0xff]  }
 0x461   :  { %7459 = vmatpush1.bf16.msra.mxu1 %v19201_v10  ;;  %7419 = vmatprep.subr.bf16.mxu0 %v19206_v4  ;;  %v19263_v10 = vld [vmem:[#allocation3 + $0x1104] ss:$40 sps:$4 sm:$0xff]   ;;  %v1600_v4 = vrot.slane %v20510_v47, %v20368_v17 }
 0x462   :  { %7460 = vmatprep.subr.bf16.mxu1 %v19209_v5 }
 0x464   :  { %7420 = vmatpush2.bf16.msra.mxu0 %v19204_v6 }
 0x465   :  { %7461 = vmatpush2.bf16.msra.mxu1 %v19207_v8  ;;  %7421 = vmatprep.subr.bf16.mxu0 %v19212_v9  ;;  %v19258_v9 = vld [vmem:[#allocation3 + $0xc00] ss:$40 sps:$4 sm:$0xff]  }
 0x466   :  { %7462 = vmatprep.subr.bf16.mxu1 %v19215_v11  ;;  %v19261_v11 = vld [vmem:[#allocation3 + $0x1100] ss:$40 sps:$4 sm:$0xff]  }
 0x468   :  { %7422 = vmatpush2.bf16.msra.mxu0 %v19210_v16 }
 0x469   :  { %7463 = vmatpush2.bf16.msra.mxu1 %v19213_v18  ;;  %7423 = vmatprep.subr.bf16.mxu0 %v19218_v25  ;;  %v19266_v25 = vld [vmem:[#allocation3 + $0xbb4] ss:$40 sps:$4 sm:$0xff]  }
 0x46a   :  { %7464 = vmatprep.subr.bf16.mxu1 %v19221_v26  ;;  %v19269_v26 = vld [vmem:[#allocation3 + $0x10b4] ss:$40 sps:$4 sm:$0xff]  }
 0x46c   :  { %7424 = vmatpush2.bf16.msra.mxu0 %v19216_v22 }
 0x46d   :  { %7465 = vmatpush2.bf16.msra.mxu1 %v19219_v63  ;;  %7425 = vmatprep.subr.bf16.mxu0 %v19224_v24  ;;  %v19264_v24 = vld [vmem:[#allocation3 + $0xbb0] ss:$40 sps:$4 sm:$0xff]  }
 0x46e   :  { %7466 = vmatprep.subr.bf16.mxu1 %v19227_v32  ;;  %v19267_v32 = vld [vmem:[#allocation3 + $0x10b0] ss:$40 sps:$4 sm:$0xff]  }
 0x470   :  { %7426 = vmatpush2.bf16.msra.mxu0 %v19222_v33 }
 0x471   :  { %7467 = vmatpush2.bf16.msra.mxu1 %v19225_v28  ;;  %7427 = vmatprep.subr.bf16.mxu0 %v19230_v35  ;;  %v19272_v35 = vld [vmem:[#allocation3 + $0xb64] ss:$40 sps:$4 sm:$0xff]  }
 0x472   :  { %7468 = vmatprep.subr.bf16.mxu1 %v19233_v23  ;;  %v19275_v23 = vld [vmem:[#allocation3 + $0x1064] ss:$40 sps:$4 sm:$0xff]  }
 0x474   :  { %7428 = vmatpush2.bf16.msra.mxu0 %v19228_v7  ;;  %v19270_v7 = vld [vmem:[#allocation3 + $0xb60] ss:$40 sps:$4 sm:$0xff]  }
 0x475   :  { %7469 = vmatpush2.bf16.msra.mxu1 %v19231_v38  ;;  %7429 = vmatprep.subr.bf16.mxu0 %v19236_v50  ;;  %v19281_v38 = vld [vmem:[#allocation3 + $0x1014] ss:$40 sps:$4 sm:$0xff]   ;;  %v19276_v50 = vld [vmem:[#allocation3 + $0xb10] ss:$40 sps:$4 sm:$0xff]  }
 0x476   :  { %7470 = vmatprep.subr.bf16.mxu1 %v19239_v56  ;;  %v19279_v56 = vld [vmem:[#allocation3 + $0x1010] ss:$40 sps:$4 sm:$0xff]  }
 0x478   :  { %7430 = vmatpush2.bf16.msra.mxu0 %v19234_v30  ;;  %v19284_v30 = vld [vmem:[#allocation3 + $0xac4] ss:$40 sps:$4 sm:$0xff]  }
 0x479   :  { %7471 = vmatpush2.bf16.msra.mxu1 %v19237_v44  ;;  %7431 = vmatprep.subr.bf16.mxu0 %v19242_v45  ;;  %v19287_v44 = vld [vmem:[#allocation3 + $0xfc4] ss:$40 sps:$4 sm:$0xff]   ;;  %v19282_v45 = vld [vmem:[#allocation3 + $0xac0] ss:$40 sps:$4 sm:$0xff]  }
 0x47a   :  { %7472 = vmatprep.subr.bf16.mxu1 %v19245_v46  ;;  %v19285_v46 = vld [vmem:[#allocation3 + $0xfc0] ss:$40 sps:$4 sm:$0xff]  }
 0x47c   :  { %7432 = vmatpush2.bf16.msra.mxu0 %v19240_v59  ;;  %v19290_v59 = vld [vmem:[#allocation3 + $0xa74] ss:$40 sps:$4 sm:$0xff]  }
 0x47d   :  { %7473 = vmatpush2.bf16.msra.mxu1 %v19243_v48  ;;  %7433 = vmatprep.subr.bf16.mxu0 %v19248_v49  ;;  %v19293_v48 = vld [vmem:[#allocation3 + $0xf74] ss:$40 sps:$4 sm:$0xff]   ;;  %v19288_v49 = vld [vmem:[#allocation3 + $0xa70] ss:$40 sps:$4 sm:$0xff]  }
 0x47e   :  { %7474 = vmatprep.subr.bf16.mxu1 %v19251_v42  ;;  %v19291_v42 = vld [vmem:[#allocation3 + $0xf70] ss:$40 sps:$4 sm:$0xff]  }
 0x480   :  { %7434 = vmatpush2.bf16.msra.mxu0 %v19246_v57  ;;  %v19296_v57 = vld [vmem:[#allocation3 + $0xa24] ss:$40 sps:$4 sm:$0xff]  }
 0x481   :  { %7475 = vmatpush2.bf16.msra.mxu1 %v19249_v60  ;;  %7485 = vmatprep.subr.bf16.mxu0 %v19254_v0  ;;  %v19299_v60 = vld [vmem:[#allocation3 + $0xf24] ss:$40 sps:$4 sm:$0xff]   ;;  %v19294_v0 = vld [vmem:[#allocation3 + $0xa20] ss:$40 sps:$4 sm:$0xff]  }
 0x482   :  { %7526 = vmatprep.subr.bf16.mxu1 %v19257_v3  ;;  %v19297_v3 = vld [vmem:[#allocation3 + $0xf20] ss:$40 sps:$4 sm:$0xff]  }
 0x483   :  { %v7191_v5 = vpop.f32.mrf.mxu0  ;;  %7436 = vmatmul.mubr.bf16.vlgmr.msra.gmra.mxu0 %v20400_v20 }
 0x484   :  { %v7232_v6 = vpop.f32.mrf.mxu1  ;;  %7477 = vmatmul.mubr.bf16.vlgmr.msra.gmra.mxu1 %v20404_v21  ;;  %v7192_v8 = vadd.f32 %v7191_v5, %v1596_v13  ;;  %7486 = vmatpush1.bf16.msra.mxu0 %v19252_v1  ;;  %v19302_v13 = vld [vmem:[#allocation3 + $0xed4] ss:$40 sps:$4 sm:$0xff]   ;;  %v19306_v5 = vld [vmem:[#allocation3 + $0xe80] ss:$40 sps:$4 sm:$0xff]  }
 0x485   :  { %7527 = vmatpush1.bf16.msra.mxu1 %v19255_v54  ;;  %v7193_v16 = vpop.f32.mrf.mxu0  ;;  %7487 = vmatprep.subr.bf16.mxu0 %v19260_v2  ;;  %v19305_v1 = vld [vmem:[#allocation3 + $0x13d4] ss:$40 sps:$4 sm:$0xff]   ;;  %v19300_v54 = vld [vmem:[#allocation3 + $0xed0] ss:$40 sps:$4 sm:$0xff]  }
 0x486   :  { %v7234_v18 = vpop.f32.mrf.mxu1  ;;  %7528 = vmatprep.subr.bf16.mxu1 %v19263_v10  ;;  %v20550_v22 = vadd.f32 %v7232_v6, %v7192_v8  ;;  %v7194_v47 = vadd.f32 %v7193_v16, %v1600_v4  ;;  %7517 = vmatprep.mubr.bf16.mxu0 %v20408_v27  ;;  %v19273_v27 = vld [vmem:[#allocation3 + $0x1060] ss:$40 sps:$4 sm:$0xff]   ;;  %v19303_v2 = vld [vmem:[#allocation3 + $0x13d0] ss:$40 sps:$4 sm:$0xff]   ;;  %v19308_v10 = vld [vmem:[#allocation3 + $0xe84] ss:$40 sps:$4 sm:$0xff]  }
 0x487   :  { %7558 = vmatprep.mubr.bf16.mxu1 %v20412_v43  ;;  %v7195_v20 = vpop.f32.mrf.mxu0  ;;  %v19278_v43 = vld [vmem:[#allocation3 + $0xb14] ss:$40 sps:$4 sm:$0xff]   ;;  %v19311_v4 = vld [vmem:[#allocation3 + $0x1384] ss:$40 sps:$4 sm:$0xff]   ;;  %v19309_v6 = vld [vmem:[#allocation3 + $0x1380] ss:$40 sps:$4 sm:$0xff]  }
 0x488   :  { %v7236_v21 = vpop.f32.mrf.mxu1  ;;  %v20554_v63 = vadd.f32 %v7234_v18, %v7194_v47  ;;  %7488 = vmatpush1.bf16.msra.mxu0 %v19258_v9  ;;  %v19314_v8 = vld [vmem:[#allocation3 + $0xe34] ss:$40 sps:$4 sm:$0xff]   ;;  %v19315_v16 = vld [vmem:[#allocation3 + $0x1330] ss:$40 sps:$4 sm:$0xff]   ;;  %v19320_v18 = vld [vmem:[#allocation3 + $0xde4] ss:$40 sps:$4 sm:$0xff]  }
 0x489   :  { %7529 = vmatpush1.bf16.msra.mxu1 %v19261_v11  ;;  %v7196_v33 = vpop.f32.mrf.mxu0  ;;  %7489 = vmatprep.subr.bf16.mxu0 %v19266_v25  ;;  %v19317_v9 = vld [vmem:[#allocation3 + $0x1334] ss:$40 sps:$4 sm:$0xff]   ;;  %v19312_v11 = vld [vmem:[#allocation3 + $0xe30] ss:$40 sps:$4 sm:$0xff]   ;;  %v19323_v25 = vld [vmem:[#allocation3 + $0x12e4] ss:$40 sps:$4 sm:$0xff]  }
 0x48a   :  { %v7237_v28 = vpop.f32.mrf.mxu1  ;;  %7530 = vmatprep.subr.bf16.mxu1 %v19269_v26  ;;  %v19318_v26 = vld [vmem:[#allocation3 + $0xde0] ss:$40 sps:$4 sm:$0xff]   ;;  %v19326_v20 = vld [vmem:[#allocation3 + $0xd94] ss:$40 sps:$4 sm:$0xff]   ;;  %v19332_v33 = vld [vmem:[#allocation3 + $0xd44] ss:$40 sps:$4 sm:$0xff]  }
 0x48b   :  { %v19321_v47 = vld [vmem:[#allocation3 + $0x12e0] ss:$40 sps:$4 sm:$0xff]   ;;  %v19329_v21 = vld [vmem:[#allocation3 + $0x1294] ss:$40 sps:$4 sm:$0xff]   ;;  %v19335_v28 = vld [vmem:[#allocation3 + $0x1244] ss:$40 sps:$4 sm:$0xff]  }
 0x48c   :  { %7490 = vmatpush1.bf16.msra.mxu0 %v19264_v24  ;;  %v19324_v24 = vld [vmem:[#allocation3 + $0xd90] ss:$40 sps:$4 sm:$0xff]  }
 0x48d   :  { %7531 = vmatpush1.bf16.msra.mxu1 %v19267_v32  ;;  %7491 = vmatprep.subr.bf16.mxu0 %v19272_v35  ;;  %v19327_v32 = vld [vmem:[#allocation3 + $0x1290] ss:$40 sps:$4 sm:$0xff]   ;;  %v19330_v35 = vld [vmem:[#allocation3 + $0xd40] ss:$40 sps:$4 sm:$0xff]  }
 0x48e   :  { %7532 = vmatprep.subr.bf16.mxu1 %v19275_v23  ;;  %v19333_v23 = vld [vmem:[#allocation3 + $0x1240] ss:$40 sps:$4 sm:$0xff]  }
 0x490   :  { %7492 = vmatpush1.bf16.msra.mxu0 %v19270_v7  ;;  %v19338_v7 = vld [vmem:[#allocation3 + $0xcf4] ss:$40 sps:$4 sm:$0xff]  }
 0x491   :  { %7533 = vmatpush1.bf16.msra.mxu1 %v19273_v27  ;;  %7493 = vmatprep.subr.bf16.mxu0 %v19278_v43  ;;  %v19341_v27 = vld [vmem:[#allocation3 + $0x11f4] ss:$40 sps:$4 sm:$0xff]   ;;  %v19336_v43 = vld [vmem:[#allocation3 + $0xcf0] ss:$40 sps:$4 sm:$0xff]  }
 0x492   :  { %7534 = vmatprep.subr.bf16.mxu1 %v19281_v38  ;;  %v19339_v38 = vld [vmem:[#allocation3 + $0x11f0] ss:$40 sps:$4 sm:$0xff]  }
 0x494   :  { %7494 = vmatpush1.bf16.msra.mxu0 %v19276_v50  ;;  %v19344_v50 = vld [vmem:[#allocation3 + $0xca4] ss:$40 sps:$4 sm:$0xff]  }
 0x495   :  { %7535 = vmatpush1.bf16.msra.mxu1 %v19279_v56  ;;  %7495 = vmatprep.subr.bf16.mxu0 %v19284_v30  ;;  %v19347_v56 = vld [vmem:[#allocation3 + $0x11a4] ss:$40 sps:$4 sm:$0xff]   ;;  %v19342_v30 = vld [vmem:[#allocation3 + $0xca0] ss:$40 sps:$4 sm:$0xff]  }
 0x496   :  { %7536 = vmatprep.subr.bf16.mxu1 %v19287_v44  ;;  %v19345_v44 = vld [vmem:[#allocation3 + $0x11a0] ss:$40 sps:$4 sm:$0xff]  }
 0x498   :  { %7496 = vmatpush1.bf16.msra.mxu0 %v19282_v45  ;;  %v19350_v45 = vld [vmem:[#allocation3 + $0x1654] ss:$40 sps:$4 sm:$0xff]  }
 0x499   :  { %7537 = vmatpush1.bf16.msra.mxu1 %v19285_v46  ;;  %7497 = vmatprep.subr.bf16.mxu0 %v19290_v59  ;;  %v19353_v46 = vld [vmem:[#allocation3 + $0x1b54] ss:$40 sps:$4 sm:$0xff]   ;;  %v19348_v59 = vld [vmem:[#allocation3 + $0x1650] ss:$40 sps:$4 sm:$0xff]  }
 0x49a   :  { %7538 = vmatprep.subr.bf16.mxu1 %v19293_v48  ;;  %v19351_v48 = vld [vmem:[#allocation3 + $0x1b50] ss:$40 sps:$4 sm:$0xff]  }
 0x49c   :  { %7498 = vmatpush1.bf16.msra.mxu0 %v19288_v49  ;;  %v19356_v49 = vld [vmem:[#allocation3 + $0x1604] ss:$40 sps:$4 sm:$0xff]  }
 0x49d   :  { %7539 = vmatpush1.bf16.msra.mxu1 %v19291_v42  ;;  %7499 = vmatprep.subr.bf16.mxu0 %v19296_v57  ;;  %v19359_v42 = vld [vmem:[#allocation3 + $0x1b04] ss:$40 sps:$4 sm:$0xff]  }
 0x49e   :  { %7540 = vmatprep.subr.bf16.mxu1 %v19299_v60 }
 0x4a0   :  { %7500 = vmatpush1.bf16.msra.mxu0 %v19294_v0 }
 0x4a1   :  { %7541 = vmatpush1.bf16.msra.mxu1 %v19297_v3  ;;  %7501 = vmatprep.subr.bf16.mxu0 %v19302_v13  ;;  %v19354_v3 = vld [vmem:[#allocation3 + $0x1600] ss:$40 sps:$4 sm:$0xff]  }
 0x4a2   :  { %7542 = vmatprep.subr.bf16.mxu1 %v19305_v1  ;;  %v19357_v13 = vld [vmem:[#allocation3 + $0x1b00] ss:$40 sps:$4 sm:$0xff]  }
 0x4a4   :  { %7502 = vmatpush2.bf16.msra.mxu0 %v19300_v54 }
 0x4a5   :  { %7543 = vmatpush2.bf16.msra.mxu1 %v19303_v2  ;;  %7503 = vmatprep.subr.bf16.mxu0 %v19308_v10  ;;  %v19362_v2 = vld [vmem:[#allocation3 + $0x15b4] ss:$40 sps:$4 sm:$0xff]  }
 0x4a6   :  { %7544 = vmatprep.subr.bf16.mxu1 %v19311_v4  ;;  %v19365_v10 = vld [vmem:[#allocation3 + $0x1ab4] ss:$40 sps:$4 sm:$0xff]  }
 0x4a8   :  { %7504 = vmatpush2.bf16.msra.mxu0 %v19306_v5 }
 0x4a9   :  { %7545 = vmatpush2.bf16.msra.mxu1 %v19309_v6  ;;  %7505 = vmatprep.subr.bf16.mxu0 %v19314_v8  ;;  %v19360_v6 = vld [vmem:[#allocation3 + $0x15b0] ss:$40 sps:$4 sm:$0xff]  }
 0x4aa   :  { %7546 = vmatprep.subr.bf16.mxu1 %v19317_v9  ;;  %v19363_v8 = vld [vmem:[#allocation3 + $0x1ab0] ss:$40 sps:$4 sm:$0xff]  }
 0x4ac   :  { %7506 = vmatpush2.bf16.msra.mxu0 %v19312_v11 }
 0x4ad   :  { %7547 = vmatpush2.bf16.msra.mxu1 %v19315_v16  ;;  %7507 = vmatprep.subr.bf16.mxu0 %v19320_v18  ;;  %v19368_v16 = vld [vmem:[#allocation3 + $0x1564] ss:$40 sps:$4 sm:$0xff]  }
 0x4ae   :  { %7548 = vmatprep.subr.bf16.mxu1 %v19323_v25  ;;  %v19371_v18 = vld [vmem:[#allocation3 + $0x1a64] ss:$40 sps:$4 sm:$0xff]   ;;  %v19377_v25 = vld [vmem:[#allocation3 + $0x1a14] ss:$40 sps:$4 sm:$0xff]  }
 0x4b0   :  { %7508 = vmatpush2.bf16.msra.mxu0 %v19318_v26  ;;  %v19372_v26 = vld [vmem:[#allocation3 + $0x1510] ss:$40 sps:$4 sm:$0xff]  }
 0x4b1   :  { %7549 = vmatpush2.bf16.msra.mxu1 %v19321_v47  ;;  %7509 = vmatprep.subr.bf16.mxu0 %v19326_v20  ;;  %v19375_v47 = vld [vmem:[#allocation3 + $0x1a10] ss:$40 sps:$4 sm:$0xff]   ;;  %v19380_v20 = vld [vmem:[#allocation3 + $0x14c4] ss:$40 sps:$4 sm:$0xff]  }
 0x4b2   :  { %7550 = vmatprep.subr.bf16.mxu1 %v19329_v21  ;;  %v19383_v21 = vld [vmem:[#allocation3 + $0x19c4] ss:$40 sps:$4 sm:$0xff]  }
 0x4b4   :  { %7510 = vmatpush2.bf16.msra.mxu0 %v19324_v24  ;;  %v19378_v24 = vld [vmem:[#allocation3 + $0x14c0] ss:$40 sps:$4 sm:$0xff]  }
 0x4b5   :  { %7551 = vmatpush2.bf16.msra.mxu1 %v19327_v32  ;;  %7511 = vmatprep.subr.bf16.mxu0 %v19332_v33  ;;  %v19381_v32 = vld [vmem:[#allocation3 + $0x19c0] ss:$40 sps:$4 sm:$0xff]   ;;  %v19386_v33 = vld [vmem:[#allocation3 + $0x1474] ss:$40 sps:$4 sm:$0xff]  }
 0x4b6   :  { %7552 = vmatprep.subr.bf16.mxu1 %v19335_v28  ;;  %v19389_v28 = vld [vmem:[#allocation3 + $0x1974] ss:$40 sps:$4 sm:$0xff]  }
 0x4b8   :  { %7512 = vmatpush2.bf16.msra.mxu0 %v19330_v35  ;;  %v19384_v35 = vld [vmem:[#allocation3 + $0x1470] ss:$40 sps:$4 sm:$0xff]  }
 0x4b9   :  { %7553 = vmatpush2.bf16.msra.mxu1 %v19333_v23  ;;  %7513 = vmatprep.subr.bf16.mxu0 %v19338_v7  ;;  %v19387_v23 = vld [vmem:[#allocation3 + $0x1970] ss:$40 sps:$4 sm:$0xff]   ;;  %v19392_v7 = vld [vmem:[#allocation3 + $0x1424] ss:$40 sps:$4 sm:$0xff]  }
 0x4ba   :  { %7554 = vmatprep.subr.bf16.mxu1 %v19341_v27  ;;  %v19395_v27 = vld [vmem:[#allocation3 + $0x1924] ss:$40 sps:$4 sm:$0xff]  }
 0x4bc   :  { %7514 = vmatpush2.bf16.msra.mxu0 %v19336_v43  ;;  %v19390_v43 = vld [vmem:[#allocation3 + $0x1420] ss:$40 sps:$4 sm:$0xff]  }
 0x4bd   :  { %7555 = vmatpush2.bf16.msra.mxu1 %v19339_v38  ;;  %7515 = vmatprep.subr.bf16.mxu0 %v19344_v50  ;;  %v19393_v38 = vld [vmem:[#allocation3 + $0x1920] ss:$40 sps:$4 sm:$0xff]   ;;  %v19398_v50 = vld [vmem:[#allocation3 + $0x18d4] ss:$40 sps:$4 sm:$0xff]  }
 0x4be   :  { %7556 = vmatprep.subr.bf16.mxu1 %v19347_v56  ;;  %v19401_v56 = vld [vmem:[#allocation3 + $0x1dd4] ss:$40 sps:$4 sm:$0xff]  }
 0x4c0   :  { %7516 = vmatpush2.bf16.msra.mxu0 %v19342_v30  ;;  %v19396_v30 = vld [vmem:[#allocation3 + $0x18d0] ss:$40 sps:$4 sm:$0xff]  }
 0x4c1   :  { %7557 = vmatpush2.bf16.msra.mxu1 %v19345_v44  ;;  %7567 = vmatprep.subr.bf16.mxu0 %v19350_v45  ;;  %v19399_v44 = vld [vmem:[#allocation3 + $0x1dd0] ss:$40 sps:$4 sm:$0xff]   ;;  %v19404_v45 = vld [vmem:[#allocation3 + $0x1884] ss:$40 sps:$4 sm:$0xff]  }
 0x4c2   :  { %7608 = vmatprep.subr.bf16.mxu1 %v19353_v46  ;;  %v19407_v46 = vld [vmem:[#allocation3 + $0x1d84] ss:$40 sps:$4 sm:$0xff]  }
 0x4c3   :  { %v7273_v57 = vpop.f32.mrf.mxu0  ;;  %7518 = vmatmul.mubr.bf16.vlgmr.msra.gmra.mxu0 %v20420_v52 }
 0x4c4   :  { %v7314_v60 = vpop.f32.mrf.mxu1  ;;  %7559 = vmatmul.mubr.bf16.vlgmr.msra.gmra.mxu1 %v20424_v53  ;;  %v7274_v0 = vadd.f32 %v7273_v57, %v20550_v22  ;;  %7568 = vmatpush1.bf16.msra.mxu0 %v19348_v59  ;;  %v19402_v59 = vld [vmem:[#allocation3 + $0x1880] ss:$40 sps:$4 sm:$0xff]   ;;  %v19408_v57 = vld [vmem:[#allocation3 + $0x1830] ss:$40 sps:$4 sm:$0xff]  }
 0x4c5   :  { %7609 = vmatpush1.bf16.msra.mxu1 %v19351_v48  ;;  %v7275_v1 = vpop.f32.mrf.mxu0  ;;  %7569 = vmatprep.subr.bf16.mxu0 %v19356_v49  ;;  %v19405_v48 = vld [vmem:[#allocation3 + $0x1d80] ss:$40 sps:$4 sm:$0xff]   ;;  %v19410_v49 = vld [vmem:[#allocation3 + $0x1834] ss:$40 sps:$4 sm:$0xff]  }
 0x4c6   :  { %v7316_v54 = vpop.f32.mrf.mxu1  ;;  %7610 = vmatprep.subr.bf16.mxu1 %v19359_v42  ;;  %v20559_v4 = vadd.f32 %v7314_v60, %v7274_v0  ;;  %v7276_v5 = vadd.f32 %v7275_v1, %v20554_v63  ;;  %7599 = vmatprep.mubr.bf16.mxu0 %v20428_v61  ;;  %v19366_v63 = vld [vmem:[#allocation3 + $0x1560] ss:$40 sps:$4 sm:$0xff]   ;;  %v19413_v42 = vld [vmem:[#allocation3 + $0x1d34] ss:$40 sps:$4 sm:$0xff]   ;;  %v19411_v60 = vld [vmem:[#allocation3 + $0x1d30] ss:$40 sps:$4 sm:$0xff]  }
 0x4c7   :  { %7640 = vmatprep.mubr.bf16.mxu1 %v20432_v19  ;;  %v7277_v52 = vpop.f32.mrf.mxu0  ;;  %v19369_v61 = vld [vmem:[#allocation3 + $0x1a60] ss:$40 sps:$4 sm:$0xff]   ;;  %v19374_v19 = vld [vmem:[#allocation3 + $0x1514] ss:$40 sps:$4 sm:$0xff]   ;;  %v19416_v0 = vld [vmem:[#allocation3 + $0x17e4] ss:$40 sps:$4 sm:$0xff]  }
 0x4c8   :  { %v7318_v53 = vpop.f32.mrf.mxu1  ;;  %v20564_v22 = vadd.f32 %v7316_v54, %v7276_v5  ;;  %7570 = vmatpush1.bf16.msra.mxu0 %v19354_v3  ;;  %v19419_v3 = vld [vmem:[#allocation3 + $0x1ce4] ss:$40 sps:$4 sm:$0xff]   ;;  %v19417_v1 = vld [vmem:[#allocation3 + $0x1ce0] ss:$40 sps:$4 sm:$0xff]   ;;  %v19422_v54 = vld [vmem:[#allocation3 + $0x1794] ss:$40 sps:$4 sm:$0xff]  }
 0x4c9   :  { %7611 = vmatpush1.bf16.msra.mxu1 %v19357_v13  ;;  %v7278_v9 = vpop.f32.mrf.mxu0  ;;  %7571 = vmatprep.subr.bf16.mxu0 %v19362_v2  ;;  %v19414_v13 = vld [vmem:[#allocation3 + $0x17e0] ss:$40 sps:$4 sm:$0xff]   ;;  %v19425_v2 = vld [vmem:[#allocation3 + $0x1c94] ss:$40 sps:$4 sm:$0xff]   ;;  %v19423_v5 = vld [vmem:[#allocation3 + $0x1c90] ss:$40 sps:$4 sm:$0xff]  }
 0x4ca   :  { %v7319_v11 = vpop.f32.mrf.mxu1  ;;  %7612 = vmatprep.subr.bf16.mxu1 %v19365_v10  ;;  %v19420_v10 = vld [vmem:[#allocation3 + $0x1790] ss:$40 sps:$4 sm:$0xff]   ;;  %v19428_v52 = vld [vmem:[#allocation3 + $0x1744] ss:$40 sps:$4 sm:$0xff]   ;;  %v19434_v9 = vld [vmem:[#allocation3 + $0x16f4] ss:$40 sps:$4 sm:$0xff]  }
 0x4cb   :  { %v19431_v53 = vld [vmem:[#allocation3 + $0x1c44] ss:$40 sps:$4 sm:$0xff]   ;;  %v19437_v11 = vld [vmem:[#allocation3 + $0x1bf4] ss:$40 sps:$4 sm:$0xff]  }
 0x4cc   :  { %7572 = vmatpush1.bf16.msra.mxu0 %v19360_v6  ;;  %v19426_v6 = vld [vmem:[#allocation3 + $0x1740] ss:$40 sps:$4 sm:$0xff]  }
 0x4cd   :  { %7613 = vmatpush1.bf16.msra.mxu1 %v19363_v8  ;;  %7573 = vmatprep.subr.bf16.mxu0 %v19368_v16  ;;  %v19429_v8 = vld [vmem:[#allocation3 + $0x1c40] ss:$40 sps:$4 sm:$0xff]   ;;  %v19432_v16 = vld [vmem:[#allocation3 + $0x16f0] ss:$40 sps:$4 sm:$0xff]  }
 0x4ce   :  { %7614 = vmatprep.subr.bf16.mxu1 %v19371_v18  ;;  %v19435_v18 = vld [vmem:[#allocation3 + $0x1bf0] ss:$40 sps:$4 sm:$0xff]  }
 0x4d0   :  { %7574 = vmatpush1.bf16.msra.mxu0 %v19366_v63  ;;  %v19440_v63 = vld [vmem:[#allocation3 + $0x16a4] ss:$40 sps:$4 sm:$0xff]  }
 0x4d1   :  { %7615 = vmatpush1.bf16.msra.mxu1 %v19369_v61  ;;  %7575 = vmatprep.subr.bf16.mxu0 %v19374_v19  ;;  %v19443_v61 = vld [vmem:[#allocation3 + $0x1ba4] ss:$40 sps:$4 sm:$0xff]   ;;  %v19438_v19 = vld [vmem:[#allocation3 + $0x16a0] ss:$40 sps:$4 sm:$0xff]  }
 0x4d2   :  { %7616 = vmatprep.subr.bf16.mxu1 %v19377_v25  ;;  %v19441_v25 = vld [vmem:[#allocation3 + $0x1ba0] ss:$40 sps:$4 sm:$0xff]  }
 0x4d4   :  { %7576 = vmatpush1.bf16.msra.mxu0 %v19372_v26 }
 0x4d5   :  { %7617 = vmatpush1.bf16.msra.mxu1 %v19375_v47  ;;  %7577 = vmatprep.subr.bf16.mxu0 %v19380_v20 }
 0x4d6   :  { %7618 = vmatprep.subr.bf16.mxu1 %v19383_v21 }
 0x4d8   :  { %7578 = vmatpush1.bf16.msra.mxu0 %v19378_v24 }
 0x4d9   :  { %7619 = vmatpush1.bf16.msra.mxu1 %v19381_v32  ;;  %7579 = vmatprep.subr.bf16.mxu0 %v19386_v33 }
 0x4da   :  { %7620 = vmatprep.subr.bf16.mxu1 %v19389_v28 }
 0x4dc   :  { %7580 = vmatpush1.bf16.msra.mxu0 %v19384_v35 }
 0x4dd   :  { %7621 = vmatpush1.bf16.msra.mxu1 %v19387_v23  ;;  %7581 = vmatprep.subr.bf16.mxu0 %v19392_v7 }
 0x4de   :  { %7622 = vmatprep.subr.bf16.mxu1 %v19395_v27 }
 0x4e0   :  { %7582 = vmatpush1.bf16.msra.mxu0 %v19390_v43 }
 0x4e1   :  { %7623 = vmatpush1.bf16.msra.mxu1 %v19393_v38  ;;  %7583 = vmatprep.subr.bf16.mxu0 %v19398_v50 }
 0x4e2   :  { %7624 = vmatprep.subr.bf16.mxu1 %v19401_v56 }
 0x4e4   :  { %7584 = vmatpush2.bf16.msra.mxu0 %v19396_v30 }
 0x4e5   :  { %7625 = vmatpush2.bf16.msra.mxu1 %v19399_v44  ;;  %7585 = vmatprep.subr.bf16.mxu0 %v19404_v45 }
 0x4e6   :  { %7626 = vmatprep.subr.bf16.mxu1 %v19407_v46 }
 0x4e8   :  { %7586 = vmatpush2.bf16.msra.mxu0 %v19402_v59 }
 0x4e9   :  { %7627 = vmatpush2.bf16.msra.mxu1 %v19405_v48  ;;  %7587 = vmatprep.subr.bf16.mxu0 %v19410_v49 }
 0x4ea   :  { %7628 = vmatprep.subr.bf16.mxu1 %v19413_v42 }
 0x4ec   :  { %7588 = vmatpush2.bf16.msra.mxu0 %v19408_v57 }
 0x4ed   :  { %7629 = vmatpush2.bf16.msra.mxu1 %v19411_v60  ;;  %7589 = vmatprep.subr.bf16.mxu0 %v19416_v0 }
 0x4ee   :  { %7630 = vmatprep.subr.bf16.mxu1 %v19419_v3 }
 0x4f0   :  { %7590 = vmatpush2.bf16.msra.mxu0 %v19414_v13 }
 0x4f1   :  { %7631 = vmatpush2.bf16.msra.mxu1 %v19417_v1  ;;  %7591 = vmatprep.subr.bf16.mxu0 %v19422_v54 }
 0x4f2   :  { %7632 = vmatprep.subr.bf16.mxu1 %v19425_v2 }
 0x4f4   :  { %7592 = vmatpush2.bf16.msra.mxu0 %v19420_v10 }
 0x4f5   :  { %7633 = vmatpush2.bf16.msra.mxu1 %v19423_v5  ;;  %7593 = vmatprep.subr.bf16.mxu0 %v19428_v52 }
 0x4f6   :  { %7634 = vmatprep.subr.bf16.mxu1 %v19431_v53 }
 0x4f8   :  { %7594 = vmatpush2.bf16.msra.mxu0 %v19426_v6 }
 0x4f9   :  { %7635 = vmatpush2.bf16.msra.mxu1 %v19429_v8  ;;  %7595 = vmatprep.subr.bf16.mxu0 %v19434_v9 }
 0x4fa   :  { %7636 = vmatprep.subr.bf16.mxu1 %v19437_v11 }
 0x4fc   :  { %7596 = vmatpush2.bf16.msra.mxu0 %v19432_v16 }
 0x4fd   :  { %7637 = vmatpush2.bf16.msra.mxu1 %v19435_v18  ;;  %7597 = vmatprep.subr.bf16.mxu0 %v19440_v63 }
 0x4fe   :  { %7638 = vmatprep.subr.bf16.mxu1 %v19443_v61 }
 0x500   :  { %7598 = vmatpush2.bf16.msra.mxu0 %v19438_v19 }
 0x501   :  { %7639 = vmatpush2.bf16.msra.mxu1 %v19441_v25 }
 0x503   :  { %v7355_v26 = vpop.f32.mrf.mxu0  ;;  %7600 = vmatmul.mubr.bf16.vlgmr.msra.gmra.mxu0 %v20440_v14  ;;  %v1566_v14 = vld [vmem:[#allocation11 + $0x14] sm:$0x3] }
 0x504   :  { %v7396_v47 = vpop.f32.mrf.mxu1  ;;  %7641 = vmatmul.mubr.bf16.vlgmr.msra.gmra.mxu1 %v20444_v15  ;;  %v7356_v20 = vadd.f32 %v7355_v26, %v20559_v4  ;;  %v1604_v15 = vrot.slane %v1566_v14, %v20324_v29  ;;  %v1608_v4 = vrot.slane %v1566_v14, %v20328_v31 }
 0x505   :  { %v7357_v21 = vpop.f32.mrf.mxu0 }
 0x506   :  { %v7398_v24 = vpop.f32.mrf.mxu1  ;;  %v7397_v32 = vadd.f32 %v7396_v47, %v7356_v20  ;;  %v7358_v33 = vadd.f32 %v7357_v21, %v20564_v22 }
 0x507   :  { %v7359_v28 = vpop.f32.mrf.mxu0 }
 0x508   :  { %v7400_v35 = vpop.f32.mrf.mxu1  ;;  %v7655_v23 = vmul.f32 0.01, %v7397_v32  ;;  %v7399_v7 = vadd.f32 %v7398_v24, %v7358_v33 }
 0x509   :  { %v7360_v27 = vpop.f32.mrf.mxu0 }
 0x50a   :  { %v7401_v43 = vpop.f32.mrf.mxu1  ;;  %v20570_v38 = vmax.f32 %v7397_v32, %v7655_v23  ;;  %v7656_v50 = vmul.f32 0.01, %v7399_v7 }
 0x50c   :  { %v20572_v56 = vmax.f32 %v7399_v7, %v7656_v50 }
 0x543   :  { %v7437_v30 = vpop.f32.mrf.mxu0 }
 0x544   :  { %v7478_v44 = vpop.f32.mrf.mxu1  ;;  %v7438_v45 = vadd.f32 %v7437_v30, %v1604_v15 }
 0x545   :  { %v7439_v22 = vpop.f32.mrf.mxu0 }
 0x546   :  { %v7480_v46 = vpop.f32.mrf.mxu1  ;;  %v7479_v59 = vadd.f32 %v7478_v44, %v7438_v45  ;;  %v7440_v48 = vadd.f32 %v7439_v22, %v1608_v4 }
 0x547   :  { %v7441_v49 = vpop.f32.mrf.mxu0 }
 0x548   :  { %v7482_v42 = vpop.f32.mrf.mxu1  ;;  %v7481_v57 = vadd.f32 %v7480_v46, %v7440_v48 }
 0x549   :  { %v7442_v60 = vpop.f32.mrf.mxu0 }
 0x54a   :  { %v7483_v0 = vpop.f32.mrf.mxu1 }
 0x583   :  { %v7519_v3 = vpop.f32.mrf.mxu0 }
 0x584   :  { %v7560_v13 = vpop.f32.mrf.mxu1  ;;  %v7520_v1 = vadd.f32 %v7519_v3, %v7479_v59 }
 0x585   :  { %v7521_v54 = vpop.f32.mrf.mxu0 }
 0x586   :  { %v7562_v2 = vpop.f32.mrf.mxu1  ;;  %v7561_v10 = vadd.f32 %v7560_v13, %v7520_v1  ;;  %v7522_v8 = vadd.f32 %v7521_v54, %v7481_v57 }
 0x587   :  { %v7523_v5 = vpop.f32.mrf.mxu0 }
 0x588   :  { %v7564_v52 = vpop.f32.mrf.mxu1  ;;  %v7563_v16 = vadd.f32 %v7562_v2, %v7522_v8 }
 0x589   :  { %v7524_v53 = vpop.f32.mrf.mxu0 }
 0x58a   :  { %v7565_v6 = vpop.f32.mrf.mxu1 }
 0x5c3   :  { %v7601_v9 = vpop.f32.mrf.mxu0 }
 0x5c4   :  { %v7642_v11 = vpop.f32.mrf.mxu1  ;;  %v7602_v18 = vadd.f32 %v7601_v9, %v7561_v10 }
 0x5c5   :  { %v7603_v63 = vpop.f32.mrf.mxu0 }
 0x5c6   :  { %v7644_v61 = vpop.f32.mrf.mxu1  ;;  %v7643_v19 = vadd.f32 %v7642_v11, %v7602_v18  ;;  %v7604_v25 = vadd.f32 %v7603_v63, %v7563_v16 }
 0x5c7   :  { %v7605_v26 = vpop.f32.mrf.mxu0 }
 0x5c8   :  { %v7646_v47 = vpop.f32.mrf.mxu1  ;;  %v7657_v20 = vmul.f32 0.01, %v7643_v19  ;;  %v7645_v21 = vadd.f32 %v7644_v61, %v7604_v25 }
 0x5c9   :  { %v7606_v24 = vpop.f32.mrf.mxu0 }
 0x5ca   :  { %v7647_v32 = vpop.f32.mrf.mxu1  ;;  %v20576_v33 = vmax.f32 %v7643_v19, %v7657_v20  ;;  %v7658_v28 = vmul.f32 0.01, %v7645_v21 }
 0x5cc   :  { %v20578_v35 = vmax.f32 %v7645_v21, %v7658_v28 }
 0x5cd   :  { %20240 = dma.done.wait [#allocation7 + $0x2], 81920 }
 0x5ce   :  { %20241 = vsyncadd [#allocation7 + $0x2], 4294885376  ;;  %v20582_v23 = vpack.c.bf16 %v20478_v62, %v20478_v62  ;;  %v20586_v7 = vpack.c.bf16 %v20508_v37, %v20508_v37  ;;  %v7729_v27 = vld [vmem:[#allocation4 + $0x1c0] sm:$0xff] }
 0x5cf   :  { %v7733_v43 = vld [vmem:[#allocation4 + $0x1e0] sm:$0xff] }
 0x5d0   :  { %11597 = vmatprep.mubr.bf16.mxu0 %v20582_v23  ;;  %11638 = vmatprep.mubr.bf16.mxu1 %v20586_v7  ;;  %v7857_v50 = vld [vmem:[#allocation4 + $0x5c0] sm:$0xff]  ;;  %v16872_v14 = vcombine.high %v7729_v27, %v7733_v43  ;;  %v16871_v4 = vcombine.low %v7729_v27, %v7733_v43 }
 0x5d1   :  { %v7861_v15 = vld [vmem:[#allocation4 + $0x5e0] sm:$0xff] }
 0x5d2   :  { %v7721_v30 = vld [vmem:[#allocation4 + $0x180] sm:$0xff]  ;;  %v17000_v45 = vcombine.high %v7857_v50, %v7861_v15  ;;  %v16999_v22 = vcombine.low %v7857_v50, %v7861_v15  ;;  %11565 = vmatprep.subr.bf16.mxu0 %v16872_v14 }
 0x5d3   :  { %v7725_v44 = vld [vmem:[#allocation4 + $0x1a0] sm:$0xff]  ;;  %11566 = vmatpush1.bf16.msra.mxu0 %v16871_v4 }
 0x5d4   :  { %v16864_v62 = vcombine.high %v7721_v30, %v7725_v44  ;;  %v7849_v46 = vld [vmem:[#allocation4 + $0x580] sm:$0xff]  ;;  %11606 = vmatprep.subr.bf16.mxu1 %v17000_v45  ;;  %v16863_v60 = vcombine.low %v7721_v30, %v7725_v44 }
 0x5d5   :  { %v7853_v59 = vld [vmem:[#allocation4 + $0x5a0] sm:$0xff]  ;;  %11607 = vmatpush1.bf16.msra.mxu1 %v16999_v22 }
 0x5d6   :  { %v7713_v48 = vld [vmem:[#allocation4 + $0x140] sm:$0xff]  ;;  %v16992_v37 = vcombine.high %v7849_v46, %v7853_v59  ;;  %11567 = vmatprep.subr.bf16.mxu0 %v16864_v62  ;;  %v16991_v0 = vcombine.low %v7849_v46, %v7853_v59 }
 0x5d7   :  { %v7717_v49 = vld [vmem:[#allocation4 + $0x160] sm:$0xff]  ;;  %11568 = vmatpush1.bf16.msra.mxu0 %v16863_v60 }
 0x5d8   :  { %v7841_v42 = vld [vmem:[#allocation4 + $0x540] sm:$0xff]  ;;  %v16856_v3 = vcombine.high %v7713_v48, %v7717_v49  ;;  %11608 = vmatprep.subr.bf16.mxu1 %v16992_v37  ;;  %v16855_v5 = vcombine.low %v7713_v48, %v7717_v49 }
 0x5d9   :  { %v7845_v57 = vld [vmem:[#allocation4 + $0x560] sm:$0xff]  ;;  %11609 = vmatpush1.bf16.msra.mxu1 %v16991_v0 }
 0x5da   :  { %v16984_v13 = vcombine.high %v7841_v42, %v7845_v57  ;;  %v7705_v1 = vld [vmem:[#allocation4 + $0x100] sm:$0xff]  ;;  %11569 = vmatprep.subr.bf16.mxu0 %v16856_v3  ;;  %v16983_v52 = vcombine.low %v7841_v42, %v7845_v57 }
 0x5db   :  { %v7709_v54 = vld [vmem:[#allocation4 + $0x120] sm:$0xff]  ;;  %11570 = vmatpush1.bf16.msra.mxu0 %v16855_v5 }
 0x5dc   :  { %v7833_v2 = vld [vmem:[#allocation4 + $0x500] sm:$0xff]  ;;  %v16848_v53 = vcombine.high %v7705_v1, %v7709_v54  ;;  %11610 = vmatprep.subr.bf16.mxu1 %v16984_v13  ;;  %v16847_v18 = vcombine.low %v7705_v1, %v7709_v54 }
 0x5dd   :  { %v7837_v10 = vld [vmem:[#allocation4 + $0x520] sm:$0xff]  ;;  %11611 = vmatpush1.bf16.msra.mxu1 %v16983_v52 }
 0x5de   :  { %v16976_v6 = vcombine.high %v7833_v2, %v7837_v10  ;;  %v7697_v8 = vld [vmem:[#allocation4 + $0xc0] sm:$0xff]  ;;  %11571 = vmatprep.subr.bf16.mxu0 %v16848_v53  ;;  %v16975_v63 = vcombine.low %v7833_v2, %v7837_v10 }
 0x5df   :  { %v7701_v9 = vld [vmem:[#allocation4 + $0xe0] sm:$0xff]  ;;  %11572 = vmatpush1.bf16.msra.mxu0 %v16847_v18 }
 0x5e0   :  { %v7825_v11 = vld [vmem:[#allocation4 + $0x4c0] sm:$0xff]  ;;  %v16840_v61 = vcombine.high %v7697_v8, %v7701_v9  ;;  %11612 = vmatprep.subr.bf16.mxu1 %v16976_v6  ;;  %v16839_v21 = vcombine.low %v7697_v8, %v7701_v9 }
 0x5e1   :  { %v7829_v16 = vld [vmem:[#allocation4 + $0x4e0] sm:$0xff]  ;;  %11613 = vmatpush1.bf16.msra.mxu1 %v16975_v63 }
 0x5e2   :  { %v16968_v19 = vcombine.high %v7825_v11, %v7829_v16  ;;  %v7689_v25 = vld [vmem:[#allocation4 + $0x80] sm:$0xff]  ;;  %11573 = vmatprep.subr.bf16.mxu0 %v16840_v61  ;;  %v16967_v24 = vcombine.low %v7825_v11, %v7829_v16 }
 0x5e3   :  { %v7693_v26 = vld [vmem:[#allocation4 + $0xa0] sm:$0xff]  ;;  %11574 = vmatpush1.bf16.msra.mxu0 %v16839_v21 }
 0x5e4   :  { %v7817_v47 = vld [vmem:[#allocation4 + $0x480] sm:$0xff]  ;;  %v16832_v32 = vcombine.high %v7689_v25, %v7693_v26  ;;  %11614 = vmatprep.subr.bf16.mxu1 %v16968_v19  ;;  %v16831_v15 = vcombine.low %v7689_v25, %v7693_v26 }
 0x5e5   :  { %v7821_v20 = vld [vmem:[#allocation4 + $0x4a0] sm:$0xff]  ;;  %11615 = vmatpush1.bf16.msra.mxu1 %v16967_v24 }
 0x5e6   :  { %v16960_v28 = vcombine.high %v7817_v47, %v7821_v20  ;;  %v7681_v27 = vld [vmem:[#allocation4 + $0x40] sm:$0xff]  ;;  %11575 = vmatprep.subr.bf16.mxu0 %v16832_v32  ;;  %v16959_v4 = vcombine.low %v7817_v47, %v7821_v20 }
 0x5e7   :  { %v7685_v43 = vld [vmem:[#allocation4 + $0x60] sm:$0xff]  ;;  %11576 = vmatpush1.bf16.msra.mxu0 %v16831_v15 }
 0x5e8   :  { %v7809_v50 = vld [vmem:[#allocation4 + $0x440] sm:$0xff]  ;;  %v16824_v30 = vcombine.high %v7681_v27, %v7685_v43  ;;  %11616 = vmatprep.subr.bf16.mxu1 %v16960_v28  ;;  %v16823_v59 = vcombine.low %v7681_v27, %v7685_v43 }
 0x5e9   :  { %v7813_v14 = vld [vmem:[#allocation4 + $0x460] sm:$0xff]  ;;  %11617 = vmatpush1.bf16.msra.mxu1 %v16959_v4 }
 0x5ea   :  { %v16952_v44 = vcombine.high %v7809_v50, %v7813_v14  ;;  %v7673_v45 = vld [vmem:[#allocation4] sm:$0xff]  ;;  %11577 = vmatprep.subr.bf16.mxu0 %v16824_v30  ;;  %v16951_v48 = vcombine.low %v7809_v50, %v7813_v14 }
 0x5eb   :  { %v7677_v22 = vld [vmem:[#allocation4 + $0x20] sm:$0xff]  ;;  %11578 = vmatpush1.bf16.msra.mxu0 %v16823_v59 }
 0x5ec   :  { %v7801_v62 = vld [vmem:[#allocation4 + $0x400] sm:$0xff]  ;;  %v16816_v37 = vcombine.high %v7673_v45, %v7677_v22  ;;  %11618 = vmatprep.subr.bf16.mxu1 %v16952_v44  ;;  %v16815_v3 = vcombine.low %v7673_v45, %v7677_v22 }
 0x5ed   :  { %v7805_v46 = vld [vmem:[#allocation4 + $0x420] sm:$0xff]  ;;  %11619 = vmatpush1.bf16.msra.mxu1 %v16951_v48 }
 0x5ee   :  { %v16944_v49 = vcombine.high %v7801_v62, %v7805_v46  ;;  %v7793_v42 = vld [vmem:[#allocation4 + $0x3c0] sm:$0xff]  ;;  %11579 = vmatprep.subr.bf16.mxu0 %v16816_v37  ;;  %v16943_v13 = vcombine.low %v7801_v62, %v7805_v46 }
 0x5ef   :  { %v7797_v57 = vld [vmem:[#allocation4 + $0x3e0] sm:$0xff]  ;;  %11580 = vmatpush1.bf16.msra.mxu0 %v16815_v3 }
 0x5f0   :  { %v7921_v60 = vld [vmem:[#allocation4 + $0x7c0] sm:$0xff]  ;;  %v16936_v1 = vcombine.high %v7793_v42, %v7797_v57  ;;  %11620 = vmatprep.subr.bf16.mxu1 %v16944_v49  ;;  %v16935_v53 = vcombine.low %v7793_v42, %v7797_v57 }
 0x5f1   :  { %v7925_v0 = vld [vmem:[#allocation4 + $0x7e0] sm:$0xff]  ;;  %11621 = vmatpush1.bf16.msra.mxu1 %v16943_v13 }
 0x5f2   :  { %v17064_v54 = vcombine.high %v7921_v60, %v7925_v0  ;;  %v7785_v2 = vld [vmem:[#allocation4 + $0x380] sm:$0xff]  ;;  %11581 = vmatprep.subr.bf16.mxu0 %v16936_v1  ;;  %v17063_v6 = vcombine.low %v7921_v60, %v7925_v0 }
 0x5f3   :  { %v7789_v10 = vld [vmem:[#allocation4 + $0x3a0] sm:$0xff]  ;;  %11582 = vmatpush2.bf16.msra.mxu0 %v16935_v53 }
 0x5f4   :  { %v7913_v5 = vld [vmem:[#allocation4 + $0x780] sm:$0xff]  ;;  %v16928_v8 = vcombine.high %v7785_v2, %v7789_v10  ;;  %11622 = vmatprep.subr.bf16.mxu1 %v17064_v54  ;;  %v16927_v61 = vcombine.low %v7785_v2, %v7789_v10 }
 0x5f5   :  { %v7917_v52 = vld [vmem:[#allocation4 + $0x7a0] sm:$0xff]  ;;  %11623 = vmatpush2.bf16.msra.mxu1 %v17063_v6 }
 0x5f6   :  { %v17056_v9 = vcombine.high %v7913_v5, %v7917_v52  ;;  %v7777_v11 = vld [vmem:[#allocation4 + $0x340] sm:$0xff]  ;;  %11583 = vmatprep.subr.bf16.mxu0 %v16928_v8  ;;  %v17055_v19 = vcombine.low %v7913_v5, %v7917_v52 }
 0x5f7   :  { %v7781_v16 = vld [vmem:[#allocation4 + $0x360] sm:$0xff]  ;;  %11584 = vmatpush2.bf16.msra.mxu0 %v16927_v61 }
 0x5f8   :  { %v7905_v18 = vld [vmem:[#allocation4 + $0x740] sm:$0xff]  ;;  %v16920_v25 = vcombine.high %v7777_v11, %v7781_v16  ;;  %11624 = vmatprep.subr.bf16.mxu1 %v17056_v9  ;;  %v16919_v32 = vcombine.low %v7777_v11, %v7781_v16 }
 0x5f9   :  { %v7909_v63 = vld [vmem:[#allocation4 + $0x760] sm:$0xff]  ;;  %11625 = vmatpush2.bf16.msra.mxu1 %v17055_v19 }
 0x5fa   :  { %v17048_v26 = vcombine.high %v7905_v18, %v7909_v63  ;;  %v7769_v47 = vld [vmem:[#allocation4 + $0x300] sm:$0xff]  ;;  %11585 = vmatprep.subr.bf16.mxu0 %v16920_v25  ;;  %v17047_v28 = vcombine.low %v7905_v18, %v7909_v63 }
 0x5fb   :  { %v7773_v20 = vld [vmem:[#allocation4 + $0x320] sm:$0xff]  ;;  %11586 = vmatpush2.bf16.msra.mxu0 %v16919_v32  ;;  %v20592_v32 = vpack.c.bf16 %v20476_v34, %v20476_v34  ;;  %v20600_v34 = vpack.c.bf16 %v20542_v55, %v20542_v55 }
 0x5fc   :  { %v7897_v21 = vld [vmem:[#allocation4 + $0x700] sm:$0xff]  ;;  %v16912_v27 = vcombine.high %v7769_v47, %v7773_v20  ;;  %11626 = vmatprep.subr.bf16.mxu1 %v17048_v26  ;;  %v16911_v30 = vcombine.low %v7769_v47, %v7773_v20 }
 0x5fd   :  { %v7901_v24 = vld [vmem:[#allocation4 + $0x720] sm:$0xff]  ;;  %11627 = vmatpush2.bf16.msra.mxu1 %v17047_v28 }
 0x5fe   :  { %v17040_v43 = vcombine.high %v7897_v21, %v7901_v24  ;;  %v7761_v50 = vld [vmem:[#allocation4 + $0x2c0] sm:$0xff]  ;;  %11587 = vmatprep.subr.bf16.mxu0 %v16912_v27  ;;  %v17039_v44 = vcombine.low %v7897_v21, %v7901_v24 }
 0x5ff   :  { %v7765_v14 = vld [vmem:[#allocation4 + $0x2e0] sm:$0xff]  ;;  %11588 = vmatpush2.bf16.msra.mxu0 %v16911_v30 }
 0x600   :  { %v7889_v15 = vld [vmem:[#allocation4 + $0x6c0] sm:$0xff]  ;;  %v16904_v45 = vcombine.high %v7761_v50, %v7765_v14  ;;  %11628 = vmatprep.subr.bf16.mxu1 %v17040_v43  ;;  %v16903_v37 = vcombine.low %v7761_v50, %v7765_v14  ;;  %v20596_v43 = vpack.c.bf16 %v20506_v39, %v20506_v39  ;;  %v20605_v39 = vpack.c.bf16 %v20572_v56, %v20572_v56 }
 0x601   :  { %v7893_v4 = vld [vmem:[#allocation4 + $0x6e0] sm:$0xff]  ;;  %11629 = vmatpush2.bf16.msra.mxu1 %v17039_v44 }
 0x602   :  { %v17032_v22 = vcombine.high %v7889_v15, %v7893_v4  ;;  %v7753_v62 = vld [vmem:[#allocation4 + $0x280] sm:$0xff]  ;;  %11589 = vmatprep.subr.bf16.mxu0 %v16904_v45  ;;  %v17031_v49 = vcombine.low %v7889_v15, %v7893_v4 }
 0x603   :  { %v7757_v46 = vld [vmem:[#allocation4 + $0x2a0] sm:$0xff]  ;;  %11590 = vmatpush2.bf16.msra.mxu0 %v16903_v37 }
 0x604   :  { %v7881_v59 = vld [vmem:[#allocation4 + $0x680] sm:$0xff]  ;;  %v16896_v42 = vcombine.high %v7753_v62, %v7757_v46  ;;  %11630 = vmatprep.subr.bf16.mxu1 %v17032_v22  ;;  %v16895_v1 = vcombine.low %v7753_v62, %v7757_v46 }
 0x605   :  { %v7885_v48 = vld [vmem:[#allocation4 + $0x6a0] sm:$0xff]  ;;  %11631 = vmatpush2.bf16.msra.mxu1 %v17031_v49 }
 0x606   :  { %v17024_v57 = vcombine.high %v7881_v59, %v7885_v48  ;;  %v7745_v60 = vld [vmem:[#allocation4 + $0x240] sm:$0xff]  ;;  %11591 = vmatprep.subr.bf16.mxu0 %v16896_v42  ;;  %v17023_v54 = vcombine.low %v7881_v59, %v7885_v48 }
 0x607   :  { %v7749_v0 = vld [vmem:[#allocation4 + $0x260] sm:$0xff]  ;;  %11592 = vmatpush2.bf16.msra.mxu0 %v16895_v1 }
 0x608   :  { %v7873_v3 = vld [vmem:[#allocation4 + $0x640] sm:$0xff]  ;;  %v16888_v2 = vcombine.high %v7745_v60, %v7749_v0  ;;  %11632 = vmatprep.subr.bf16.mxu1 %v17024_v57  ;;  %v16887_v8 = vcombine.low %v7745_v60, %v7749_v0 }
 0x609   :  { %v7877_v13 = vld [vmem:[#allocation4 + $0x660] sm:$0xff]  ;;  %11633 = vmatpush2.bf16.msra.mxu1 %v17023_v54 }
 0x60a   :  { %v17016_v10 = vcombine.high %v7873_v3, %v7877_v13  ;;  %v7737_v5 = vld [vmem:[#allocation4 + $0x200] sm:$0xff]  ;;  %11593 = vmatprep.subr.bf16.mxu0 %v16888_v2  ;;  %v17015_v9 = vcombine.low %v7873_v3, %v7877_v13 }
 0x60b   :  { %v7741_v52 = vld [vmem:[#allocation4 + $0x220] sm:$0xff]  ;;  %11594 = vmatpush2.bf16.msra.mxu0 %v16887_v8 }
 0x60c   :  { %v7865_v53 = vld [vmem:[#allocation4 + $0x600] sm:$0xff]  ;;  %v16880_v11 = vcombine.high %v7737_v5, %v7741_v52  ;;  %11634 = vmatprep.subr.bf16.mxu1 %v17016_v10  ;;  %v16879_v25 = vcombine.low %v7737_v5, %v7741_v52 }
 0x60d   :  { %v7869_v6 = vld [vmem:[#allocation4 + $0x620] sm:$0xff]  ;;  %11635 = vmatpush2.bf16.msra.mxu1 %v17015_v9 }
 0x60e   :  { %v17008_v16 = vcombine.high %v7865_v53, %v7869_v6  ;;  %v7985_v18 = vld [vmem:[#allocation4 + $0x9c0] sm:$0xff]  ;;  %11595 = vmatprep.subr.bf16.mxu0 %v16880_v11  ;;  %v17007_v26 = vcombine.low %v7865_v53, %v7869_v6 }
 0x60f   :  { %v7989_v63 = vld [vmem:[#allocation4 + $0x9e0] sm:$0xff]  ;;  %11596 = vmatpush2.bf16.msra.mxu0 %v16879_v25 }
 0x610   :  { %v8113_v61 = vld [vmem:[#allocation4 + $0xdc0] sm:$0xff]  ;;  %v17128_v47 = vcombine.high %v7985_v18, %v7989_v63  ;;  %11636 = vmatprep.subr.bf16.mxu1 %v17008_v16  ;;  %v17127_v50 = vcombine.low %v7985_v18, %v7989_v63 }
 0x611   :  { %v8117_v19 = vld [vmem:[#allocation4 + $0xde0] sm:$0xff]  ;;  %11637 = vmatpush2.bf16.msra.mxu1 %v17007_v26 }
 0x612   :  { %v17256_v20 = vcombine.high %v8113_v61, %v8117_v19  ;;  %v7977_v21 = vld [vmem:[#allocation4 + $0x980] sm:$0xff]  ;;  %11647 = vmatprep.subr.bf16.mxu0 %v17128_v47  ;;  %v17255_v14 = vcombine.low %v8113_v61, %v8117_v19  ;;  %11598 = vmatmul.mubr.bf16.vlgmr.msra.gmra.mxu0 %v20592_v32 }
 0x613   :  { %v7981_v24 = vld [vmem:[#allocation4 + $0x9a0] sm:$0xff]  ;;  %11648 = vmatpush1.bf16.msra.mxu0 %v17127_v50  ;;  %11679 = vmatprep.mubr.bf16.mxu0 %v20600_v34 }
 0x614   :  { %v8105_v28 = vld [vmem:[#allocation4 + $0xd80] sm:$0xff]  ;;  %v17120_v15 = vcombine.high %v7977_v21, %v7981_v24  ;;  %11688 = vmatprep.subr.bf16.mxu1 %v17256_v20  ;;  %11639 = vmatmul.mubr.bf16.vlgmr.msra.gmra.mxu1 %v20596_v43  ;;  %v17119_v62 = vcombine.low %v7977_v21, %v7981_v24 }
 0x615   :  { %v8109_v27 = vld [vmem:[#allocation4 + $0xda0] sm:$0xff]  ;;  %11689 = vmatpush1.bf16.msra.mxu1 %v17255_v14  ;;  %11720 = vmatprep.mubr.bf16.mxu1 %v20605_v39 }
 0x616   :  { %v17248_v4 = vcombine.high %v8105_v28, %v8109_v27  ;;  %v7969_v30 = vld [vmem:[#allocation4 + $0x940] sm:$0xff]  ;;  %11649 = vmatprep.subr.bf16.mxu0 %v17120_v15  ;;  %v17247_v46 = vcombine.low %v8105_v28, %v8109_v27 }
 0x617   :  { %v7973_v44 = vld [vmem:[#allocation4 + $0x960] sm:$0xff]  ;;  %11650 = vmatpush1.bf16.msra.mxu0 %v17119_v62 }
 0x618   :  { %v8097_v45 = vld [vmem:[#allocation4 + $0xd40] sm:$0xff]  ;;  %v17112_v59 = vcombine.high %v7969_v30, %v7973_v44  ;;  %11690 = vmatprep.subr.bf16.mxu1 %v17248_v4  ;;  %v17111_v56 = vcombine.low %v7969_v30, %v7973_v44 }
 0x619   :  { %v8101_v22 = vld [vmem:[#allocation4 + $0xd60] sm:$0xff]  ;;  %11691 = vmatpush1.bf16.msra.mxu1 %v17247_v46 }
 0x61a   :  { %v17240_v48 = vcombine.high %v8097_v45, %v8101_v22  ;;  %v7961_v55 = vld [vmem:[#allocation4 + $0x900] sm:$0xff]  ;;  %11651 = vmatprep.subr.bf16.mxu0 %v17112_v59  ;;  %v17239_v57 = vcombine.low %v8097_v45, %v8101_v22 }
 0x61b   :  { %v7965_v37 = vld [vmem:[#allocation4 + $0x920] sm:$0xff]  ;;  %11652 = vmatpush1.bf16.msra.mxu0 %v17111_v56 }
 0x61c   :  { %v8089_v49 = vld [vmem:[#allocation4 + $0xd00] sm:$0xff]  ;;  %v17104_v60 = vcombine.high %v7961_v55, %v7965_v37  ;;  %11692 = vmatprep.subr.bf16.mxu1 %v17240_v48  ;;  %v17103_v2 = vcombine.low %v7961_v55, %v7965_v37 }
 0x61d   :  { %v8093_v42 = vld [vmem:[#allocation4 + $0xd20] sm:$0xff]  ;;  %11693 = vmatpush1.bf16.msra.mxu1 %v17239_v57 }
 0x61e   :  { %v17232_v0 = vcombine.high %v8089_v49, %v8093_v42  ;;  %v7953_v3 = vld [vmem:[#allocation4 + $0x8c0] sm:$0xff]  ;;  %11653 = vmatprep.subr.bf16.mxu0 %v17104_v60  ;;  %v17231_v10 = vcombine.low %v8089_v49, %v8093_v42 }
 0x61f   :  { %v7957_v13 = vld [vmem:[#allocation4 + $0x8e0] sm:$0xff]  ;;  %11654 = vmatpush1.bf16.msra.mxu0 %v17103_v2 }
 0x620   :  { %v8081_v1 = vld [vmem:[#allocation4 + $0xcc0] sm:$0xff]  ;;  %v17096_v5 = vcombine.high %v7953_v3, %v7957_v13  ;;  %11694 = vmatprep.subr.bf16.mxu1 %v17232_v0  ;;  %v17095_v11 = vcombine.low %v7953_v3, %v7957_v13 }
 0x621   :  { %v8085_v54 = vld [vmem:[#allocation4 + $0xce0] sm:$0xff]  ;;  %11695 = vmatpush1.bf16.msra.mxu1 %v17231_v10 }
 0x622   :  { %v17224_v52 = vcombine.high %v8081_v1, %v8085_v54  ;;  %v7945_v53 = vld [vmem:[#allocation4 + $0x880] sm:$0xff]  ;;  %11655 = vmatprep.subr.bf16.mxu0 %v17096_v5  ;;  %v17223_v16 = vcombine.low %v8081_v1, %v8085_v54 }
 0x623   :  { %v7949_v6 = vld [vmem:[#allocation4 + $0x8a0] sm:$0xff]  ;;  %11656 = vmatpush1.bf16.msra.mxu0 %v17095_v11 }
 0x624   :  { %v8073_v8 = vld [vmem:[#allocation4 + $0xc80] sm:$0xff]  ;;  %v17088_v18 = vcombine.high %v7945_v53, %v7949_v6  ;;  %11696 = vmatprep.subr.bf16.mxu1 %v17224_v52  ;;  %v17087_v47 = vcombine.low %v7945_v53, %v7949_v6 }
 0x625   :  { %v8077_v9 = vld [vmem:[#allocation4 + $0xca0] sm:$0xff]  ;;  %11697 = vmatpush1.bf16.msra.mxu1 %v17223_v16 }
 0x626   :  { %v17216_v63 = vcombine.high %v8073_v8, %v8077_v9  ;;  %v7937_v61 = vld [vmem:[#allocation4 + $0x840] sm:$0xff]  ;;  %11657 = vmatprep.subr.bf16.mxu0 %v17088_v18  ;;  %v17215_v20 = vcombine.low %v8073_v8, %v8077_v9 }
 0x627   :  { %v7941_v19 = vld [vmem:[#allocation4 + $0x860] sm:$0xff]  ;;  %11658 = vmatpush1.bf16.msra.mxu0 %v17087_v47 }
 0x628   :  { %v8065_v25 = vld [vmem:[#allocation4 + $0xc40] sm:$0xff]  ;;  %v17080_v21 = vcombine.high %v7937_v61, %v7941_v19  ;;  %11698 = vmatprep.subr.bf16.mxu1 %v17216_v63  ;;  %v17079_v15 = vcombine.low %v7937_v61, %v7941_v19 }
 0x629   :  { %v8069_v26 = vld [vmem:[#allocation4 + $0xc60] sm:$0xff]  ;;  %11699 = vmatpush1.bf16.msra.mxu1 %v17215_v20 }
 0x62a   :  { %v17208_v24 = vcombine.high %v8065_v25, %v8069_v26  ;;  %v7929_v28 = vld [vmem:[#allocation4 + $0x800] sm:$0xff]  ;;  %11659 = vmatprep.subr.bf16.mxu0 %v17080_v21  ;;  %v17207_v4 = vcombine.low %v8065_v25, %v8069_v26 }
 0x62b   :  { %v7933_v27 = vld [vmem:[#allocation4 + $0x820] sm:$0xff]  ;;  %11660 = vmatpush1.bf16.msra.mxu0 %v17079_v15 }
 0x62c   :  { %v8057_v50 = vld [vmem:[#allocation4 + $0xc00] sm:$0xff]  ;;  %v17072_v30 = vcombine.high %v7929_v28, %v7933_v27  ;;  %11700 = vmatprep.subr.bf16.mxu1 %v17208_v24  ;;  %v17071_v59 = vcombine.low %v7929_v28, %v7933_v27 }
 0x62d   :  { %v8061_v14 = vld [vmem:[#allocation4 + $0xc20] sm:$0xff]  ;;  %11701 = vmatpush1.bf16.msra.mxu1 %v17207_v4 }
 0x62e   :  { %v17200_v44 = vcombine.high %v8057_v50, %v8061_v14  ;;  %v8049_v45 = vld [vmem:[#allocation4 + $0xbc0] sm:$0xff]  ;;  %11661 = vmatprep.subr.bf16.mxu0 %v17072_v30  ;;  %v17199_v48 = vcombine.low %v8057_v50, %v8061_v14 }
 0x62f   :  { %v8053_v22 = vld [vmem:[#allocation4 + $0xbe0] sm:$0xff]  ;;  %11662 = vmatpush1.bf16.msra.mxu0 %v17071_v59 }
 0x630   :  { %v8177_v62 = vld [vmem:[#allocation4 + $0xfc0] sm:$0xff]  ;;  %v17192_v55 = vcombine.high %v8049_v45, %v8053_v22  ;;  %11702 = vmatprep.subr.bf16.mxu1 %v17200_v44  ;;  %v17191_v60 = vcombine.low %v8049_v45, %v8053_v22 }
 0x631   :  { %v8181_v46 = vld [vmem:[#allocation4 + $0xfe0] sm:$0xff]  ;;  %11703 = vmatpush1.bf16.msra.mxu1 %v17199_v48 }
 0x632   :  { %v17320_v37 = vcombine.high %v8177_v62, %v8181_v46  ;;  %v8041_v49 = vld [vmem:[#allocation4 + $0xb80] sm:$0xff]  ;;  %11663 = vmatprep.subr.bf16.mxu0 %v17192_v55  ;;  %v17319_v0 = vcombine.low %v8177_v62, %v8181_v46 }
 0x633   :  { %v8045_v42 = vld [vmem:[#allocation4 + $0xba0] sm:$0xff]  ;;  %11664 = vmatpush2.bf16.msra.mxu0 %v17191_v60 }
 0x634   :  { %v8169_v56 = vld [vmem:[#allocation4 + $0xf80] sm:$0xff]  ;;  %v17184_v3 = vcombine.high %v8041_v49, %v8045_v42  ;;  %11704 = vmatprep.subr.bf16.mxu1 %v17320_v37  ;;  %v17183_v5 = vcombine.low %v8041_v49, %v8045_v42 }
 0x635   :  { %v8173_v57 = vld [vmem:[#allocation4 + $0xfa0] sm:$0xff]  ;;  %11705 = vmatpush2.bf16.msra.mxu1 %v17319_v0 }
 0x636   :  { %v17312_v13 = vcombine.high %v8169_v56, %v8173_v57  ;;  %v8033_v1 = vld [vmem:[#allocation4 + $0xb40] sm:$0xff]  ;;  %11665 = vmatprep.subr.bf16.mxu0 %v17184_v3  ;;  %v17311_v52 = vcombine.low %v8169_v56, %v8173_v57 }
 0x637   :  { %v8037_v54 = vld [vmem:[#allocation4 + $0xb60] sm:$0xff]  ;;  %11666 = vmatpush2.bf16.msra.mxu0 %v17183_v5  ;;  %v7730_v5 = vld [vmem:[#allocation4 + $0x1c8] sm:$0xff] }
 0x638   :  { %v8161_v2 = vld [vmem:[#allocation4 + $0xf40] sm:$0xff]  ;;  %v17176_v53 = vcombine.high %v8033_v1, %v8037_v54  ;;  %11706 = vmatprep.subr.bf16.mxu1 %v17312_v13  ;;  %v17175_v18 = vcombine.low %v8033_v1, %v8037_v54 }
 0x639   :  { %v8165_v10 = vld [vmem:[#allocation4 + $0xf60] sm:$0xff]  ;;  %11707 = vmatpush2.bf16.msra.mxu1 %v17311_v52  ;;  %v7734_v52 = vld [vmem:[#allocation4 + $0x1e8] sm:$0xff] }
 0x63a   :  { %v17304_v6 = vcombine.high %v8161_v2, %v8165_v10  ;;  %v8025_v8 = vld [vmem:[#allocation4 + $0xb00] sm:$0xff]  ;;  %11667 = vmatprep.subr.bf16.mxu0 %v17176_v53  ;;  %v17303_v63 = vcombine.low %v8161_v2, %v8165_v10 }
 0x63b   :  { %v8029_v9 = vld [vmem:[#allocation4 + $0xb20] sm:$0xff]  ;;  %11668 = vmatpush2.bf16.msra.mxu0 %v17175_v18  ;;  %v20612_v18 = vpack.c.bf16 %v20540_v41, %v20540_v41  ;;  %v20620_v41 = vpack.c.bf16 %v20578_v35, %v20578_v35  ;;  %v7706_v35 = vld [vmem:[#allocation4 + $0x108] sm:$0xff] }
 0x63c   :  { %v8153_v11 = vld [vmem:[#allocation4 + $0xf00] sm:$0xff]  ;;  %v17168_v61 = vcombine.high %v8025_v8, %v8029_v9  ;;  %11708 = vmatprep.subr.bf16.mxu1 %v17304_v6  ;;  %v17167_v21 = vcombine.low %v8025_v8, %v8029_v9  ;;  %v16874_v9 = vcombine.high %v7730_v5, %v7734_v52 }
 0x63d   :  { %v8157_v16 = vld [vmem:[#allocation4 + $0xf20] sm:$0xff]  ;;  %11709 = vmatpush2.bf16.msra.mxu1 %v17303_v63  ;;  %v7722_v63 = vld [vmem:[#allocation4 + $0x188] sm:$0xff] }
 0x63e   :  { %v17296_v19 = vcombine.high %v8153_v11, %v8157_v16  ;;  %v8017_v25 = vld [vmem:[#allocation4 + $0xac0] sm:$0xff]  ;;  %11669 = vmatprep.subr.bf16.mxu0 %v17168_v61  ;;  %v17295_v24 = vcombine.low %v8153_v11, %v8157_v16  ;;  %v7726_v61 = vld [vmem:[#allocation4 + $0x1a8] sm:$0xff] }
 0x63f   :  { %v8021_v26 = vld [vmem:[#allocation4 + $0xae0] sm:$0xff]  ;;  %11670 = vmatpush2.bf16.msra.mxu0 %v17167_v21 }
 0x640   :  { %v8145_v47 = vld [vmem:[#allocation4 + $0xec0] sm:$0xff]  ;;  %v17160_v28 = vcombine.high %v8017_v25, %v8021_v26  ;;  %11710 = vmatprep.subr.bf16.mxu1 %v17296_v19  ;;  %v17159_v30 = vcombine.low %v8017_v25, %v8021_v26  ;;  %v20616_v19 = vpack.c.bf16 %v20570_v38, %v20570_v38  ;;  %v16873_v26 = vcombine.low %v7730_v5, %v7734_v52 }
 0x641   :  { %v8149_v20 = vld [vmem:[#allocation4 + $0xee0] sm:$0xff]  ;;  %11711 = vmatpush2.bf16.msra.mxu1 %v17295_v24 }
 0x642   :  { %v17288_v27 = vcombine.high %v8145_v47, %v8149_v20  ;;  %v8009_v50 = vld [vmem:[#allocation4 + $0xa80] sm:$0xff]  ;;  %11671 = vmatprep.subr.bf16.mxu0 %v17160_v28  ;;  %v17287_v44 = vcombine.low %v8145_v47, %v8149_v20  ;;  %v16866_v20 = vcombine.high %v7722_v63, %v7726_v61  ;;  %v7714_v28 = vld [vmem:[#allocation4 + $0x148] sm:$0xff] }
 0x643   :  { %v8013_v14 = vld [vmem:[#allocation4 + $0xaa0] sm:$0xff]  ;;  %11672 = vmatpush2.bf16.msra.mxu0 %v17159_v30 }
 0x644   :  { %v8137_v15 = vld [vmem:[#allocation4 + $0xe80] sm:$0xff]  ;;  %v17152_v45 = vcombine.high %v8009_v50, %v8013_v14  ;;  %11712 = vmatprep.subr.bf16.mxu1 %v17288_v27  ;;  %v17151_v55 = vcombine.low %v8009_v50, %v8013_v14  ;;  %v7718_v27 = vld [vmem:[#allocation4 + $0x168] sm:$0xff]  ;;  %v16865_v50 = vcombine.low %v7722_v63, %v7726_v61 }
 0x645   :  { %v8141_v4 = vld [vmem:[#allocation4 + $0xea0] sm:$0xff]  ;;  %11713 = vmatpush2.bf16.msra.mxu1 %v17287_v44  ;;  %v7710_v44 = vld [vmem:[#allocation4 + $0x128] sm:$0xff] }
 0x646   :  { %v17280_v22 = vcombine.high %v8137_v15, %v8141_v4  ;;  %v8001_v62 = vld [vmem:[#allocation4 + $0xa40] sm:$0xff]  ;;  %11673 = vmatprep.subr.bf16.mxu0 %v17152_v45  ;;  %v17279_v37 = vcombine.low %v8137_v15, %v8141_v4  ;;  %v16858_v15 = vcombine.high %v7714_v28, %v7718_v27 }
 0x647   :  { %v8005_v46 = vld [vmem:[#allocation4 + $0xa60] sm:$0xff]  ;;  %11674 = vmatpush2.bf16.msra.mxu0 %v17151_v55  ;;  %v7698_v55 = vld [vmem:[#allocation4 + $0xc8] sm:$0xff] }
 0x648   :  { %v8129_v59 = vld [vmem:[#allocation4 + $0xe40] sm:$0xff]  ;;  %v17144_v49 = vcombine.high %v8001_v62, %v8005_v46  ;;  %11714 = vmatprep.subr.bf16.mxu1 %v17280_v22  ;;  %v17143_v3 = vcombine.low %v8001_v62, %v8005_v46  ;;  %v16857_v22 = vcombine.low %v7714_v28, %v7718_v27  ;;  %v16850_v46 = vcombine.high %v7706_v35, %v7710_v44 }
 0x649   :  { %v8133_v48 = vld [vmem:[#allocation4 + $0xe60] sm:$0xff]  ;;  %11715 = vmatpush2.bf16.msra.mxu1 %v17279_v37  ;;  %v7702_v37 = vld [vmem:[#allocation4 + $0xe8] sm:$0xff] }
 0x64a   :  { %v17272_v42 = vcombine.high %v8129_v59, %v8133_v48  ;;  %v7993_v56 = vld [vmem:[#allocation4 + $0xa00] sm:$0xff]  ;;  %11675 = vmatprep.subr.bf16.mxu0 %v17144_v49  ;;  %v17271_v13 = vcombine.low %v8129_v59, %v8133_v48 }
 0x64b   :  { %v7997_v57 = vld [vmem:[#allocation4 + $0xa20] sm:$0xff]  ;;  %11676 = vmatpush2.bf16.msra.mxu0 %v17143_v3  ;;  %v7690_v3 = vld [vmem:[#allocation4 + $0x88] sm:$0xff] }
 0x64c   :  { %v8121_v60 = vld [vmem:[#allocation4 + $0xe00] sm:$0xff]  ;;  %v17136_v1 = vcombine.high %v7993_v56, %v7997_v57  ;;  %11716 = vmatprep.subr.bf16.mxu1 %v17272_v42  ;;  %v17135_v53 = vcombine.low %v7993_v56, %v7997_v57  ;;  %v16849_v42 = vcombine.low %v7706_v35, %v7710_v44  ;;  %v16842_v57 = vcombine.high %v7698_v55, %v7702_v37 }
 0x64d   :  { %v8125_v0 = vld [vmem:[#allocation4 + $0xe20] sm:$0xff]  ;;  %11717 = vmatpush2.bf16.msra.mxu1 %v17271_v13  ;;  %v7694_v13 = vld [vmem:[#allocation4 + $0xa8] sm:$0xff] }
 0x64e   :  { %v17264_v54 = vcombine.high %v8121_v60, %v8125_v0  ;;  %v8241_v2 = vld [vmem:[#allocation4 + $0x11c0] sm:$0xff]  ;;  %11677 = vmatprep.subr.bf16.mxu0 %v17136_v1  ;;  %v17263_v6 = vcombine.low %v8121_v60, %v8125_v0 }
 0x64f   :  { %v8245_v10 = vld [vmem:[#allocation4 + $0x11e0] sm:$0xff]  ;;  %11678 = vmatpush2.bf16.msra.mxu0 %v17135_v53  ;;  %v7682_v53 = vld [vmem:[#allocation4 + $0x48] sm:$0xff] }
 0x650   :  { %v17384_v8 = vcombine.high %v8241_v2, %v8245_v10  ;;  %11718 = vmatprep.subr.bf16.mxu1 %v17264_v54  ;;  %v8233_v11 = vld [vmem:[#allocation4 + $0x1180] sm:$0xff]  ;;  %v17383_v25 = vcombine.low %v8241_v2, %v8245_v10  ;;  %v16841_v54 = vcombine.low %v7698_v55, %v7702_v37  ;;  %v16834_v10 = vcombine.high %v7690_v3, %v7694_v13 }
 0x651   :  { %v8237_v16 = vld [vmem:[#allocation4 + $0x11a0] sm:$0xff]  ;;  %11719 = vmatpush2.bf16.msra.mxu1 %v17263_v6  ;;  %v7686_v6 = vld [vmem:[#allocation4 + $0x68] sm:$0xff] }
 0x652   :  { %11729 = vmatprep.subr.bf16.mxu0 %v17384_v8  ;;  %v17376_v47 = vcombine.high %v8233_v11, %v8237_v16  ;;  %11770 = vmatprep.subr.bf16.mxu1 %v16874_v9  ;;  %v8225_v21 = vld [vmem:[#allocation4 + $0x1140] sm:$0xff]  ;;  %v17375_v38 = vcombine.low %v8233_v11, %v8237_v16  ;;  %v16833_v9 = vcombine.low %v7690_v3, %v7694_v13 }
 0x653   :  { %v8229_v24 = vld [vmem:[#allocation4 + $0x1160] sm:$0xff]  ;;  %11680 = vmatmul.mubr.bf16.vlgmr.msra.gmra.mxu0 %v20612_v18  ;;  %v16826_v16 = vcombine.high %v7682_v53, %v7686_v6 }
 0x654   :  { %11721 = vmatmul.mubr.bf16.vlgmr.msra.gmra.mxu1 %v20616_v19  ;;  %11730 = vmatpush1.bf16.msra.mxu0 %v17383_v25  ;;  %v17368_v14 = vcombine.high %v8225_v21, %v8229_v24  ;;  %v8217_v4 = vld [vmem:[#allocation4 + $0x1100] sm:$0xff]  ;;  %v17367_v45 = vcombine.low %v8225_v21, %v8229_v24  ;;  %v7674_v25 = vld [vmem:[#allocation4 + $0x8] sm:$0xff] }
 0x655   :  { %11771 = vmatpush1.bf16.msra.mxu1 %v16873_v26  ;;  %11731 = vmatprep.subr.bf16.mxu0 %v17376_v47  ;;  %v8221_v30 = vld [vmem:[#allocation4 + $0x1120] sm:$0xff]  ;;  %v7678_v26 = vld [vmem:[#allocation4 + $0x28] sm:$0xff] }
 0x656   :  { %11772 = vmatprep.subr.bf16.mxu1 %v16866_v20  ;;  %11761 = vmatprep.mubr.bf16.mxu0 %v20620_v41  ;;  %v17360_v62 = vcombine.high %v8217_v4, %v8221_v30  ;;  %v8209_v59 = vld [vmem:[#allocation4 + $0x10c0] sm:$0xff]  ;;  %v17359_v49 = vcombine.low %v8217_v4, %v8221_v30  ;;  %v16825_v20 = vcombine.low %v7682_v53, %v7686_v6 }
 0x657   :  { %11802 = vmatprep.mubr.bf16.mxu1 %v20582_v23  ;;  %v8213_v48 = vld [vmem:[#allocation4 + $0x10e0] sm:$0xff]  ;;  %v16818_v24 = vcombine.high %v7674_v25, %v7678_v26 }
 0x658   :  { %11732 = vmatpush1.bf16.msra.mxu0 %v17375_v38  ;;  %v17352_v56 = vcombine.high %v8209_v59, %v8213_v48  ;;  %v8201_v60 = vld [vmem:[#allocation4 + $0x1080] sm:$0xff]  ;;  %v17351_v1 = vcombine.low %v8209_v59, %v8213_v48  ;;  %v7794_v38 = vld [vmem:[#allocation4 + $0x3c8] sm:$0xff] }
 0x659   :  { %11773 = vmatpush1.bf16.msra.mxu1 %v16865_v50  ;;  %11733 = vmatprep.subr.bf16.mxu0 %v17368_v14  ;;  %v8205_v0 = vld [vmem:[#allocation4 + $0x10a0] sm:$0xff]  ;;  %v7798_v50 = vld [vmem:[#allocation4 + $0x3e8] sm:$0xff] }
 0x65a   :  { %11774 = vmatprep.subr.bf16.mxu1 %v16858_v15  ;;  %v17344_v2 = vcombine.high %v8201_v60, %v8205_v0  ;;  %v8193_v5 = vld [vmem:[#allocation4 + $0x1040] sm:$0xff]  ;;  %v17343_v8 = vcombine.low %v8201_v60, %v8205_v0  ;;  %v16817_v15 = vcombine.low %v7674_v25, %v7678_v26  ;;  %v16938_v30 = vcombine.high %v7794_v38, %v7798_v50 }
 0x65b   :  { %v8197_v52 = vld [vmem:[#allocation4 + $0x1060] sm:$0xff] }
 0x65c   :  { %11734 = vmatpush1.bf16.msra.mxu0 %v17367_v45  ;;  %v17336_v11 = vcombine.high %v8193_v5, %v8197_v52  ;;  %v8185_v63 = vld [vmem:[#allocation4 + $0x1000] sm:$0xff]  ;;  %v17335_v47 = vcombine.low %v8193_v5, %v8197_v52  ;;  %v7786_v45 = vld [vmem:[#allocation4 + $0x388] sm:$0xff] }
 0x65d   :  { %11775 = vmatpush1.bf16.msra.mxu1 %v16857_v22  ;;  %11735 = vmatprep.subr.bf16.mxu0 %v17360_v62  ;;  %v8189_v61 = vld [vmem:[#allocation4 + $0x1020] sm:$0xff]  ;;  %v7790_v22 = vld [vmem:[#allocation4 + $0x3a8] sm:$0xff] }
 0x65e   :  { %11776 = vmatprep.subr.bf16.mxu1 %v16850_v46  ;;  %v17328_v21 = vcombine.high %v8185_v63, %v8189_v61  ;;  %v8305_v28 = vld [vmem:[#allocation4 + $0x13c0] sm:$0xff]  ;;  %v17327_v14 = vcombine.low %v8185_v63, %v8189_v61  ;;  %v16937_v46 = vcombine.low %v7794_v38, %v7798_v50  ;;  %v16930_v48 = vcombine.high %v7786_v45, %v7790_v22 }
 0x65f   :  { %v8309_v27 = vld [vmem:[#allocation4 + $0x13e0] sm:$0xff] }
 0x660   :  { %11736 = vmatpush1.bf16.msra.mxu0 %v17359_v49  ;;  %v17448_v4 = vcombine.high %v8305_v28, %v8309_v27  ;;  %v8297_v35 = vld [vmem:[#allocation4 + $0x1380] sm:$0xff]  ;;  %v17447_v62 = vcombine.low %v8305_v28, %v8309_v27  ;;  %v7778_v49 = vld [vmem:[#allocation4 + $0x348] sm:$0xff] }
 0x661   :  { %11777 = vmatpush1.bf16.msra.mxu1 %v16849_v42  ;;  %11737 = vmatprep.subr.bf16.mxu0 %v17352_v56  ;;  %v8301_v44 = vld [vmem:[#allocation4 + $0x13a0] sm:$0xff]  ;;  %v7782_v42 = vld [vmem:[#allocation4 + $0x368] sm:$0xff] }
 0x662   :  { %11778 = vmatprep.subr.bf16.mxu1 %v16842_v57  ;;  %v17440_v59 = vcombine.high %v8297_v35, %v8301_v44  ;;  %v8289_v55 = vld [vmem:[#allocation4 + $0x1340] sm:$0xff]  ;;  %v17439_v56 = vcombine.low %v8297_v35, %v8301_v44  ;;  %v16929_v57 = vcombine.low %v7786_v45, %v7790_v22  ;;  %v16922_v0 = vcombine.high %v7778_v49, %v7782_v42 }
 0x663   :  { %v8293_v37 = vld [vmem:[#allocation4 + $0x1360] sm:$0xff] }
 0x664   :  { %11738 = vmatpush1.bf16.msra.mxu0 %v17351_v1  ;;  %v17432_v60 = vcombine.high %v8289_v55, %v8293_v37  ;;  %v8281_v3 = vld [vmem:[#allocation4 + $0x1300] sm:$0xff]  ;;  %v7770_v1 = vld [vmem:[#allocation4 + $0x308] sm:$0xff] }
 0x665   :  { %11779 = vmatpush1.bf16.msra.mxu1 %v16841_v54  ;;  %11739 = vmatprep.subr.bf16.mxu0 %v17344_v2  ;;  %v8285_v13 = vld [vmem:[#allocation4 + $0x1320] sm:$0xff]  ;;  %v7774_v54 = vld [vmem:[#allocation4 + $0x328] sm:$0xff]  ;;  %v17431_v2 = vcombine.low %v8289_v55, %v8293_v37 }
 0x666   :  { %11780 = vmatprep.subr.bf16.mxu1 %v16834_v10  ;;  %v16921_v10 = vcombine.low %v7778_v49, %v7782_v42  ;;  %v17424_v5 = vcombine.high %v8281_v3, %v8285_v13  ;;  %v16914_v52 = vcombine.high %v7770_v1, %v7774_v54  ;;  %v8273_v53 = vld [vmem:[#allocation4 + $0x12c0] sm:$0xff]  ;;  %v7858_v49 = vld [vmem:[#allocation4 + $0x5c8] sm:$0xff] }
 0x667   :  { %v8277_v6 = vld [vmem:[#allocation4 + $0x12e0] sm:$0xff]  ;;  %v7862_v42 = vld [vmem:[#allocation4 + $0x5e8] sm:$0xff] }
 0x668   :  { %11740 = vmatpush1.bf16.msra.mxu0 %v17343_v8  ;;  %v7762_v8 = vld [vmem:[#allocation4 + $0x2c8] sm:$0xff]  ;;  %v17416_v63 = vcombine.high %v8273_v53, %v8277_v6  ;;  %v8265_v25 = vld [vmem:[#allocation4 + $0x1280] sm:$0xff] }
 0x669   :  { %11781 = vmatpush1.bf16.msra.mxu1 %v16833_v9  ;;  %11741 = vmatprep.subr.bf16.mxu0 %v17336_v11  ;;  %v7766_v9 = vld [vmem:[#allocation4 + $0x2e8] sm:$0xff]  ;;  %v17423_v11 = vcombine.low %v8281_v3, %v8285_v13  ;;  %v8269_v26 = vld [vmem:[#allocation4 + $0x12a0] sm:$0xff]  ;;  %v17002_v3 = vcombine.high %v7858_v49, %v7862_v42 }
 0x66a   :  { %11782 = vmatprep.subr.bf16.mxu1 %v16826_v16  ;;  %v16913_v16 = vcombine.low %v7770_v1, %v7774_v54  ;;  %v16906_v61 = vcombine.high %v7762_v8, %v7766_v9  ;;  %v17408_v28 = vcombine.high %v8265_v25, %v8269_v26  ;;  %v8257_v38 = vld [vmem:[#allocation4 + $0x1240] sm:$0xff]  ;;  %v7850_v1 = vld [vmem:[#allocation4 + $0x588] sm:$0xff] }
 0x66b   :  { %v8261_v50 = vld [vmem:[#allocation4 + $0x1260] sm:$0xff]  ;;  %v7854_v54 = vld [vmem:[#allocation4 + $0x5a8] sm:$0xff] }
 0x66c   :  { %11742 = vmatpush1.bf16.msra.mxu0 %v17335_v47  ;;  %v7754_v47 = vld [vmem:[#allocation4 + $0x288] sm:$0xff]  ;;  %v17400_v35 = vcombine.high %v8257_v38, %v8261_v50  ;;  %v8249_v45 = vld [vmem:[#allocation4 + $0x1200] sm:$0xff] }
 0x66d   :  { %11783 = vmatpush1.bf16.msra.mxu1 %v16825_v20  ;;  %11743 = vmatprep.subr.bf16.mxu0 %v17328_v21  ;;  %v7758_v20 = vld [vmem:[#allocation4 + $0x2a8] sm:$0xff]  ;;  %v17415_v21 = vcombine.low %v8273_v53, %v8277_v6  ;;  %v8253_v22 = vld [vmem:[#allocation4 + $0x1220] sm:$0xff]  ;;  %v16994_v6 = vcombine.high %v7850_v1, %v7854_v54 }
 0x66e   :  { %11784 = vmatprep.subr.bf16.mxu1 %v16818_v24  ;;  %v16905_v24 = vcombine.low %v7762_v8, %v7766_v9  ;;  %v16898_v27 = vcombine.high %v7754_v47, %v7758_v20  ;;  %v17392_v55 = vcombine.high %v8249_v45, %v8253_v22  ;;  %v7842_v9 = vld [vmem:[#allocation4 + $0x548] sm:$0xff] }
 0x670   :  { %11744 = vmatpush1.bf16.msra.mxu0 %v17327_v14  ;;  %v7746_v14 = vld [vmem:[#allocation4 + $0x248] sm:$0xff] }
 0x671   :  { %11785 = vmatpush1.bf16.msra.mxu1 %v16817_v15  ;;  %11745 = vmatprep.subr.bf16.mxu0 %v17448_v4  ;;  %v7750_v15 = vld [vmem:[#allocation4 + $0x268] sm:$0xff]  ;;  %v17407_v4 = vcombine.low %v8265_v25, %v8269_v26 }
 0x672   :  { %11786 = vmatprep.subr.bf16.mxu1 %v16938_v30  ;;  %v16897_v30 = vcombine.low %v7754_v47, %v7758_v20  ;;  %v16890_v44 = vcombine.high %v7746_v14, %v7750_v15  ;;  %v7834_v47 = vld [vmem:[#allocation4 + $0x508] sm:$0xff] }
 0x673   :  { %v7838_v20 = vld [vmem:[#allocation4 + $0x528] sm:$0xff] }
 0x674   :  { %11746 = vmatpush2.bf16.msra.mxu0 %v17447_v62  ;;  %v7738_v62 = vld [vmem:[#allocation4 + $0x208] sm:$0xff] }
 0x675   :  { %11787 = vmatpush2.bf16.msra.mxu1 %v16937_v46  ;;  %11747 = vmatprep.subr.bf16.mxu0 %v17440_v59  ;;  %v7742_v46 = vld [vmem:[#allocation4 + $0x228] sm:$0xff]  ;;  %v17399_v59 = vcombine.low %v8257_v38, %v8261_v50  ;;  %v16978_v38 = vcombine.high %v7834_v47, %v7838_v20 }
 0x676   :  { %11788 = vmatprep.subr.bf16.mxu1 %v16930_v48  ;;  %v16889_v48 = vcombine.low %v7746_v14, %v7750_v15  ;;  %v16882_v37 = vcombine.high %v7738_v62, %v7742_v46  ;;  %v7826_v14 = vld [vmem:[#allocation4 + $0x4c8] sm:$0xff] }
 0x677   :  { %v7830_v15 = vld [vmem:[#allocation4 + $0x4e8] sm:$0xff] }
 0x678   :  { %11748 = vmatpush2.bf16.msra.mxu0 %v17439_v56  ;;  %v7986_v56 = vld [vmem:[#allocation4 + $0x9c8] sm:$0xff] }
 0x679   :  { %11789 = vmatpush2.bf16.msra.mxu1 %v16929_v57  ;;  %11749 = vmatprep.subr.bf16.mxu0 %v17432_v60  ;;  %v7990_v57 = vld [vmem:[#allocation4 + $0x9e8] sm:$0xff]  ;;  %v17391_v60 = vcombine.low %v8249_v45, %v8253_v22  ;;  %v16970_v45 = vcombine.high %v7826_v14, %v7830_v15 }
 0x67a   :  { %11790 = vmatprep.subr.bf16.mxu1 %v16922_v0  ;;  %v16881_v0 = vcombine.low %v7738_v62, %v7742_v46  ;;  %v17130_v13 = vcombine.high %v7986_v56, %v7990_v57  ;;  %v17129_v53 = vcombine.low %v7986_v56, %v7990_v57  ;;  %v7818_v62 = vld [vmem:[#allocation4 + $0x488] sm:$0xff] }
 0x67b   :  { %v7822_v46 = vld [vmem:[#allocation4 + $0x4a8] sm:$0xff] }
 0x67c   :  { %11750 = vmatpush2.bf16.msra.mxu0 %v17431_v2  ;;  %v20628_v2 = vpack.c.bf16 %v20576_v33, %v20576_v33  ;;  %v16993_v33 = vcombine.low %v7850_v1, %v7854_v54  ;;  %v7810_v56 = vld [vmem:[#allocation4 + $0x448] sm:$0xff] }
 0x67d   :  { %11791 = vmatpush2.bf16.msra.mxu1 %v16921_v10  ;;  %11751 = vmatprep.subr.bf16.mxu0 %v17424_v5  ;;  %v7978_v10 = vld [vmem:[#allocation4 + $0x988] sm:$0xff] }
 0x67e   :  { %11792 = vmatprep.subr.bf16.mxu1 %v16914_v52  ;;  %v7982_v5 = vld [vmem:[#allocation4 + $0x9a8] sm:$0xff]  ;;  %v17001_v52 = vcombine.low %v7858_v49, %v7862_v42  ;;  %v16962_v49 = vcombine.high %v7818_v62, %v7822_v46 }
 0x67f   :  { %v17122_v8 = vcombine.high %v7978_v10, %v7982_v5  ;;  %v7814_v57 = vld [vmem:[#allocation4 + $0x468] sm:$0xff] }
 0x680   :  { %11752 = vmatpush2.bf16.msra.mxu0 %v17423_v11  ;;  %v7846_v11 = vld [vmem:[#allocation4 + $0x568] sm:$0xff]  ;;  %v16954_v1 = vcombine.high %v7810_v56, %v7814_v57 }
 0x681   :  { %11793 = vmatpush2.bf16.msra.mxu1 %v16913_v16  ;;  %11753 = vmatprep.subr.bf16.mxu0 %v17416_v63  ;;  %v7970_v16 = vld [vmem:[#allocation4 + $0x948] sm:$0xff]  ;;  %v16986_v25 = vcombine.high %v7842_v9, %v7846_v11 }
 0x682   :  { %11794 = vmatprep.subr.bf16.mxu1 %v16906_v61  ;;  %v7974_v63 = vld [vmem:[#allocation4 + $0x968] sm:$0xff]  ;;  %v17121_v61 = vcombine.low %v7978_v10, %v7982_v5 }
 0x683   :  { %v17114_v26 = vcombine.high %v7970_v16, %v7974_v63  ;;  %v7802_v10 = vld [vmem:[#allocation4 + $0x408] sm:$0xff] }
 0x684   :  { %11754 = vmatpush2.bf16.msra.mxu0 %v17415_v21  ;;  %v7962_v21 = vld [vmem:[#allocation4 + $0x908] sm:$0xff] }
 0x685   :  { %11795 = vmatpush2.bf16.msra.mxu1 %v16905_v24  ;;  %11755 = vmatprep.subr.bf16.mxu0 %v17408_v28  ;;  %v7966_v24 = vld [vmem:[#allocation4 + $0x928] sm:$0xff]  ;;  %v16985_v28 = vcombine.low %v7842_v9, %v7846_v11 }
 0x686   :  { %11796 = vmatprep.subr.bf16.mxu1 %v16898_v27  ;;  %v17113_v27 = vcombine.low %v7970_v16, %v7974_v63  ;;  %v17106_v50 = vcombine.high %v7962_v21, %v7966_v24  ;;  %v7806_v5 = vld [vmem:[#allocation4 + $0x428] sm:$0xff] }
 0x687   :  { %v16946_v9 = vcombine.high %v7802_v10, %v7806_v5  ;;  %v7922_v16 = vld [vmem:[#allocation4 + $0x7c8] sm:$0xff] }
 0x688   :  { %11756 = vmatpush2.bf16.msra.mxu0 %v17407_v4  ;;  %v7954_v4 = vld [vmem:[#allocation4 + $0x8c8] sm:$0xff] }
 0x689   :  { %11797 = vmatpush2.bf16.msra.mxu1 %v16897_v30  ;;  %11757 = vmatprep.subr.bf16.mxu0 %v17400_v35  ;;  %v7958_v30 = vld [vmem:[#allocation4 + $0x8e8] sm:$0xff]  ;;  %v16977_v35 = vcombine.low %v7834_v47, %v7838_v20 }
 0x68a   :  { %11798 = vmatprep.subr.bf16.mxu1 %v16890_v44  ;;  %v17105_v44 = vcombine.low %v7962_v21, %v7966_v24  ;;  %v17098_v22 = vcombine.high %v7954_v4, %v7958_v30  ;;  %v7926_v63 = vld [vmem:[#allocation4 + $0x7e8] sm:$0xff] }
 0x68b   :  { %v17066_v47 = vcombine.high %v7922_v16, %v7926_v63  ;;  %v7914_v21 = vld [vmem:[#allocation4 + $0x788] sm:$0xff] }
 0x68c   :  { %11758 = vmatpush2.bf16.msra.mxu0 %v17399_v59  ;;  %v7946_v59 = vld [vmem:[#allocation4 + $0x888] sm:$0xff] }
 0x68d   :  { %11799 = vmatpush2.bf16.msra.mxu1 %v16889_v48  ;;  %11759 = vmatprep.subr.bf16.mxu0 %v17392_v55  ;;  %v7950_v48 = vld [vmem:[#allocation4 + $0x8a8] sm:$0xff]  ;;  %v16969_v55 = vcombine.low %v7826_v14, %v7830_v15 }
 0x68e   :  { %11800 = vmatprep.subr.bf16.mxu1 %v16882_v37  ;;  %v17097_v37 = vcombine.low %v7954_v4, %v7958_v30  ;;  %v17090_v42 = vcombine.high %v7946_v59, %v7950_v48  ;;  %v7918_v24 = vld [vmem:[#allocation4 + $0x7a8] sm:$0xff] }
 0x68f   :  { %v17058_v14 = vcombine.high %v7914_v21, %v7918_v24  ;;  %v7906_v4 = vld [vmem:[#allocation4 + $0x748] sm:$0xff] }
 0x690   :  { %11760 = vmatpush2.bf16.msra.mxu0 %v17391_v60  ;;  %v7938_v60 = vld [vmem:[#allocation4 + $0x848] sm:$0xff] }
 0x691   :  { %11801 = vmatpush2.bf16.msra.mxu1 %v16881_v0  ;;  %11811 = vmatprep.subr.bf16.mxu0 %v17002_v3  ;;  %v7942_v0 = vld [vmem:[#allocation4 + $0x868] sm:$0xff]  ;;  %v16961_v3 = vcombine.low %v7818_v62, %v7822_v46 }
 0x692   :  { %11852 = vmatprep.subr.bf16.mxu1 %v17130_v13  ;;  %v17089_v13 = vcombine.low %v7946_v59, %v7950_v48  ;;  %v17082_v54 = vcombine.high %v7938_v60, %v7942_v0  ;;  %v7910_v30 = vld [vmem:[#allocation4 + $0x768] sm:$0xff] }
 0x693   :  { %11762 = vmatmul.mubr.bf16.vlgmr.msra.gmra.mxu0 %v20628_v2  ;;  %v17050_v62 = vcombine.high %v7906_v4, %v7910_v30  ;;  %v7898_v59 = vld [vmem:[#allocation4 + $0x708] sm:$0xff] }
 0x694   :  { %11803 = vmatmul.mubr.bf16.vlgmr.msra.gmra.mxu1 %v20592_v32  ;;  %11812 = vmatpush1.bf16.msra.mxu0 %v17001_v52  ;;  %v7930_v52 = vld [vmem:[#allocation4 + $0x808] sm:$0xff] }
 0x695   :  { %11853 = vmatpush1.bf16.msra.mxu1 %v17129_v53  ;;  %11813 = vmatprep.subr.bf16.mxu0 %v16994_v6  ;;  %v7934_v53 = vld [vmem:[#allocation4 + $0x828] sm:$0xff]  ;;  %v16953_v6 = vcombine.low %v7810_v56, %v7814_v57 }
 0x696   :  { %11854 = vmatprep.subr.bf16.mxu1 %v17122_v8  ;;  %11843 = vmatprep.mubr.bf16.mxu0 %v20586_v7  ;;  %v17081_v8 = vcombine.low %v7938_v60, %v7942_v0  ;;  %v17074_v11 = vcombine.high %v7930_v52, %v7934_v53  ;;  %v7902_v48 = vld [vmem:[#allocation4 + $0x728] sm:$0xff] }
 0x697   :  { %11884 = vmatprep.mubr.bf16.mxu1 %v20600_v34  ;;  %v17042_v56 = vcombine.high %v7898_v59, %v7902_v48  ;;  %v7890_v60 = vld [vmem:[#allocation4 + $0x6c8] sm:$0xff] }
 0x698   :  { %11814 = vmatpush1.bf16.msra.mxu0 %v16993_v33  ;;  %v8050_v33 = vld [vmem:[#allocation4 + $0xbc8] sm:$0xff] }
 0x699   :  { %11855 = vmatpush1.bf16.msra.mxu1 %v17121_v61  ;;  %11815 = vmatprep.subr.bf16.mxu0 %v16986_v25  ;;  %v8054_v61 = vld [vmem:[#allocation4 + $0xbe8] sm:$0xff]  ;;  %v16945_v25 = vcombine.low %v7802_v10, %v7806_v5 }
 0x69a   :  { %11856 = vmatprep.subr.bf16.mxu1 %v17114_v26  ;;  %v17073_v26 = vcombine.low %v7930_v52, %v7934_v53  ;;  %v17194_v20 = vcombine.high %v8050_v33, %v8054_v61  ;;  %v7894_v0 = vld [vmem:[#allocation4 + $0x6e8] sm:$0xff] }
 0x69b   :  { %v17034_v10 = vcombine.high %v7890_v60, %v7894_v0  ;;  %v7882_v52 = vld [vmem:[#allocation4 + $0x688] sm:$0xff] }
 0x69c   :  { %11816 = vmatpush1.bf16.msra.mxu0 %v16985_v28  ;;  %v8042_v28 = vld [vmem:[#allocation4 + $0xb88] sm:$0xff] }
 0x69d   :  { %11857 = vmatpush1.bf16.msra.mxu1 %v17113_v27  ;;  %11817 = vmatprep.subr.bf16.mxu0 %v16978_v38  ;;  %v8046_v27 = vld [vmem:[#allocation4 + $0xba8] sm:$0xff]  ;;  %v17065_v38 = vcombine.low %v7922_v16, %v7926_v63 }
 0x69e   :  { %11858 = vmatprep.subr.bf16.mxu1 %v17106_v50  ;;  %v17193_v50 = vcombine.low %v8050_v33, %v8054_v61  ;;  %v17186_v15 = vcombine.high %v8042_v28, %v8046_v27  ;;  %v7886_v53 = vld [vmem:[#allocation4 + $0x6a8] sm:$0xff] }
 0x69f   :  { %v17026_v16 = vcombine.high %v7882_v52, %v7886_v53  ;;  %v7874_v33 = vld [vmem:[#allocation4 + $0x648] sm:$0xff] }
 0x6a0   :  { %11818 = vmatpush1.bf16.msra.mxu0 %v16977_v35  ;;  %v8034_v35 = vld [vmem:[#allocation4 + $0xb48] sm:$0xff] }
 0x6a1   :  { %11859 = vmatpush1.bf16.msra.mxu1 %v17105_v44  ;;  %11819 = vmatprep.subr.bf16.mxu0 %v16970_v45  ;;  %v8038_v44 = vld [vmem:[#allocation4 + $0xb68] sm:$0xff]  ;;  %v17057_v45 = vcombine.low %v7914_v21, %v7918_v24 }
 0x6a2   :  { %11860 = vmatprep.subr.bf16.mxu1 %v17098_v22  ;;  %v17185_v22 = vcombine.low %v8042_v28, %v8046_v27  ;;  %v17178_v46 = vcombine.high %v8034_v35, %v8038_v44  ;;  %v7878_v61 = vld [vmem:[#allocation4 + $0x668] sm:$0xff] }
 0x6a3   :  { %v17018_v21 = vcombine.high %v7874_v33, %v7878_v61  ;;  %v7866_v28 = vld [vmem:[#allocation4 + $0x608] sm:$0xff] }
 0x6a4   :  { %11820 = vmatpush1.bf16.msra.mxu0 %v16969_v55  ;;  %v8026_v55 = vld [vmem:[#allocation4 + $0xb08] sm:$0xff] }
 0x6a5   :  { %11861 = vmatpush1.bf16.msra.mxu1 %v17097_v37  ;;  %11821 = vmatprep.subr.bf16.mxu0 %v16962_v49  ;;  %v8030_v37 = vld [vmem:[#allocation4 + $0xb28] sm:$0xff]  ;;  %v17049_v49 = vcombine.low %v7906_v4, %v7910_v30 }
 0x6a6   :  { %11862 = vmatprep.subr.bf16.mxu1 %v17090_v42  ;;  %v17177_v42 = vcombine.low %v8034_v35, %v8038_v44  ;;  %v17170_v57 = vcombine.high %v8026_v55, %v8030_v37  ;;  %v7870_v27 = vld [vmem:[#allocation4 + $0x628] sm:$0xff] }
 0x6a7   :  { %v17010_v4 = vcombine.high %v7866_v28, %v7870_v27  ;;  %v8114_v35 = vld [vmem:[#allocation4 + $0xdc8] sm:$0xff] }
 0x6a8   :  { %11822 = vmatpush1.bf16.msra.mxu0 %v16961_v3  ;;  %v8018_v3 = vld [vmem:[#allocation4 + $0xac8] sm:$0xff] }
 0x6a9   :  { %11863 = vmatpush1.bf16.msra.mxu1 %v17089_v13  ;;  %11823 = vmatprep.subr.bf16.mxu0 %v16954_v1  ;;  %v8022_v13 = vld [vmem:[#allocation4 + $0xae8] sm:$0xff]  ;;  %v17041_v1 = vcombine.low %v7898_v59, %v7902_v48  ;;  %v8323_v59 = vld [vmem:[#allocation11 + $0x16] sm:$0xff] }
 0x6aa   :  { %11864 = vmatprep.subr.bf16.mxu1 %v17082_v54  ;;  %v17169_v54 = vcombine.low %v8026_v55, %v8030_v37  ;;  %v17162_v5 = vcombine.high %v8018_v3, %v8022_v13  ;;  %v8118_v44 = vld [vmem:[#allocation4 + $0xde8] sm:$0xff] }
 0x6ab   :  { %v17258_v48 = vcombine.high %v8114_v35, %v8118_v44  ;;  %v8106_v37 = vld [vmem:[#allocation4 + $0xd88] sm:$0xff] }
 0x6ac   :  { %11824 = vmatpush1.bf16.msra.mxu0 %v16953_v6  ;;  %v8010_v6 = vld [vmem:[#allocation4 + $0xa88] sm:$0xff] }
 0x6ad   :  { %11865 = vmatpush1.bf16.msra.mxu1 %v17081_v8  ;;  %11825 = vmatprep.subr.bf16.mxu0 %v16946_v9  ;;  %v8014_v8 = vld [vmem:[#allocation4 + $0xaa8] sm:$0xff]  ;;  %v17033_v9 = vcombine.low %v7890_v60, %v7894_v0  ;;  %v17257_v60 = vcombine.low %v8114_v35, %v8118_v44 }
 0x6ae   :  { %11866 = vmatprep.subr.bf16.mxu1 %v17074_v11  ;;  %v17161_v11 = vcombine.low %v8018_v3, %v8022_v13  ;;  %v17154_v63 = vcombine.high %v8010_v6, %v8014_v8  ;;  %v8332_v13 = vrot.slane %v8323_v59, %v20328_v31  ;;  %v8082_v44 = vld [vmem:[#allocation4 + $0xcc8] sm:$0xff] }
 0x6b0   :  { %11826 = vmatpush1.bf16.msra.mxu0 %v16945_v25  ;;  %v8002_v25 = vld [vmem:[#allocation4 + $0xa48] sm:$0xff] }
 0x6b1   :  { %11867 = vmatpush1.bf16.msra.mxu1 %v17073_v26  ;;  %11827 = vmatprep.subr.bf16.mxu0 %v17066_v47  ;;  %v8006_v26 = vld [vmem:[#allocation4 + $0xa68] sm:$0xff]  ;;  %v17025_v47 = vcombine.low %v7882_v52, %v7886_v53 }
 0x6b2   :  { %11868 = vmatprep.subr.bf16.mxu1 %v17194_v20  ;;  %v17153_v20 = vcombine.low %v8010_v6, %v8014_v8  ;;  %v17146_v24 = vcombine.high %v8002_v25, %v8006_v26  ;;  %v8226_v52 = vld [vmem:[#allocation4 + $0x1148] sm:$0xff] }
 0x6b3   :  { %v8230_v53 = vld [vmem:[#allocation4 + $0x1168] sm:$0xff] }
 0x6b4   :  { %11828 = vmatpush2.bf16.msra.mxu0 %v17065_v38  ;;  %v7994_v38 = vld [vmem:[#allocation4 + $0xa08] sm:$0xff] }
 0x6b5   :  { %11869 = vmatpush2.bf16.msra.mxu1 %v17193_v50  ;;  %11829 = vmatprep.subr.bf16.mxu0 %v17058_v14  ;;  %v7998_v50 = vld [vmem:[#allocation4 + $0xa28] sm:$0xff]  ;;  %v17017_v14 = vcombine.low %v7874_v33, %v7878_v61 }
 0x6b6   :  { %11870 = vmatprep.subr.bf16.mxu1 %v17186_v15  ;;  %v17145_v15 = vcombine.low %v8002_v25, %v8006_v26  ;;  %v17138_v30 = vcombine.high %v7994_v38, %v7998_v50  ;;  %v17370_v26 = vcombine.high %v8226_v52, %v8230_v53 }
 0x6b8   :  { %11830 = vmatpush2.bf16.msra.mxu0 %v17057_v45  ;;  %v8242_v45 = vld [vmem:[#allocation4 + $0x11c8] sm:$0xff] }
 0x6b9   :  { %11871 = vmatpush2.bf16.msra.mxu1 %v17185_v22  ;;  %11831 = vmatprep.subr.bf16.mxu0 %v17050_v62  ;;  %v8246_v22 = vld [vmem:[#allocation4 + $0x11e8] sm:$0xff]  ;;  %v17009_v62 = vcombine.low %v7866_v28, %v7870_v27 }
 0x6ba   :  { %11872 = vmatprep.subr.bf16.mxu1 %v17178_v46  ;;  %v17137_v46 = vcombine.low %v7994_v38, %v7998_v50  ;;  %v17386_v55 = vcombine.high %v8242_v45, %v8246_v22  ;;  %v17385_v0 = vcombine.low %v8242_v45, %v8246_v22  ;;  %v8222_v28 = vld [vmem:[#allocation4 + $0x1128] sm:$0xff] }
 0x6bb   :  { %v8086_v45 = vld [vmem:[#allocation4 + $0xce8] sm:$0xff] }
 0x6bc   :  { %11832 = vmatpush2.bf16.msra.mxu0 %v17049_v49  ;;  %v8110_v49 = vld [vmem:[#allocation4 + $0xda8] sm:$0xff] }
 0x6bd   :  { %11873 = vmatpush2.bf16.msra.mxu1 %v17177_v42  ;;  %11833 = vmatprep.subr.bf16.mxu0 %v17042_v56  ;;  %v8234_v42 = vld [vmem:[#allocation4 + $0x1188] sm:$0xff]  ;;  %v17250_v3 = vcombine.high %v8106_v37, %v8110_v49 }
 0x6be   :  { %11874 = vmatprep.subr.bf16.mxu1 %v17170_v57  ;;  %v8238_v56 = vld [vmem:[#allocation4 + $0x11a8] sm:$0xff]  ;;  %v8328_v57 = vrot.slane %v8323_v59, %v20324_v29 }
 0x6bf   :  { %v8210_v22 = vld [vmem:[#allocation4 + $0x10c8] sm:$0xff] }
 0x6c0   :  { %11834 = vmatpush2.bf16.msra.mxu0 %v17041_v1  ;;  %v17378_v1 = vcombine.high %v8234_v42, %v8238_v56 }
 0x6c1   :  { %11875 = vmatpush2.bf16.msra.mxu1 %v17169_v54  ;;  %11835 = vmatprep.subr.bf16.mxu0 %v17034_v10  ;;  %v8098_v54 = vld [vmem:[#allocation4 + $0xd48] sm:$0xff] }
 0x6c2   :  { %11876 = vmatprep.subr.bf16.mxu1 %v17162_v5  ;;  %v8102_v10 = vld [vmem:[#allocation4 + $0xd68] sm:$0xff] }
 0x6c3   :  { %v17241_v50 = vcombine.low %v8098_v54, %v8102_v10 }
 0x6c4   :  { %11836 = vmatpush2.bf16.msra.mxu0 %v17033_v9  ;;  %v17249_v9 = vcombine.low %v8106_v37, %v8110_v49  ;;  %v8074_v37 = vld [vmem:[#allocation4 + $0xc88] sm:$0xff] }
 0x6c5   :  { %11877 = vmatpush2.bf16.msra.mxu1 %v17161_v11  ;;  %11837 = vmatprep.subr.bf16.mxu0 %v17026_v16  ;;  %v17377_v16 = vcombine.low %v8234_v42, %v8238_v56  ;;  %v8078_v49 = vld [vmem:[#allocation4 + $0xca8] sm:$0xff] }
 0x6c6   :  { %11878 = vmatprep.subr.bf16.mxu1 %v17154_v63  ;;  %v17242_v63 = vcombine.high %v8098_v54, %v8102_v10  ;;  %v8202_v42 = vld [vmem:[#allocation4 + $0x1088] sm:$0xff] }
 0x6c7   :  { %v8206_v56 = vld [vmem:[#allocation4 + $0x10a8] sm:$0xff] }
 0x6c8   :  { %11838 = vmatpush2.bf16.msra.mxu0 %v17025_v47  ;;  %v8090_v47 = vld [vmem:[#allocation4 + $0xd08] sm:$0xff] }
 0x6c9   :  { %11879 = vmatpush2.bf16.msra.mxu1 %v17153_v20  ;;  %11839 = vmatprep.subr.bf16.mxu0 %v17018_v21  ;;  %v8094_v20 = vld [vmem:[#allocation4 + $0xd28] sm:$0xff] }
 0x6ca   :  { %11880 = vmatprep.subr.bf16.mxu1 %v17146_v24  ;;  %v8218_v24 = vld [vmem:[#allocation4 + $0x1108] sm:$0xff] }
 0x6cb   :  { %v17362_v35 = vcombine.high %v8218_v24, %v8222_v28  ;;  %v17361_v59 = vcombine.low %v8218_v24, %v8222_v28  ;;  %v8194_v54 = vld [vmem:[#allocation4 + $0x1048] sm:$0xff] }
 0x6cc   :  { %11840 = vmatpush2.bf16.msra.mxu0 %v17017_v14  ;;  %v8198_v10 = vld [vmem:[#allocation4 + $0x1068] sm:$0xff] }
 0x6cd   :  { %11881 = vmatpush2.bf16.msra.mxu1 %v17145_v15  ;;  %11841 = vmatprep.subr.bf16.mxu0 %v17010_v4  ;;  %v17369_v15 = vcombine.low %v8226_v52, %v8230_v53  ;;  %v17234_v4 = vcombine.high %v8090_v47, %v8094_v20  ;;  %v17345_v52 = vcombine.low %v8202_v42, %v8206_v56  ;;  %v8310_v24 = vld [vmem:[#allocation4 + $0x13e8] sm:$0xff] }
 0x6ce   :  { %11882 = vmatprep.subr.bf16.mxu1 %v17138_v30 }
 0x6d0   :  { %11842 = vmatpush2.bf16.msra.mxu0 %v17009_v62  ;;  %v8214_v62 = vld [vmem:[#allocation4 + $0x10e8] sm:$0xff] }
 0x6d1   :  { %11883 = vmatpush2.bf16.msra.mxu1 %v17137_v46  ;;  %11893 = vmatprep.subr.bf16.mxu0 %v17258_v48  ;;  %v17233_v46 = vcombine.low %v8090_v47, %v8094_v20  ;;  %v17226_v48 = vcombine.high %v8082_v44, %v8086_v45  ;;  %v8178_v47 = vld [vmem:[#allocation4 + $0xfc8] sm:$0xff] }
 0x6d2   :  { %11934 = vmatprep.subr.bf16.mxu1 %v17386_v55  ;;  %v11599_v5 = vpop.f32.mrf.mxu0  ;;  %v17354_v55 = vcombine.high %v8210_v22, %v8214_v62  ;;  %v8182_v20 = vld [vmem:[#allocation4 + $0xfe8] sm:$0xff] }
 0x6d3   :  { %11844 = vmatmul.mubr.bf16.vlgmr.msra.gmra.mxu0 %v20596_v43  ;;  %v11600_v6 = vadd.f32 %v11599_v5, %v8328_v57  ;;  %v17225_v57 = vcombine.low %v8082_v44, %v8086_v45  ;;  %v17217_v5 = vcombine.low %v8074_v37, %v8078_v49  ;;  %v17321_v44 = vcombine.low %v8178_v47, %v8182_v20 }
 0x6d4   :  { %v11640_v8 = vpop.f32.mrf.mxu1  ;;  %11885 = vmatmul.mubr.bf16.vlgmr.msra.gmra.mxu1 %v20612_v18  ;;  %11894 = vmatpush1.bf16.msra.mxu0 %v17257_v60  ;;  %v11601_v11 = vpop.f32.mrf.mxu0  ;;  %v17353_v60 = vcombine.low %v8210_v22, %v8214_v62 }
 0x6d5   :  { %11935 = vmatpush1.bf16.msra.mxu1 %v17385_v0  ;;  %11895 = vmatprep.subr.bf16.mxu0 %v17250_v3  ;;  %v20638_v33 = vadd.f32 %v11640_v8, %v11600_v6  ;;  %v11602_v61 = vadd.f32 %v11601_v11, %v8332_v13  ;;  %v17218_v0 = vcombine.high %v8074_v37, %v8078_v49  ;;  %v8066_v13 = vld [vmem:[#allocation4 + $0xc48] sm:$0xff] }
 0x6d6   :  { %v11642_v25 = vpop.f32.mrf.mxu1  ;;  %11936 = vmatprep.subr.bf16.mxu1 %v17378_v1  ;;  %11925 = vmatprep.mubr.bf16.mxu0 %v20605_v39  ;;  %v11603_v21 = vpop.f32.mrf.mxu0  ;;  %v17346_v3 = vcombine.high %v8202_v42, %v8206_v56  ;;  %v8070_v1 = vld [vmem:[#allocation4 + $0xc68] sm:$0xff]  ;;  %v17338_v6 = vcombine.high %v8194_v54, %v8198_v10 }
 0x6d7   :  { %11966 = vmatprep.mubr.bf16.mxu1 %v20620_v41  ;;  %v20642_v27 = vadd.f32 %v11642_v25, %v11602_v61  ;;  %v17210_v53 = vcombine.high %v8066_v13, %v8070_v1  ;;  %v8058_v8 = vld [vmem:[#allocation4 + $0xc08] sm:$0xff]  ;;  %v17337_v61 = vcombine.low %v8194_v54, %v8198_v10 }
 0x6d8   :  { %v11644_v38 = vpop.f32.mrf.mxu1  ;;  %11896 = vmatpush1.bf16.msra.mxu0 %v17249_v9  ;;  %v11604_v14 = vpop.f32.mrf.mxu0  ;;  %v8062_v9 = vld [vmem:[#allocation4 + $0xc28] sm:$0xff] }
 0x6d9   :  { %11937 = vmatpush1.bf16.msra.mxu1 %v17377_v16  ;;  %11897 = vmatprep.subr.bf16.mxu0 %v17242_v63  ;;  %v8186_v11 = vld [vmem:[#allocation4 + $0x1008] sm:$0xff]  ;;  %v17209_v63 = vcombine.low %v8066_v13, %v8070_v1  ;;  %v17202_v25 = vcombine.high %v8058_v8, %v8062_v9  ;;  %v17201_v28 = vcombine.low %v8058_v8, %v8062_v9 }
 0x6da   :  { %v11645_v30 = vpop.f32.mrf.mxu1  ;;  %11938 = vmatprep.subr.bf16.mxu1 %v17370_v26  ;;  %v8190_v16 = vld [vmem:[#allocation4 + $0x1028] sm:$0xff] }
 0x6db   :  { %v17330_v26 = vcombine.high %v8186_v11, %v8190_v16  ;;  %v8306_v21 = vld [vmem:[#allocation4 + $0x13c8] sm:$0xff]  ;;  %v17329_v38 = vcombine.low %v8186_v11, %v8190_v16 }
 0x6dc   :  { %11898 = vmatpush1.bf16.msra.mxu0 %v17241_v50  ;;  %v17322_v50 = vcombine.high %v8178_v47, %v8182_v20  ;;  %v17450_v14 = vcombine.high %v8306_v21, %v8310_v24  ;;  %v8298_v30 = vld [vmem:[#allocation4 + $0x1388] sm:$0xff]  ;;  %v17449_v45 = vcombine.low %v8306_v21, %v8310_v24 }
 0x6dd   :  { %11939 = vmatpush1.bf16.msra.mxu1 %v17369_v15  ;;  %11899 = vmatprep.subr.bf16.mxu0 %v17234_v4  ;;  %v8170_v15 = vld [vmem:[#allocation4 + $0xf88] sm:$0xff] }
 0x6de   :  { %11940 = vmatprep.subr.bf16.mxu1 %v17362_v35  ;;  %v8174_v4 = vld [vmem:[#allocation4 + $0xfa8] sm:$0xff] }
 0x6df   :  { %v8302_v35 = vld [vmem:[#allocation4 + $0x13a8] sm:$0xff]  ;;  %v17314_v22 = vcombine.high %v8170_v15, %v8174_v4  ;;  %v17313_v37 = vcombine.low %v8170_v15, %v8174_v4 }
 0x6e0   :  { %11900 = vmatpush1.bf16.msra.mxu0 %v17233_v46  ;;  %v17442_v62 = vcombine.high %v8298_v30, %v8302_v35  ;;  %v8162_v46 = vld [vmem:[#allocation4 + $0xf48] sm:$0xff]  ;;  %v17441_v49 = vcombine.low %v8298_v30, %v8302_v35 }
 0x6e1   :  { %11941 = vmatpush1.bf16.msra.mxu1 %v17361_v59  ;;  %11901 = vmatprep.subr.bf16.mxu0 %v17226_v48  ;;  %v8166_v59 = vld [vmem:[#allocation4 + $0xf68] sm:$0xff] }
 0x6e2   :  { %11942 = vmatprep.subr.bf16.mxu1 %v17354_v55  ;;  %v8290_v48 = vld [vmem:[#allocation4 + $0x1348] sm:$0xff]  ;;  %v17306_v42 = vcombine.high %v8162_v46, %v8166_v59  ;;  %v17305_v13 = vcombine.low %v8162_v46, %v8166_v59 }
 0x6e3   :  { %v8294_v55 = vld [vmem:[#allocation4 + $0x1368] sm:$0xff] }
 0x6e4   :  { %11902 = vmatpush1.bf16.msra.mxu0 %v17225_v57  ;;  %v17434_v56 = vcombine.high %v8290_v48, %v8294_v55  ;;  %v8154_v57 = vld [vmem:[#allocation4 + $0xf08] sm:$0xff]  ;;  %v17433_v1 = vcombine.low %v8290_v48, %v8294_v55 }
 0x6e5   :  { %11943 = vmatpush1.bf16.msra.mxu1 %v17353_v60  ;;  %11903 = vmatprep.subr.bf16.mxu0 %v17218_v0  ;;  %v8158_v60 = vld [vmem:[#allocation4 + $0xf28] sm:$0xff] }
 0x6e6   :  { %11944 = vmatprep.subr.bf16.mxu1 %v17346_v3  ;;  %v8282_v0 = vld [vmem:[#allocation4 + $0x1308] sm:$0xff]  ;;  %v17298_v54 = vcombine.high %v8154_v57, %v8158_v60  ;;  %v17297_v8 = vcombine.low %v8154_v57, %v8158_v60 }
 0x6e7   :  { %v8286_v3 = vld [vmem:[#allocation4 + $0x1328] sm:$0xff] }
 0x6e8   :  { %11904 = vmatpush1.bf16.msra.mxu0 %v17217_v5  ;;  %v17426_v10 = vcombine.high %v8282_v0, %v8286_v3  ;;  %v8146_v5 = vld [vmem:[#allocation4 + $0xec8] sm:$0xff]  ;;  %v17425_v9 = vcombine.low %v8282_v0, %v8286_v3 }
 0x6e9   :  { %11945 = vmatpush1.bf16.msra.mxu1 %v17345_v52  ;;  %11905 = vmatprep.subr.bf16.mxu0 %v17210_v53  ;;  %v8150_v52 = vld [vmem:[#allocation4 + $0xee8] sm:$0xff] }
 0x6ea   :  { %11946 = vmatprep.subr.bf16.mxu1 %v17338_v6  ;;  %v8274_v53 = vld [vmem:[#allocation4 + $0x12c8] sm:$0xff]  ;;  %v17290_v11 = vcombine.high %v8146_v5, %v8150_v52  ;;  %v17289_v47 = vcombine.low %v8146_v5, %v8150_v52 }
 0x6eb   :  { %v8278_v6 = vld [vmem:[#allocation4 + $0x12e8] sm:$0xff] }
 0x6ec   :  { %11906 = vmatpush1.bf16.msra.mxu0 %v17209_v63  ;;  %v17418_v16 = vcombine.high %v8274_v53, %v8278_v6  ;;  %v8138_v63 = vld [vmem:[#allocation4 + $0xe88] sm:$0xff]  ;;  %v17417_v20 = vcombine.low %v8274_v53, %v8278_v6 }
 0x6ed   :  { %11947 = vmatpush1.bf16.msra.mxu1 %v17337_v61  ;;  %11907 = vmatprep.subr.bf16.mxu0 %v17202_v25  ;;  %v8142_v61 = vld [vmem:[#allocation4 + $0xea8] sm:$0xff] }
 0x6ee   :  { %11948 = vmatprep.subr.bf16.mxu1 %v17330_v26  ;;  %v8266_v25 = vld [vmem:[#allocation4 + $0x1288] sm:$0xff]  ;;  %v17282_v21 = vcombine.high %v8138_v63, %v8142_v61  ;;  %v17281_v15 = vcombine.low %v8138_v63, %v8142_v61  ;;  %v7847_v63 = vld [vmem:[#allocation4 + $0x570] sm:$0xff] }
 0x6ef   :  { %v8270_v26 = vld [vmem:[#allocation4 + $0x12a8] sm:$0xff] }
 0x6f0   :  { %11908 = vmatpush1.bf16.msra.mxu0 %v17201_v28  ;;  %v17410_v24 = vcombine.high %v8266_v25, %v8270_v26  ;;  %v8130_v28 = vld [vmem:[#allocation4 + $0xe48] sm:$0xff]  ;;  %v17409_v4 = vcombine.low %v8266_v25, %v8270_v26 }
 0x6f1   :  { %11949 = vmatpush1.bf16.msra.mxu1 %v17329_v38  ;;  %11909 = vmatprep.subr.bf16.mxu0 %v17322_v50  ;;  %v8134_v38 = vld [vmem:[#allocation4 + $0xe68] sm:$0xff] }
 0x6f2   :  { %11950 = vmatprep.subr.bf16.mxu1 %v17450_v14  ;;  %v8258_v50 = vld [vmem:[#allocation4 + $0x1248] sm:$0xff]  ;;  %v17274_v30 = vcombine.high %v8130_v28, %v8134_v38  ;;  %v17273_v46 = vcombine.low %v8130_v28, %v8134_v38 }
 0x6f3   :  { %v8262_v14 = vld [vmem:[#allocation4 + $0x1268] sm:$0xff] }
 0x6f4   :  { %11910 = vmatpush2.bf16.msra.mxu0 %v17321_v44  ;;  %v17402_v35 = vcombine.high %v8258_v50, %v8262_v14  ;;  %v8122_v44 = vld [vmem:[#allocation4 + $0xe08] sm:$0xff]  ;;  %v17401_v59 = vcombine.low %v8258_v50, %v8262_v14  ;;  %v7707_v14 = vld [vmem:[#allocation4 + $0x110] sm:$0xff] }
 0x6f5   :  { %11951 = vmatpush2.bf16.msra.mxu1 %v17449_v45  ;;  %11911 = vmatprep.subr.bf16.mxu0 %v17314_v22  ;;  %v8126_v45 = vld [vmem:[#allocation4 + $0xe28] sm:$0xff] }
 0x6f6   :  { %11952 = vmatprep.subr.bf16.mxu1 %v17442_v62  ;;  %v8250_v22 = vld [vmem:[#allocation4 + $0x1208] sm:$0xff]  ;;  %v17266_v48 = vcombine.high %v8122_v44, %v8126_v45  ;;  %v17265_v57 = vcombine.low %v8122_v44, %v8126_v45 }
 0x6f7   :  { %v8254_v62 = vld [vmem:[#allocation4 + $0x1228] sm:$0xff] }
 0x6f8   :  { %11912 = vmatpush2.bf16.msra.mxu0 %v17313_v37  ;;  %v17394_v55 = vcombine.high %v8250_v22, %v8254_v62  ;;  %v7731_v37 = vld [vmem:[#allocation4 + $0x1d0] sm:$0xff]  ;;  %v17393_v60 = vcombine.low %v8250_v22, %v8254_v62 }
 0x6f9   :  { %11953 = vmatpush2.bf16.msra.mxu1 %v17441_v49  ;;  %11913 = vmatprep.subr.bf16.mxu0 %v17306_v42  ;;  %v7735_v49 = vld [vmem:[#allocation4 + $0x1f0] sm:$0xff] }
 0x6fa   :  { %11954 = vmatprep.subr.bf16.mxu1 %v17434_v56  ;;  %v7859_v42 = vld [vmem:[#allocation4 + $0x5d0] sm:$0xff]  ;;  %v16876_v0 = vcombine.high %v7731_v37, %v7735_v49  ;;  %v16875_v5 = vcombine.low %v7731_v37, %v7735_v49 }
 0x6fb   :  { %v7863_v56 = vld [vmem:[#allocation4 + $0x5f0] sm:$0xff] }
 0x6fc   :  { %11914 = vmatpush2.bf16.msra.mxu0 %v17305_v13  ;;  %v17004_v3 = vcombine.high %v7859_v42, %v7863_v56  ;;  %v7723_v13 = vld [vmem:[#allocation4 + $0x190] sm:$0xff]  ;;  %v17003_v52 = vcombine.low %v7859_v42, %v7863_v56 }
 0x6fd   :  { %11955 = vmatpush2.bf16.msra.mxu1 %v17433_v1  ;;  %11915 = vmatprep.subr.bf16.mxu0 %v17298_v54  ;;  %v7727_v1 = vld [vmem:[#allocation4 + $0x1b0] sm:$0xff] }
 0x6fe   :  { %11956 = vmatprep.subr.bf16.mxu1 %v17426_v10  ;;  %v7851_v54 = vld [vmem:[#allocation4 + $0x590] sm:$0xff]  ;;  %v16868_v53 = vcombine.high %v7723_v13, %v7727_v1  ;;  %v16867_v26 = vcombine.low %v7723_v13, %v7727_v1 }
 0x6ff   :  { %v7855_v10 = vld [vmem:[#allocation4 + $0x5b0] sm:$0xff] }
 0x700   :  { %11916 = vmatpush2.bf16.msra.mxu0 %v17297_v8  ;;  %v16996_v6 = vcombine.high %v7851_v54, %v7855_v10  ;;  %v7715_v8 = vld [vmem:[#allocation4 + $0x150] sm:$0xff] }
 0x701   :  { %11957 = vmatpush2.bf16.msra.mxu1 %v17425_v9  ;;  %11917 = vmatprep.subr.bf16.mxu0 %v17290_v11  ;;  %v7719_v9 = vld [vmem:[#allocation4 + $0x170] sm:$0xff] }
 0x702   :  { %11958 = vmatprep.subr.bf16.mxu1 %v17418_v16  ;;  %v7843_v16 = vld [vmem:[#allocation4 + $0x550] sm:$0xff]  ;;  %v16859_v45 = vcombine.low %v7715_v8, %v7719_v9 }
 0x703   :  { %v16988_v50 = vcombine.high %v7843_v16, %v7847_v63  ;;  %v7827_v37 = vld [vmem:[#allocation4 + $0x4d0] sm:$0xff] }
 0x704   :  { %11918 = vmatpush2.bf16.msra.mxu0 %v17289_v47  ;;  %v7831_v49 = vld [vmem:[#allocation4 + $0x4f0] sm:$0xff] }
 0x705   :  { %11959 = vmatpush2.bf16.msra.mxu1 %v17417_v20  ;;  %11919 = vmatprep.subr.bf16.mxu0 %v17282_v21  ;;  %v16995_v20 = vcombine.low %v7851_v54, %v7855_v10  ;;  %v16860_v21 = vcombine.high %v7715_v8, %v7719_v9  ;;  %v7819_v13 = vld [vmem:[#allocation4 + $0x490] sm:$0xff]  ;;  %v16971_v10 = vcombine.low %v7827_v37, %v7831_v49 }
 0x706   :  { %11960 = vmatprep.subr.bf16.mxu1 %v17410_v24  ;;  %v7823_v1 = vld [vmem:[#allocation4 + $0x4b0] sm:$0xff] }
 0x707   :  { %v7811_v8 = vld [vmem:[#allocation4 + $0x450] sm:$0xff] }
 0x708   :  { %11920 = vmatpush2.bf16.msra.mxu0 %v17281_v15  ;;  %v7711_v15 = vld [vmem:[#allocation4 + $0x130] sm:$0xff] }
 0x709   :  { %11961 = vmatpush2.bf16.msra.mxu1 %v17409_v4  ;;  %11921 = vmatprep.subr.bf16.mxu0 %v17274_v30  ;;  %v7835_v4 = vld [vmem:[#allocation4 + $0x510] sm:$0xff]  ;;  %v16852_v62 = vcombine.high %v7707_v14, %v7711_v15  ;;  %v16851_v42 = vcombine.low %v7707_v14, %v7711_v15 }
 0x70a   :  { %11962 = vmatprep.subr.bf16.mxu1 %v17402_v35  ;;  %v7839_v30 = vld [vmem:[#allocation4 + $0x530] sm:$0xff] }
 0x70b   :  { %v16979_v56 = vcombine.low %v7835_v4, %v7839_v30  ;;  %v7815_v9 = vld [vmem:[#allocation4 + $0x470] sm:$0xff] }
 0x70c   :  { %11922 = vmatpush2.bf16.msra.mxu0 %v17273_v46  ;;  %v7795_v14 = vld [vmem:[#allocation4 + $0x3d0] sm:$0xff] }
 0x70d   :  { %11963 = vmatpush2.bf16.msra.mxu1 %v17401_v59  ;;  %11923 = vmatprep.subr.bf16.mxu0 %v17266_v48  ;;  %v16980_v59 = vcombine.high %v7835_v4, %v7839_v30  ;;  %v7699_v48 = vld [vmem:[#allocation4 + $0xd0] sm:$0xff] }
 0x70e   :  { %11964 = vmatprep.subr.bf16.mxu1 %v17394_v55  ;;  %v7703_v55 = vld [vmem:[#allocation4 + $0xf0] sm:$0xff] }
 0x70f   :  { %v16843_v54 = vcombine.low %v7699_v48, %v7703_v55  ;;  %v7799_v15 = vld [vmem:[#allocation4 + $0x3f0] sm:$0xff] }
 0x710   :  { %11924 = vmatpush2.bf16.msra.mxu0 %v17265_v57  ;;  %v16844_v57 = vcombine.high %v7699_v48, %v7703_v55  ;;  %v7927_v4 = vld [vmem:[#allocation4 + $0x7f0] sm:$0xff]  ;;  %v16939_v48 = vcombine.low %v7795_v14, %v7799_v15 }
 0x711   :  { %11965 = vmatpush2.bf16.msra.mxu1 %v17393_v60  ;;  %11975 = vmatprep.subr.bf16.mxu0 %v16876_v0  ;;  %v16972_v60 = vcombine.high %v7827_v37, %v7831_v49  ;;  %v7691_v0 = vld [vmem:[#allocation4 + $0x90] sm:$0xff] }
 0x712   :  { %12016 = vmatprep.subr.bf16.mxu1 %v17004_v3  ;;  %v7695_v3 = vld [vmem:[#allocation4 + $0xb0] sm:$0xff] }
 0x713   :  { %v11681_v11 = vpop.f32.mrf.mxu0  ;;  %11926 = vmatmul.mubr.bf16.vlgmr.msra.gmra.mxu0 %v20616_v19 }
 0x714   :  { %v11682_v61 = vadd.f32 %v11681_v11, %v20638_v33  ;;  %v11722_v25 = vpop.f32.mrf.mxu1  ;;  %11967 = vmatmul.mubr.bf16.vlgmr.msra.gmra.mxu1 %v20628_v2  ;;  %11976 = vmatpush1.bf16.msra.mxu0 %v16875_v5  ;;  %v16836_v5 = vcombine.high %v7691_v0, %v7695_v3  ;;  %v16835_v11 = vcombine.low %v7691_v0, %v7695_v3 }
 0x715   :  { %12017 = vmatpush1.bf16.msra.mxu1 %v17003_v52  ;;  %v11683_v47 = vpop.f32.mrf.mxu0  ;;  %11977 = vmatprep.subr.bf16.mxu0 %v16868_v53  ;;  %v16964_v52 = vcombine.high %v7819_v13, %v7823_v1  ;;  %v7683_v53 = vld [vmem:[#allocation4 + $0x50] sm:$0xff] }
 0x716   :  { %v20647_v24 = vadd.f32 %v11722_v25, %v11682_v61  ;;  %v11684_v28 = vadd.f32 %v11683_v47, %v20642_v27  ;;  %v11724_v38 = vpop.f32.mrf.mxu1  ;;  %12018 = vmatprep.subr.bf16.mxu1 %v16996_v6  ;;  %12007 = vmatprep.mubr.bf16.mxu0 %v20582_v23  ;;  %v16987_v27 = vcombine.low %v7843_v16, %v7847_v63  ;;  %v7687_v6 = vld [vmem:[#allocation4 + $0x70] sm:$0xff] }
 0x717   :  { %v11685_v33 = vpop.f32.mrf.mxu0  ;;  %12048 = vmatprep.mubr.bf16.mxu1 %v20586_v7  ;;  %v16963_v16 = vcombine.low %v7819_v13, %v7823_v1  ;;  %v16828_v63 = vcombine.high %v7683_v53, %v7687_v6  ;;  %v16956_v61 = vcombine.high %v7811_v8, %v7815_v9  ;;  %v7675_v25 = vld [vmem:[#allocation4 + $0x10] sm:$0xff] }
 0x718   :  { %v20652_v35 = vadd.f32 %v11724_v38, %v11684_v28  ;;  %v11726_v44 = vpop.f32.mrf.mxu1  ;;  %11978 = vmatpush1.bf16.msra.mxu0 %v16867_v26  ;;  %v7679_v26 = vld [vmem:[#allocation4 + $0x30] sm:$0xff]  ;;  %v16955_v28 = vcombine.low %v7811_v8, %v7815_v9 }
 0x719   :  { %12019 = vmatpush1.bf16.msra.mxu1 %v16995_v20  ;;  %v11686_v22 = vpop.f32.mrf.mxu0  ;;  %11979 = vmatprep.subr.bf16.mxu0 %v16860_v21  ;;  %v7803_v47 = vld [vmem:[#allocation4 + $0x410] sm:$0xff]  ;;  %v16827_v21 = vcombine.low %v7683_v53, %v7687_v6  ;;  %v16820_v38 = vcombine.high %v7675_v25, %v7679_v26  ;;  %v16819_v30 = vcombine.low %v7675_v25, %v7679_v26 }
 0x71a   :  { %v11727_v46 = vpop.f32.mrf.mxu1  ;;  %12020 = vmatprep.subr.bf16.mxu1 %v16988_v50  ;;  %v7807_v20 = vld [vmem:[#allocation4 + $0x430] sm:$0xff] }
 0x71b   :  { %v16948_v50 = vcombine.high %v7803_v47, %v7807_v20  ;;  %v7923_v33 = vld [vmem:[#allocation4 + $0x7d0] sm:$0xff]  ;;  %v16947_v44 = vcombine.low %v7803_v47, %v7807_v20 }
 0x71c   :  { %11980 = vmatpush1.bf16.msra.mxu0 %v16859_v45  ;;  %v16940_v45 = vcombine.high %v7795_v14, %v7799_v15  ;;  %v17068_v22 = vcombine.high %v7923_v33, %v7927_v4  ;;  %v7915_v46 = vld [vmem:[#allocation4 + $0x790] sm:$0xff]  ;;  %v17067_v55 = vcombine.low %v7923_v33, %v7927_v4 }
 0x71d   :  { %12021 = vmatpush1.bf16.msra.mxu1 %v16987_v27  ;;  %11981 = vmatprep.subr.bf16.mxu0 %v16852_v62  ;;  %v7787_v27 = vld [vmem:[#allocation4 + $0x390] sm:$0xff] }
 0x71e   :  { %12022 = vmatprep.subr.bf16.mxu1 %v16980_v59  ;;  %v7791_v62 = vld [vmem:[#allocation4 + $0x3b0] sm:$0xff] }
 0x71f   :  { %v7919_v59 = vld [vmem:[#allocation4 + $0x7b0] sm:$0xff]  ;;  %v16932_v37 = vcombine.high %v7787_v27, %v7791_v62  ;;  %v16931_v0 = vcombine.low %v7787_v27, %v7791_v62 }
 0x720   :  { %11982 = vmatpush1.bf16.msra.mxu0 %v16851_v42  ;;  %v17060_v49 = vcombine.high %v7915_v46, %v7919_v59  ;;  %v7779_v42 = vld [vmem:[#allocation4 + $0x350] sm:$0xff]  ;;  %v17059_v3 = vcombine.low %v7915_v46, %v7919_v59 }
 0x721   :  { %12023 = vmatpush1.bf16.msra.mxu1 %v16979_v56  ;;  %11983 = vmatprep.subr.bf16.mxu0 %v16844_v57  ;;  %v7783_v56 = vld [vmem:[#allocation4 + $0x370] sm:$0xff] }
 0x722   :  { %12024 = vmatprep.subr.bf16.mxu1 %v16972_v60  ;;  %v7907_v57 = vld [vmem:[#allocation4 + $0x750] sm:$0xff]  ;;  %v16924_v13 = vcombine.high %v7779_v42, %v7783_v56  ;;  %v16923_v53 = vcombine.low %v7779_v42, %v7783_v56 }
 0x723   :  { %v7911_v60 = vld [vmem:[#allocation4 + $0x770] sm:$0xff] }
 0x724   :  { %11984 = vmatpush1.bf16.msra.mxu0 %v16843_v54  ;;  %v17052_v1 = vcombine.high %v7907_v57, %v7911_v60  ;;  %v7771_v54 = vld [vmem:[#allocation4 + $0x310] sm:$0xff]  ;;  %v17051_v6 = vcombine.low %v7907_v57, %v7911_v60 }
 0x725   :  { %12025 = vmatpush1.bf16.msra.mxu1 %v16971_v10  ;;  %11985 = vmatprep.subr.bf16.mxu0 %v16836_v5  ;;  %v7775_v10 = vld [vmem:[#allocation4 + $0x330] sm:$0xff] }
 0x726   :  { %12026 = vmatprep.subr.bf16.mxu1 %v16964_v52  ;;  %v7899_v5 = vld [vmem:[#allocation4 + $0x710] sm:$0xff]  ;;  %v16916_v8 = vcombine.high %v7771_v54, %v7775_v10  ;;  %v16915_v25 = vcombine.low %v7771_v54, %v7775_v10 }
 0x727   :  { %v7903_v52 = vld [vmem:[#allocation4 + $0x730] sm:$0xff] }
 0x728   :  { %11986 = vmatpush1.bf16.msra.mxu0 %v16835_v11  ;;  %v17044_v9 = vcombine.high %v7899_v5, %v7903_v52  ;;  %v7763_v11 = vld [vmem:[#allocation4 + $0x2d0] sm:$0xff]  ;;  %v17043_v26 = vcombine.low %v7899_v5, %v7903_v52 }
 0x729   :  { %12027 = vmatpush1.bf16.msra.mxu1 %v16963_v16  ;;  %11987 = vmatprep.subr.bf16.mxu0 %v16828_v63  ;;  %v7767_v16 = vld [vmem:[#allocation4 + $0x2f0] sm:$0xff] }
 0x72a   :  { %12028 = vmatprep.subr.bf16.mxu1 %v16956_v61  ;;  %v7891_v63 = vld [vmem:[#allocation4 + $0x6d0] sm:$0xff]  ;;  %v16908_v47 = vcombine.high %v7763_v11, %v7767_v16  ;;  %v16907_v14 = vcombine.low %v7763_v11, %v7767_v16 }
 0x72b   :  { %v7895_v61 = vld [vmem:[#allocation4 + $0x6f0] sm:$0xff] }
 0x72c   :  { %11988 = vmatpush1.bf16.msra.mxu0 %v16827_v21  ;;  %v17036_v20 = vcombine.high %v7891_v63, %v7895_v61  ;;  %v7755_v21 = vld [vmem:[#allocation4 + $0x290] sm:$0xff]  ;;  %v17035_v15 = vcombine.low %v7891_v63, %v7895_v61 }
 0x72d   :  { %12029 = vmatpush1.bf16.msra.mxu1 %v16955_v28  ;;  %11989 = vmatprep.subr.bf16.mxu0 %v16820_v38  ;;  %v7759_v28 = vld [vmem:[#allocation4 + $0x2b0] sm:$0xff] }
 0x72e   :  { %12030 = vmatprep.subr.bf16.mxu1 %v16948_v50  ;;  %v7883_v38 = vld [vmem:[#allocation4 + $0x690] sm:$0xff]  ;;  %v16900_v33 = vcombine.high %v7755_v21, %v7759_v28  ;;  %v16899_v27 = vcombine.low %v7755_v21, %v7759_v28 }
 0x72f   :  { %v7887_v50 = vld [vmem:[#allocation4 + $0x6b0] sm:$0xff] }
 0x730   :  { %11990 = vmatpush1.bf16.msra.mxu0 %v16819_v30  ;;  %v17028_v4 = vcombine.high %v7883_v38, %v7887_v50  ;;  %v7747_v30 = vld [vmem:[#allocation4 + $0x250] sm:$0xff]  ;;  %v17027_v62 = vcombine.low %v7883_v38, %v7887_v50 }
 0x731   :  { %12031 = vmatpush1.bf16.msra.mxu1 %v16947_v44  ;;  %11991 = vmatprep.subr.bf16.mxu0 %v16940_v45  ;;  %v7751_v44 = vld [vmem:[#allocation4 + $0x270] sm:$0xff] }
 0x732   :  { %12032 = vmatprep.subr.bf16.mxu1 %v17068_v22  ;;  %v7875_v45 = vld [vmem:[#allocation4 + $0x650] sm:$0xff]  ;;  %v16892_v46 = vcombine.high %v7747_v30, %v7751_v44  ;;  %v16891_v42 = vcombine.low %v7747_v30, %v7751_v44 }
 0x733   :  { %v7879_v22 = vld [vmem:[#allocation4 + $0x670] sm:$0xff] }
 0x734   :  { %11992 = vmatpush2.bf16.msra.mxu0 %v16939_v48  ;;  %v17020_v59 = vcombine.high %v7875_v45, %v7879_v22  ;;  %v7739_v48 = vld [vmem:[#allocation4 + $0x210] sm:$0xff]  ;;  %v17019_v56 = vcombine.low %v7875_v45, %v7879_v22 }
 0x735   :  { %12033 = vmatpush2.bf16.msra.mxu1 %v17067_v55  ;;  %11993 = vmatprep.subr.bf16.mxu0 %v16932_v37  ;;  %v7743_v55 = vld [vmem:[#allocation4 + $0x230] sm:$0xff] }
 0x736   :  { %12034 = vmatprep.subr.bf16.mxu1 %v17060_v49  ;;  %v7867_v37 = vld [vmem:[#allocation4 + $0x610] sm:$0xff]  ;;  %v16884_v57 = vcombine.high %v7739_v48, %v7743_v55  ;;  %v16883_v54 = vcombine.low %v7739_v48, %v7743_v55 }
 0x737   :  { %v7871_v49 = vld [vmem:[#allocation4 + $0x630] sm:$0xff] }
 0x738   :  { %11994 = vmatpush2.bf16.msra.mxu0 %v16931_v0  ;;  %v17012_v60 = vcombine.high %v7867_v37, %v7871_v49  ;;  %v7987_v0 = vld [vmem:[#allocation4 + $0x9d0] sm:$0xff]  ;;  %v17011_v10 = vcombine.low %v7867_v37, %v7871_v49 }
 0x739   :  { %12035 = vmatpush2.bf16.msra.mxu1 %v17059_v3  ;;  %11995 = vmatprep.subr.bf16.mxu0 %v16924_v13  ;;  %v7991_v3 = vld [vmem:[#allocation4 + $0x9f0] sm:$0xff] }
 0x73a   :  { %12036 = vmatprep.subr.bf16.mxu1 %v17052_v1  ;;  %v8115_v13 = vld [vmem:[#allocation4 + $0xdd0] sm:$0xff]  ;;  %v17132_v5 = vcombine.high %v7987_v0, %v7991_v3  ;;  %v17131_v11 = vcombine.low %v7987_v0, %v7991_v3 }
 0x73b   :  { %v8119_v1 = vld [vmem:[#allocation4 + $0xdf0] sm:$0xff] }
 0x73c   :  { %11996 = vmatpush2.bf16.msra.mxu0 %v16923_v53  ;;  %v17260_v52 = vcombine.high %v8115_v13, %v8119_v1  ;;  %v7979_v53 = vld [vmem:[#allocation4 + $0x990] sm:$0xff]  ;;  %v17259_v16 = vcombine.low %v8115_v13, %v8119_v1 }
 0x73d   :  { %12037 = vmatpush2.bf16.msra.mxu1 %v17051_v6  ;;  %11997 = vmatprep.subr.bf16.mxu0 %v16916_v8  ;;  %v7983_v6 = vld [vmem:[#allocation4 + $0x9b0] sm:$0xff] }
 0x73e   :  { %12038 = vmatprep.subr.bf16.mxu1 %v17044_v9  ;;  %v8107_v8 = vld [vmem:[#allocation4 + $0xd90] sm:$0xff]  ;;  %v17124_v63 = vcombine.high %v7979_v53, %v7983_v6  ;;  %v17123_v50 = vcombine.low %v7979_v53, %v7983_v6 }
 0x73f   :  { %v8111_v9 = vld [vmem:[#allocation4 + $0xdb0] sm:$0xff] }
 0x740   :  { %11998 = vmatpush2.bf16.msra.mxu0 %v16915_v25  ;;  %v17252_v61 = vcombine.high %v8107_v8, %v8111_v9  ;;  %v7971_v25 = vld [vmem:[#allocation4 + $0x950] sm:$0xff] }
 0x741   :  { %12039 = vmatpush2.bf16.msra.mxu1 %v17043_v26  ;;  %11999 = vmatprep.subr.bf16.mxu0 %v16908_v47  ;;  %v7975_v26 = vld [vmem:[#allocation4 + $0x970] sm:$0xff] }
 0x742   :  { %12040 = vmatprep.subr.bf16.mxu1 %v17036_v20  ;;  %v8099_v20 = vld [vmem:[#allocation4 + $0xd50] sm:$0xff]  ;;  %v17115_v37 = vcombine.low %v7971_v25, %v7975_v26 }
 0x743   :  { %v8103_v21 = vld [vmem:[#allocation4 + $0xd70] sm:$0xff] }
 0x744   :  { %12000 = vmatpush2.bf16.msra.mxu0 %v16907_v14  ;;  %v17244_v45 = vcombine.high %v8099_v20, %v8103_v21  ;;  %v7963_v22 = vld [vmem:[#allocation4 + $0x910] sm:$0xff]  ;;  %v17243_v49 = vcombine.low %v8099_v20, %v8103_v21 }
 0x745   :  { %12041 = vmatpush2.bf16.msra.mxu1 %v17035_v15  ;;  %12001 = vmatprep.subr.bf16.mxu0 %v16900_v33  ;;  %v17251_v15 = vcombine.low %v8107_v8, %v8111_v9  ;;  %v17116_v33 = vcombine.high %v7971_v25, %v7975_v26  ;;  %v7955_v0 = vld [vmem:[#allocation4 + $0x8d0] sm:$0xff] }
 0x746   :  { %12042 = vmatprep.subr.bf16.mxu1 %v17028_v4  ;;  %v7959_v3 = vld [vmem:[#allocation4 + $0x8f0] sm:$0xff] }
 0x747   :  { %v8083_v13 = vld [vmem:[#allocation4 + $0xcd0] sm:$0xff] }
 0x748   :  { %12002 = vmatpush2.bf16.msra.mxu0 %v16899_v27  ;;  %v8087_v1 = vld [vmem:[#allocation4 + $0xcf0] sm:$0xff] }
 0x749   :  { %12043 = vmatpush2.bf16.msra.mxu1 %v17027_v62  ;;  %12003 = vmatprep.subr.bf16.mxu0 %v16892_v46  ;;  %v8091_v62 = vld [vmem:[#allocation4 + $0xd10] sm:$0xff] }
 0x74a   :  { %12044 = vmatprep.subr.bf16.mxu1 %v17020_v59  ;;  %v8095_v46 = vld [vmem:[#allocation4 + $0xd30] sm:$0xff] }
 0x74b   :  { %v7947_v53 = vld [vmem:[#allocation4 + $0x890] sm:$0xff] }
 0x74c   :  { %12004 = vmatpush2.bf16.msra.mxu0 %v16891_v42  ;;  %v7951_v6 = vld [vmem:[#allocation4 + $0x8b0] sm:$0xff] }
 0x74d   :  { %12045 = vmatpush2.bf16.msra.mxu1 %v17019_v56  ;;  %12005 = vmatprep.subr.bf16.mxu0 %v16884_v57  ;;  %v8075_v8 = vld [vmem:[#allocation4 + $0xc90] sm:$0xff]  ;;  %v17091_v21 = vcombine.low %v7947_v53, %v7951_v6 }
 0x74e   :  { %12046 = vmatprep.subr.bf16.mxu1 %v17012_v60  ;;  %v17236_v60 = vcombine.high %v8091_v62, %v8095_v46  ;;  %v8079_v9 = vld [vmem:[#allocation4 + $0xcb0] sm:$0xff] }
 0x74f   :  { %v7939_v25 = vld [vmem:[#allocation4 + $0x850] sm:$0xff] }
 0x750   :  { %12006 = vmatpush2.bf16.msra.mxu0 %v16883_v54  ;;  %v7943_v26 = vld [vmem:[#allocation4 + $0x870] sm:$0xff] }
 0x751   :  { %12047 = vmatpush2.bf16.msra.mxu1 %v17011_v10  ;;  %12057 = vmatprep.subr.bf16.mxu0 %v17132_v5  ;;  %v17235_v10 = vcombine.low %v8091_v62, %v8095_v46  ;;  %v17100_v5 = vcombine.high %v7955_v0, %v7959_v3  ;;  %v8071_v20 = vld [vmem:[#allocation4 + $0xc70] sm:$0xff] }
 0x752   :  { %12098 = vmatprep.subr.bf16.mxu1 %v17260_v52  ;;  %v17228_v52 = vcombine.high %v8083_v13, %v8087_v1  ;;  %v8051_v62 = vld [vmem:[#allocation4 + $0xbd0] sm:$0xff] }
 0x753   :  { %v11763_v47 = vpop.f32.mrf.mxu0  ;;  %12008 = vmatmul.mubr.bf16.vlgmr.msra.gmra.mxu0 %v20592_v32  ;;  %v8055_v46 = vld [vmem:[#allocation4 + $0xbf0] sm:$0xff] }
 0x754   :  { %v11764_v28 = vadd.f32 %v11763_v47, %v20647_v24  ;;  %v20656_v38 = vpop.f32.mrf.mxu1  ;;  %12049 = vmatmul.mubr.bf16.vlgmr.msra.gmra.mxu1 %v20596_v43  ;;  %12058 = vmatpush1.bf16.msra.mxu0 %v17131_v11  ;;  %v7967_v24 = vld [vmem:[#allocation4 + $0x930] sm:$0xff]  ;;  %v17099_v11 = vcombine.low %v7955_v0, %v7959_v3 }
 0x755   :  { %12099 = vmatpush1.bf16.msra.mxu1 %v17259_v16  ;;  %v11765_v14 = vpop.f32.mrf.mxu0  ;;  %12059 = vmatprep.subr.bf16.mxu0 %v17124_v63  ;;  %v17108_v42 = vcombine.high %v7963_v22, %v7967_v24  ;;  %v17107_v54 = vcombine.low %v7963_v22, %v7967_v24  ;;  %v17227_v16 = vcombine.low %v8083_v13, %v8087_v1  ;;  %v8067_v47 = vld [vmem:[#allocation4 + $0xc50] sm:$0xff] }
 0x756   :  { %v12385_v4 = vmul.f32 0.01, %v11764_v28  ;;  %v11766_v30 = vadd.f32 %v11765_v14, %v20652_v35  ;;  %v20660_v44 = vpop.f32.mrf.mxu1  ;;  %12100 = vmatprep.subr.bf16.mxu1 %v17252_v61  ;;  %12089 = vmatprep.mubr.bf16.mxu0 %v20600_v34  ;;  %v17092_v63 = vcombine.high %v7947_v53, %v7951_v6  ;;  %v17220_v61 = vcombine.high %v8075_v8, %v8079_v9  ;;  %v8171_v0 = vld [vmem:[#allocation4 + $0xf90] sm:$0xff] }
 0x757   :  { %v11767_v27 = vpop.f32.mrf.mxu0  ;;  %12130 = vmatprep.mubr.bf16.mxu1 %v20605_v39  ;;  %v17212_v14 = vcombine.high %v8067_v47, %v8071_v20  ;;  %v17211_v22 = vcombine.low %v8067_v47, %v8071_v20  ;;  %v8175_v3 = vld [vmem:[#allocation4 + $0xfb0] sm:$0xff]  ;;  %v17195_v13 = vcombine.low %v8051_v62, %v8055_v46 }
 0x758   :  { %v20664_v59 = vmax.f32 %v11764_v28, %v12385_v4  ;;  %v12386_v48 = vmul.f32 0.01, %v11766_v30  ;;  %v11808_v55 = vpop.f32.mrf.mxu1  ;;  %12060 = vmatpush1.bf16.msra.mxu0 %v17123_v50  ;;  %v17219_v28 = vcombine.low %v8075_v8, %v8079_v9  ;;  %v17084_v50 = vcombine.high %v7939_v25, %v7943_v26  ;;  %v8059_v4 = vld [vmem:[#allocation4 + $0xc10] sm:$0xff] }
 0x759   :  { %12101 = vmatpush1.bf16.msra.mxu1 %v17251_v15  ;;  %v11768_v35 = vpop.f32.mrf.mxu0  ;;  %12061 = vmatprep.subr.bf16.mxu0 %v17116_v33  ;;  %v7931_v15 = vld [vmem:[#allocation4 + $0x810] sm:$0xff]  ;;  %v17315_v9 = vcombine.low %v8171_v0, %v8175_v3 }
 0x75a   :  { %v20666_v56 = vmax.f32 %v11766_v30, %v12386_v48  ;;  %v11809_v57 = vpop.f32.mrf.mxu1  ;;  %12102 = vmatprep.subr.bf16.mxu1 %v17244_v45  ;;  %v7935_v33 = vld [vmem:[#allocation4 + $0x830] sm:$0xff]  ;;  %v17083_v45 = vcombine.low %v7939_v25, %v7943_v26 }
 0x75b   :  { %v8063_v30 = vld [vmem:[#allocation4 + $0xc30] sm:$0xff]  ;;  %v17076_v24 = vcombine.high %v7931_v15, %v7935_v33 }
 0x75c   :  { %12062 = vmatpush1.bf16.msra.mxu0 %v17115_v37  ;;  %v17204_v27 = vcombine.high %v8059_v4, %v8063_v30  ;;  %v8179_v48 = vld [vmem:[#allocation4 + $0xfd0] sm:$0xff]  ;;  %v17075_v37 = vcombine.low %v7931_v15, %v7935_v33  ;;  %v17203_v35 = vcombine.low %v8059_v4, %v8063_v30 }
 0x75d   :  { %12103 = vmatpush1.bf16.msra.mxu1 %v17243_v49  ;;  %12063 = vmatprep.subr.bf16.mxu0 %v17108_v42  ;;  %v8183_v55 = vld [vmem:[#allocation4 + $0xff0] sm:$0xff]  ;;  %v17196_v49 = vcombine.high %v8051_v62, %v8055_v46 }
 0x75e   :  { %12104 = vmatprep.subr.bf16.mxu1 %v17236_v60  ;;  %v17324_v42 = vcombine.high %v8179_v48, %v8183_v55  ;;  %v8043_v57 = vld [vmem:[#allocation4 + $0xb90] sm:$0xff]  ;;  %v17323_v1 = vcombine.low %v8179_v48, %v8183_v55 }
 0x75f   :  { %v8047_v60 = vld [vmem:[#allocation4 + $0xbb0] sm:$0xff] }
 0x760   :  { %12064 = vmatpush1.bf16.msra.mxu0 %v17107_v54  ;;  %v17188_v54 = vcombine.high %v8043_v57, %v8047_v60  ;;  %v8163_v53 = vld [vmem:[#allocation4 + $0xf50] sm:$0xff]  ;;  %v17187_v8 = vcombine.low %v8043_v57, %v8047_v60 }
 0x761   :  { %12105 = vmatpush1.bf16.msra.mxu1 %v17235_v10  ;;  %12065 = vmatprep.subr.bf16.mxu0 %v17100_v5  ;;  %v17316_v10 = vcombine.high %v8171_v0, %v8175_v3  ;;  %v8035_v5 = vld [vmem:[#allocation4 + $0xb50] sm:$0xff] }
 0x762   :  { %12106 = vmatprep.subr.bf16.mxu1 %v17228_v52  ;;  %v8039_v52 = vld [vmem:[#allocation4 + $0xb70] sm:$0xff] }
 0x763   :  { %v8167_v6 = vld [vmem:[#allocation4 + $0xf70] sm:$0xff]  ;;  %v17179_v47 = vcombine.low %v8035_v5, %v8039_v52 }
 0x764   :  { %12066 = vmatpush1.bf16.msra.mxu0 %v17099_v11  ;;  %v17180_v11 = vcombine.high %v8035_v5, %v8039_v52  ;;  %v8155_v25 = vld [vmem:[#allocation4 + $0xf10] sm:$0xff]  ;;  %v17307_v20 = vcombine.low %v8163_v53, %v8167_v6 }
 0x765   :  { %12107 = vmatpush1.bf16.msra.mxu1 %v17227_v16  ;;  %12067 = vmatprep.subr.bf16.mxu0 %v17092_v63  ;;  %v17308_v16 = vcombine.high %v8163_v53, %v8167_v6  ;;  %v8027_v63 = vld [vmem:[#allocation4 + $0xb10] sm:$0xff] }
 0x766   :  { %12108 = vmatprep.subr.bf16.mxu1 %v17220_v61  ;;  %v8031_v61 = vld [vmem:[#allocation4 + $0xb30] sm:$0xff] }
 0x767   :  { %v8159_v26 = vld [vmem:[#allocation4 + $0xf30] sm:$0xff]  ;;  %v17171_v4 = vcombine.low %v8027_v63, %v8031_v61 }
 0x768   :  { %12068 = vmatpush1.bf16.msra.mxu0 %v17091_v21  ;;  %v17172_v21 = vcombine.high %v8027_v63, %v8031_v61  ;;  %v8147_v15 = vld [vmem:[#allocation4 + $0xed0] sm:$0xff]  ;;  %v17299_v30 = vcombine.low %v8155_v25, %v8159_v26  ;;  %v7732_v63 = vld [vmem:[#allocation4 + $0x1d8] sm:$0xff] }
 0x769   :  { %12109 = vmatpush1.bf16.msra.mxu1 %v17219_v28  ;;  %12069 = vmatprep.subr.bf16.mxu0 %v17084_v50  ;;  %v17300_v28 = vcombine.high %v8155_v25, %v8159_v26  ;;  %v8019_v50 = vld [vmem:[#allocation4 + $0xad0] sm:$0xff]  ;;  %v7736_v61 = vld [vmem:[#allocation4 + $0x1f8] sm:$0xff] }
 0x76a   :  { %12110 = vmatprep.subr.bf16.mxu1 %v17212_v14  ;;  %v8023_v14 = vld [vmem:[#allocation4 + $0xaf0] sm:$0xff] }
 0x76b   :  { %v8151_v33 = vld [vmem:[#allocation4 + $0xef0] sm:$0xff]  ;;  %v17163_v48 = vcombine.low %v8019_v50, %v8023_v14 }
 0x76c   :  { %12070 = vmatpush1.bf16.msra.mxu0 %v17083_v45  ;;  %v17164_v45 = vcombine.high %v8019_v50, %v8023_v14  ;;  %v8139_v62 = vld [vmem:[#allocation4 + $0xe90] sm:$0xff]  ;;  %v17291_v55 = vcombine.low %v8147_v15, %v8151_v33 }
 0x76d   :  { %12111 = vmatpush1.bf16.msra.mxu1 %v17211_v22  ;;  %12071 = vmatprep.subr.bf16.mxu0 %v17076_v24  ;;  %v17292_v22 = vcombine.high %v8147_v15, %v8151_v33  ;;  %v8011_v24 = vld [vmem:[#allocation4 + $0xa90] sm:$0xff]  ;;  %v7724_v15 = vld [vmem:[#allocation4 + $0x198] sm:$0xff] }
 0x76e   :  { %12112 = vmatprep.subr.bf16.mxu1 %v17204_v27  ;;  %v8015_v27 = vld [vmem:[#allocation4 + $0xab0] sm:$0xff]  ;;  %v7728_v33 = vld [vmem:[#allocation4 + $0x1b8] sm:$0xff] }
 0x76f   :  { %v8143_v46 = vld [vmem:[#allocation4 + $0xeb0] sm:$0xff]  ;;  %v17155_v0 = vcombine.low %v8011_v24, %v8015_v27 }
 0x770   :  { %12072 = vmatpush1.bf16.msra.mxu0 %v17075_v37  ;;  %v17156_v37 = vcombine.high %v8011_v24, %v8015_v27  ;;  %v8131_v57 = vld [vmem:[#allocation4 + $0xe50] sm:$0xff]  ;;  %v17283_v3 = vcombine.low %v8139_v62, %v8143_v46  ;;  %v16870_v27 = vcombine.high %v7724_v15, %v7728_v33 }
 0x771   :  { %12113 = vmatpush1.bf16.msra.mxu1 %v17203_v35  ;;  %12073 = vmatprep.subr.bf16.mxu0 %v17196_v49  ;;  %v17284_v35 = vcombine.high %v8139_v62, %v8143_v46  ;;  %v8003_v49 = vld [vmem:[#allocation4 + $0xa50] sm:$0xff] }
 0x772   :  { %12114 = vmatprep.subr.bf16.mxu1 %v17324_v42  ;;  %v8007_v42 = vld [vmem:[#allocation4 + $0xa70] sm:$0xff] }
 0x773   :  { %v8135_v60 = vld [vmem:[#allocation4 + $0xe70] sm:$0xff]  ;;  %v17147_v53 = vcombine.low %v8003_v49, %v8007_v42 }
 0x774   :  { %12074 = vmatpush2.bf16.msra.mxu0 %v17195_v13  ;;  %v17148_v13 = vcombine.high %v8003_v49, %v8007_v42  ;;  %v8123_v5 = vld [vmem:[#allocation4 + $0xe10] sm:$0xff]  ;;  %v17275_v6 = vcombine.low %v8131_v57, %v8135_v60 }
 0x775   :  { %12115 = vmatpush2.bf16.msra.mxu1 %v17323_v1  ;;  %12075 = vmatprep.subr.bf16.mxu0 %v17188_v54  ;;  %v17276_v1 = vcombine.high %v8131_v57, %v8135_v60  ;;  %v7995_v54 = vld [vmem:[#allocation4 + $0xa10] sm:$0xff] }
 0x776   :  { %12116 = vmatprep.subr.bf16.mxu1 %v17316_v10  ;;  %v7999_v10 = vld [vmem:[#allocation4 + $0xa30] sm:$0xff] }
 0x777   :  { %v8127_v52 = vld [vmem:[#allocation4 + $0xe30] sm:$0xff]  ;;  %v17139_v25 = vcombine.low %v7995_v54, %v7999_v10 }
 0x778   :  { %12076 = vmatpush2.bf16.msra.mxu0 %v17187_v8  ;;  %v17140_v8 = vcombine.high %v7995_v54, %v7999_v10  ;;  %v17267_v26 = vcombine.low %v8123_v5, %v8127_v52  ;;  %v8235_v50 = vld [vmem:[#allocation4 + $0x1190] sm:$0xff] }
 0x779   :  { %12117 = vmatpush2.bf16.msra.mxu1 %v17315_v9  ;;  %12077 = vmatprep.subr.bf16.mxu0 %v17180_v11  ;;  %v17268_v9 = vcombine.high %v8123_v5, %v8127_v52  ;;  %v8243_v11 = vld [vmem:[#allocation4 + $0x11d0] sm:$0xff]  ;;  %v7708_v52 = vld [vmem:[#allocation4 + $0x118] sm:$0xff] }
 0x77a   :  { %12118 = vmatprep.subr.bf16.mxu1 %v17308_v16  ;;  %v8247_v16 = vld [vmem:[#allocation4 + $0x11f0] sm:$0xff] }
 0x77b   :  { %v8239_v14 = vld [vmem:[#allocation4 + $0x11b0] sm:$0xff] }
 0x77c   :  { %12078 = vmatpush2.bf16.msra.mxu0 %v17179_v47  ;;  %v17388_v47 = vcombine.high %v8243_v11, %v8247_v16  ;;  %v8227_v62 = vld [vmem:[#allocation4 + $0x1150] sm:$0xff]  ;;  %v17379_v57 = vcombine.low %v8235_v50, %v8239_v14 }
 0x77d   :  { %12119 = vmatpush2.bf16.msra.mxu1 %v17307_v20  ;;  %12079 = vmatprep.subr.bf16.mxu0 %v17172_v21  ;;  %v20668_v20 = vld [vmem:[#allocation11 + $0x16] sm:$0xff]  ;;  %v8231_v46 = vld [vmem:[#allocation4 + $0x1170] sm:$0xff] }
 0x77e   :  { %12120 = vmatprep.subr.bf16.mxu1 %v17300_v28  ;;  %v8336_v21 = vrot.slane %v20668_v20, %v20334_v36  ;;  %v16878_v28 = vcombine.high %v7732_v63, %v7736_v61  ;;  %v8219_v10 = vld [vmem:[#allocation4 + $0x1110] sm:$0xff] }
 0x77f   :  { %v8223_v5 = vld [vmem:[#allocation4 + $0x1130] sm:$0xff] }
 0x780   :  { %12080 = vmatpush2.bf16.msra.mxu0 %v17171_v4  ;;  %v8340_v4 = vrot.slane %v20668_v20, %v20336_v40  ;;  %v11805_v24 = vadd.f32 %v20656_v38, %v8336_v21  ;;  %v16869_v38 = vcombine.low %v7724_v15, %v7728_v33  ;;  %v7700_v21 = vld [vmem:[#allocation4 + $0xd8] sm:$0xff]  ;;  %v8203_v33 = vld [vmem:[#allocation4 + $0x1090] sm:$0xff] }
 0x781   :  { %12121 = vmatpush2.bf16.msra.mxu1 %v17299_v30  ;;  %12081 = vmatprep.subr.bf16.mxu0 %v17164_v45  ;;  %v17387_v30 = vcombine.low %v8243_v11, %v8247_v16  ;;  %v16877_v45 = vcombine.low %v7732_v63, %v7736_v61  ;;  %v17364_v63 = vcombine.high %v8219_v10, %v8223_v5 }
 0x782   :  { %12122 = vmatprep.subr.bf16.mxu1 %v17292_v22  ;;  %v17380_v22 = vcombine.high %v8235_v50, %v8239_v14  ;;  %v17363_v50 = vcombine.low %v8219_v10, %v8223_v5 }
 0x784   :  { %12082 = vmatpush2.bf16.msra.mxu0 %v17163_v48 }
 0x785   :  { %12123 = vmatpush2.bf16.msra.mxu1 %v17291_v55  ;;  %12083 = vmatprep.subr.bf16.mxu0 %v17156_v37  ;;  %v7716_v55 = vld [vmem:[#allocation4 + $0x158] sm:$0xff] }
 0x786   :  { %12124 = vmatprep.subr.bf16.mxu1 %v17284_v35  ;;  %v7720_v37 = vld [vmem:[#allocation4 + $0x178] sm:$0xff]  ;;  %v11807_v35 = vadd.f32 %v20660_v44, %v8340_v4  ;;  %v8207_v4 = vld [vmem:[#allocation4 + $0x10b0] sm:$0xff] }
 0x787   :  { %v16862_v54 = vcombine.high %v7716_v55, %v7720_v37  ;;  %v16861_v16 = vcombine.low %v7716_v55, %v7720_v37  ;;  %v7684_v55 = vld [vmem:[#allocation4 + $0x58] sm:$0xff] }
 0x788   :  { %12084 = vmatpush2.bf16.msra.mxu0 %v17155_v0  ;;  %v17372_v0 = vcombine.high %v8227_v62, %v8231_v46  ;;  %v7688_v37 = vld [vmem:[#allocation4 + $0x78] sm:$0xff] }
 0x789   :  { %12125 = vmatpush2.bf16.msra.mxu1 %v17283_v3  ;;  %12085 = vmatprep.subr.bf16.mxu0 %v17148_v13 }
 0x78a   :  { %12126 = vmatprep.subr.bf16.mxu1 %v17276_v1 }
 0x78c   :  { %12086 = vmatpush2.bf16.msra.mxu0 %v17147_v53  ;;  %v7712_v53 = vld [vmem:[#allocation4 + $0x138] sm:$0xff] }
 0x78d   :  { %12127 = vmatpush2.bf16.msra.mxu1 %v17275_v6  ;;  %12087 = vmatprep.subr.bf16.mxu0 %v17140_v8 }
 0x78e   :  { %12128 = vmatprep.subr.bf16.mxu1 %v17268_v9  ;;  %v17371_v9 = vcombine.low %v8227_v62, %v8231_v46  ;;  %v8195_v46 = vld [vmem:[#allocation4 + $0x1050] sm:$0xff] }
 0x790   :  { %12088 = vmatpush2.bf16.msra.mxu0 %v17139_v25  ;;  %v16854_v25 = vcombine.high %v7708_v52, %v7712_v53 }
 0x791   :  { %12129 = vmatpush2.bf16.msra.mxu1 %v17267_v26  ;;  %12139 = vmatprep.subr.bf16.mxu0 %v17388_v47  ;;  %v8211_v26 = vld [vmem:[#allocation4 + $0x10d0] sm:$0xff] }
 0x792   :  { %12180 = vmatprep.subr.bf16.mxu1 %v16878_v28  ;;  %v8215_v47 = vld [vmem:[#allocation4 + $0x10f0] sm:$0xff]  ;;  %v7704_v28 = vld [vmem:[#allocation4 + $0xf8] sm:$0xff] }
 0x793   :  { %v11845_v48 = vpop.f32.mrf.mxu0  ;;  %12090 = vmatmul.mubr.bf16.vlgmr.msra.gmra.mxu0 %v20612_v18  ;;  %v17356_v14 = vcombine.high %v8211_v26, %v8215_v47  ;;  %v16846_v15 = vcombine.high %v7700_v21, %v7704_v28 }
 0x794   :  { %v11846_v49 = vadd.f32 %v11845_v48, %v11805_v24  ;;  %v11886_v42 = vpop.f32.mrf.mxu1  ;;  %12131 = vmatmul.mubr.bf16.vlgmr.msra.gmra.mxu1 %v20616_v19  ;;  %12140 = vmatpush1.bf16.msra.mxu0 %v17387_v30  ;;  %v7692_v30 = vld [vmem:[#allocation4 + $0x98] sm:$0xff]  ;;  %v16845_v24 = vcombine.low %v7700_v21, %v7704_v28  ;;  %v8199_v48 = vld [vmem:[#allocation4 + $0x1070] sm:$0xff] }
 0x795   :  { %12181 = vmatpush1.bf16.msra.mxu1 %v16877_v45  ;;  %v11847_v60 = vpop.f32.mrf.mxu0  ;;  %12141 = vmatprep.subr.bf16.mxu0 %v17380_v22  ;;  %v7696_v45 = vld [vmem:[#allocation4 + $0xb8] sm:$0xff]  ;;  %v17355_v22 = vcombine.low %v8211_v26, %v8215_v47 }
 0x796   :  { %v20678_v3 = vadd.f32 %v11886_v42, %v11846_v49  ;;  %v11848_v13 = vadd.f32 %v11847_v60, %v11807_v35  ;;  %v11888_v1 = vpop.f32.mrf.mxu1  ;;  %12182 = vmatprep.subr.bf16.mxu1 %v16870_v27  ;;  %12171 = vmatprep.mubr.bf16.mxu0 %v20620_v41  ;;  %v17348_v27 = vcombine.high %v8203_v33, %v8207_v4  ;;  %v8187_v60 = vld [vmem:[#allocation4 + $0x1010] sm:$0xff]  ;;  %v7788_v26 = vld [vmem:[#allocation4 + $0x398] sm:$0xff] }
 0x797   :  { %v11849_v44 = vpop.f32.mrf.mxu0  ;;  %12212 = vmatprep.mubr.bf16.mxu1 %v20582_v23  ;;  %v16853_v23 = vcombine.low %v7708_v52, %v7712_v53  ;;  %v16838_v62 = vcombine.high %v7692_v30, %v7696_v45  ;;  %v17347_v35 = vcombine.low %v8203_v33, %v8207_v4  ;;  %v16837_v49 = vcombine.low %v7692_v30, %v7696_v45  ;;  %v8311_v52 = vld [vmem:[#allocation4 + $0x13f0] sm:$0xff]  ;;  %v7796_v53 = vld [vmem:[#allocation4 + $0x3d8] sm:$0xff] }
 0x798   :  { %v20682_v6 = vadd.f32 %v11888_v1, %v11848_v13  ;;  %v11890_v8 = vpop.f32.mrf.mxu1  ;;  %12142 = vmatpush1.bf16.msra.mxu0 %v17379_v57  ;;  %v17340_v42 = vcombine.high %v8195_v46, %v8199_v48  ;;  %v16830_v57 = vcombine.high %v7684_v55, %v7688_v37  ;;  %v7680_v13 = vld [vmem:[#allocation4 + $0x38] sm:$0xff]  ;;  %v17339_v1 = vcombine.low %v8195_v46, %v8199_v48  ;;  %v8307_v44 = vld [vmem:[#allocation4 + $0x13d0] sm:$0xff] }
 0x799   :  { %12183 = vmatpush1.bf16.msra.mxu1 %v16869_v38  ;;  %v11850_v11 = vpop.f32.mrf.mxu0  ;;  %12143 = vmatprep.subr.bf16.mxu0 %v17372_v0  ;;  %v8191_v38 = vld [vmem:[#allocation4 + $0x1030] sm:$0xff]  ;;  %v7676_v0 = vld [vmem:[#allocation4 + $0x18] sm:$0xff]  ;;  %v17451_v21 = vcombine.low %v8307_v44, %v8311_v52 }
 0x79a   :  { %v11891_v61 = vpop.f32.mrf.mxu1  ;;  %12184 = vmatprep.subr.bf16.mxu1 %v16862_v54  ;;  %v16829_v54 = vcombine.low %v7684_v55, %v7688_v37  ;;  %v17332_v10 = vcombine.high %v8187_v60, %v8191_v38  ;;  %v16822_v5 = vcombine.high %v7676_v0, %v7680_v13  ;;  %v7800_v8 = vld [vmem:[#allocation4 + $0x3f8] sm:$0xff]  ;;  %v16821_v11 = vcombine.low %v7676_v0, %v7680_v13 }
 0x79b   :  { %v8299_v61 = vld [vmem:[#allocation4 + $0x1390] sm:$0xff]  ;;  %v7792_v47 = vld [vmem:[#allocation4 + $0x3b8] sm:$0xff]  ;;  %v16941_v28 = vcombine.low %v7796_v53, %v7800_v8 }
 0x79c   :  { %12144 = vmatpush1.bf16.msra.mxu0 %v17371_v9  ;;  %v17331_v9 = vcombine.low %v8187_v60, %v8191_v38  ;;  %v7780_v33 = vld [vmem:[#allocation4 + $0x358] sm:$0xff]  ;;  %v16933_v45 = vcombine.low %v7788_v26, %v7792_v47 }
 0x79d   :  { %12185 = vmatpush1.bf16.msra.mxu1 %v16861_v16  ;;  %12145 = vmatprep.subr.bf16.mxu0 %v17364_v63  ;;  %v17452_v16 = vcombine.high %v8307_v44, %v8311_v52  ;;  %v16942_v63 = vcombine.high %v7796_v53, %v7800_v8  ;;  %v7784_v4 = vld [vmem:[#allocation4 + $0x378] sm:$0xff] }
 0x79e   :  { %12186 = vmatprep.subr.bf16.mxu1 %v16854_v25  ;;  %v8303_v25 = vld [vmem:[#allocation4 + $0x13b0] sm:$0xff]  ;;  %v7772_v46 = vld [vmem:[#allocation4 + $0x318] sm:$0xff]  ;;  %v16925_v37 = vcombine.low %v7780_v33, %v7784_v4 }
 0x79f   :  { %v17443_v30 = vcombine.low %v8299_v61, %v8303_v25  ;;  %v7776_v48 = vld [vmem:[#allocation4 + $0x338] sm:$0xff] }
 0x7a0   :  { %12146 = vmatpush1.bf16.msra.mxu0 %v17363_v50  ;;  %v17444_v50 = vcombine.high %v8299_v61, %v8303_v25  ;;  %v7764_v60 = vld [vmem:[#allocation4 + $0x2d8] sm:$0xff]  ;;  %v16917_v13 = vcombine.low %v7772_v46, %v7776_v48 }
 0x7a1   :  { %12187 = vmatpush1.bf16.msra.mxu1 %v16853_v23  ;;  %12147 = vmatprep.subr.bf16.mxu0 %v17356_v14  ;;  %v16934_v23 = vcombine.high %v7788_v26, %v7792_v47  ;;  %v8291_v14 = vld [vmem:[#allocation4 + $0x1350] sm:$0xff]  ;;  %v7768_v38 = vld [vmem:[#allocation4 + $0x2f8] sm:$0xff] }
 0x7a2   :  { %12188 = vmatprep.subr.bf16.mxu1 %v16846_v15  ;;  %v8295_v15 = vld [vmem:[#allocation4 + $0x1370] sm:$0xff]  ;;  %v7756_v44 = vld [vmem:[#allocation4 + $0x298] sm:$0xff]  ;;  %v16909_v8 = vcombine.low %v7764_v60, %v7768_v38 }
 0x7a3   :  { %v17435_v55 = vcombine.low %v8291_v14, %v8295_v15  ;;  %v7760_v52 = vld [vmem:[#allocation4 + $0x2b8] sm:$0xff] }
 0x7a4   :  { %12148 = vmatpush1.bf16.msra.mxu0 %v17355_v22  ;;  %v17436_v22 = vcombine.high %v8291_v14, %v8295_v15  ;;  %v7748_v61 = vld [vmem:[#allocation4 + $0x258] sm:$0xff]  ;;  %v16901_v47 = vcombine.low %v7756_v44, %v7760_v52 }
 0x7a5   :  { %12189 = vmatpush1.bf16.msra.mxu1 %v16845_v24  ;;  %12149 = vmatprep.subr.bf16.mxu0 %v17348_v27  ;;  %v16926_v24 = vcombine.high %v7780_v33, %v7784_v4  ;;  %v8283_v27 = vld [vmem:[#allocation4 + $0x1310] sm:$0xff]  ;;  %v7752_v25 = vld [vmem:[#allocation4 + $0x278] sm:$0xff] }
 0x7a6   :  { %12190 = vmatprep.subr.bf16.mxu1 %v16838_v62  ;;  %v8287_v62 = vld [vmem:[#allocation4 + $0x1330] sm:$0xff]  ;;  %v7740_v14 = vld [vmem:[#allocation4 + $0x218] sm:$0xff]  ;;  %v16893_v4 = vcombine.low %v7748_v61, %v7752_v25 }
 0x7a7   :  { %v17427_v0 = vcombine.low %v8283_v27, %v8287_v62  ;;  %v7744_v15 = vld [vmem:[#allocation4 + $0x238] sm:$0xff] }
 0x7a8   :  { %12150 = vmatpush1.bf16.msra.mxu0 %v17347_v35  ;;  %v17428_v35 = vcombine.high %v8283_v27, %v8287_v62  ;;  %v7988_v27 = vld [vmem:[#allocation4 + $0x9d8] sm:$0xff] }
 0x7a9   :  { %12191 = vmatpush1.bf16.msra.mxu1 %v16837_v49  ;;  %12151 = vmatprep.subr.bf16.mxu0 %v17340_v42  ;;  %v16918_v49 = vcombine.high %v7772_v46, %v7776_v48  ;;  %v8275_v42 = vld [vmem:[#allocation4 + $0x12d0] sm:$0xff]  ;;  %v7992_v62 = vld [vmem:[#allocation4 + $0x9f8] sm:$0xff]  ;;  %v16885_v48 = vcombine.low %v7740_v14, %v7744_v15 }
 0x7aa   :  { %12192 = vmatprep.subr.bf16.mxu1 %v16830_v57  ;;  %v8279_v57 = vld [vmem:[#allocation4 + $0x12f0] sm:$0xff] }
 0x7ab   :  { %v17419_v53 = vcombine.low %v8275_v42, %v8279_v57 }
 0x7ac   :  { %12152 = vmatpush1.bf16.msra.mxu0 %v17339_v1  ;;  %v17420_v1 = vcombine.high %v8275_v42, %v8279_v57  ;;  %v7980_v42 = vld [vmem:[#allocation4 + $0x998] sm:$0xff] }
 0x7ad   :  { %12193 = vmatpush1.bf16.msra.mxu1 %v16829_v54  ;;  %12153 = vmatprep.subr.bf16.mxu0 %v17332_v10  ;;  %v16910_v54 = vcombine.high %v7764_v60, %v7768_v38  ;;  %v8267_v10 = vld [vmem:[#allocation4 + $0x1290] sm:$0xff]  ;;  %v7984_v57 = vld [vmem:[#allocation4 + $0x9b8] sm:$0xff]  ;;  %v17133_v38 = vcombine.low %v7988_v27, %v7992_v62 }
 0x7ae   :  { %12194 = vmatprep.subr.bf16.mxu1 %v16822_v5  ;;  %v8271_v5 = vld [vmem:[#allocation4 + $0x12b0] sm:$0xff] }
 0x7af   :  { %v17411_v26 = vcombine.low %v8267_v10, %v8271_v5 }
 0x7b0   :  { %12154 = vmatpush1.bf16.msra.mxu0 %v17331_v9  ;;  %v17412_v9 = vcombine.high %v8267_v10, %v8271_v5  ;;  %v7972_v5 = vld [vmem:[#allocation4 + $0x958] sm:$0xff] }
 0x7b1   :  { %12195 = vmatpush1.bf16.msra.mxu1 %v16821_v11  ;;  %12155 = vmatprep.subr.bf16.mxu0 %v17452_v16  ;;  %v16902_v11 = vcombine.high %v7756_v44, %v7760_v52  ;;  %v8259_v16 = vld [vmem:[#allocation4 + $0x1250] sm:$0xff]  ;;  %v7976_v44 = vld [vmem:[#allocation4 + $0x978] sm:$0xff] }
 0x7b2   :  { %12196 = vmatprep.subr.bf16.mxu1 %v16942_v63  ;;  %v8263_v63 = vld [vmem:[#allocation4 + $0x1270] sm:$0xff] }
 0x7b3   :  { %v17403_v33 = vcombine.low %v8259_v16, %v8263_v63 }
 0x7b4   :  { %12156 = vmatpush2.bf16.msra.mxu0 %v17451_v21  ;;  %v17404_v21 = vcombine.high %v8259_v16, %v8263_v63 }
 0x7b5   :  { %12197 = vmatpush2.bf16.msra.mxu1 %v16941_v28  ;;  %12157 = vmatprep.subr.bf16.mxu0 %v17444_v50  ;;  %v16894_v28 = vcombine.high %v7748_v61, %v7752_v25  ;;  %v8251_v50 = vld [vmem:[#allocation4 + $0x1210] sm:$0xff] }
 0x7b6   :  { %12198 = vmatprep.subr.bf16.mxu1 %v16934_v23  ;;  %v8255_v23 = vld [vmem:[#allocation4 + $0x1230] sm:$0xff] }
 0x7b7   :  { %v17395_v46 = vcombine.low %v8251_v50, %v8255_v23 }
 0x7b8   :  { %12158 = vmatpush2.bf16.msra.mxu0 %v17443_v30  ;;  %v17396_v30 = vcombine.high %v8251_v50, %v8255_v23 }
 0x7b9   :  { %12199 = vmatpush2.bf16.msra.mxu1 %v16933_v45  ;;  %12159 = vmatprep.subr.bf16.mxu0 %v17436_v22  ;;  %v16886_v45 = vcombine.high %v7740_v14, %v7744_v15  ;;  %v7860_v22 = vld [vmem:[#allocation4 + $0x5d8] sm:$0xff] }
 0x7ba   :  { %12200 = vmatprep.subr.bf16.mxu1 %v16926_v24  ;;  %v7864_v24 = vld [vmem:[#allocation4 + $0x5f8] sm:$0xff] }
 0x7bb   :  { %v17005_v60 = vcombine.low %v7860_v22, %v7864_v24 }
 0x7bc   :  { %12160 = vmatpush2.bf16.msra.mxu0 %v17435_v55  ;;  %v17006_v55 = vcombine.high %v7860_v22, %v7864_v24  ;;  %v7828_v24 = vld [vmem:[#allocation4 + $0x4d8] sm:$0xff] }
 0x7bd   :  { %12201 = vmatpush2.bf16.msra.mxu1 %v16925_v37  ;;  %12161 = vmatprep.subr.bf16.mxu0 %v17428_v35  ;;  %v17134_v37 = vcombine.high %v7988_v27, %v7992_v62  ;;  %v7852_v35 = vld [vmem:[#allocation4 + $0x598] sm:$0xff] }
 0x7be   :  { %12202 = vmatprep.subr.bf16.mxu1 %v16918_v49  ;;  %v7856_v49 = vld [vmem:[#allocation4 + $0x5b8] sm:$0xff] }
 0x7bf   :  { %v7832_v27 = vld [vmem:[#allocation4 + $0x4f8] sm:$0xff] }
 0x7c0   :  { %12162 = vmatpush2.bf16.msra.mxu0 %v17427_v0  ;;  %v16998_v0 = vcombine.high %v7852_v35, %v7856_v49  ;;  %v7956_v62 = vld [vmem:[#allocation4 + $0x8d8] sm:$0xff] }
 0x7c1   :  { %12203 = vmatpush2.bf16.msra.mxu1 %v16917_v13  ;;  %12163 = vmatprep.subr.bf16.mxu0 %v17420_v1  ;;  %v17126_v13 = vcombine.high %v7980_v42, %v7984_v57  ;;  %v7844_v1 = vld [vmem:[#allocation4 + $0x558] sm:$0xff] }
 0x7c2   :  { %12204 = vmatprep.subr.bf16.mxu1 %v16910_v54  ;;  %v7848_v54 = vld [vmem:[#allocation4 + $0x578] sm:$0xff] }
 0x7c3   :  { %v16990_v16 = vcombine.high %v7844_v1, %v7848_v54  ;;  %v16989_v15 = vcombine.low %v7844_v1, %v7848_v54  ;;  %v7812_v54 = vld [vmem:[#allocation4 + $0x458] sm:$0xff] }
 0x7c4   :  { %12164 = vmatpush2.bf16.msra.mxu0 %v17419_v53 }
 0x7c5   :  { %12205 = vmatpush2.bf16.msra.mxu1 %v16909_v8  ;;  %12165 = vmatprep.subr.bf16.mxu0 %v17412_v9  ;;  %v16997_v8 = vcombine.low %v7852_v35, %v7856_v49  ;;  %v7820_v49 = vld [vmem:[#allocation4 + $0x498] sm:$0xff] }
 0x7c6   :  { %12206 = vmatprep.subr.bf16.mxu1 %v16902_v11  ;;  %v17125_v11 = vcombine.low %v7980_v42, %v7984_v57  ;;  %v7824_v42 = vld [vmem:[#allocation4 + $0x4b8] sm:$0xff] }
 0x7c7   :  { %v7948_v57 = vld [vmem:[#allocation4 + $0x898] sm:$0xff] }
 0x7c8   :  { %12166 = vmatpush2.bf16.msra.mxu0 %v17411_v26  ;;  %v17118_v26 = vcombine.high %v7972_v5, %v7976_v44 }
 0x7c9   :  { %12207 = vmatpush2.bf16.msra.mxu1 %v16901_v47  ;;  %12167 = vmatprep.subr.bf16.mxu0 %v17404_v21  ;;  %v7836_v47 = vld [vmem:[#allocation4 + $0x518] sm:$0xff] }
 0x7ca   :  { %12208 = vmatprep.subr.bf16.mxu1 %v16894_v28  ;;  %v7840_v21 = vld [vmem:[#allocation4 + $0x538] sm:$0xff] }
 0x7cb   :  { %v7964_v28 = vld [vmem:[#allocation4 + $0x918] sm:$0xff] }
 0x7cc   :  { %12168 = vmatpush2.bf16.msra.mxu0 %v17403_v33 }
 0x7cd   :  { %12209 = vmatpush2.bf16.msra.mxu1 %v16893_v4  ;;  %12169 = vmatprep.subr.bf16.mxu0 %v17396_v30  ;;  %v16982_v4 = vcombine.high %v7836_v47, %v7840_v21 }
 0x7ce   :  { %12210 = vmatprep.subr.bf16.mxu1 %v16886_v45 }
 0x7d0   :  { %12170 = vmatpush2.bf16.msra.mxu0 %v17395_v46 }
 0x7d1   :  { %12211 = vmatpush2.bf16.msra.mxu1 %v16885_v48  ;;  %12221 = vmatprep.subr.bf16.mxu0 %v17006_v55  ;;  %v16981_v48 = vcombine.low %v7836_v47, %v7840_v21 }
 0x7d2   :  { %12262 = vmatprep.subr.bf16.mxu1 %v17134_v37  ;;  %v16974_v37 = vcombine.high %v7828_v24, %v7832_v27 }
 0x7d3   :  { %v11927_v10 = vpop.f32.mrf.mxu0  ;;  %12172 = vmatmul.mubr.bf16.vlgmr.msra.gmra.mxu0 %v20628_v2 }
 0x7d4   :  { %v11928_v52 = vadd.f32 %v11927_v10, %v20678_v3  ;;  %v11968_v53 = vpop.f32.mrf.mxu1  ;;  %12213 = vmatmul.mubr.bf16.vlgmr.msra.gmra.mxu1 %v20592_v32  ;;  %12222 = vmatpush1.bf16.msra.mxu0 %v17005_v60  ;;  %v7968_v32 = vld [vmem:[#allocation4 + $0x938] sm:$0xff] }
 0x7d5   :  { %12263 = vmatpush1.bf16.msra.mxu1 %v17133_v38  ;;  %v11929_v9 = vpop.f32.mrf.mxu0  ;;  %12223 = vmatprep.subr.bf16.mxu0 %v16998_v0  ;;  %v17109_v55 = vcombine.low %v7964_v28, %v7968_v32  ;;  %v7952_v60 = vld [vmem:[#allocation4 + $0x8b8] sm:$0xff]  ;;  %v16973_v38 = vcombine.low %v7828_v24, %v7832_v27 }
 0x7d6   :  { %v11969_v63 = vadd.f32 %v11968_v53, %v11928_v52  ;;  %v11930_v61 = vadd.f32 %v11929_v9, %v20682_v6  ;;  %v11970_v25 = vpop.f32.mrf.mxu1  ;;  %12264 = vmatprep.subr.bf16.mxu1 %v17126_v13  ;;  %12253 = vmatprep.mubr.bf16.mxu0 %v20586_v7  ;;  %v17117_v6 = vcombine.low %v7972_v5, %v7976_v44  ;;  %v7816_v10 = vld [vmem:[#allocation4 + $0x478] sm:$0xff] }
 0x7d7   :  { %v11931_v3 = vpop.f32.mrf.mxu0  ;;  %12294 = vmatprep.mubr.bf16.mxu1 %v20600_v34  ;;  %v17110_v7 = vcombine.high %v7964_v28, %v7968_v32  ;;  %v7960_v34 = vld [vmem:[#allocation4 + $0x8f8] sm:$0xff]  ;;  %v16966_v13 = vcombine.high %v7820_v49, %v7824_v42  ;;  %v17094_v1 = vcombine.high %v7948_v57, %v7952_v60  ;;  %v16965_v52 = vcombine.low %v7820_v49, %v7824_v42 }
 0x7d8   :  { %v12387_v50 = vmul.f32 0.01, %v11969_v63  ;;  %v11971_v23 = vadd.f32 %v11970_v25, %v11930_v61  ;;  %v11972_v14 = vpop.f32.mrf.mxu1  ;;  %12224 = vmatpush1.bf16.msra.mxu0 %v16997_v8  ;;  %v17102_v35 = vcombine.high %v7956_v62, %v7960_v34  ;;  %v17101_v0 = vcombine.low %v7956_v62, %v7960_v34  ;;  %v7940_v5 = vld [vmem:[#allocation4 + $0x858] sm:$0xff] }
 0x7d9   :  { %12265 = vmatpush1.bf16.msra.mxu1 %v17125_v11  ;;  %v11932_v33 = vpop.f32.mrf.mxu0  ;;  %12225 = vmatprep.subr.bf16.mxu0 %v16990_v16  ;;  %v7944_v44 = vld [vmem:[#allocation4 + $0x878] sm:$0xff]  ;;  %v17093_v53 = vcombine.low %v7948_v57, %v7952_v60  ;;  %v16958_v8 = vcombine.high %v7812_v54, %v7816_v10  ;;  %v16957_v25 = vcombine.low %v7812_v54, %v7816_v10 }
 0x7da   :  { %v20690_v30 = vmax.f32 %v11969_v63, %v12387_v50  ;;  %v12388_v45 = vmul.f32 0.01, %v11971_v23  ;;  %v11973_v22 = vpop.f32.mrf.mxu1  ;;  %12266 = vmatprep.subr.bf16.mxu1 %v17118_v26  ;;  %v17086_v9 = vcombine.high %v7940_v5, %v7944_v44  ;;  %v7804_v11 = vld [vmem:[#allocation4 + $0x418] sm:$0xff]  ;;  %v17085_v26 = vcombine.low %v7940_v5, %v7944_v44 }
 0x7db   :  { %v7808_v16 = vld [vmem:[#allocation4 + $0x438] sm:$0xff] }
 0x7dc   :  { %v20692_v46 = vmax.f32 %v11971_v23, %v12388_v45  ;;  %12226 = vmatpush1.bf16.msra.mxu0 %v16989_v15  ;;  %v7932_v63 = vld [vmem:[#allocation4 + $0x818] sm:$0xff]  ;;  %v16950_v47 = vcombine.high %v7804_v11, %v7808_v16  ;;  %v16949_v23 = vcombine.low %v7804_v11, %v7808_v16 }
 0x7dd   :  { %12267 = vmatpush1.bf16.msra.mxu1 %v17117_v6  ;;  %12227 = vmatprep.subr.bf16.mxu0 %v16982_v4  ;;  %v7936_v61 = vld [vmem:[#allocation4 + $0x838] sm:$0xff] }
 0x7de   :  { %12268 = vmatprep.subr.bf16.mxu1 %v17110_v7  ;;  %v17078_v21 = vcombine.high %v7932_v63, %v7936_v61  ;;  %v7924_v3 = vld [vmem:[#allocation4 + $0x7d8] sm:$0xff]  ;;  %v17077_v14 = vcombine.low %v7932_v63, %v7936_v61 }
 0x7df   :  { %v7928_v28 = vld [vmem:[#allocation4 + $0x7f8] sm:$0xff] }
 0x7e0   :  { %12228 = vmatpush1.bf16.msra.mxu0 %v16981_v48  ;;  %v8052_v32 = vld [vmem:[#allocation4 + $0xbd8] sm:$0xff]  ;;  %v17070_v15 = vcombine.high %v7924_v3, %v7928_v28  ;;  %v17069_v7 = vcombine.low %v7924_v3, %v7928_v28 }
 0x7e1   :  { %12269 = vmatpush1.bf16.msra.mxu1 %v17109_v55  ;;  %12229 = vmatprep.subr.bf16.mxu0 %v16974_v37  ;;  %v8056_v50 = vld [vmem:[#allocation4 + $0xbf8] sm:$0xff] }
 0x7e2   :  { %12270 = vmatprep.subr.bf16.mxu1 %v17102_v35  ;;  %v17198_v33 = vcombine.high %v8052_v32, %v8056_v50  ;;  %v7916_v6 = vld [vmem:[#allocation4 + $0x798] sm:$0xff]  ;;  %v17197_v24 = vcombine.low %v8052_v32, %v8056_v50 }
 0x7e3   :  { %v7920_v4 = vld [vmem:[#allocation4 + $0x7b8] sm:$0xff] }
 0x7e4   :  { %12230 = vmatpush1.bf16.msra.mxu0 %v16973_v38  ;;  %v8044_v45 = vld [vmem:[#allocation4 + $0xb98] sm:$0xff]  ;;  %v17062_v27 = vcombine.high %v7916_v6, %v7920_v4  ;;  %v17061_v35 = vcombine.low %v7916_v6, %v7920_v4 }
 0x7e5   :  { %12271 = vmatpush1.bf16.msra.mxu1 %v17101_v0  ;;  %12231 = vmatprep.subr.bf16.mxu0 %v16966_v13  ;;  %v8048_v22 = vld [vmem:[#allocation4 + $0xbb8] sm:$0xff] }
 0x7e6   :  { %12272 = vmatprep.subr.bf16.mxu1 %v17094_v1  ;;  %v17190_v62 = vcombine.high %v8044_v45, %v8048_v22  ;;  %v7908_v34 = vld [vmem:[#allocation4 + $0x758] sm:$0xff]  ;;  %v17189_v49 = vcombine.low %v8044_v45, %v8048_v22 }
 0x7e7   :  { %v7912_v48 = vld [vmem:[#allocation4 + $0x778] sm:$0xff] }
 0x7e8   :  { %12232 = vmatpush1.bf16.msra.mxu0 %v16965_v52  ;;  %v8036_v55 = vld [vmem:[#allocation4 + $0xb58] sm:$0xff]  ;;  %v17054_v42 = vcombine.high %v7908_v34, %v7912_v48  ;;  %v17053_v1 = vcombine.low %v7908_v34, %v7912_v48 }
 0x7e9   :  { %12273 = vmatpush1.bf16.msra.mxu1 %v17093_v53  ;;  %12233 = vmatprep.subr.bf16.mxu0 %v16958_v8  ;;  %v8040_v37 = vld [vmem:[#allocation4 + $0xb78] sm:$0xff] }
 0x7ea   :  { %12274 = vmatprep.subr.bf16.mxu1 %v17086_v9  ;;  %v17182_v57 = vcombine.high %v8036_v55, %v8040_v37  ;;  %v7900_v60 = vld [vmem:[#allocation4 + $0x718] sm:$0xff]  ;;  %v17181_v54 = vcombine.low %v8036_v55, %v8040_v37 }
 0x7eb   :  { %v7904_v38 = vld [vmem:[#allocation4 + $0x738] sm:$0xff] }
 0x7ec   :  { %12234 = vmatpush1.bf16.msra.mxu0 %v16957_v25  ;;  %v8028_v0 = vld [vmem:[#allocation4 + $0xb18] sm:$0xff]  ;;  %v17046_v10 = vcombine.high %v7900_v60, %v7904_v38  ;;  %v17045_v9 = vcombine.low %v7900_v60, %v7904_v38 }
 0x7ed   :  { %12275 = vmatpush1.bf16.msra.mxu1 %v17085_v26  ;;  %12235 = vmatprep.subr.bf16.mxu0 %v16950_v47  ;;  %v8032_v13 = vld [vmem:[#allocation4 + $0xb38] sm:$0xff] }
 0x7ee   :  { %12276 = vmatprep.subr.bf16.mxu1 %v17078_v21  ;;  %v17174_v5 = vcombine.high %v8028_v0, %v8032_v13  ;;  %v7892_v44 = vld [vmem:[#allocation4 + $0x6d8] sm:$0xff]  ;;  %v17173_v11 = vcombine.low %v8028_v0, %v8032_v13 }
 0x7ef   :  { %v7896_v52 = vld [vmem:[#allocation4 + $0x6f8] sm:$0xff] }
 0x7f0   :  { %12236 = vmatpush1.bf16.msra.mxu0 %v16949_v23  ;;  %v8020_v53 = vld [vmem:[#allocation4 + $0xad8] sm:$0xff]  ;;  %v17038_v16 = vcombine.high %v7892_v44, %v7896_v52  ;;  %v17037_v21 = vcombine.low %v7892_v44, %v7896_v52 }
 0x7f1   :  { %12277 = vmatpush1.bf16.msra.mxu1 %v17077_v14  ;;  %12237 = vmatprep.subr.bf16.mxu0 %v17070_v15  ;;  %v8024_v8 = vld [vmem:[#allocation4 + $0xaf8] sm:$0xff] }
 0x7f2   :  { %12278 = vmatprep.subr.bf16.mxu1 %v17198_v33  ;;  %v17166_v63 = vcombine.high %v8020_v53, %v8024_v8  ;;  %v7884_v61 = vld [vmem:[#allocation4 + $0x698] sm:$0xff]  ;;  %v17165_v3 = vcombine.low %v8020_v53, %v8024_v8  ;;  %v8348_v8 = vrot.slane %v20668_v20, %v20354_v58 }
 0x7f3   :  { %v7888_v25 = vld [vmem:[#allocation4 + $0x6b8] sm:$0xff] }
 0x7f4   :  { %12238 = vmatpush2.bf16.msra.mxu0 %v17069_v7  ;;  %v8012_v26 = vld [vmem:[#allocation4 + $0xa98] sm:$0xff]  ;;  %v17030_v28 = vcombine.high %v7884_v61, %v7888_v25  ;;  %v17029_v33 = vcombine.low %v7884_v61, %v7888_v25 }
 0x7f5   :  { %12279 = vmatpush2.bf16.msra.mxu1 %v17197_v24  ;;  %12239 = vmatprep.subr.bf16.mxu0 %v17062_v27  ;;  %v8016_v47 = vld [vmem:[#allocation4 + $0xab8] sm:$0xff] }
 0x7f6   :  { %12280 = vmatprep.subr.bf16.mxu1 %v17190_v62  ;;  %v17158_v32 = vcombine.high %v8012_v26, %v8016_v47  ;;  %v7876_v50 = vld [vmem:[#allocation4 + $0x658] sm:$0xff]  ;;  %v17157_v6 = vcombine.low %v8012_v26, %v8016_v47 }
 0x7f7   :  { %v7880_v23 = vld [vmem:[#allocation4 + $0x678] sm:$0xff] }
 0x7f8   :  { %12240 = vmatpush2.bf16.msra.mxu0 %v17061_v35  ;;  %v8004_v14 = vld [vmem:[#allocation4 + $0xa58] sm:$0xff]  ;;  %v17022_v4 = vcombine.high %v7876_v50, %v7880_v23  ;;  %v17021_v62 = vcombine.low %v7876_v50, %v7880_v23 }
 0x7f9   :  { %12281 = vmatpush2.bf16.msra.mxu1 %v17189_v49  ;;  %12241 = vmatprep.subr.bf16.mxu0 %v17054_v42  ;;  %v8008_v15 = vld [vmem:[#allocation4 + $0xa78] sm:$0xff] }
 0x7fa   :  { %12282 = vmatprep.subr.bf16.mxu1 %v17182_v57  ;;  %v17150_v45 = vcombine.high %v8004_v14, %v8008_v15  ;;  %v7868_v22 = vld [vmem:[#allocation4 + $0x618] sm:$0xff]  ;;  %v17149_v34 = vcombine.low %v8004_v14, %v8008_v15 }
 0x7fb   :  { %v7872_v7 = vld [vmem:[#allocation4 + $0x638] sm:$0xff] }
 0x7fc   :  { %12242 = vmatpush2.bf16.msra.mxu0 %v17053_v1  ;;  %v7996_v24 = vld [vmem:[#allocation4 + $0xa18] sm:$0xff]  ;;  %v17014_v48 = vcombine.high %v7868_v22, %v7872_v7  ;;  %v17013_v57 = vcombine.low %v7868_v22, %v7872_v7 }
 0x7fd   :  { %12283 = vmatpush2.bf16.msra.mxu1 %v17181_v54  ;;  %12243 = vmatprep.subr.bf16.mxu0 %v17046_v10  ;;  %v8000_v27 = vld [vmem:[#allocation4 + $0xa38] sm:$0xff] }
 0x7fe   :  { %12284 = vmatprep.subr.bf16.mxu1 %v17174_v5  ;;  %v17142_v55 = vcombine.high %v7996_v24, %v8000_v27  ;;  %v8116_v37 = vld [vmem:[#allocation4 + $0xdd8] sm:$0xff]  ;;  %v17141_v60 = vcombine.low %v7996_v24, %v8000_v27  ;;  %v8344_v5 = vrot.slane %v20668_v20, %v20350_v51 }
 0x7ff   :  { %v8120_v35 = vld [vmem:[#allocation4 + $0xdf8] sm:$0xff] }
 0x800   :  { %12244 = vmatpush2.bf16.msra.mxu0 %v17045_v9  ;;  %v8244_v49 = vld [vmem:[#allocation4 + $0x11d8] sm:$0xff]  ;;  %v17262_v38 = vcombine.high %v8116_v37, %v8120_v35  ;;  %v17261_v44 = vcombine.low %v8116_v37, %v8120_v35 }
 0x801   :  { %12285 = vmatpush2.bf16.msra.mxu1 %v17173_v11  ;;  %12245 = vmatprep.subr.bf16.mxu0 %v17038_v16  ;;  %v8248_v42 = vld [vmem:[#allocation4 + $0x11f8] sm:$0xff] }
 0x802   :  { %12286 = vmatprep.subr.bf16.mxu1 %v17166_v63  ;;  %v17390_v0 = vcombine.high %v8244_v49, %v8248_v42  ;;  %v8108_v13 = vld [vmem:[#allocation4 + $0xd98] sm:$0xff]  ;;  %v17389_v52 = vcombine.low %v8244_v49, %v8248_v42 }
 0x803   :  { %v8112_v1 = vld [vmem:[#allocation4 + $0xdb8] sm:$0xff] }
 0x804   :  { %12246 = vmatpush2.bf16.msra.mxu0 %v17037_v21  ;;  %v8236_v54 = vld [vmem:[#allocation4 + $0x1198] sm:$0xff]  ;;  %v17254_v53 = vcombine.high %v8108_v13, %v8112_v1  ;;  %v17253_v21 = vcombine.low %v8108_v13, %v8112_v1 }
 0x805   :  { %12287 = vmatpush2.bf16.msra.mxu1 %v17165_v3  ;;  %12247 = vmatprep.subr.bf16.mxu0 %v17030_v28  ;;  %v8240_v10 = vld [vmem:[#allocation4 + $0x11b8] sm:$0xff] }
 0x806   :  { %12288 = vmatprep.subr.bf16.mxu1 %v17158_v32  ;;  %v17382_v9 = vcombine.high %v8236_v54, %v8240_v10  ;;  %v8100_v11 = vld [vmem:[#allocation4 + $0xd58] sm:$0xff]  ;;  %v17381_v28 = vcombine.low %v8236_v54, %v8240_v10 }
 0x807   :  { %v8104_v16 = vld [vmem:[#allocation4 + $0xd78] sm:$0xff] }
 0x808   :  { %12248 = vmatpush2.bf16.msra.mxu0 %v17029_v33  ;;  %v8228_v61 = vld [vmem:[#allocation4 + $0x1158] sm:$0xff]  ;;  %v17246_v32 = vcombine.high %v8100_v11, %v8104_v16  ;;  %v17245_v22 = vcombine.low %v8100_v11, %v8104_v16 }
 0x809   :  { %12289 = vmatpush2.bf16.msra.mxu1 %v17157_v6  ;;  %12249 = vmatprep.subr.bf16.mxu0 %v17022_v4  ;;  %v8232_v25 = vld [vmem:[#allocation4 + $0x1178] sm:$0xff] }
 0x80a   :  { %12290 = vmatprep.subr.bf16.mxu1 %v17150_v45  ;;  %v17374_v14 = vcombine.high %v8228_v61, %v8232_v25  ;;  %v8096_v15 = vld [vmem:[#allocation4 + $0xd38] sm:$0xff]  ;;  %v17373_v24 = vcombine.low %v8228_v61, %v8232_v25 }
 0x80b   :  { %v8220_v6 = vld [vmem:[#allocation4 + $0x1118] sm:$0xff] }
 0x80c   :  { %12250 = vmatpush2.bf16.msra.mxu0 %v17021_v62  ;;  %v8216_v37 = vld [vmem:[#allocation4 + $0x10f8] sm:$0xff] }
 0x80d   :  { %12291 = vmatpush2.bf16.msra.mxu1 %v17149_v34  ;;  %12251 = vmatprep.subr.bf16.mxu0 %v17014_v48  ;;  %v8084_v48 = vld [vmem:[#allocation4 + $0xcd8] sm:$0xff] }
 0x80e   :  { %12292 = vmatprep.subr.bf16.mxu1 %v17142_v55  ;;  %v8212_v55 = vld [vmem:[#allocation4 + $0x10d8] sm:$0xff] }
 0x80f   :  { %v17358_v42 = vcombine.high %v8212_v55, %v8216_v37  ;;  %v17357_v1 = vcombine.low %v8212_v55, %v8216_v37  ;;  %v8064_v61 = vld [vmem:[#allocation4 + $0xc38] sm:$0xff] }
 0x810   :  { %12252 = vmatpush2.bf16.msra.mxu0 %v17013_v57  ;;  %v8076_v57 = vld [vmem:[#allocation4 + $0xc98] sm:$0xff] }
 0x811   :  { %12293 = vmatpush2.bf16.msra.mxu1 %v17141_v60  ;;  %12303 = vmatprep.subr.bf16.mxu0 %v17262_v38  ;;  %v8080_v60 = vld [vmem:[#allocation4 + $0xcb8] sm:$0xff] }
 0x812   :  { %12344 = vmatprep.subr.bf16.mxu1 %v17390_v0  ;;  %v8204_v38 = vld [vmem:[#allocation4 + $0x1098] sm:$0xff]  ;;  %v17222_v54 = vcombine.high %v8076_v57, %v8080_v60 }
 0x813   :  { %v12009_v63 = vpop.f32.mrf.mxu0  ;;  %12254 = vmatmul.mubr.bf16.vlgmr.msra.gmra.mxu0 %v20596_v43  ;;  %v8092_v43 = vld [vmem:[#allocation4 + $0xd18] sm:$0xff] }
 0x814   :  { %v12010_v26 = vadd.f32 %v12009_v63, %v8344_v5  ;;  %v12050_v47 = vpop.f32.mrf.mxu1  ;;  %12295 = vmatmul.mubr.bf16.vlgmr.msra.gmra.mxu1 %v20612_v18  ;;  %12304 = vmatpush1.bf16.msra.mxu0 %v17261_v44  ;;  %v8224_v18 = vld [vmem:[#allocation4 + $0x1138] sm:$0xff]  ;;  %v17238_v27 = vcombine.high %v8092_v43, %v8096_v15  ;;  %v17237_v35 = vcombine.low %v8092_v43, %v8096_v15 }
 0x815   :  { %12345 = vmatpush1.bf16.msra.mxu1 %v17389_v52  ;;  %v12011_v3 = vpop.f32.mrf.mxu0  ;;  %12305 = vmatprep.subr.bf16.mxu0 %v17254_v53  ;;  %v17366_v34 = vcombine.high %v8220_v6, %v8224_v18  ;;  %v8208_v0 = vld [vmem:[#allocation4 + $0x10b8] sm:$0xff] }
 0x816   :  { %v20700_v20 = vadd.f32 %v12050_v47, %v12010_v26  ;;  %v12012_v50 = vadd.f32 %v12011_v3, %v8348_v8  ;;  %v12052_v23 = vpop.f32.mrf.mxu1  ;;  %12346 = vmatprep.subr.bf16.mxu1 %v17382_v9  ;;  %12335 = vmatprep.mubr.bf16.mxu0 %v20605_v39  ;;  %v8088_v39 = vld [vmem:[#allocation4 + $0xcf8] sm:$0xff]  ;;  %v17350_v10 = vcombine.high %v8204_v38, %v8208_v0 }
 0x817   :  { %v12013_v33 = vpop.f32.mrf.mxu0  ;;  %12376 = vmatprep.mubr.bf16.mxu1 %v20620_v41  ;;  %v17365_v41 = vcombine.low %v8220_v6, %v8224_v18  ;;  %v17230_v49 = vcombine.high %v8084_v48, %v8088_v39  ;;  %v17229_v13 = vcombine.low %v8084_v48, %v8088_v39  ;;  %v8068_v5 = vld [vmem:[#allocation4 + $0xc58] sm:$0xff]  ;;  %v17221_v8 = vcombine.low %v8076_v57, %v8080_v60 }
 0x818   :  { %v20704_v4 = vadd.f32 %v12052_v23, %v12012_v50  ;;  %v12054_v45 = vpop.f32.mrf.mxu1  ;;  %12306 = vmatpush1.bf16.msra.mxu0 %v17253_v21  ;;  %v8072_v44 = vld [vmem:[#allocation4 + $0xc78] sm:$0xff]  ;;  %v17349_v9 = vcombine.low %v8204_v38, %v8208_v0 }
 0x819   :  { %12347 = vmatpush1.bf16.msra.mxu1 %v17381_v28  ;;  %v12014_v7 = vpop.f32.mrf.mxu0  ;;  %12307 = vmatprep.subr.bf16.mxu0 %v17246_v32  ;;  %v8196_v52 = vld [vmem:[#allocation4 + $0x1058] sm:$0xff]  ;;  %v17214_v11 = vcombine.high %v8068_v5, %v8072_v44  ;;  %v17213_v47 = vcombine.low %v8068_v5, %v8072_v44 }
 0x81a   :  { %v12055_v62 = vpop.f32.mrf.mxu1  ;;  %12348 = vmatprep.subr.bf16.mxu1 %v17374_v14  ;;  %v8200_v53 = vld [vmem:[#allocation4 + $0x1078] sm:$0xff] }
 0x81b   :  { %v17342_v16 = vcombine.high %v8196_v52, %v8200_v53  ;;  %v8060_v63 = vld [vmem:[#allocation4 + $0xc18] sm:$0xff]  ;;  %v17341_v21 = vcombine.low %v8196_v52, %v8200_v53 }
 0x81c   :  { %12308 = vmatpush1.bf16.msra.mxu0 %v17245_v22  ;;  %v8188_v25 = vld [vmem:[#allocation4 + $0x1018] sm:$0xff]  ;;  %v17206_v3 = vcombine.high %v8060_v63, %v8064_v61  ;;  %v17205_v43 = vcombine.low %v8060_v63, %v8064_v61 }
 0x81d   :  { %12349 = vmatpush1.bf16.msra.mxu1 %v17373_v24  ;;  %12309 = vmatprep.subr.bf16.mxu0 %v17238_v27  ;;  %v8192_v26 = vld [vmem:[#allocation4 + $0x1038] sm:$0xff] }
 0x81e   :  { %12350 = vmatprep.subr.bf16.mxu1 %v17366_v34  ;;  %v17334_v28 = vcombine.high %v8188_v25, %v8192_v26  ;;  %v8180_v32 = vld [vmem:[#allocation4 + $0xfd8] sm:$0xff]  ;;  %v17333_v15 = vcombine.low %v8188_v25, %v8192_v26 }
 0x81f   :  { %v8184_v50 = vld [vmem:[#allocation4 + $0xff8] sm:$0xff] }
 0x820   :  { %12310 = vmatpush1.bf16.msra.mxu0 %v17237_v35  ;;  %v8308_v23 = vld [vmem:[#allocation4 + $0x13d8] sm:$0xff]  ;;  %v17326_v33 = vcombine.high %v8180_v32, %v8184_v50  ;;  %v17325_v24 = vcombine.low %v8180_v32, %v8184_v50 }
 0x821   :  { %12351 = vmatpush1.bf16.msra.mxu1 %v17365_v41  ;;  %12311 = vmatprep.subr.bf16.mxu0 %v17230_v49  ;;  %v8312_v14 = vld [vmem:[#allocation4 + $0x13f8] sm:$0xff] }
 0x822   :  { %12352 = vmatprep.subr.bf16.mxu1 %v17358_v42  ;;  %v17454_v6 = vcombine.high %v8308_v23, %v8312_v14  ;;  %v8172_v18 = vld [vmem:[#allocation4 + $0xf98] sm:$0xff]  ;;  %v17453_v27 = vcombine.low %v8308_v23, %v8312_v14 }
 0x823   :  { %v8176_v45 = vld [vmem:[#allocation4 + $0xfb8] sm:$0xff] }
 0x824   :  { %12312 = vmatpush1.bf16.msra.mxu0 %v17229_v13  ;;  %v8300_v22 = vld [vmem:[#allocation4 + $0x1398] sm:$0xff]  ;;  %v17318_v62 = vcombine.high %v8172_v18, %v8176_v45  ;;  %v17317_v35 = vcombine.low %v8172_v18, %v8176_v45 }
 0x825   :  { %12353 = vmatpush1.bf16.msra.mxu1 %v17357_v1  ;;  %12313 = vmatprep.subr.bf16.mxu0 %v17222_v54  ;;  %v8304_v7 = vld [vmem:[#allocation4 + $0x13b8] sm:$0xff] }
 0x826   :  { %12354 = vmatprep.subr.bf16.mxu1 %v17350_v10  ;;  %v17446_v34 = vcombine.high %v8300_v22, %v8304_v7  ;;  %v8164_v48 = vld [vmem:[#allocation4 + $0xf58] sm:$0xff]  ;;  %v17445_v41 = vcombine.low %v8300_v22, %v8304_v7 }
 0x827   :  { %v8168_v39 = vld [vmem:[#allocation4 + $0xf78] sm:$0xff] }
 0x828   :  { %12314 = vmatpush1.bf16.msra.mxu0 %v17221_v8  ;;  %v8292_v55 = vld [vmem:[#allocation4 + $0x1358] sm:$0xff]  ;;  %v17310_v49 = vcombine.high %v8164_v48, %v8168_v39  ;;  %v17309_v13 = vcombine.low %v8164_v48, %v8168_v39 }
 0x829   :  { %12355 = vmatpush1.bf16.msra.mxu1 %v17349_v9  ;;  %12315 = vmatprep.subr.bf16.mxu0 %v17214_v11  ;;  %v8296_v37 = vld [vmem:[#allocation4 + $0x1378] sm:$0xff] }
 0x82a   :  { %12356 = vmatprep.subr.bf16.mxu1 %v17342_v16  ;;  %v17438_v42 = vcombine.high %v8292_v55, %v8296_v37  ;;  %v8156_v57 = vld [vmem:[#allocation4 + $0xf18] sm:$0xff]  ;;  %v17437_v1 = vcombine.low %v8292_v55, %v8296_v37 }
 0x82b   :  { %v8160_v60 = vld [vmem:[#allocation4 + $0xf38] sm:$0xff] }
 0x82c   :  { %12316 = vmatpush1.bf16.msra.mxu0 %v17213_v47  ;;  %v8284_v38 = vld [vmem:[#allocation4 + $0x1318] sm:$0xff]  ;;  %v17302_v54 = vcombine.high %v8156_v57, %v8160_v60  ;;  %v17301_v8 = vcombine.low %v8156_v57, %v8160_v60 }
 0x82d   :  { %12357 = vmatpush1.bf16.msra.mxu1 %v17341_v21  ;;  %12317 = vmatprep.subr.bf16.mxu0 %v17206_v3  ;;  %v8288_v0 = vld [vmem:[#allocation4 + $0x1338] sm:$0xff] }
 0x82e   :  { %12358 = vmatprep.subr.bf16.mxu1 %v17334_v28  ;;  %v17430_v10 = vcombine.high %v8284_v38, %v8288_v0  ;;  %v8148_v5 = vld [vmem:[#allocation4 + $0xed8] sm:$0xff]  ;;  %v17429_v9 = vcombine.low %v8284_v38, %v8288_v0 }
 0x82f   :  { %v8152_v44 = vld [vmem:[#allocation4 + $0xef8] sm:$0xff] }
 0x830   :  { %12318 = vmatpush1.bf16.msra.mxu0 %v17205_v43  ;;  %v8276_v52 = vld [vmem:[#allocation4 + $0x12d8] sm:$0xff]  ;;  %v17294_v11 = vcombine.high %v8148_v5, %v8152_v44  ;;  %v17293_v47 = vcombine.low %v8148_v5, %v8152_v44 }
 0x831   :  { %12359 = vmatpush1.bf16.msra.mxu1 %v17333_v15  ;;  %12319 = vmatprep.subr.bf16.mxu0 %v17326_v33  ;;  %v8280_v53 = vld [vmem:[#allocation4 + $0x12f8] sm:$0xff] }
 0x832   :  { %12360 = vmatprep.subr.bf16.mxu1 %v17454_v6  ;;  %v17422_v16 = vcombine.high %v8276_v52, %v8280_v53  ;;  %v8140_v63 = vld [vmem:[#allocation4 + $0xe98] sm:$0xff]  ;;  %v17421_v21 = vcombine.low %v8276_v52, %v8280_v53 }
 0x833   :  { %v8144_v61 = vld [vmem:[#allocation4 + $0xeb8] sm:$0xff] }
 0x834   :  { %12320 = vmatpush2.bf16.msra.mxu0 %v17325_v24  ;;  %v8268_v25 = vld [vmem:[#allocation4 + $0x1298] sm:$0xff]  ;;  %v17286_v3 = vcombine.high %v8140_v63, %v8144_v61  ;;  %v17285_v43 = vcombine.low %v8140_v63, %v8144_v61 }
 0x835   :  { %12361 = vmatpush2.bf16.msra.mxu1 %v17453_v27  ;;  %12321 = vmatprep.subr.bf16.mxu0 %v17318_v62  ;;  %v8272_v26 = vld [vmem:[#allocation4 + $0x12b8] sm:$0xff] }
 0x836   :  { %12362 = vmatprep.subr.bf16.mxu1 %v17446_v34  ;;  %v17414_v28 = vcombine.high %v8268_v25, %v8272_v26  ;;  %v8132_v32 = vld [vmem:[#allocation4 + $0xe58] sm:$0xff]  ;;  %v17413_v15 = vcombine.low %v8268_v25, %v8272_v26 }
 0x837   :  { %v8136_v50 = vld [vmem:[#allocation4 + $0xe78] sm:$0xff] }
 0x838   :  { %12322 = vmatpush2.bf16.msra.mxu0 %v17317_v35  ;;  %v8260_v23 = vld [vmem:[#allocation4 + $0x1258] sm:$0xff]  ;;  %v17278_v33 = vcombine.high %v8132_v32, %v8136_v50  ;;  %v17277_v24 = vcombine.low %v8132_v32, %v8136_v50 }
 0x839   :  { %12363 = vmatpush2.bf16.msra.mxu1 %v17445_v41  ;;  %12323 = vmatprep.subr.bf16.mxu0 %v17310_v49  ;;  %v8264_v14 = vld [vmem:[#allocation4 + $0x1278] sm:$0xff] }
 0x83a   :  { %12364 = vmatprep.subr.bf16.mxu1 %v17438_v42  ;;  %v17406_v6 = vcombine.high %v8260_v23, %v8264_v14  ;;  %v8124_v18 = vld [vmem:[#allocation4 + $0xe18] sm:$0xff]  ;;  %v17405_v27 = vcombine.low %v8260_v23, %v8264_v14 }
 0x83b   :  { %v8128_v45 = vld [vmem:[#allocation4 + $0xe38] sm:$0xff] }
 0x83c   :  { %12324 = vmatpush2.bf16.msra.mxu0 %v17309_v13  ;;  %v8252_v22 = vld [vmem:[#allocation4 + $0x1218] sm:$0xff]  ;;  %v17270_v62 = vcombine.high %v8124_v18, %v8128_v45  ;;  %v17269_v48 = vcombine.low %v8124_v18, %v8128_v45 }
 0x83d   :  { %12365 = vmatpush2.bf16.msra.mxu1 %v17437_v1  ;;  %12325 = vmatprep.subr.bf16.mxu0 %v17302_v54  ;;  %v8256_v7 = vld [vmem:[#allocation4 + $0x1238] sm:$0xff] }
 0x83e   :  { %12366 = vmatprep.subr.bf16.mxu1 %v17430_v10  ;;  %v17398_v34 = vcombine.high %v8252_v22, %v8256_v7  ;;  %v17397_v39 = vcombine.low %v8252_v22, %v8256_v7  ;;  %v19447_v32 = vld [vmem:[#allocation11 + $0x16] sm:$0xff] }
 0x83f   :  { %v8352_v50 = vrot.slane %v19447_v32, %v20364_v12  ;;  %v8356_v23 = vrot.slane %v19447_v32, %v20368_v17 }
 0x840   :  { %12326 = vmatpush2.bf16.msra.mxu0 %v17301_v8 }
 0x841   :  { %12367 = vmatpush2.bf16.msra.mxu1 %v17429_v9  ;;  %12327 = vmatprep.subr.bf16.mxu0 %v17294_v11 }
 0x842   :  { %12368 = vmatprep.subr.bf16.mxu1 %v17422_v16 }
 0x844   :  { %12328 = vmatpush2.bf16.msra.mxu0 %v17293_v47 }
 0x845   :  { %12369 = vmatpush2.bf16.msra.mxu1 %v17421_v21  ;;  %12329 = vmatprep.subr.bf16.mxu0 %v17286_v3 }
 0x846   :  { %12370 = vmatprep.subr.bf16.mxu1 %v17414_v28 }
 0x848   :  { %12330 = vmatpush2.bf16.msra.mxu0 %v17285_v43 }
 0x849   :  { %12371 = vmatpush2.bf16.msra.mxu1 %v17413_v15  ;;  %12331 = vmatprep.subr.bf16.mxu0 %v17278_v33 }
 0x84a   :  { %12372 = vmatprep.subr.bf16.mxu1 %v17406_v6 }
 0x84c   :  { %12332 = vmatpush2.bf16.msra.mxu0 %v17277_v24 }
 0x84d   :  { %12373 = vmatpush2.bf16.msra.mxu1 %v17405_v27  ;;  %12333 = vmatprep.subr.bf16.mxu0 %v17270_v62 }
 0x84e   :  { %12374 = vmatprep.subr.bf16.mxu1 %v17398_v34 }
 0x850   :  { %12334 = vmatpush2.bf16.msra.mxu0 %v17269_v48 }
 0x851   :  { %12375 = vmatpush2.bf16.msra.mxu1 %v17397_v39 }
 0x853   :  { %v12091_v55 = vpop.f32.mrf.mxu0  ;;  %12336 = vmatmul.mubr.bf16.vlgmr.msra.gmra.mxu0 %v20616_v19 }
 0x854   :  { %v12092_v37 = vadd.f32 %v12091_v55, %v20700_v20  ;;  %v12132_v35 = vpop.f32.mrf.mxu1  ;;  %12377 = vmatmul.mubr.bf16.vlgmr.msra.gmra.mxu1 %v20628_v2 }
 0x855   :  { %v12093_v41 = vpop.f32.mrf.mxu0 }
 0x856   :  { %v12133_v49 = vadd.f32 %v12132_v35, %v12092_v37  ;;  %v12094_v42 = vadd.f32 %v12093_v41, %v20704_v4  ;;  %v12134_v57 = vpop.f32.mrf.mxu1 }
 0x857   :  { %v12095_v60 = vpop.f32.mrf.mxu0 }
 0x858   :  { %v12135_v38 = vadd.f32 %v12134_v57, %v12094_v42  ;;  %v12136_v0 = vpop.f32.mrf.mxu1 }
 0x859   :  { %v12096_v13 = vpop.f32.mrf.mxu0 }
 0x85a   :  { %v12137_v1 = vpop.f32.mrf.mxu1 }
 0x893   :  { %v12173_v54 = vpop.f32.mrf.mxu0 }
 0x894   :  { %v12174_v10 = vadd.f32 %v12173_v54, %v12133_v49  ;;  %v12214_v5 = vpop.f32.mrf.mxu1 }
 0x895   :  { %v12175_v44 = vpop.f32.mrf.mxu0  ;;  %v12215_v14 = vadd.f32 %v12214_v5, %v8352_v50 }
 0x896   :  { %v12389_v19 = vmul.f32 0.01, %v12174_v10  ;;  %v12176_v52 = vadd.f32 %v12175_v44, %v12135_v38  ;;  %v12216_v20 = vpop.f32.mrf.mxu1 }
 0x897   :  { %v12177_v53 = vpop.f32.mrf.mxu0  ;;  %v12217_v43 = vadd.f32 %v12216_v20, %v8356_v23 }
 0x898   :  { %v20710_v8 = vmax.f32 %v12174_v10, %v12389_v19  ;;  %v12390_v2 = vmul.f32 0.01, %v12176_v52  ;;  %v12218_v9 = vpop.f32.mrf.mxu1 }
 0x899   :  { %v12178_v11 = vpop.f32.mrf.mxu0 }
 0x89a   :  { %v20712_v4 = vmax.f32 %v12176_v52, %v12390_v2  ;;  %v12219_v16 = vpop.f32.mrf.mxu1 }
 0x8d3   :  { %v12255_v63 = vpop.f32.mrf.mxu0 }
 0x8d4   :  { %v12296_v61 = vpop.f32.mrf.mxu1  ;;  %v12256_v15 = vadd.f32 %v12255_v63, %v12215_v14 }
 0x8d5   :  { %v12257_v25 = vpop.f32.mrf.mxu0 }
 0x8d6   :  { %v12298_v26 = vpop.f32.mrf.mxu1  ;;  %v12258_v33 = vadd.f32 %v12257_v25, %v12217_v43  ;;  %v12297_v6 = vadd.f32 %v12296_v61, %v12256_v15 }
 0x8d7   :  { %v12259_v47 = vpop.f32.mrf.mxu0 }
 0x8d8   :  { %v12300_v21 = vpop.f32.mrf.mxu1  ;;  %v12299_v45 = vadd.f32 %v12298_v26, %v12258_v33 }
 0x8d9   :  { %v12260_v3 = vpop.f32.mrf.mxu0 }
 0x8da   :  { %v12301_v28 = vpop.f32.mrf.mxu1 }
 0x913   :  { %v12337_v18 = vpop.f32.mrf.mxu0 }
 0x914   :  { %v12338_v22 = vadd.f32 %v12337_v18, %v12297_v6  ;;  %v12378_v7 = vpop.f32.mrf.mxu1 }
 0x915   :  { %v12339_v24 = vpop.f32.mrf.mxu0 }
 0x916   :  { %v12379_v27 = vadd.f32 %v12378_v7, %v12338_v22  ;;  %v12340_v62 = vadd.f32 %v12339_v24, %v12299_v45  ;;  %v12380_v34 = vpop.f32.mrf.mxu1 }
 0x917   :  { %v12341_v48 = vpop.f32.mrf.mxu0 }
 0x918   :  { %v12391_v39 = vmul.f32 0.01, %v12379_v27  ;;  %v12381_v55 = vadd.f32 %v12380_v34, %v12340_v62  ;;  %v12382_v37 = vpop.f32.mrf.mxu1 }
 0x919   :  { %v12342_v12 = vpop.f32.mrf.mxu0 }
 0x91a   :  { %v20716_v35 = vmax.f32 %v12379_v27, %v12391_v39  ;;  %v12392_v17 = vmul.f32 0.01, %v12381_v55  ;;  %v12383_v41 = vpop.f32.mrf.mxu1 }
 0x91c   :  { %v20718_v49 = vmax.f32 %v12381_v55, %v12392_v17 }
 0x91d   :  { %20242 = dma.done.wait [#allocation7 + $0x3], 49152 }
 0x91e   :  { %20243 = vsyncadd [#allocation7 + $0x3], 4294918144  ;;  %v20722_v42 = vpack.c.bf16 %v20666_v56, %v20666_v56  ;;  %v20726_v57 = vpack.c.bf16 %v20692_v46, %v20692_v46  ;;  %v19448_v60 = vld [vmem:[#allocation5 + $0x154] ss:$24 sps:$4 sm:$0xff]   ;;  %v19452_v0 = vld [vmem:[#allocation5 + $0x150] ss:$24 sps:$4 sm:$0xff]  }
 0x91f   :  { %v19450_v38 = vld [vmem:[#allocation5 + $0x454] ss:$24 sps:$4 sm:$0xff]   ;;  %14749 = vmatprep.subr.bf16.mxu0 %v19448_v60  ;;  %v19453_v13 = vld [vmem:[#allocation5 + $0x450] ss:$24 sps:$4 sm:$0xff]   ;;  %v19454_v1 = vld [vmem:[#allocation5 + $0x124] ss:$24 sps:$4 sm:$0xff]  }
 0x920   :  { %14781 = vmatprep.mubr.bf16.mxu0 %v20722_v42  ;;  %14822 = vmatprep.mubr.bf16.mxu1 %v20726_v57  ;;  %v19456_v54 = vld [vmem:[#allocation5 + $0x424] ss:$24 sps:$4 sm:$0xff]   ;;  %v19458_v56 = vld [vmem:[#allocation5 + $0x120] ss:$24 sps:$4 sm:$0xff]   ;;  %v19460_v46 = vld [vmem:[#allocation5 + $0xf4] ss:$24 sps:$4 sm:$0xff]  }
 0x921   :  { %14790 = vmatprep.subr.bf16.mxu1 %v19450_v38  ;;  %14750 = vmatpush1.bf16.msra.mxu0 %v19452_v0  ;;  %v19459_v10 = vld [vmem:[#allocation5 + $0x420] ss:$24 sps:$4 sm:$0xff]   ;;  %v19462_v5 = vld [vmem:[#allocation5 + $0x3f4] ss:$24 sps:$4 sm:$0xff]   ;;  %v19464_v44 = vld [vmem:[#allocation5 + $0xf0] ss:$24 sps:$4 sm:$0xff]  }
 0x922   :  { %14791 = vmatpush1.bf16.msra.mxu1 %v19453_v13  ;;  %14751 = vmatprep.subr.bf16.mxu0 %v19454_v1  ;;  %v19465_v19 = vld [vmem:[#allocation5 + $0x3f0] ss:$24 sps:$4 sm:$0xff]   ;;  %v19466_v52 = vld [vmem:[#allocation5 + $0xc4] ss:$24 sps:$4 sm:$0xff]   ;;  %v19470_v53 = vld [vmem:[#allocation5 + $0xc0] ss:$24 sps:$4 sm:$0xff]  }
 0x923   :  { %14792 = vmatprep.subr.bf16.mxu1 %v19456_v54  ;;  %v19468_v20 = vld [vmem:[#allocation5 + $0x3c4] ss:$24 sps:$4 sm:$0xff]   ;;  %v19471_v2 = vld [vmem:[#allocation5 + $0x3c0] ss:$24 sps:$4 sm:$0xff]   ;;  %v19472_v9 = vld [vmem:[#allocation5 + $0x94] ss:$24 sps:$4 sm:$0xff]  }
 0x924   :  { %v19474_v11 = vld [vmem:[#allocation5 + $0x394] ss:$24 sps:$4 sm:$0xff]   ;;  %v19476_v16 = vld [vmem:[#allocation5 + $0x90] ss:$24 sps:$4 sm:$0xff]   ;;  %v19478_v61 = vld [vmem:[#allocation5 + $0x64] ss:$24 sps:$4 sm:$0xff]  }
 0x925   :  { %14752 = vmatpush1.bf16.msra.mxu0 %v19458_v56  ;;  %v19477_v63 = vld [vmem:[#allocation5 + $0x390] ss:$24 sps:$4 sm:$0xff]   ;;  %v19480_v25 = vld [vmem:[#allocation5 + $0x364] ss:$24 sps:$4 sm:$0xff]   ;;  %v19482_v26 = vld [vmem:[#allocation5 + $0x60] ss:$24 sps:$4 sm:$0xff]  }
 0x926   :  { %14793 = vmatpush1.bf16.msra.mxu1 %v19459_v10  ;;  %14753 = vmatprep.subr.bf16.mxu0 %v19460_v46  ;;  %v19483_v47 = vld [vmem:[#allocation5 + $0x360] ss:$24 sps:$4 sm:$0xff]   ;;  %v19484_v21 = vld [vmem:[#allocation5 + $0x34] ss:$24 sps:$4 sm:$0xff]   ;;  %v19488_v28 = vld [vmem:[#allocation5 + $0x30] ss:$24 sps:$4 sm:$0xff]  }
 0x927   :  { %14794 = vmatprep.subr.bf16.mxu1 %v19462_v5  ;;  %v19486_v3 = vld [vmem:[#allocation5 + $0x334] ss:$24 sps:$4 sm:$0xff]   ;;  %v19489_v32 = vld [vmem:[#allocation5 + $0x330] ss:$24 sps:$4 sm:$0xff]   ;;  %v19490_v50 = vld [vmem:[#allocation5 + $0x4] ss:$24 sps:$4 sm:$0xff]  }
 0x928   :  { %v19492_v23 = vld [vmem:[#allocation5 + $0x304] ss:$24 sps:$4 sm:$0xff]   ;;  %v19494_v14 = vld [vmem:[#allocation5] ss:$24 sps:$4 sm:$0xff]   ;;  %v19496_v15 = vld [vmem:[#allocation5 + $0x2d4] ss:$24 sps:$4 sm:$0xff]  }
 0x929   :  { %14754 = vmatpush1.bf16.msra.mxu0 %v19464_v44  ;;  %v19495_v43 = vld [vmem:[#allocation5 + $0x300] ss:$24 sps:$4 sm:$0xff]   ;;  %v19498_v33 = vld [vmem:[#allocation5 + $0x5d4] ss:$24 sps:$4 sm:$0xff]   ;;  %v19500_v6 = vld [vmem:[#allocation5 + $0x2d0] ss:$24 sps:$4 sm:$0xff]  }
 0x92a   :  { %14795 = vmatpush1.bf16.msra.mxu1 %v19465_v19  ;;  %14755 = vmatprep.subr.bf16.mxu0 %v19466_v52  ;;  %v19501_v18 = vld [vmem:[#allocation5 + $0x5d0] ss:$24 sps:$4 sm:$0xff]   ;;  %v19502_v45 = vld [vmem:[#allocation5 + $0x2a4] ss:$24 sps:$4 sm:$0xff]   ;;  %v19506_v7 = vld [vmem:[#allocation5 + $0x2a0] ss:$24 sps:$4 sm:$0xff]  }
 0x92b   :  { %14796 = vmatprep.subr.bf16.mxu1 %v19468_v20  ;;  %v19504_v22 = vld [vmem:[#allocation5 + $0x5a4] ss:$24 sps:$4 sm:$0xff]   ;;  %v19507_v24 = vld [vmem:[#allocation5 + $0x5a0] ss:$24 sps:$4 sm:$0xff]   ;;  %v19508_v27 = vld [vmem:[#allocation5 + $0x274] ss:$24 sps:$4 sm:$0xff]  }
 0x92c   :  { %v19510_v62 = vld [vmem:[#allocation5 + $0x574] ss:$24 sps:$4 sm:$0xff]   ;;  %v19512_v34 = vld [vmem:[#allocation5 + $0x270] ss:$24 sps:$4 sm:$0xff]   ;;  %v19514_v39 = vld [vmem:[#allocation5 + $0x244] ss:$24 sps:$4 sm:$0xff]  }
 0x92d   :  { %14756 = vmatpush1.bf16.msra.mxu0 %v19470_v53  ;;  %v19513_v48 = vld [vmem:[#allocation5 + $0x570] ss:$24 sps:$4 sm:$0xff]   ;;  %v19516_v55 = vld [vmem:[#allocation5 + $0x544] ss:$24 sps:$4 sm:$0xff]   ;;  %v19518_v37 = vld [vmem:[#allocation5 + $0x240] ss:$24 sps:$4 sm:$0xff]  }
 0x92e   :  { %14797 = vmatpush1.bf16.msra.mxu1 %v19471_v2  ;;  %14757 = vmatprep.subr.bf16.mxu0 %v19472_v9  ;;  %v19519_v12 = vld [vmem:[#allocation5 + $0x540] ss:$24 sps:$4 sm:$0xff]   ;;  %v19520_v17 = vld [vmem:[#allocation5 + $0x214] ss:$24 sps:$4 sm:$0xff]   ;;  %v19524_v60 = vld [vmem:[#allocation5 + $0x210] ss:$24 sps:$4 sm:$0xff]   ;;  %v20732_v9 = vpack.c.bf16 %v20664_v59, %v20664_v59  ;;  %v20744_v59 = vpack.c.bf16 %v20718_v49, %v20718_v49 }
 0x92f   :  { %14798 = vmatprep.subr.bf16.mxu1 %v19474_v11  ;;  %v19522_v41 = vld [vmem:[#allocation5 + $0x514] ss:$24 sps:$4 sm:$0xff]   ;;  %v19525_v38 = vld [vmem:[#allocation5 + $0x510] ss:$24 sps:$4 sm:$0xff]   ;;  %v19526_v0 = vld [vmem:[#allocation5 + $0x1e4] ss:$24 sps:$4 sm:$0xff]   ;;  %v20736_v11 = vpack.c.bf16 %v20690_v30, %v20690_v30 }
 0x930   :  { %v19528_v13 = vld [vmem:[#allocation5 + $0x4e4] ss:$24 sps:$4 sm:$0xff]   ;;  %v19530_v1 = vld [vmem:[#allocation5 + $0x1e0] ss:$24 sps:$4 sm:$0xff]   ;;  %v19532_v56 = vld [vmem:[#allocation5 + $0x1b4] ss:$24 sps:$4 sm:$0xff]  }
 0x931   :  { %14758 = vmatpush1.bf16.msra.mxu0 %v19476_v16  ;;  %v19531_v54 = vld [vmem:[#allocation5 + $0x4e0] ss:$24 sps:$4 sm:$0xff]   ;;  %v19534_v10 = vld [vmem:[#allocation5 + $0x4b4] ss:$24 sps:$4 sm:$0xff]   ;;  %v19536_v46 = vld [vmem:[#allocation5 + $0x1b0] ss:$24 sps:$4 sm:$0xff]  }
 0x932   :  { %14799 = vmatpush1.bf16.msra.mxu1 %v19477_v63  ;;  %14759 = vmatprep.subr.bf16.mxu0 %v19478_v61  ;;  %v19537_v5 = vld [vmem:[#allocation5 + $0x4b0] ss:$24 sps:$4 sm:$0xff]   ;;  %v19538_v44 = vld [vmem:[#allocation5 + $0x184] ss:$24 sps:$4 sm:$0xff]   ;;  %v19542_v52 = vld [vmem:[#allocation5 + $0x180] ss:$24 sps:$4 sm:$0xff]  }
 0x933   :  { %14800 = vmatprep.subr.bf16.mxu1 %v19480_v25  ;;  %v19540_v19 = vld [vmem:[#allocation5 + $0x484] ss:$24 sps:$4 sm:$0xff]   ;;  %v19543_v20 = vld [vmem:[#allocation5 + $0x480] ss:$24 sps:$4 sm:$0xff]   ;;  %v19546_v53 = vld [vmem:[#allocation5 + $0x754] ss:$24 sps:$4 sm:$0xff]  }
 0x934   :  { %v19549_v2 = vld [vmem:[#allocation5 + $0xa54] ss:$24 sps:$4 sm:$0xff]   ;;  %v19544_v16 = vld [vmem:[#allocation5 + $0x750] ss:$24 sps:$4 sm:$0xff]   ;;  %v19552_v61 = vld [vmem:[#allocation5 + $0x724] ss:$24 sps:$4 sm:$0xff]  }
 0x935   :  { %14760 = vmatpush1.bf16.msra.mxu0 %v19482_v26  ;;  %v19547_v63 = vld [vmem:[#allocation5 + $0xa50] ss:$24 sps:$4 sm:$0xff]   ;;  %v19555_v25 = vld [vmem:[#allocation5 + $0xa24] ss:$24 sps:$4 sm:$0xff]   ;;  %v20740_v26 = vpack.c.bf16 %v20712_v4, %v20712_v4  ;;  %v19550_v30 = vld [vmem:[#allocation5 + $0x720] ss:$24 sps:$4 sm:$0xff]  }
 0x936   :  { %14801 = vmatpush1.bf16.msra.mxu1 %v19483_v47  ;;  %14761 = vmatprep.subr.bf16.mxu0 %v19484_v21  ;;  %v19553_v47 = vld [vmem:[#allocation5 + $0xa20] ss:$24 sps:$4 sm:$0xff]   ;;  %v19558_v21 = vld [vmem:[#allocation5 + $0x6f4] ss:$24 sps:$4 sm:$0xff]   ;;  %v19556_v4 = vld [vmem:[#allocation5 + $0x6f0] ss:$24 sps:$4 sm:$0xff]  }
 0x937   :  { %14802 = vmatprep.subr.bf16.mxu1 %v19486_v3  ;;  %v19561_v3 = vld [vmem:[#allocation5 + $0x9f4] ss:$24 sps:$4 sm:$0xff]   ;;  %v19564_v49 = vld [vmem:[#allocation5 + $0x6c4] ss:$24 sps:$4 sm:$0xff]  }
 0x939   :  { %14762 = vmatpush1.bf16.msra.mxu0 %v19488_v28  ;;  %v19559_v28 = vld [vmem:[#allocation5 + $0x9f0] ss:$24 sps:$4 sm:$0xff]  }
 0x93a   :  { %14803 = vmatpush1.bf16.msra.mxu1 %v19489_v32  ;;  %14763 = vmatprep.subr.bf16.mxu0 %v19490_v50  ;;  %v19567_v32 = vld [vmem:[#allocation5 + $0x9c4] ss:$24 sps:$4 sm:$0xff]   ;;  %v19562_v50 = vld [vmem:[#allocation5 + $0x6c0] ss:$24 sps:$4 sm:$0xff]  }
 0x93b   :  { %14804 = vmatprep.subr.bf16.mxu1 %v19492_v23  ;;  %v19565_v23 = vld [vmem:[#allocation5 + $0x9c0] ss:$24 sps:$4 sm:$0xff]  }
 0x93d   :  { %14764 = vmatpush1.bf16.msra.mxu0 %v19494_v14  ;;  %v19570_v14 = vld [vmem:[#allocation5 + $0x694] ss:$24 sps:$4 sm:$0xff]  }
 0x93e   :  { %14805 = vmatpush1.bf16.msra.mxu1 %v19495_v43  ;;  %14765 = vmatprep.subr.bf16.mxu0 %v19496_v15  ;;  %v19573_v43 = vld [vmem:[#allocation5 + $0x994] ss:$24 sps:$4 sm:$0xff]   ;;  %v19568_v15 = vld [vmem:[#allocation5 + $0x690] ss:$24 sps:$4 sm:$0xff]  }
 0x93f   :  { %14806 = vmatprep.subr.bf16.mxu1 %v19498_v33  ;;  %v19571_v33 = vld [vmem:[#allocation5 + $0x990] ss:$24 sps:$4 sm:$0xff]  }
 0x941   :  { %14766 = vmatpush2.bf16.msra.mxu0 %v19500_v6  ;;  %v19576_v6 = vld [vmem:[#allocation5 + $0x664] ss:$24 sps:$4 sm:$0xff]  }
 0x942   :  { %14807 = vmatpush2.bf16.msra.mxu1 %v19501_v18  ;;  %14767 = vmatprep.subr.bf16.mxu0 %v19502_v45  ;;  %v19579_v18 = vld [vmem:[#allocation5 + $0x964] ss:$24 sps:$4 sm:$0xff]   ;;  %v19574_v45 = vld [vmem:[#allocation5 + $0x660] ss:$24 sps:$4 sm:$0xff]  }
 0x943   :  { %14808 = vmatprep.subr.bf16.mxu1 %v19504_v22  ;;  %v19577_v22 = vld [vmem:[#allocation5 + $0x960] ss:$24 sps:$4 sm:$0xff]  }
 0x945   :  { %14768 = vmatpush2.bf16.msra.mxu0 %v19506_v7  ;;  %v19582_v7 = vld [vmem:[#allocation5 + $0x634] ss:$24 sps:$4 sm:$0xff]  }
 0x946   :  { %14809 = vmatpush2.bf16.msra.mxu1 %v19507_v24  ;;  %14769 = vmatprep.subr.bf16.mxu0 %v19508_v27  ;;  %v19585_v24 = vld [vmem:[#allocation5 + $0x934] ss:$24 sps:$4 sm:$0xff]   ;;  %v19580_v27 = vld [vmem:[#allocation5 + $0x630] ss:$24 sps:$4 sm:$0xff]  }
 0x947   :  { %14810 = vmatprep.subr.bf16.mxu1 %v19510_v62  ;;  %v19583_v62 = vld [vmem:[#allocation5 + $0x930] ss:$24 sps:$4 sm:$0xff]  }
 0x949   :  { %14770 = vmatpush2.bf16.msra.mxu0 %v19512_v34  ;;  %v19588_v34 = vld [vmem:[#allocation5 + $0x604] ss:$24 sps:$4 sm:$0xff]  }
 0x94a   :  { %14811 = vmatpush2.bf16.msra.mxu1 %v19513_v48  ;;  %14771 = vmatprep.subr.bf16.mxu0 %v19514_v39  ;;  %v19591_v48 = vld [vmem:[#allocation5 + $0x904] ss:$24 sps:$4 sm:$0xff]   ;;  %v19586_v39 = vld [vmem:[#allocation5 + $0x600] ss:$24 sps:$4 sm:$0xff]  }
 0x94b   :  { %14812 = vmatprep.subr.bf16.mxu1 %v19516_v55  ;;  %v19589_v55 = vld [vmem:[#allocation5 + $0x900] ss:$24 sps:$4 sm:$0xff]  }
 0x94d   :  { %14772 = vmatpush2.bf16.msra.mxu0 %v19518_v37  ;;  %v19594_v37 = vld [vmem:[#allocation5 + $0x8d4] ss:$24 sps:$4 sm:$0xff]  }
 0x94e   :  { %14813 = vmatpush2.bf16.msra.mxu1 %v19519_v12  ;;  %14773 = vmatprep.subr.bf16.mxu0 %v19520_v17  ;;  %v19597_v12 = vld [vmem:[#allocation5 + $0xbd4] ss:$24 sps:$4 sm:$0xff]   ;;  %v19592_v17 = vld [vmem:[#allocation5 + $0x8d0] ss:$24 sps:$4 sm:$0xff]  }
 0x94f   :  { %14814 = vmatprep.subr.bf16.mxu1 %v19522_v41  ;;  %v19595_v41 = vld [vmem:[#allocation5 + $0xbd0] ss:$24 sps:$4 sm:$0xff]  }
 0x951   :  { %14774 = vmatpush2.bf16.msra.mxu0 %v19524_v60  ;;  %v19600_v60 = vld [vmem:[#allocation5 + $0x8a4] ss:$24 sps:$4 sm:$0xff]  }
 0x952   :  { %14815 = vmatpush2.bf16.msra.mxu1 %v19525_v38  ;;  %14775 = vmatprep.subr.bf16.mxu0 %v19526_v0  ;;  %v19603_v38 = vld [vmem:[#allocation5 + $0xba4] ss:$24 sps:$4 sm:$0xff]   ;;  %v19598_v0 = vld [vmem:[#allocation5 + $0x8a0] ss:$24 sps:$4 sm:$0xff]  }
 0x953   :  { %14816 = vmatprep.subr.bf16.mxu1 %v19528_v13  ;;  %v19601_v13 = vld [vmem:[#allocation5 + $0xba0] ss:$24 sps:$4 sm:$0xff]  }
 0x955   :  { %14776 = vmatpush2.bf16.msra.mxu0 %v19530_v1  ;;  %v19606_v1 = vld [vmem:[#allocation5 + $0x874] ss:$24 sps:$4 sm:$0xff]  }
 0x956   :  { %14817 = vmatpush2.bf16.msra.mxu1 %v19531_v54  ;;  %14777 = vmatprep.subr.bf16.mxu0 %v19532_v56  ;;  %v19609_v54 = vld [vmem:[#allocation5 + $0xb74] ss:$24 sps:$4 sm:$0xff]   ;;  %v19604_v56 = vld [vmem:[#allocation5 + $0x870] ss:$24 sps:$4 sm:$0xff]  }
 0x957   :  { %14818 = vmatprep.subr.bf16.mxu1 %v19534_v10  ;;  %v19607_v10 = vld [vmem:[#allocation5 + $0xb70] ss:$24 sps:$4 sm:$0xff]  }
 0x959   :  { %14778 = vmatpush2.bf16.msra.mxu0 %v19536_v46  ;;  %v19612_v46 = vld [vmem:[#allocation5 + $0x844] ss:$24 sps:$4 sm:$0xff]  }
 0x95a   :  { %14819 = vmatpush2.bf16.msra.mxu1 %v19537_v5  ;;  %14779 = vmatprep.subr.bf16.mxu0 %v19538_v44  ;;  %v19615_v5 = vld [vmem:[#allocation5 + $0xb44] ss:$24 sps:$4 sm:$0xff]   ;;  %v19610_v44 = vld [vmem:[#allocation5 + $0x840] ss:$24 sps:$4 sm:$0xff]  }
 0x95b   :  { %14820 = vmatprep.subr.bf16.mxu1 %v19540_v19  ;;  %v19613_v19 = vld [vmem:[#allocation5 + $0xb40] ss:$24 sps:$4 sm:$0xff]  }
 0x95d   :  { %14780 = vmatpush2.bf16.msra.mxu0 %v19542_v52  ;;  %v19618_v52 = vld [vmem:[#allocation5 + $0x814] ss:$24 sps:$4 sm:$0xff]  }
 0x95e   :  { %14821 = vmatpush2.bf16.msra.mxu1 %v19543_v20  ;;  %14831 = vmatprep.subr.bf16.mxu0 %v19546_v53  ;;  %v19621_v20 = vld [vmem:[#allocation5 + $0xb14] ss:$24 sps:$4 sm:$0xff]   ;;  %v19616_v53 = vld [vmem:[#allocation5 + $0x810] ss:$24 sps:$4 sm:$0xff]  }
 0x95f   :  { %14872 = vmatprep.subr.bf16.mxu1 %v19549_v2  ;;  %v19619_v2 = vld [vmem:[#allocation5 + $0xb10] ss:$24 sps:$4 sm:$0xff]  }
 0x960   :  { %14782 = vmatmul.mubr.bf16.vlgmr.msra.gmra.mxu0 %v20732_v9 }
 0x961   :  { %14823 = vmatmul.mubr.bf16.vlgmr.msra.gmra.mxu1 %v20736_v11  ;;  %14832 = vmatpush1.bf16.msra.mxu0 %v19544_v16  ;;  %v19624_v16 = vld [vmem:[#allocation5 + $0x7e4] ss:$24 sps:$4 sm:$0xff]  }
 0x962   :  { %14873 = vmatpush1.bf16.msra.mxu1 %v19547_v63  ;;  %14833 = vmatprep.subr.bf16.mxu0 %v19552_v61  ;;  %v19627_v63 = vld [vmem:[#allocation5 + $0xae4] ss:$24 sps:$4 sm:$0xff]   ;;  %v19622_v61 = vld [vmem:[#allocation5 + $0x7e0] ss:$24 sps:$4 sm:$0xff]  }
 0x963   :  { %14874 = vmatprep.subr.bf16.mxu1 %v19555_v25  ;;  %14863 = vmatprep.mubr.bf16.mxu0 %v20740_v26  ;;  %v19625_v25 = vld [vmem:[#allocation5 + $0xae0] ss:$24 sps:$4 sm:$0xff]  }
 0x964   :  { %14904 = vmatprep.mubr.bf16.mxu1 %v20744_v59 }
 0x965   :  { %14834 = vmatpush1.bf16.msra.mxu0 %v19550_v30  ;;  %v19630_v30 = vld [vmem:[#allocation5 + $0x7b4] ss:$24 sps:$4 sm:$0xff]  }
 0x966   :  { %14875 = vmatpush1.bf16.msra.mxu1 %v19553_v47  ;;  %14835 = vmatprep.subr.bf16.mxu0 %v19558_v21  ;;  %v19633_v47 = vld [vmem:[#allocation5 + $0xab4] ss:$24 sps:$4 sm:$0xff]   ;;  %v19628_v21 = vld [vmem:[#allocation5 + $0x7b0] ss:$24 sps:$4 sm:$0xff]  }
 0x967   :  { %14876 = vmatprep.subr.bf16.mxu1 %v19561_v3  ;;  %v19631_v3 = vld [vmem:[#allocation5 + $0xab0] ss:$24 sps:$4 sm:$0xff]  }
 0x969   :  { %14836 = vmatpush1.bf16.msra.mxu0 %v19556_v4  ;;  %v19636_v4 = vld [vmem:[#allocation5 + $0x784] ss:$24 sps:$4 sm:$0xff]  }
 0x96a   :  { %14877 = vmatpush1.bf16.msra.mxu1 %v19559_v28  ;;  %14837 = vmatprep.subr.bf16.mxu0 %v19564_v49  ;;  %v19639_v28 = vld [vmem:[#allocation5 + $0xa84] ss:$24 sps:$4 sm:$0xff]   ;;  %v19634_v49 = vld [vmem:[#allocation5 + $0x780] ss:$24 sps:$4 sm:$0xff]  }
 0x96b   :  { %14878 = vmatprep.subr.bf16.mxu1 %v19567_v32  ;;  %v19637_v32 = vld [vmem:[#allocation5 + $0xa80] ss:$24 sps:$4 sm:$0xff]  }
 0x96d   :  { %14838 = vmatpush1.bf16.msra.mxu0 %v19562_v50  ;;  %v19642_v50 = vld [vmem:[#allocation5 + $0x15c] ss:$24 sps:$4 sm:$0xff]  }
 0x96e   :  { %14879 = vmatpush1.bf16.msra.mxu1 %v19565_v23  ;;  %14839 = vmatprep.subr.bf16.mxu0 %v19570_v14  ;;  %v19645_v23 = vld [vmem:[#allocation5 + $0x45c] ss:$24 sps:$4 sm:$0xff]   ;;  %v20752_v14 = vpack.c.bf16 %v20710_v8, %v20710_v8 }
 0x96f   :  { %14880 = vmatprep.subr.bf16.mxu1 %v19573_v43  ;;  %v20756_v43 = vpack.c.bf16 %v20716_v35, %v20716_v35  ;;  %v19654_v8 = vld [vmem:[#allocation5 + $0xfc] ss:$24 sps:$4 sm:$0xff]  }
 0x970   :  { %v19657_v35 = vld [vmem:[#allocation5 + $0x3fc] ss:$24 sps:$4 sm:$0xff]  }
 0x971   :  { %14840 = vmatpush1.bf16.msra.mxu0 %v19568_v15  ;;  %v19640_v15 = vld [vmem:[#allocation5 + $0x158] ss:$24 sps:$4 sm:$0xff]  }
 0x972   :  { %14881 = vmatpush1.bf16.msra.mxu1 %v19571_v33  ;;  %14841 = vmatprep.subr.bf16.mxu0 %v19576_v6  ;;  %v19643_v33 = vld [vmem:[#allocation5 + $0x458] ss:$24 sps:$4 sm:$0xff]   ;;  %v19648_v6 = vld [vmem:[#allocation5 + $0x12c] ss:$24 sps:$4 sm:$0xff]  }
 0x973   :  { %14882 = vmatprep.subr.bf16.mxu1 %v19579_v18  ;;  %v19651_v18 = vld [vmem:[#allocation5 + $0x42c] ss:$24 sps:$4 sm:$0xff]  }
 0x975   :  { %14842 = vmatpush1.bf16.msra.mxu0 %v19574_v45  ;;  %v19646_v45 = vld [vmem:[#allocation5 + $0x128] ss:$24 sps:$4 sm:$0xff]  }
 0x976   :  { %14883 = vmatpush1.bf16.msra.mxu1 %v19577_v22  ;;  %14843 = vmatprep.subr.bf16.mxu0 %v19582_v7  ;;  %v19649_v22 = vld [vmem:[#allocation5 + $0x428] ss:$24 sps:$4 sm:$0xff]   ;;  %v19652_v7 = vld [vmem:[#allocation5 + $0xf8] ss:$24 sps:$4 sm:$0xff]  }
 0x977   :  { %14884 = vmatprep.subr.bf16.mxu1 %v19585_v24  ;;  %v19655_v24 = vld [vmem:[#allocation5 + $0x3f8] ss:$24 sps:$4 sm:$0xff]  }
 0x979   :  { %14844 = vmatpush1.bf16.msra.mxu0 %v19580_v27  ;;  %v19660_v27 = vld [vmem:[#allocation5 + $0xcc] ss:$24 sps:$4 sm:$0xff]  }
 0x97a   :  { %14885 = vmatpush1.bf16.msra.mxu1 %v19583_v62  ;;  %14845 = vmatprep.subr.bf16.mxu0 %v19588_v34  ;;  %v19663_v62 = vld [vmem:[#allocation5 + $0x3cc] ss:$24 sps:$4 sm:$0xff]   ;;  %v19658_v34 = vld [vmem:[#allocation5 + $0xc8] ss:$24 sps:$4 sm:$0xff]  }
 0x97b   :  { %14886 = vmatprep.subr.bf16.mxu1 %v19591_v48  ;;  %v19661_v48 = vld [vmem:[#allocation5 + $0x3c8] ss:$24 sps:$4 sm:$0xff]  }
 0x97d   :  { %14846 = vmatpush1.bf16.msra.mxu0 %v19586_v39  ;;  %v19666_v39 = vld [vmem:[#allocation5 + $0x9c] ss:$24 sps:$4 sm:$0xff]  }
 0x97e   :  { %14887 = vmatpush1.bf16.msra.mxu1 %v19589_v55  ;;  %14847 = vmatprep.subr.bf16.mxu0 %v19594_v37  ;;  %v19669_v55 = vld [vmem:[#allocation5 + $0x39c] ss:$24 sps:$4 sm:$0xff]   ;;  %v19664_v37 = vld [vmem:[#allocation5 + $0x98] ss:$24 sps:$4 sm:$0xff]  }
 0x97f   :  { %14888 = vmatprep.subr.bf16.mxu1 %v19597_v12  ;;  %v19667_v12 = vld [vmem:[#allocation5 + $0x398] ss:$24 sps:$4 sm:$0xff]  }
 0x981   :  { %14848 = vmatpush2.bf16.msra.mxu0 %v19592_v17  ;;  %v19672_v17 = vld [vmem:[#allocation5 + $0x6c] ss:$24 sps:$4 sm:$0xff]  }
 0x982   :  { %14889 = vmatpush2.bf16.msra.mxu1 %v19595_v41  ;;  %14849 = vmatprep.subr.bf16.mxu0 %v19600_v60  ;;  %v19675_v41 = vld [vmem:[#allocation5 + $0x36c] ss:$24 sps:$4 sm:$0xff]   ;;  %v19670_v60 = vld [vmem:[#allocation5 + $0x68] ss:$24 sps:$4 sm:$0xff]  }
 0x983   :  { %14890 = vmatprep.subr.bf16.mxu1 %v19603_v38  ;;  %v19673_v38 = vld [vmem:[#allocation5 + $0x368] ss:$24 sps:$4 sm:$0xff]  }
 0x985   :  { %14850 = vmatpush2.bf16.msra.mxu0 %v19598_v0  ;;  %v19678_v0 = vld [vmem:[#allocation5 + $0x3c] ss:$24 sps:$4 sm:$0xff]  }
 0x986   :  { %14891 = vmatpush2.bf16.msra.mxu1 %v19601_v13  ;;  %14851 = vmatprep.subr.bf16.mxu0 %v19606_v1  ;;  %v19681_v13 = vld [vmem:[#allocation5 + $0x33c] ss:$24 sps:$4 sm:$0xff]   ;;  %v19676_v1 = vld [vmem:[#allocation5 + $0x38] ss:$24 sps:$4 sm:$0xff]  }
 0x987   :  { %14892 = vmatprep.subr.bf16.mxu1 %v19609_v54  ;;  %v19679_v54 = vld [vmem:[#allocation5 + $0x338] ss:$24 sps:$4 sm:$0xff]  }
 0x989   :  { %14852 = vmatpush2.bf16.msra.mxu0 %v19604_v56  ;;  %v19684_v56 = vld [vmem:[#allocation5 + $0xc] ss:$24 sps:$4 sm:$0xff]  }
 0x98a   :  { %14893 = vmatpush2.bf16.msra.mxu1 %v19607_v10  ;;  %14853 = vmatprep.subr.bf16.mxu0 %v19612_v46  ;;  %v19687_v10 = vld [vmem:[#allocation5 + $0x30c] ss:$24 sps:$4 sm:$0xff]   ;;  %v19682_v46 = vld [vmem:[#allocation5 + $0x8] ss:$24 sps:$4 sm:$0xff]  }
 0x98b   :  { %14894 = vmatprep.subr.bf16.mxu1 %v19615_v5  ;;  %v19685_v5 = vld [vmem:[#allocation5 + $0x308] ss:$24 sps:$4 sm:$0xff]  }
 0x98d   :  { %14854 = vmatpush2.bf16.msra.mxu0 %v19610_v44  ;;  %v19690_v44 = vld [vmem:[#allocation5 + $0x2dc] ss:$24 sps:$4 sm:$0xff]  }
 0x98e   :  { %14895 = vmatpush2.bf16.msra.mxu1 %v19613_v19  ;;  %14855 = vmatprep.subr.bf16.mxu0 %v19618_v52  ;;  %v19693_v19 = vld [vmem:[#allocation5 + $0x5dc] ss:$24 sps:$4 sm:$0xff]   ;;  %v19688_v52 = vld [vmem:[#allocation5 + $0x2d8] ss:$24 sps:$4 sm:$0xff]  }
 0x98f   :  { %14896 = vmatprep.subr.bf16.mxu1 %v19621_v20  ;;  %v19691_v20 = vld [vmem:[#allocation5 + $0x5d8] ss:$24 sps:$4 sm:$0xff]  }
 0x991   :  { %14856 = vmatpush2.bf16.msra.mxu0 %v19616_v53  ;;  %v19696_v53 = vld [vmem:[#allocation5 + $0x2ac] ss:$24 sps:$4 sm:$0xff]  }
 0x992   :  { %14897 = vmatpush2.bf16.msra.mxu1 %v19619_v2  ;;  %14857 = vmatprep.subr.bf16.mxu0 %v19624_v16  ;;  %v19699_v2 = vld [vmem:[#allocation5 + $0x5ac] ss:$24 sps:$4 sm:$0xff]   ;;  %v19694_v16 = vld [vmem:[#allocation5 + $0x2a8] ss:$24 sps:$4 sm:$0xff]  }
 0x993   :  { %14898 = vmatprep.subr.bf16.mxu1 %v19627_v63  ;;  %v19697_v63 = vld [vmem:[#allocation5 + $0x5a8] ss:$24 sps:$4 sm:$0xff]  }
 0x995   :  { %14858 = vmatpush2.bf16.msra.mxu0 %v19622_v61  ;;  %v19702_v61 = vld [vmem:[#allocation5 + $0x27c] ss:$24 sps:$4 sm:$0xff]  }
 0x996   :  { %14899 = vmatpush2.bf16.msra.mxu1 %v19625_v25  ;;  %14859 = vmatprep.subr.bf16.mxu0 %v19630_v30  ;;  %v19705_v25 = vld [vmem:[#allocation5 + $0x57c] ss:$24 sps:$4 sm:$0xff]   ;;  %v19700_v30 = vld [vmem:[#allocation5 + $0x278] ss:$24 sps:$4 sm:$0xff]  }
 0x997   :  { %14900 = vmatprep.subr.bf16.mxu1 %v19633_v47  ;;  %v19703_v47 = vld [vmem:[#allocation5 + $0x578] ss:$24 sps:$4 sm:$0xff]  }
 0x999   :  { %14860 = vmatpush2.bf16.msra.mxu0 %v19628_v21  ;;  %v19708_v21 = vld [vmem:[#allocation5 + $0x24c] ss:$24 sps:$4 sm:$0xff]  }
 0x99a   :  { %14901 = vmatpush2.bf16.msra.mxu1 %v19631_v3  ;;  %14861 = vmatprep.subr.bf16.mxu0 %v19636_v4  ;;  %v19711_v3 = vld [vmem:[#allocation5 + $0x54c] ss:$24 sps:$4 sm:$0xff]   ;;  %v19706_v4 = vld [vmem:[#allocation5 + $0x248] ss:$24 sps:$4 sm:$0xff]  }
 0x99b   :  { %14902 = vmatprep.subr.bf16.mxu1 %v19639_v28  ;;  %v19709_v28 = vld [vmem:[#allocation5 + $0x548] ss:$24 sps:$4 sm:$0xff]  }
 0x99d   :  { %14862 = vmatpush2.bf16.msra.mxu0 %v19634_v49  ;;  %v19714_v49 = vld [vmem:[#allocation5 + $0x21c] ss:$24 sps:$4 sm:$0xff]  }
 0x99e   :  { %14903 = vmatpush2.bf16.msra.mxu1 %v19637_v32  ;;  %14913 = vmatprep.subr.bf16.mxu0 %v19642_v50  ;;  %v19717_v32 = vld [vmem:[#allocation5 + $0x51c] ss:$24 sps:$4 sm:$0xff]   ;;  %v19712_v50 = vld [vmem:[#allocation5 + $0x218] ss:$24 sps:$4 sm:$0xff]  }
 0x99f   :  { %14954 = vmatprep.subr.bf16.mxu1 %v19645_v23  ;;  %v19715_v23 = vld [vmem:[#allocation5 + $0x518] ss:$24 sps:$4 sm:$0xff]  }
 0x9a0   :  { %14864 = vmatmul.mubr.bf16.vlgmr.msra.gmra.mxu0 %v20752_v14 }
 0x9a1   :  { %14905 = vmatmul.mubr.bf16.vlgmr.msra.gmra.mxu1 %v20756_v43  ;;  %14914 = vmatpush1.bf16.msra.mxu0 %v19640_v15  ;;  %v19720_v15 = vld [vmem:[#allocation5 + $0x1ec] ss:$24 sps:$4 sm:$0xff]  }
 0x9a2   :  { %14955 = vmatpush1.bf16.msra.mxu1 %v19643_v33  ;;  %14915 = vmatprep.subr.bf16.mxu0 %v19648_v6  ;;  %v19723_v33 = vld [vmem:[#allocation5 + $0x4ec] ss:$24 sps:$4 sm:$0xff]   ;;  %v19718_v6 = vld [vmem:[#allocation5 + $0x1e8] ss:$24 sps:$4 sm:$0xff]  }
 0x9a3   :  { %14956 = vmatprep.subr.bf16.mxu1 %v19651_v18  ;;  %14945 = vmatprep.mubr.bf16.mxu0 %v20722_v42  ;;  %v19721_v18 = vld [vmem:[#allocation5 + $0x4e8] ss:$24 sps:$4 sm:$0xff]  }
 0x9a4   :  { %14986 = vmatprep.mubr.bf16.mxu1 %v20726_v57 }
 0x9a5   :  { %14916 = vmatpush1.bf16.msra.mxu0 %v19646_v45  ;;  %v19726_v45 = vld [vmem:[#allocation5 + $0x1bc] ss:$24 sps:$4 sm:$0xff]  }
 0x9a6   :  { %14957 = vmatpush1.bf16.msra.mxu1 %v19649_v22  ;;  %14917 = vmatprep.subr.bf16.mxu0 %v19654_v8  ;;  %v19729_v22 = vld [vmem:[#allocation5 + $0x4bc] ss:$24 sps:$4 sm:$0xff]   ;;  %v19724_v8 = vld [vmem:[#allocation5 + $0x1b8] ss:$24 sps:$4 sm:$0xff]  }
 0x9a7   :  { %14958 = vmatprep.subr.bf16.mxu1 %v19657_v35  ;;  %v19727_v35 = vld [vmem:[#allocation5 + $0x4b8] ss:$24 sps:$4 sm:$0xff]  }
 0x9a9   :  { %14918 = vmatpush1.bf16.msra.mxu0 %v19652_v7  ;;  %v19732_v7 = vld [vmem:[#allocation5 + $0x18c] ss:$24 sps:$4 sm:$0xff]  }
 0x9aa   :  { %14959 = vmatpush1.bf16.msra.mxu1 %v19655_v24  ;;  %14919 = vmatprep.subr.bf16.mxu0 %v19660_v27  ;;  %v19735_v24 = vld [vmem:[#allocation5 + $0x48c] ss:$24 sps:$4 sm:$0xff]   ;;  %v19730_v27 = vld [vmem:[#allocation5 + $0x188] ss:$24 sps:$4 sm:$0xff]  }
 0x9ab   :  { %14960 = vmatprep.subr.bf16.mxu1 %v19663_v62  ;;  %v19733_v62 = vld [vmem:[#allocation5 + $0x488] ss:$24 sps:$4 sm:$0xff]  }
 0x9ad   :  { %14920 = vmatpush1.bf16.msra.mxu0 %v19658_v34  ;;  %v19738_v34 = vld [vmem:[#allocation5 + $0x75c] ss:$24 sps:$4 sm:$0xff]  }
 0x9ae   :  { %14961 = vmatpush1.bf16.msra.mxu1 %v19661_v48  ;;  %14921 = vmatprep.subr.bf16.mxu0 %v19666_v39  ;;  %v19741_v48 = vld [vmem:[#allocation5 + $0xa5c] ss:$24 sps:$4 sm:$0xff]   ;;  %v19736_v39 = vld [vmem:[#allocation5 + $0x758] ss:$24 sps:$4 sm:$0xff]  }
 0x9af   :  { %14962 = vmatprep.subr.bf16.mxu1 %v19669_v55  ;;  %v19739_v55 = vld [vmem:[#allocation5 + $0xa58] ss:$24 sps:$4 sm:$0xff]  }
 0x9b1   :  { %14922 = vmatpush1.bf16.msra.mxu0 %v19664_v37  ;;  %v19744_v37 = vld [vmem:[#allocation5 + $0x72c] ss:$24 sps:$4 sm:$0xff]  }
 0x9b2   :  { %14963 = vmatpush1.bf16.msra.mxu1 %v19667_v12  ;;  %14923 = vmatprep.subr.bf16.mxu0 %v19672_v17  ;;  %v19747_v12 = vld [vmem:[#allocation5 + $0xa2c] ss:$24 sps:$4 sm:$0xff]   ;;  %v19742_v17 = vld [vmem:[#allocation5 + $0x728] ss:$24 sps:$4 sm:$0xff]  }
 0x9b3   :  { %14964 = vmatprep.subr.bf16.mxu1 %v19675_v41  ;;  %v19745_v41 = vld [vmem:[#allocation5 + $0xa28] ss:$24 sps:$4 sm:$0xff]  }
 0x9b5   :  { %14924 = vmatpush1.bf16.msra.mxu0 %v19670_v60  ;;  %v19750_v60 = vld [vmem:[#allocation5 + $0x6fc] ss:$24 sps:$4 sm:$0xff]  }
 0x9b6   :  { %14965 = vmatpush1.bf16.msra.mxu1 %v19673_v38  ;;  %14925 = vmatprep.subr.bf16.mxu0 %v19678_v0  ;;  %v19753_v38 = vld [vmem:[#allocation5 + $0x9fc] ss:$24 sps:$4 sm:$0xff]   ;;  %v19748_v0 = vld [vmem:[#allocation5 + $0x6f8] ss:$24 sps:$4 sm:$0xff]  }
 0x9b7   :  { %14966 = vmatprep.subr.bf16.mxu1 %v19681_v13  ;;  %v19751_v13 = vld [vmem:[#allocation5 + $0x9f8] ss:$24 sps:$4 sm:$0xff]  }
 0x9b9   :  { %14926 = vmatpush1.bf16.msra.mxu0 %v19676_v1  ;;  %v19756_v1 = vld [vmem:[#allocation5 + $0x6cc] ss:$24 sps:$4 sm:$0xff]  }
 0x9ba   :  { %14967 = vmatpush1.bf16.msra.mxu1 %v19679_v54  ;;  %14927 = vmatprep.subr.bf16.mxu0 %v19684_v56  ;;  %v19759_v54 = vld [vmem:[#allocation5 + $0x9cc] ss:$24 sps:$4 sm:$0xff]   ;;  %v19754_v56 = vld [vmem:[#allocation5 + $0x6c8] ss:$24 sps:$4 sm:$0xff]  }
 0x9bb   :  { %14968 = vmatprep.subr.bf16.mxu1 %v19687_v10  ;;  %v19757_v10 = vld [vmem:[#allocation5 + $0x9c8] ss:$24 sps:$4 sm:$0xff]  }
 0x9bd   :  { %14928 = vmatpush1.bf16.msra.mxu0 %v19682_v46  ;;  %v19762_v46 = vld [vmem:[#allocation5 + $0x69c] ss:$24 sps:$4 sm:$0xff]  }
 0x9be   :  { %14969 = vmatpush1.bf16.msra.mxu1 %v19685_v5  ;;  %14929 = vmatprep.subr.bf16.mxu0 %v19690_v44  ;;  %v19765_v5 = vld [vmem:[#allocation5 + $0x99c] ss:$24 sps:$4 sm:$0xff]   ;;  %v19760_v44 = vld [vmem:[#allocation5 + $0x698] ss:$24 sps:$4 sm:$0xff]  }
 0x9bf   :  { %14970 = vmatprep.subr.bf16.mxu1 %v19693_v19  ;;  %v19763_v19 = vld [vmem:[#allocation5 + $0x998] ss:$24 sps:$4 sm:$0xff]  }
 0x9c1   :  { %14930 = vmatpush2.bf16.msra.mxu0 %v19688_v52  ;;  %v19768_v52 = vld [vmem:[#allocation5 + $0x66c] ss:$24 sps:$4 sm:$0xff]  }
 0x9c2   :  { %14971 = vmatpush2.bf16.msra.mxu1 %v19691_v20  ;;  %14931 = vmatprep.subr.bf16.mxu0 %v19696_v53  ;;  %v19771_v20 = vld [vmem:[#allocation5 + $0x96c] ss:$24 sps:$4 sm:$0xff]   ;;  %v19766_v53 = vld [vmem:[#allocation5 + $0x668] ss:$24 sps:$4 sm:$0xff]  }
 0x9c3   :  { %14972 = vmatprep.subr.bf16.mxu1 %v19699_v2  ;;  %v19769_v2 = vld [vmem:[#allocation5 + $0x968] ss:$24 sps:$4 sm:$0xff]  }
 0x9c5   :  { %14932 = vmatpush2.bf16.msra.mxu0 %v19694_v16  ;;  %v19774_v16 = vld [vmem:[#allocation5 + $0x63c] ss:$24 sps:$4 sm:$0xff]  }
 0x9c6   :  { %14973 = vmatpush2.bf16.msra.mxu1 %v19697_v63  ;;  %14933 = vmatprep.subr.bf16.mxu0 %v19702_v61  ;;  %v19777_v63 = vld [vmem:[#allocation5 + $0x93c] ss:$24 sps:$4 sm:$0xff]   ;;  %v19772_v61 = vld [vmem:[#allocation5 + $0x638] ss:$24 sps:$4 sm:$0xff]  }
 0x9c7   :  { %14974 = vmatprep.subr.bf16.mxu1 %v19705_v25  ;;  %v19775_v25 = vld [vmem:[#allocation5 + $0x938] ss:$24 sps:$4 sm:$0xff]  }
 0x9c9   :  { %14934 = vmatpush2.bf16.msra.mxu0 %v19700_v30  ;;  %v19780_v30 = vld [vmem:[#allocation5 + $0x60c] ss:$24 sps:$4 sm:$0xff]  }
 0x9ca   :  { %14975 = vmatpush2.bf16.msra.mxu1 %v19703_v47  ;;  %14935 = vmatprep.subr.bf16.mxu0 %v19708_v21  ;;  %v19783_v47 = vld [vmem:[#allocation5 + $0x90c] ss:$24 sps:$4 sm:$0xff]   ;;  %v19778_v21 = vld [vmem:[#allocation5 + $0x608] ss:$24 sps:$4 sm:$0xff]  }
 0x9cb   :  { %14976 = vmatprep.subr.bf16.mxu1 %v19711_v3  ;;  %v19781_v3 = vld [vmem:[#allocation5 + $0x908] ss:$24 sps:$4 sm:$0xff]  }
 0x9cd   :  { %14936 = vmatpush2.bf16.msra.mxu0 %v19706_v4  ;;  %v19786_v4 = vld [vmem:[#allocation5 + $0x8dc] ss:$24 sps:$4 sm:$0xff]  }
 0x9ce   :  { %14977 = vmatpush2.bf16.msra.mxu1 %v19709_v28  ;;  %14937 = vmatprep.subr.bf16.mxu0 %v19714_v49  ;;  %v19789_v28 = vld [vmem:[#allocation5 + $0xbdc] ss:$24 sps:$4 sm:$0xff]   ;;  %v19784_v49 = vld [vmem:[#allocation5 + $0x8d8] ss:$24 sps:$4 sm:$0xff]  }
 0x9cf   :  { %14978 = vmatprep.subr.bf16.mxu1 %v19717_v32  ;;  %v19787_v32 = vld [vmem:[#allocation5 + $0xbd8] ss:$24 sps:$4 sm:$0xff]  }
 0x9d1   :  { %14938 = vmatpush2.bf16.msra.mxu0 %v19712_v50  ;;  %v19792_v50 = vld [vmem:[#allocation5 + $0x8ac] ss:$24 sps:$4 sm:$0xff]  }
 0x9d2   :  { %14979 = vmatpush2.bf16.msra.mxu1 %v19715_v23  ;;  %14939 = vmatprep.subr.bf16.mxu0 %v19720_v15  ;;  %v19795_v23 = vld [vmem:[#allocation5 + $0xbac] ss:$24 sps:$4 sm:$0xff]   ;;  %v19790_v15 = vld [vmem:[#allocation5 + $0x8a8] ss:$24 sps:$4 sm:$0xff]  }
 0x9d3   :  { %14980 = vmatprep.subr.bf16.mxu1 %v19723_v33  ;;  %v19793_v33 = vld [vmem:[#allocation5 + $0xba8] ss:$24 sps:$4 sm:$0xff]  }
 0x9d5   :  { %14940 = vmatpush2.bf16.msra.mxu0 %v19718_v6  ;;  %v19798_v6 = vld [vmem:[#allocation5 + $0x87c] ss:$24 sps:$4 sm:$0xff]  }
 0x9d6   :  { %14981 = vmatpush2.bf16.msra.mxu1 %v19721_v18  ;;  %14941 = vmatprep.subr.bf16.mxu0 %v19726_v45  ;;  %v19801_v18 = vld [vmem:[#allocation5 + $0xb7c] ss:$24 sps:$4 sm:$0xff]   ;;  %v19796_v45 = vld [vmem:[#allocation5 + $0x878] ss:$24 sps:$4 sm:$0xff]  }
 0x9d7   :  { %14982 = vmatprep.subr.bf16.mxu1 %v19729_v22  ;;  %v19799_v22 = vld [vmem:[#allocation5 + $0xb78] ss:$24 sps:$4 sm:$0xff]  }
 0x9d9   :  { %14942 = vmatpush2.bf16.msra.mxu0 %v19724_v8  ;;  %v19804_v8 = vld [vmem:[#allocation5 + $0x84c] ss:$24 sps:$4 sm:$0xff]  }
 0x9da   :  { %14983 = vmatpush2.bf16.msra.mxu1 %v19727_v35  ;;  %14943 = vmatprep.subr.bf16.mxu0 %v19732_v7  ;;  %v19807_v35 = vld [vmem:[#allocation5 + $0xb4c] ss:$24 sps:$4 sm:$0xff]   ;;  %v19802_v7 = vld [vmem:[#allocation5 + $0x848] ss:$24 sps:$4 sm:$0xff]  }
 0x9db   :  { %14984 = vmatprep.subr.bf16.mxu1 %v19735_v24  ;;  %v19805_v24 = vld [vmem:[#allocation5 + $0xb48] ss:$24 sps:$4 sm:$0xff]  }
 0x9dd   :  { %14944 = vmatpush2.bf16.msra.mxu0 %v19730_v27  ;;  %v19810_v27 = vld [vmem:[#allocation5 + $0x81c] ss:$24 sps:$4 sm:$0xff]  }
 0x9de   :  { %14985 = vmatpush2.bf16.msra.mxu1 %v19733_v62  ;;  %14995 = vmatprep.subr.bf16.mxu0 %v19738_v34  ;;  %v19813_v62 = vld [vmem:[#allocation5 + $0xb1c] ss:$24 sps:$4 sm:$0xff]   ;;  %v19808_v34 = vld [vmem:[#allocation5 + $0x818] ss:$24 sps:$4 sm:$0xff]  }
 0x9df   :  { %15036 = vmatprep.subr.bf16.mxu1 %v19741_v48  ;;  %v19811_v48 = vld [vmem:[#allocation5 + $0xb18] ss:$24 sps:$4 sm:$0xff]  }
 0x9e0   :  { %14946 = vmatmul.mubr.bf16.vlgmr.msra.gmra.mxu0 %v20732_v9 }
 0x9e1   :  { %14987 = vmatmul.mubr.bf16.vlgmr.msra.gmra.mxu1 %v20736_v11  ;;  %14996 = vmatpush1.bf16.msra.mxu0 %v19736_v39  ;;  %v19816_v39 = vld [vmem:[#allocation5 + $0x7ec] ss:$24 sps:$4 sm:$0xff]  }
 0x9e2   :  { %15037 = vmatpush1.bf16.msra.mxu1 %v19739_v55  ;;  %14997 = vmatprep.subr.bf16.mxu0 %v19744_v37  ;;  %v19819_v55 = vld [vmem:[#allocation5 + $0xaec] ss:$24 sps:$4 sm:$0xff]   ;;  %v19814_v37 = vld [vmem:[#allocation5 + $0x7e8] ss:$24 sps:$4 sm:$0xff]  }
 0x9e3   :  { %15038 = vmatprep.subr.bf16.mxu1 %v19747_v12  ;;  %15027 = vmatprep.mubr.bf16.mxu0 %v20740_v26  ;;  %v19817_v12 = vld [vmem:[#allocation5 + $0xae8] ss:$24 sps:$4 sm:$0xff]  }
 0x9e4   :  { %15068 = vmatprep.mubr.bf16.mxu1 %v20744_v59 }
 0x9e5   :  { %14998 = vmatpush1.bf16.msra.mxu0 %v19742_v17  ;;  %v19822_v17 = vld [vmem:[#allocation5 + $0x7bc] ss:$24 sps:$4 sm:$0xff]  }
 0x9e6   :  { %15039 = vmatpush1.bf16.msra.mxu1 %v19745_v41  ;;  %14999 = vmatprep.subr.bf16.mxu0 %v19750_v60  ;;  %v19825_v41 = vld [vmem:[#allocation5 + $0xabc] ss:$24 sps:$4 sm:$0xff]   ;;  %v19820_v60 = vld [vmem:[#allocation5 + $0x7b8] ss:$24 sps:$4 sm:$0xff]  }
 0x9e7   :  { %15040 = vmatprep.subr.bf16.mxu1 %v19753_v38  ;;  %v19823_v38 = vld [vmem:[#allocation5 + $0xab8] ss:$24 sps:$4 sm:$0xff]  }
 0x9e9   :  { %15000 = vmatpush1.bf16.msra.mxu0 %v19748_v0  ;;  %v19828_v0 = vld [vmem:[#allocation5 + $0x78c] ss:$24 sps:$4 sm:$0xff]  }
 0x9ea   :  { %15041 = vmatpush1.bf16.msra.mxu1 %v19751_v13  ;;  %15001 = vmatprep.subr.bf16.mxu0 %v19756_v1  ;;  %v19831_v13 = vld [vmem:[#allocation5 + $0xa8c] ss:$24 sps:$4 sm:$0xff]   ;;  %v19826_v1 = vld [vmem:[#allocation5 + $0x788] ss:$24 sps:$4 sm:$0xff]  }
 0x9eb   :  { %15042 = vmatprep.subr.bf16.mxu1 %v19759_v54  ;;  %v19829_v54 = vld [vmem:[#allocation5 + $0xa88] ss:$24 sps:$4 sm:$0xff]  }
 0x9ed   :  { %15002 = vmatpush1.bf16.msra.mxu0 %v19754_v56  ;;  %v20766_v56 = vld [vmem:[#allocation11 + $0x1e] sm:$0x3f] }
 0x9ee   :  { %15043 = vmatpush1.bf16.msra.mxu1 %v19757_v10  ;;  %15003 = vmatprep.subr.bf16.mxu0 %v19762_v46  ;;  %v19834_v10 = vld [vmem:[#allocation5 + $0x164] ss:$24 sps:$4 sm:$0xff]  }
 0x9ef   :  { %15044 = vmatprep.subr.bf16.mxu1 %v19765_v5  ;;  %v19837_v46 = vld [vmem:[#allocation5 + $0x464] ss:$24 sps:$4 sm:$0xff]   ;;  %v12802_v5 = vrot.slane %v20766_v56, %v20324_v29  ;;  %v19841_v29 = vld [vmem:[#allocation5 + $0x430] ss:$24 sps:$4 sm:$0xff]  }
 0x9f1   :  { %15004 = vmatpush1.bf16.msra.mxu0 %v19760_v44  ;;  %v19832_v44 = vld [vmem:[#allocation5 + $0x160] ss:$24 sps:$4 sm:$0xff]  }
 0x9f2   :  { %15045 = vmatpush1.bf16.msra.mxu1 %v19763_v19  ;;  %15005 = vmatprep.subr.bf16.mxu0 %v19768_v52  ;;  %v19835_v19 = vld [vmem:[#allocation5 + $0x460] ss:$24 sps:$4 sm:$0xff]   ;;  %v19840_v52 = vld [vmem:[#allocation5 + $0x134] ss:$24 sps:$4 sm:$0xff]  }
 0x9f3   :  { %15046 = vmatprep.subr.bf16.mxu1 %v19771_v20  ;;  %v19843_v20 = vld [vmem:[#allocation5 + $0x434] ss:$24 sps:$4 sm:$0xff]  }
 0x9f5   :  { %15006 = vmatpush1.bf16.msra.mxu0 %v19766_v53  ;;  %v12806_v53 = vrot.slane %v20766_v56, %v20328_v31 }
 0x9f6   :  { %15047 = vmatpush1.bf16.msra.mxu1 %v19769_v2  ;;  %15007 = vmatprep.subr.bf16.mxu0 %v19774_v16 }
 0x9f7   :  { %15048 = vmatprep.subr.bf16.mxu1 %v19777_v63 }
 0x9f9   :  { %15008 = vmatpush1.bf16.msra.mxu0 %v19772_v61  ;;  %v19838_v61 = vld [vmem:[#allocation5 + $0x130] ss:$24 sps:$4 sm:$0xff]  }
 0x9fa   :  { %15049 = vmatpush1.bf16.msra.mxu1 %v19775_v25  ;;  %15009 = vmatprep.subr.bf16.mxu0 %v19780_v30 }
 0x9fb   :  { %15050 = vmatprep.subr.bf16.mxu1 %v19783_v47  ;;  %v19846_v47 = vld [vmem:[#allocation5 + $0x104] ss:$24 sps:$4 sm:$0xff]  }
 0x9fd   :  { %15010 = vmatpush1.bf16.msra.mxu0 %v19778_v21  ;;  %v19849_v21 = vld [vmem:[#allocation5 + $0x404] ss:$24 sps:$4 sm:$0xff]  }
 0x9fe   :  { %15051 = vmatpush1.bf16.msra.mxu1 %v19781_v3  ;;  %15011 = vmatprep.subr.bf16.mxu0 %v19786_v4 }
 0x9ff   :  { %15052 = vmatprep.subr.bf16.mxu1 %v19789_v28 }
 0xa01   :  { %15012 = vmatpush2.bf16.msra.mxu0 %v19784_v49 }
 0xa02   :  { %15053 = vmatpush2.bf16.msra.mxu1 %v19787_v32  ;;  %15013 = vmatprep.subr.bf16.mxu0 %v19792_v50  ;;  %v19844_v32 = vld [vmem:[#allocation5 + $0x100] ss:$24 sps:$4 sm:$0xff]  }
 0xa03   :  { %15054 = vmatprep.subr.bf16.mxu1 %v19795_v23  ;;  %v19847_v50 = vld [vmem:[#allocation5 + $0x400] ss:$24 sps:$4 sm:$0xff]  }
 0xa05   :  { %15014 = vmatpush2.bf16.msra.mxu0 %v19790_v15 }
 0xa06   :  { %15055 = vmatpush2.bf16.msra.mxu1 %v19793_v33  ;;  %15015 = vmatprep.subr.bf16.mxu0 %v19798_v6  ;;  %v19852_v33 = vld [vmem:[#allocation5 + $0xd4] ss:$24 sps:$4 sm:$0xff]  }
 0xa07   :  { %15056 = vmatprep.subr.bf16.mxu1 %v19801_v18  ;;  %v19855_v6 = vld [vmem:[#allocation5 + $0x3d4] ss:$24 sps:$4 sm:$0xff]   ;;  %v19850_v18 = vld [vmem:[#allocation5 + $0xd0] ss:$24 sps:$4 sm:$0xff]  }
 0xa09   :  { %15016 = vmatpush2.bf16.msra.mxu0 %v19796_v45  ;;  %v19861_v45 = vld [vmem:[#allocation5 + $0x3a4] ss:$24 sps:$4 sm:$0xff]  }
 0xa0a   :  { %15057 = vmatpush2.bf16.msra.mxu1 %v19799_v22  ;;  %15017 = vmatprep.subr.bf16.mxu0 %v19804_v8  ;;  %v19856_v22 = vld [vmem:[#allocation5 + $0xa0] ss:$24 sps:$4 sm:$0xff]  }
 0xa0b   :  { %15058 = vmatprep.subr.bf16.mxu1 %v19807_v35  ;;  %v19859_v8 = vld [vmem:[#allocation5 + $0x3a0] ss:$24 sps:$4 sm:$0xff]   ;;  %v19864_v35 = vld [vmem:[#allocation5 + $0x74] ss:$24 sps:$4 sm:$0xff]  }
 0xa0d   :  { %15018 = vmatpush2.bf16.msra.mxu0 %v19802_v7  ;;  %v19867_v7 = vld [vmem:[#allocation5 + $0x374] ss:$24 sps:$4 sm:$0xff]  }
 0xa0e   :  { %15059 = vmatpush2.bf16.msra.mxu1 %v19805_v24  ;;  %15019 = vmatprep.subr.bf16.mxu0 %v19810_v27  ;;  %v19862_v24 = vld [vmem:[#allocation5 + $0x70] ss:$24 sps:$4 sm:$0xff]  }
 0xa0f   :  { %15060 = vmatprep.subr.bf16.mxu1 %v19813_v62  ;;  %v19865_v27 = vld [vmem:[#allocation5 + $0x370] ss:$24 sps:$4 sm:$0xff]   ;;  %v19870_v62 = vld [vmem:[#allocation5 + $0x44] ss:$24 sps:$4 sm:$0xff]  }
 0xa11   :  { %15020 = vmatpush2.bf16.msra.mxu0 %v19808_v34  ;;  %v19873_v34 = vld [vmem:[#allocation5 + $0x344] ss:$24 sps:$4 sm:$0xff]  }
 0xa12   :  { %15061 = vmatpush2.bf16.msra.mxu1 %v19811_v48  ;;  %15021 = vmatprep.subr.bf16.mxu0 %v19816_v39  ;;  %v19868_v48 = vld [vmem:[#allocation5 + $0x40] ss:$24 sps:$4 sm:$0xff]  }
 0xa13   :  { %15062 = vmatprep.subr.bf16.mxu1 %v19819_v55  ;;  %v19871_v39 = vld [vmem:[#allocation5 + $0x340] ss:$24 sps:$4 sm:$0xff]   ;;  %v19876_v55 = vld [vmem:[#allocation5 + $0x14] ss:$24 sps:$4 sm:$0xff]  }
 0xa15   :  { %15022 = vmatpush2.bf16.msra.mxu0 %v19814_v37  ;;  %v19879_v37 = vld [vmem:[#allocation5 + $0x314] ss:$24 sps:$4 sm:$0xff]  }
 0xa16   :  { %15063 = vmatpush2.bf16.msra.mxu1 %v19817_v12  ;;  %15023 = vmatprep.subr.bf16.mxu0 %v19822_v17  ;;  %v19874_v12 = vld [vmem:[#allocation5 + $0x10] ss:$24 sps:$4 sm:$0xff]  }
 0xa17   :  { %15064 = vmatprep.subr.bf16.mxu1 %v19825_v41  ;;  %v19877_v17 = vld [vmem:[#allocation5 + $0x310] ss:$24 sps:$4 sm:$0xff]   ;;  %v19882_v41 = vld [vmem:[#allocation5 + $0x2e4] ss:$24 sps:$4 sm:$0xff]  }
 0xa19   :  { %15024 = vmatpush2.bf16.msra.mxu0 %v19820_v60  ;;  %v19885_v60 = vld [vmem:[#allocation5 + $0x5e4] ss:$24 sps:$4 sm:$0xff]  }
 0xa1a   :  { %15065 = vmatpush2.bf16.msra.mxu1 %v19823_v38  ;;  %15025 = vmatprep.subr.bf16.mxu0 %v19828_v0  ;;  %v19880_v38 = vld [vmem:[#allocation5 + $0x2e0] ss:$24 sps:$4 sm:$0xff]  }
 0xa1b   :  { %15066 = vmatprep.subr.bf16.mxu1 %v19831_v13  ;;  %v19883_v0 = vld [vmem:[#allocation5 + $0x5e0] ss:$24 sps:$4 sm:$0xff]   ;;  %v19888_v13 = vld [vmem:[#allocation5 + $0x2b4] ss:$24 sps:$4 sm:$0xff]  }
 0xa1d   :  { %15026 = vmatpush2.bf16.msra.mxu0 %v19826_v1  ;;  %v19891_v1 = vld [vmem:[#allocation5 + $0x5b4] ss:$24 sps:$4 sm:$0xff]  }
 0xa1e   :  { %15067 = vmatpush2.bf16.msra.mxu1 %v19829_v54  ;;  %15077 = vmatprep.subr.bf16.mxu0 %v19834_v10  ;;  %v19886_v54 = vld [vmem:[#allocation5 + $0x2b0] ss:$24 sps:$4 sm:$0xff]  }
 0xa1f   :  { %15118 = vmatprep.subr.bf16.mxu1 %v19837_v46  ;;  %v19889_v10 = vld [vmem:[#allocation5 + $0x5b0] ss:$24 sps:$4 sm:$0xff]   ;;  %v19894_v46 = vld [vmem:[#allocation5 + $0x284] ss:$24 sps:$4 sm:$0xff]  }
 0xa20   :  { %v14783_v2 = vpop.f32.mrf.mxu0  ;;  %15028 = vmatmul.mubr.bf16.vlgmr.msra.gmra.mxu0 %v20752_v14 }
 0xa21   :  { %v14824_v16 = vpop.f32.mrf.mxu1  ;;  %15069 = vmatmul.mubr.bf16.vlgmr.msra.gmra.mxu1 %v20756_v43  ;;  %v14784_v63 = vadd.f32 %v14783_v2, %v12802_v5  ;;  %15078 = vmatpush1.bf16.msra.mxu0 %v19832_v44  ;;  %v19897_v5 = vld [vmem:[#allocation5 + $0x584] ss:$24 sps:$4 sm:$0xff]   ;;  %v19892_v44 = vld [vmem:[#allocation5 + $0x280] ss:$24 sps:$4 sm:$0xff]   ;;  %v19901_v2 = vld [vmem:[#allocation5 + $0x550] ss:$24 sps:$4 sm:$0xff]  }
 0xa22   :  { %15119 = vmatpush1.bf16.msra.mxu1 %v19835_v19  ;;  %v14785_v25 = vpop.f32.mrf.mxu0  ;;  %15079 = vmatprep.subr.bf16.mxu0 %v19840_v52  ;;  %v19895_v19 = vld [vmem:[#allocation5 + $0x580] ss:$24 sps:$4 sm:$0xff]   ;;  %v19900_v52 = vld [vmem:[#allocation5 + $0x254] ss:$24 sps:$4 sm:$0xff]  }
 0xa23   :  { %v14826_v30 = vpop.f32.mrf.mxu1  ;;  %15120 = vmatprep.subr.bf16.mxu1 %v19843_v20  ;;  %v20774_v3 = vadd.f32 %v14824_v16, %v14784_v63  ;;  %v14786_v31 = vadd.f32 %v14785_v25, %v12806_v53  ;;  %15109 = vmatprep.mubr.bf16.mxu0 %v20722_v42  ;;  %v19853_v42 = vld [vmem:[#allocation5 + $0x3d0] ss:$24 sps:$4 sm:$0xff]   ;;  %v19903_v20 = vld [vmem:[#allocation5 + $0x554] ss:$24 sps:$4 sm:$0xff]   ;;  %v19906_v16 = vld [vmem:[#allocation5 + $0x224] ss:$24 sps:$4 sm:$0xff]  }
 0xa24   :  { %15150 = vmatprep.mubr.bf16.mxu1 %v20726_v57  ;;  %v14787_v4 = vpop.f32.mrf.mxu0  ;;  %v19858_v57 = vld [vmem:[#allocation5 + $0xa4] ss:$24 sps:$4 sm:$0xff]   ;;  %v19898_v53 = vld [vmem:[#allocation5 + $0x250] ss:$24 sps:$4 sm:$0xff]   ;;  %v19912_v25 = vld [vmem:[#allocation5 + $0x1f4] ss:$24 sps:$4 sm:$0xff]  }
 0xa25   :  { %v14828_v28 = vpop.f32.mrf.mxu1  ;;  %v20778_v49 = vadd.f32 %v14826_v30, %v14786_v31  ;;  %15080 = vmatpush1.bf16.msra.mxu0 %v19838_v61  ;;  %v19909_v63 = vld [vmem:[#allocation5 + $0x524] ss:$24 sps:$4 sm:$0xff]   ;;  %v19904_v61 = vld [vmem:[#allocation5 + $0x220] ss:$24 sps:$4 sm:$0xff]   ;;  %v19915_v30 = vld [vmem:[#allocation5 + $0x4f4] ss:$24 sps:$4 sm:$0xff]  }
 0xa26   :  { %15121 = vmatpush1.bf16.msra.mxu1 %v19841_v29  ;;  %v14788_v23 = vpop.f32.mrf.mxu0  ;;  %15081 = vmatprep.subr.bf16.mxu0 %v19846_v47  ;;  %v19907_v29 = vld [vmem:[#allocation5 + $0x520] ss:$24 sps:$4 sm:$0xff]   ;;  %v19910_v47 = vld [vmem:[#allocation5 + $0x1f0] ss:$24 sps:$4 sm:$0xff]   ;;  %v19918_v31 = vld [vmem:[#allocation5 + $0x1c4] ss:$24 sps:$4 sm:$0xff]  }
 0xa27   :  { %v14829_v15 = vpop.f32.mrf.mxu1  ;;  %15122 = vmatprep.subr.bf16.mxu1 %v19849_v21  ;;  %v19913_v21 = vld [vmem:[#allocation5 + $0x4f0] ss:$24 sps:$4 sm:$0xff]   ;;  %v19921_v4 = vld [vmem:[#allocation5 + $0x4c4] ss:$24 sps:$4 sm:$0xff]   ;;  %v19916_v28 = vld [vmem:[#allocation5 + $0x1c0] ss:$24 sps:$4 sm:$0xff]  }
 0xa28   :  { %v19927_v23 = vld [vmem:[#allocation5 + $0x494] ss:$24 sps:$4 sm:$0xff]   ;;  %v19922_v15 = vld [vmem:[#allocation5 + $0x190] ss:$24 sps:$4 sm:$0xff]  }
 0xa29   :  { %15082 = vmatpush1.bf16.msra.mxu0 %v19844_v32  ;;  %v19919_v32 = vld [vmem:[#allocation5 + $0x4c0] ss:$24 sps:$4 sm:$0xff]  }
 0xa2a   :  { %15123 = vmatpush1.bf16.msra.mxu1 %v19847_v50  ;;  %15083 = vmatprep.subr.bf16.mxu0 %v19852_v33  ;;  %v19924_v50 = vld [vmem:[#allocation5 + $0x194] ss:$24 sps:$4 sm:$0xff]   ;;  %v19925_v33 = vld [vmem:[#allocation5 + $0x490] ss:$24 sps:$4 sm:$0xff]  }
 0xa2b   :  { %15124 = vmatprep.subr.bf16.mxu1 %v19855_v6  ;;  %v19930_v6 = vld [vmem:[#allocation5 + $0x764] ss:$24 sps:$4 sm:$0xff]  }
 0xa2d   :  { %15084 = vmatpush1.bf16.msra.mxu0 %v19850_v18  ;;  %v19933_v18 = vld [vmem:[#allocation5 + $0xa64] ss:$24 sps:$4 sm:$0xff]  }
 0xa2e   :  { %15125 = vmatpush1.bf16.msra.mxu1 %v19853_v42  ;;  %15085 = vmatprep.subr.bf16.mxu0 %v19858_v57  ;;  %v19928_v42 = vld [vmem:[#allocation5 + $0x760] ss:$24 sps:$4 sm:$0xff]  }
 0xa2f   :  { %15126 = vmatprep.subr.bf16.mxu1 %v19861_v45  ;;  %v19931_v57 = vld [vmem:[#allocation5 + $0xa60] ss:$24 sps:$4 sm:$0xff]   ;;  %v19936_v45 = vld [vmem:[#allocation5 + $0x734] ss:$24 sps:$4 sm:$0xff]  }
 0xa31   :  { %15086 = vmatpush1.bf16.msra.mxu0 %v19856_v22  ;;  %v19939_v22 = vld [vmem:[#allocation5 + $0xa34] ss:$24 sps:$4 sm:$0xff]  }
 0xa32   :  { %15127 = vmatpush1.bf16.msra.mxu1 %v19859_v8  ;;  %15087 = vmatprep.subr.bf16.mxu0 %v19864_v35 }
 0xa33   :  { %15128 = vmatprep.subr.bf16.mxu1 %v19867_v7 }
 0xa35   :  { %15088 = vmatpush1.bf16.msra.mxu0 %v19862_v24  ;;  %v19934_v24 = vld [vmem:[#allocation5 + $0x730] ss:$24 sps:$4 sm:$0xff]  }
 0xa36   :  { %15129 = vmatpush1.bf16.msra.mxu1 %v19865_v27  ;;  %15089 = vmatprep.subr.bf16.mxu0 %v19870_v62  ;;  %v19937_v27 = vld [vmem:[#allocation5 + $0xa30] ss:$24 sps:$4 sm:$0xff]  }
 0xa37   :  { %15130 = vmatprep.subr.bf16.mxu1 %v19873_v34 }
 0xa39   :  { %15090 = vmatpush1.bf16.msra.mxu0 %v19868_v48  ;;  %v19942_v48 = vld [vmem:[#allocation5 + $0x704] ss:$24 sps:$4 sm:$0xff]  }
 0xa3a   :  { %15131 = vmatpush1.bf16.msra.mxu1 %v19871_v39  ;;  %15091 = vmatprep.subr.bf16.mxu0 %v19876_v55  ;;  %v19945_v39 = vld [vmem:[#allocation5 + $0xa04] ss:$24 sps:$4 sm:$0xff]  }
 0xa3b   :  { %15132 = vmatprep.subr.bf16.mxu1 %v19879_v37 }
 0xa3d   :  { %15092 = vmatpush1.bf16.msra.mxu0 %v19874_v12 }
 0xa3e   :  { %15133 = vmatpush1.bf16.msra.mxu1 %v19877_v17  ;;  %15093 = vmatprep.subr.bf16.mxu0 %v19882_v41  ;;  %v19940_v17 = vld [vmem:[#allocation5 + $0x700] ss:$24 sps:$4 sm:$0xff]  }
 0xa3f   :  { %15134 = vmatprep.subr.bf16.mxu1 %v19885_v60  ;;  %v19943_v41 = vld [vmem:[#allocation5 + $0xa00] ss:$24 sps:$4 sm:$0xff]  }
 0xa41   :  { %15094 = vmatpush2.bf16.msra.mxu0 %v19880_v38 }
 0xa42   :  { %15135 = vmatpush2.bf16.msra.mxu1 %v19883_v0  ;;  %15095 = vmatprep.subr.bf16.mxu0 %v19888_v13  ;;  %v19948_v0 = vld [vmem:[#allocation5 + $0x6d4] ss:$24 sps:$4 sm:$0xff]  }
 0xa43   :  { %15136 = vmatprep.subr.bf16.mxu1 %v19891_v1  ;;  %v19951_v13 = vld [vmem:[#allocation5 + $0x9d4] ss:$24 sps:$4 sm:$0xff]  }
 0xa45   :  { %15096 = vmatpush2.bf16.msra.mxu0 %v19886_v54  ;;  %v19949_v54 = vld [vmem:[#allocation5 + $0x9d0] ss:$24 sps:$4 sm:$0xff]  }
 0xa46   :  { %15137 = vmatpush2.bf16.msra.mxu1 %v19889_v10  ;;  %15097 = vmatprep.subr.bf16.mxu0 %v19894_v46  ;;  %v19954_v10 = vld [vmem:[#allocation5 + $0x6a4] ss:$24 sps:$4 sm:$0xff]  }
 0xa47   :  { %15138 = vmatprep.subr.bf16.mxu1 %v19897_v5  ;;  %v19957_v46 = vld [vmem:[#allocation5 + $0x9a4] ss:$24 sps:$4 sm:$0xff]   ;;  %v19952_v5 = vld [vmem:[#allocation5 + $0x6a0] ss:$24 sps:$4 sm:$0xff]  }
 0xa49   :  { %15098 = vmatpush2.bf16.msra.mxu0 %v19892_v44  ;;  %v19955_v44 = vld [vmem:[#allocation5 + $0x9a0] ss:$24 sps:$4 sm:$0xff]  }
 0xa4a   :  { %15139 = vmatpush2.bf16.msra.mxu1 %v19895_v19  ;;  %15099 = vmatprep.subr.bf16.mxu0 %v19900_v52  ;;  %v19960_v19 = vld [vmem:[#allocation5 + $0x674] ss:$24 sps:$4 sm:$0xff]  }
 0xa4b   :  { %15140 = vmatprep.subr.bf16.mxu1 %v19903_v20  ;;  %v19963_v52 = vld [vmem:[#allocation5 + $0x974] ss:$24 sps:$4 sm:$0xff]   ;;  %v19958_v20 = vld [vmem:[#allocation5 + $0x670] ss:$24 sps:$4 sm:$0xff]  }
 0xa4d   :  { %15100 = vmatpush2.bf16.msra.mxu0 %v19898_v53  ;;  %v19961_v53 = vld [vmem:[#allocation5 + $0x970] ss:$24 sps:$4 sm:$0xff]  }
 0xa4e   :  { %15141 = vmatpush2.bf16.msra.mxu1 %v19901_v2  ;;  %15101 = vmatprep.subr.bf16.mxu0 %v19906_v16  ;;  %v19966_v2 = vld [vmem:[#allocation5 + $0x644] ss:$24 sps:$4 sm:$0xff]  }
 0xa4f   :  { %15142 = vmatprep.subr.bf16.mxu1 %v19909_v63  ;;  %v19969_v16 = vld [vmem:[#allocation5 + $0x944] ss:$24 sps:$4 sm:$0xff]   ;;  %v19964_v63 = vld [vmem:[#allocation5 + $0x640] ss:$24 sps:$4 sm:$0xff]  }
 0xa51   :  { %15102 = vmatpush2.bf16.msra.mxu0 %v19904_v61  ;;  %v19967_v61 = vld [vmem:[#allocation5 + $0x940] ss:$24 sps:$4 sm:$0xff]  }
 0xa52   :  { %15143 = vmatpush2.bf16.msra.mxu1 %v19907_v29  ;;  %15103 = vmatprep.subr.bf16.mxu0 %v19912_v25  ;;  %v19972_v29 = vld [vmem:[#allocation5 + $0x614] ss:$24 sps:$4 sm:$0xff]  }
 0xa53   :  { %15144 = vmatprep.subr.bf16.mxu1 %v19915_v30  ;;  %v19975_v25 = vld [vmem:[#allocation5 + $0x914] ss:$24 sps:$4 sm:$0xff]   ;;  %v19970_v30 = vld [vmem:[#allocation5 + $0x610] ss:$24 sps:$4 sm:$0xff]  }
 0xa55   :  { %15104 = vmatpush2.bf16.msra.mxu0 %v19910_v47  ;;  %v19973_v47 = vld [vmem:[#allocation5 + $0x910] ss:$24 sps:$4 sm:$0xff]  }
 0xa56   :  { %15145 = vmatpush2.bf16.msra.mxu1 %v19913_v21  ;;  %15105 = vmatprep.subr.bf16.mxu0 %v19918_v31  ;;  %v19978_v21 = vld [vmem:[#allocation5 + $0x8e4] ss:$24 sps:$4 sm:$0xff]  }
 0xa57   :  { %15146 = vmatprep.subr.bf16.mxu1 %v19921_v4  ;;  %v19981_v31 = vld [vmem:[#allocation5 + $0xbe4] ss:$24 sps:$4 sm:$0xff]   ;;  %v19976_v4 = vld [vmem:[#allocation5 + $0x8e0] ss:$24 sps:$4 sm:$0xff]  }
 0xa59   :  { %15106 = vmatpush2.bf16.msra.mxu0 %v19916_v28  ;;  %v19979_v28 = vld [vmem:[#allocation5 + $0xbe0] ss:$24 sps:$4 sm:$0xff]  }
 0xa5a   :  { %15147 = vmatpush2.bf16.msra.mxu1 %v19919_v32  ;;  %15107 = vmatprep.subr.bf16.mxu0 %v19924_v50  ;;  %v19984_v32 = vld [vmem:[#allocation5 + $0x8b4] ss:$24 sps:$4 sm:$0xff]  }
 0xa5b   :  { %15148 = vmatprep.subr.bf16.mxu1 %v19927_v23  ;;  %v19987_v50 = vld [vmem:[#allocation5 + $0xbb4] ss:$24 sps:$4 sm:$0xff]   ;;  %v19982_v23 = vld [vmem:[#allocation5 + $0x8b0] ss:$24 sps:$4 sm:$0xff]  }
 0xa5d   :  { %15108 = vmatpush2.bf16.msra.mxu0 %v19922_v15  ;;  %v19985_v15 = vld [vmem:[#allocation5 + $0xbb0] ss:$24 sps:$4 sm:$0xff]  }
 0xa5e   :  { %15149 = vmatpush2.bf16.msra.mxu1 %v19925_v33  ;;  %15159 = vmatprep.subr.bf16.mxu0 %v19930_v6  ;;  %v19990_v33 = vld [vmem:[#allocation5 + $0x884] ss:$24 sps:$4 sm:$0xff]  }
 0xa5f   :  { %15200 = vmatprep.subr.bf16.mxu1 %v19933_v18  ;;  %v19993_v6 = vld [vmem:[#allocation5 + $0xb84] ss:$24 sps:$4 sm:$0xff]   ;;  %v19988_v18 = vld [vmem:[#allocation5 + $0x880] ss:$24 sps:$4 sm:$0xff]  }
 0xa60   :  { %v14865_v8 = vpop.f32.mrf.mxu0  ;;  %15110 = vmatmul.mubr.bf16.vlgmr.msra.gmra.mxu0 %v20732_v9 }
 0xa61   :  { %v14906_v35 = vpop.f32.mrf.mxu1  ;;  %15151 = vmatmul.mubr.bf16.vlgmr.msra.gmra.mxu1 %v20736_v11  ;;  %v14866_v7 = vadd.f32 %v14865_v8, %v20774_v3  ;;  %15160 = vmatpush1.bf16.msra.mxu0 %v19928_v42  ;;  %v19991_v42 = vld [vmem:[#allocation5 + $0xb80] ss:$24 sps:$4 sm:$0xff]   ;;  %v19997_v8 = vld [vmem:[#allocation5 + $0xb50] ss:$24 sps:$4 sm:$0xff]  }
 0xa62   :  { %15201 = vmatpush1.bf16.msra.mxu1 %v19931_v57  ;;  %v14867_v62 = vpop.f32.mrf.mxu0  ;;  %15161 = vmatprep.subr.bf16.mxu0 %v19936_v45  ;;  %v19996_v57 = vld [vmem:[#allocation5 + $0x854] ss:$24 sps:$4 sm:$0xff]  }
 0xa63   :  { %v14908_v34 = vpop.f32.mrf.mxu1  ;;  %15202 = vmatprep.subr.bf16.mxu1 %v19939_v22  ;;  %v14907_v55 = vadd.f32 %v14906_v35, %v14866_v7  ;;  %v14868_v37 = vadd.f32 %v14867_v62, %v20778_v49  ;;  %15191 = vmatprep.mubr.bf16.mxu0 %v20740_v26  ;;  %v19999_v45 = vld [vmem:[#allocation5 + $0xb54] ss:$24 sps:$4 sm:$0xff]   ;;  %v19994_v22 = vld [vmem:[#allocation5 + $0x850] ss:$24 sps:$4 sm:$0xff]   ;;  %v20002_v35 = vld [vmem:[#allocation5 + $0x824] ss:$24 sps:$4 sm:$0xff]  }
 0xa64   :  { %15232 = vmatprep.mubr.bf16.mxu1 %v20744_v59  ;;  %v14869_v9 = vpop.f32.mrf.mxu0  ;;  %v19946_v59 = vld [vmem:[#allocation5 + $0x6d0] ss:$24 sps:$4 sm:$0xff]   ;;  %v20005_v7 = vld [vmem:[#allocation5 + $0xb24] ss:$24 sps:$4 sm:$0xff]   ;;  %v20008_v62 = vld [vmem:[#allocation5 + $0x7f4] ss:$24 sps:$4 sm:$0xff]  }
 0xa65   :  { %v14910_v11 = vpop.f32.mrf.mxu1  ;;  %v15241_v3 = vmul.f32 0.01, %v14907_v55  ;;  %v14909_v12 = vadd.f32 %v14908_v34, %v14868_v37  ;;  %15162 = vmatpush1.bf16.msra.mxu0 %v19934_v24  ;;  %v20000_v24 = vld [vmem:[#allocation5 + $0x820] ss:$24 sps:$4 sm:$0xff]   ;;  %v20011_v34 = vld [vmem:[#allocation5 + $0xaf4] ss:$24 sps:$4 sm:$0xff]  }
 0xa66   :  { %15203 = vmatpush1.bf16.msra.mxu1 %v19937_v27  ;;  %v14870_v60 = vpop.f32.mrf.mxu0  ;;  %15163 = vmatprep.subr.bf16.mxu0 %v19942_v48  ;;  %v20003_v27 = vld [vmem:[#allocation5 + $0xb20] ss:$24 sps:$4 sm:$0xff]   ;;  %v20006_v48 = vld [vmem:[#allocation5 + $0x7f0] ss:$24 sps:$4 sm:$0xff]   ;;  %v20017_v37 = vld [vmem:[#allocation5 + $0xac4] ss:$24 sps:$4 sm:$0xff]  }
 0xa67   :  { %v14911_v38 = vpop.f32.mrf.mxu1  ;;  %15204 = vmatprep.subr.bf16.mxu1 %v19945_v39  ;;  %v20786_v1 = vmax.f32 %v14907_v55, %v15241_v3  ;;  %v15242_v49 = vmul.f32 0.01, %v14909_v12  ;;  %v20009_v39 = vld [vmem:[#allocation5 + $0xaf0] ss:$24 sps:$4 sm:$0xff]   ;;  %v20014_v55 = vld [vmem:[#allocation5 + $0x7c4] ss:$24 sps:$4 sm:$0xff]   ;;  %v12810_v60 = vrot.slane %v20766_v56, %v20334_v36 }
 0xa68   :  { %v20012_v9 = vld [vmem:[#allocation5 + $0x7c0] ss:$24 sps:$4 sm:$0xff]   ;;  %v20020_v3 = vld [vmem:[#allocation5 + $0x794] ss:$24 sps:$4 sm:$0xff]   ;;  %v12814_v38 = vrot.slane %v20766_v56, %v20336_v40 }
 0xa69   :  { %v20788_v26 = vmax.f32 %v14909_v12, %v15242_v49  ;;  %15164 = vmatpush1.bf16.msra.mxu0 %v19940_v17  ;;  %v20015_v11 = vld [vmem:[#allocation5 + $0xac0] ss:$24 sps:$4 sm:$0xff]   ;;  %v20023_v12 = vld [vmem:[#allocation5 + $0xa94] ss:$24 sps:$4 sm:$0xff]   ;;  %v20018_v17 = vld [vmem:[#allocation5 + $0x790] ss:$24 sps:$4 sm:$0xff]  }
 0xa6a   :  { %15205 = vmatpush1.bf16.msra.mxu1 %v19943_v41  ;;  %15165 = vmatprep.subr.bf16.mxu0 %v19948_v0  ;;  %v20021_v41 = vld [vmem:[#allocation5 + $0xa90] ss:$24 sps:$4 sm:$0xff]  }
 0xa6b   :  { %15206 = vmatprep.subr.bf16.mxu1 %v19951_v13 }
 0xa6d   :  { %15166 = vmatpush1.bf16.msra.mxu0 %v19946_v59 }
 0xa6e   :  { %15207 = vmatpush1.bf16.msra.mxu1 %v19949_v54  ;;  %15167 = vmatprep.subr.bf16.mxu0 %v19954_v10 }
 0xa6f   :  { %15208 = vmatprep.subr.bf16.mxu1 %v19957_v46 }
 0xa71   :  { %15168 = vmatpush1.bf16.msra.mxu0 %v19952_v5 }
 0xa72   :  { %15209 = vmatpush1.bf16.msra.mxu1 %v19955_v44  ;;  %15169 = vmatprep.subr.bf16.mxu0 %v19960_v19 }
 0xa73   :  { %15210 = vmatprep.subr.bf16.mxu1 %v19963_v52 }
 0xa75   :  { %15170 = vmatpush1.bf16.msra.mxu0 %v19958_v20 }
 0xa76   :  { %15211 = vmatpush1.bf16.msra.mxu1 %v19961_v53  ;;  %15171 = vmatprep.subr.bf16.mxu0 %v19966_v2 }
 0xa77   :  { %15212 = vmatprep.subr.bf16.mxu1 %v19969_v16 }
 0xa79   :  { %15172 = vmatpush1.bf16.msra.mxu0 %v19964_v63 }
 0xa7a   :  { %15213 = vmatpush1.bf16.msra.mxu1 %v19967_v61  ;;  %15173 = vmatprep.subr.bf16.mxu0 %v19972_v29 }
 0xa7b   :  { %15214 = vmatprep.subr.bf16.mxu1 %v19975_v25 }
 0xa7d   :  { %15174 = vmatpush1.bf16.msra.mxu0 %v19970_v30 }
 0xa7e   :  { %15215 = vmatpush1.bf16.msra.mxu1 %v19973_v47  ;;  %15175 = vmatprep.subr.bf16.mxu0 %v19978_v21 }
 0xa7f   :  { %15216 = vmatprep.subr.bf16.mxu1 %v19981_v31 }
 0xa81   :  { %15176 = vmatpush2.bf16.msra.mxu0 %v19976_v4 }
 0xa82   :  { %15217 = vmatpush2.bf16.msra.mxu1 %v19979_v28  ;;  %15177 = vmatprep.subr.bf16.mxu0 %v19984_v32 }
 0xa83   :  { %15218 = vmatprep.subr.bf16.mxu1 %v19987_v50 }
 0xa85   :  { %15178 = vmatpush2.bf16.msra.mxu0 %v19982_v23 }
 0xa86   :  { %15219 = vmatpush2.bf16.msra.mxu1 %v19985_v15  ;;  %15179 = vmatprep.subr.bf16.mxu0 %v19990_v33 }
 0xa87   :  { %15220 = vmatprep.subr.bf16.mxu1 %v19993_v6 }
 0xa89   :  { %15180 = vmatpush2.bf16.msra.mxu0 %v19988_v18 }
 0xa8a   :  { %15221 = vmatpush2.bf16.msra.mxu1 %v19991_v42  ;;  %15181 = vmatprep.subr.bf16.mxu0 %v19996_v57  ;;  %v12818_v42 = vrot.slane %v20766_v56, %v20350_v51  ;;  %v12822_v57 = vrot.slane %v20766_v56, %v20354_v58 }
 0xa8b   :  { %15222 = vmatprep.subr.bf16.mxu1 %v19999_v45 }
 0xa8d   :  { %15182 = vmatpush2.bf16.msra.mxu0 %v19994_v22 }
 0xa8e   :  { %15223 = vmatpush2.bf16.msra.mxu1 %v19997_v8  ;;  %15183 = vmatprep.subr.bf16.mxu0 %v20002_v35 }
 0xa8f   :  { %15224 = vmatprep.subr.bf16.mxu1 %v20005_v7 }
 0xa91   :  { %15184 = vmatpush2.bf16.msra.mxu0 %v20000_v24 }
 0xa92   :  { %15225 = vmatpush2.bf16.msra.mxu1 %v20003_v27  ;;  %15185 = vmatprep.subr.bf16.mxu0 %v20008_v62 }
 0xa93   :  { %15226 = vmatprep.subr.bf16.mxu1 %v20011_v34 }
 0xa95   :  { %15186 = vmatpush2.bf16.msra.mxu0 %v20006_v48 }
 0xa96   :  { %15227 = vmatpush2.bf16.msra.mxu1 %v20009_v39  ;;  %15187 = vmatprep.subr.bf16.mxu0 %v20014_v55 }
 0xa97   :  { %15228 = vmatprep.subr.bf16.mxu1 %v20017_v37 }
 0xa99   :  { %15188 = vmatpush2.bf16.msra.mxu0 %v20012_v9 }
 0xa9a   :  { %15229 = vmatpush2.bf16.msra.mxu1 %v20015_v11  ;;  %15189 = vmatprep.subr.bf16.mxu0 %v20020_v3 }
 0xa9b   :  { %15230 = vmatprep.subr.bf16.mxu1 %v20023_v12 }
 0xa9d   :  { %15190 = vmatpush2.bf16.msra.mxu0 %v20018_v17 }
 0xa9e   :  { %15231 = vmatpush2.bf16.msra.mxu1 %v20021_v41 }
 0xaa0   :  { %v14947_v0 = vpop.f32.mrf.mxu0  ;;  %15192 = vmatmul.mubr.bf16.vlgmr.msra.gmra.mxu0 %v20752_v14 }
 0xaa1   :  { %v14988_v13 = vpop.f32.mrf.mxu1  ;;  %15233 = vmatmul.mubr.bf16.vlgmr.msra.gmra.mxu1 %v20756_v43  ;;  %v14948_v49 = vadd.f32 %v14947_v0, %v12810_v60 }
 0xaa2   :  { %v14949_v59 = vpop.f32.mrf.mxu0 }
 0xaa3   :  { %v14990_v54 = vpop.f32.mrf.mxu1  ;;  %v14989_v10 = vadd.f32 %v14988_v13, %v14948_v49  ;;  %v14950_v46 = vadd.f32 %v14949_v59, %v12814_v38 }
 0xaa4   :  { %v14951_v5 = vpop.f32.mrf.mxu0 }
 0xaa5   :  { %v14992_v44 = vpop.f32.mrf.mxu1  ;;  %v14991_v19 = vadd.f32 %v14990_v54, %v14950_v46 }
 0xaa6   :  { %v14952_v52 = vpop.f32.mrf.mxu0 }
 0xaa7   :  { %v14993_v20 = vpop.f32.mrf.mxu1 }
 0xae0   :  { %v15029_v36 = vpop.f32.mrf.mxu0 }
 0xae1   :  { %v15070_v53 = vpop.f32.mrf.mxu1  ;;  %v15030_v2 = vadd.f32 %v15029_v36, %v14989_v10 }
 0xae2   :  { %v15031_v40 = vpop.f32.mrf.mxu0 }
 0xae3   :  { %v15072_v16 = vpop.f32.mrf.mxu1  ;;  %v15071_v63 = vadd.f32 %v15070_v53, %v15030_v2  ;;  %v15032_v61 = vadd.f32 %v15031_v40, %v14991_v19 }
 0xae4   :  { %v15033_v14 = vpop.f32.mrf.mxu0 }
 0xae5   :  { %v15074_v29 = vpop.f32.mrf.mxu1  ;;  %v15243_v43 = vmul.f32 0.01, %v15071_v63  ;;  %v15073_v25 = vadd.f32 %v15072_v16, %v15032_v61 }
 0xae6   :  { %v15034_v30 = vpop.f32.mrf.mxu0 }
 0xae7   :  { %v15075_v47 = vpop.f32.mrf.mxu1  ;;  %v20796_v21 = vmax.f32 %v15071_v63, %v15243_v43  ;;  %v15244_v31 = vmul.f32 0.01, %v15073_v25 }
 0xae9   :  { %v15250_v4 = vmax.f32 %v15073_v25, %v15244_v31 }
 0xb20   :  { %v15111_v28 = vpop.f32.mrf.mxu0 }
 0xb21   :  { %v15152_v32 = vpop.f32.mrf.mxu1  ;;  %v15112_v45 = vadd.f32 %v15111_v28, %v12818_v42 }
 0xb22   :  { %v15113_v50 = vpop.f32.mrf.mxu0 }
 0xb23   :  { %v15154_v23 = vpop.f32.mrf.mxu1  ;;  %v15114_v22 = vadd.f32 %v15113_v50, %v12822_v57  ;;  %v15153_v8 = vadd.f32 %v15152_v32, %v15112_v45 }
 0xb24   :  { %v15115_v15 = vpop.f32.mrf.mxu0 }
 0xb25   :  { %v15156_v33 = vpop.f32.mrf.mxu1  ;;  %v15155_v24 = vadd.f32 %v15154_v23, %v15114_v22 }
 0xb26   :  { %v15116_v6 = vpop.f32.mrf.mxu0 }
 0xb27   :  { %v15157_v18 = vpop.f32.mrf.mxu1 }
 0xb60   :  { %v15193_v35 = vpop.f32.mrf.mxu0 }
 0xb61   :  { %v15234_v7 = vpop.f32.mrf.mxu1  ;;  %v15194_v27 = vadd.f32 %v15193_v35, %v15153_v8 }
 0xb62   :  { %v15195_v62 = vpop.f32.mrf.mxu0 }
 0xb63   :  { %v15236_v34 = vpop.f32.mrf.mxu1  ;;  %v15235_v48 = vadd.f32 %v15234_v7, %v15194_v27  ;;  %v15196_v39 = vadd.f32 %v15195_v62, %v15155_v24 }
 0xb64   :  { %v15197_v55 = vpop.f32.mrf.mxu0 }
 0xb65   :  { %v15238_v37 = vpop.f32.mrf.mxu1  ;;  %v15245_v9 = vmul.f32 0.01, %v15235_v48  ;;  %v15237_v11 = vadd.f32 %v15236_v34, %v15196_v39 }
 0xb66   :  { %v15198_v3 = vpop.f32.mrf.mxu0 }
 0xb67   :  { %v15239_v51 = vpop.f32.mrf.mxu1  ;;  %v20802_v12 = vmax.f32 %v15235_v48, %v15245_v9  ;;  %v15246_v58 = vmul.f32 0.01, %v15237_v11 }
 0xb69   :  { %v20804_v56 = vmax.f32 %v15237_v11, %v15246_v58 }
 0xb6a   :  { %20244 = dma.done.wait [#allocation7 + $0x4], 6144 }
 0xb6b   :  { %20245 = vsyncadd [#allocation7 + $0x4], 4294961152  ;;  %v15354_v17 = vpack.c.bf16 %v20788_v26, %v20788_v26  ;;  %v15356_v41 = vpack.c.bf16 %v15250_v4, %v15250_v4  ;;  %v20024_v60 = vld [vmem:[#allocation6 + $0x78] sm:$0xff]   ;;  %v20028_v49 = vld [vmem:[#allocation6 + $0x70] sm:$0xff]   ;;  %v15353_v32 = vpack.c.bf16 %v20786_v1, %v20786_v1  ;;  %v15358_v23 = vpack.c.bf16 %v20804_v56, %v20804_v56  ;;  %s20256_s5 = smov [#allocation13]  }
 0xb6c   :  { %v20025_v38 = vld [vmem:[#allocation6 + $0x38] sm:$0xff]   ;;  %17893 = vmatprep.subr.bf16.mxu0 %v20024_v60  ;;  %v20029_v59 = vld [vmem:[#allocation6 + $0x30] sm:$0xff]   ;;  %v20032_v46 = vld [vmem:[#allocation6 + $0x68] sm:$0xff]   ;;  %v15355_v33 = vpack.c.bf16 %v20796_v21, %v20796_v21  ;;  %v15357_v48 = vpack.c.bf16 %v20802_v12, %v20802_v12  ;;  %s15781_s6 = sshll.u32 %s20256_s5, 4  ;;  %s15782_s6 = int_to_ptr.vmem [resolvable:$true] %s15781_s6 }
 0xb6d   :  { %15686 = vmatprep.mubr.bf16.mxu0 %v15354_v17  ;;  %15726 = vmatprep.mubr.bf16.mxu1 %v15356_v41  ;;  %v20026_v0 = vld [vmem:[#allocation6 + $0xf8] sm:$0xff]   ;;  %v20030_v54 = vld [vmem:[#allocation6 + $0xf0] sm:$0xff]   ;;  %v20033_v26 = vld [vmem:[#allocation6 + $0x28] sm:$0xff]   ;;  %s20212_s9 = scalar_lea.vmem %s15782_s6, 128  ;;  %p20217_p8 = scmp.lt.s32.totalorder %s15782_s6, %s15782_s6 }
 0xb6e   :  { %17894 = vmatpush3.bf16.msra.mxu0 %v20025_v38  ;;  %v20027_v13 = vld [vmem:[#allocation6 + $0xb8] sm:$0xff]   ;;  %17915 = vmatprep.subr.bf16.mxu1 %v20026_v0  ;;  %v20031_v10 = vld [vmem:[#allocation6 + $0xb0] sm:$0xff]   ;;  %v20034_v5 = vld [vmem:[#allocation6 + $0xe8] sm:$0xff]   ;;  %p20213_p7 = scmp.ne.s32.totalorder %s15782_s6, %s20212_s9  ;;  %p20218_p9 = scmp.lt.s32.totalorder %s20212_s9, %s20212_s9 }
 0xb6f   :  { %17916 = vmatpush3.bf16.msra.mxu1 %v20027_v13  ;;  %17895 = vmatprep.subr.bf16.mxu0 %v20028_v49  ;;  %v20035_v44 = vld [vmem:[#allocation6 + $0xa8] sm:$0xff]   ;;  %v20036_v19 = vld [vmem:[#allocation6 + $0x60] sm:$0xff]   ;;  %v20040_v53 = vld [vmem:[#allocation6 + $0x58] sm:$0xff]  }
 0xb70   :  { %17917 = vmatprep.subr.bf16.mxu1 %v20030_v54  ;;  %v20037_v52 = vld [vmem:[#allocation6 + $0x20] sm:$0xff]   ;;  %v20041_v2 = vld [vmem:[#allocation6 + $0x18] sm:$0xff]   ;;  %v20044_v63 = vld [vmem:[#allocation6 + $0x50] sm:$0xff]   ;;  %p20219_p10 = por %p20218_p9, %p20217_p8 }
 0xb71   :  { %v20038_v20 = vld [vmem:[#allocation6 + $0xe0] sm:$0xff]   ;;  %v20042_v40 = vld [vmem:[#allocation6 + $0xd8] sm:$0xff]   ;;  %v20045_v61 = vld [vmem:[#allocation6 + $0x10] sm:$0xff]  }
 0xb72   :  { %17896 = vmatpush3.bf16.msra.mxu0 %v20029_v59  ;;  %v20039_v36 = vld [vmem:[#allocation6 + $0xa0] sm:$0xff]   ;;  %v20043_v16 = vld [vmem:[#allocation6 + $0x98] sm:$0xff]   ;;  %v20046_v14 = vld [vmem:[#allocation6 + $0xd0] sm:$0xff]   ;;  %p20220_p11 = pnand %p20219_p10, %p20213_p7 }
 0xb73   :  { %17918 = vmatpush3.bf16.msra.mxu1 %v20031_v10  ;;  %17897 = vmatprep.subr.bf16.mxu0 %v20032_v46  ;;  %v20047_v29 = vld [vmem:[#allocation6 + $0x90] sm:$0xff]   ;;  %v20048_v43 = vld [vmem:[#allocation6 + $0x48] sm:$0xff]   ;;  %v20052_v31 = vld [vmem:[#allocation6 + $0x40] sm:$0xff]  }
 0xb74   :  { %17919 = vmatprep.subr.bf16.mxu1 %v20034_v5  ;;  %v20049_v25 = vld [vmem:[#allocation6 + $0x8] sm:$0xff]   ;;  %v20053_v4 = vld [vmem:[#allocation6] sm:$0xff]   ;;  %v20056_v15 = vld [vmem:[#allocation6 + $0x178] sm:$0xff]  }
 0xb75   :  { %v20050_v30 = vld [vmem:[#allocation6 + $0xc8] sm:$0xff]   ;;  %v20054_v28 = vld [vmem:[#allocation6 + $0xc0] sm:$0xff]   ;;  %v20057_v6 = vld [vmem:[#allocation6 + $0x138] sm:$0xff]  }
 0xb76   :  { %17898 = vmatpush3.bf16.msra.mxu0 %v20033_v26  ;;  %v20051_v47 = vld [vmem:[#allocation6 + $0x88] sm:$0xff]   ;;  %v20055_v50 = vld [vmem:[#allocation6 + $0x80] sm:$0xff]   ;;  %v20058_v18 = vld [vmem:[#allocation6 + $0x170] sm:$0xff]  }
 0xb77   :  { %17920 = vmatpush3.bf16.msra.mxu1 %v20035_v44  ;;  %17899 = vmatprep.subr.bf16.mxu0 %v20036_v19  ;;  %v20059_v42 = vld [vmem:[#allocation6 + $0x130] sm:$0xff]   ;;  %v20060_v1 = vld [vmem:[#allocation6 + $0x168] sm:$0xff]   ;;  %v20062_v45 = vld [vmem:[#allocation6 + $0x160] sm:$0xff]  }
 0xb78   :  { %17921 = vmatprep.subr.bf16.mxu1 %v20038_v20  ;;  %v20061_v57 = vld [vmem:[#allocation6 + $0x128] sm:$0xff]   ;;  %v20063_v22 = vld [vmem:[#allocation6 + $0x120] sm:$0xff]   ;;  %v20064_v8 = vld [vmem:[#allocation6 + $0x158] sm:$0xff]  }
 0xb79   :  { %v20065_v21 = vld [vmem:[#allocation6 + $0x118] sm:$0xff]   ;;  %v20066_v35 = vld [vmem:[#allocation6 + $0x150] sm:$0xff]   ;;  %v20068_v24 = vld [vmem:[#allocation6 + $0x148] sm:$0xff]  }
 0xb7a   :  { %17900 = vmatpush3.bf16.msra.mxu0 %v20037_v52  ;;  %v20067_v7 = vld [vmem:[#allocation6 + $0x110] sm:$0xff]   ;;  %v20069_v27 = vld [vmem:[#allocation6 + $0x108] sm:$0xff]   ;;  %v20070_v62 = vld [vmem:[#allocation6 + $0x140] sm:$0xff]  }
 0xb7b   :  { %17922 = vmatpush3.bf16.msra.mxu1 %v20039_v36  ;;  %17901 = vmatprep.subr.bf16.mxu0 %v20040_v53  ;;  %v20071_v34 = vld [vmem:[#allocation6 + $0x100] sm:$0xff]   ;;  %v17839_v17 = vld [vmem:[#allocation11 + $0x24] ss:$0 sm:$0xff] }
 0xb7c   :  { %17923 = vmatprep.subr.bf16.mxu1 %v20042_v40 }
 0xb7e   :  { %17902 = vmatpush3.bf16.msra.mxu0 %v20041_v2 }
 0xb7f   :  { %17924 = vmatpush3.bf16.msra.mxu1 %v20043_v16  ;;  %17903 = vmatprep.subr.bf16.mxu0 %v20044_v63 }
 0xb80   :  { %17925 = vmatprep.subr.bf16.mxu1 %v20046_v14 }
 0xb82   :  { %17904 = vmatpush3.bf16.msra.mxu0 %v20045_v61 }
 0xb83   :  { %17926 = vmatpush3.bf16.msra.mxu1 %v20047_v29  ;;  %17905 = vmatprep.subr.bf16.mxu0 %v20048_v43 }
 0xb84   :  { %17927 = vmatprep.subr.bf16.mxu1 %v20050_v30 }
 0xb86   :  { %17906 = vmatpush3.bf16.msra.mxu0 %v20049_v25 }
 0xb87   :  { %17928 = vmatpush3.bf16.msra.mxu1 %v20051_v47  ;;  %17907 = vmatprep.subr.bf16.mxu0 %v20052_v31 }
 0xb88   :  { %17929 = vmatprep.subr.bf16.mxu1 %v20054_v28 }
 0xb8a   :  { %17908 = vmatpush3.bf16.msra.mxu0 %v20053_v4 }
 0xb8b   :  { %17930 = vmatpush3.bf16.msra.mxu1 %v20055_v50  ;;  %17937 = vmatprep.subr.bf16.mxu0 %v20056_v15 }
 0xb8d   :  { %15687 = vmatmul.mubr.bf16.vlgmr.msra.gmra.mxu0 %v15353_v32 }
 0xb8e   :  { %17938 = vmatpush3.bf16.msra.mxu0 %v20057_v6  ;;  %15766 = vmatprep.mubr.bf16.mxu0 %v15358_v23 }
 0xb8f   :  { %15727 = vmatmul.mubr.bf16.vlgmr.msra.gmra.mxu1 %v15355_v33  ;;  %17939 = vmatprep.subr.bf16.mxu0 %v20058_v18 }
 0xb92   :  { %17940 = vmatpush3.bf16.msra.mxu0 %v20059_v42 }
 0xb93   :  { %17941 = vmatprep.subr.bf16.mxu0 %v20060_v1 }
 0xb96   :  { %17942 = vmatpush3.bf16.msra.mxu0 %v20061_v57 }
 0xb97   :  { %17943 = vmatprep.subr.bf16.mxu0 %v20062_v45 }
 0xb9a   :  { %17944 = vmatpush3.bf16.msra.mxu0 %v20063_v22 }
 0xb9b   :  { %17945 = vmatprep.subr.bf16.mxu0 %v20064_v8 }
 0xb9e   :  { %17946 = vmatpush3.bf16.msra.mxu0 %v20065_v21 }
 0xb9f   :  { %17947 = vmatprep.subr.bf16.mxu0 %v20066_v35 }
 0xba2   :  { %17948 = vmatpush3.bf16.msra.mxu0 %v20067_v7 }
 0xba3   :  { %17949 = vmatprep.subr.bf16.mxu0 %v20068_v24 }
 0xba6   :  { %17950 = vmatpush3.bf16.msra.mxu0 %v20069_v27 }
 0xba7   :  { %17951 = vmatprep.subr.bf16.mxu0 %v20070_v62 }
 0xbaa   :  { %17952 = vmatpush3.bf16.msra.mxu0 %v20071_v34 }
 0xbad   :  { %15767 = vmatmul.mubr.bf16.vlgmr.msra.gmra.mxu0 %v15357_v48 }
 0xc4d   :  { %v17909_v39 = vpop.f32.mrf.mxu0 }
 0xc4f   :  { %v17910_v55 = vpop.f32.mrf.mxu0  ;;  %v17931_v37 = vpop.f32.mrf.mxu1 }
 0xc50   :  { %v17911_v56 = vadd.f32 %v17910_v55, %v17909_v39 }
 0xc51   :  { %v17912_v9 = vpop.f32.mrf.mxu0  ;;  %v17932_v11 = vpop.f32.mrf.mxu1 }
 0xc52   :  { %v15689_v41 = vadd.f32 %v17911_v56, %v17839_v17  ;;  %v17933_v60 = vadd.f32 %v17932_v11, %v17931_v37 }
 0xc53   :  { %v17913_v3 = vpop.f32.mrf.mxu0  ;;  %v17934_v51 = vpop.f32.mrf.mxu1 }
 0xc54   :  { %v15729_v13 = vadd.f32 %v17933_v60, %v15689_v41 }
 0xc55   :  { %v17935_v58 = vpop.f32.mrf.mxu1 }
 0xc6d   :  { %v17953_v38 = vpop.f32.mrf.mxu0 }
 0xc6f   :  { %v17954_v0 = vpop.f32.mrf.mxu0 }
 0xc70   :  { %v17955_v12 = vadd.f32 %v17954_v0, %v17953_v38 }
 0xc71   :  { %v17956_v49 = vpop.f32.mrf.mxu0 }
 0xc72   :  { %v15769_v59 = vadd.f32 %v17955_v12, %v15729_v13 }
 0xc73   :  { %v17957_v54 = vpop.f32.mrf.mxu0 }
 0xc74   :  { %15774 = vst [vmem:[#allocation13] sm:$0xff] %v15769_v59 }
 0xc75   :  { %20223 = shalt.err (!%p20220_p11)
}
 0xc76   :  { %15784 = dma.vmem_to_hbm [thread:$0]  %s15782_s6, 128, %s20826_s7, [#allocation10]  }
 0xc77   :  { %20246 = dma.done.wait [#allocation10], 128  }
 0xc78   :  { %20247 = vsyncadd [#allocation10], 4294967168 }
 0xc79   :  { %15788 = vsyncpa [#allocation9], 1 }
 0xc7a   :  { %15789 = vsyncpa [#allocation12], 1 }
 0xc7b   :  { %15790 = vsyncpa [#allocation10], 1 }
 0xc7c   :  { %15791 = vsyncmov [#allocation7] }
 0xc7f   :  { %s15792_s12 = vpop.sfrf %15791 }
 0xc80   :  { %p17888_p12 = scmp.ne.s32.totalorder %s15792_s12, 0 }
 0xc82   :  { %15796 = shalt.err (%p17888_p12)  }
 0xc83   :  { %15798 = vsyncmov [#allocation7 + $0x1] }
 0xc86   :  { %s15799_s13 = vpop.sfrf %15798 }
 0xc87   :  { %p17889_p13 = scmp.ne.s32.totalorder %s15799_s13, 0 }
 0xc89   :  { %15803 = shalt.err (%p17889_p13)  }
 0xc8a   :  { %15805 = vsyncmov [#allocation7 + $0x2] }
 0xc8d   :  { %s15806_s14 = vpop.sfrf %15805 }
 0xc8e   :  { %p17890_p0 = scmp.ne.s32.totalorder %s15806_s14, 0 }
 0xc90   :  { %15810 = shalt.err (%p17890_p0)  }
 0xc91   :  { %15812 = vsyncmov [#allocation7 + $0x3] }
 0xc94   :  { %s15813_s0 = vpop.sfrf %15812 }
 0xc95   :  { %p17891_p1 = scmp.ne.s32.totalorder %s15813_s0, 0 }
 0xc97   :  { %15817 = shalt.err (%p17891_p1)  }
 0xc98   :  { %15819 = vsyncmov [#allocation7 + $0x4] }
 0xc9b   :  { %s15820_s7 = vpop.sfrf %15819 }
 0xc9c   :  { %p17892_p2 = scmp.ne.s32.totalorder %s15820_s7, 0 }
 0xc9e   :  { %15824 = shalt.err (%p17892_p2)  }

</bundles_post_ra>
